<compile_context>
chip_gen: v7x
topology: tpu7x:2x2x1
jax: 0.10.0
libtpu: 0.0.40
codegen_flags: <defaults>
</compile_context>

<pallas_src>
import functools
import math

import jax
import jax.numpy as jnp
from jax.experimental import pallas as pl
from jax.experimental.pallas import tpu as pltpu

NEG_INF = -1e9

# ----------------------------- hyperparameters -------------------------------
MODEL_DIM = 32
FF_DIM = 64
CLASSIFIER_DIM = 32
LAYERS_NUM = 2
HEAD_NUM = 2
N_MODE = 3
MAN_PER_MODE = 2
TIME_PREDICTION = "classification"
PROB_OUTPUT = False          # -> output_dim = 2 (utils.prob_activation_func not needed)
MULTI_MODAL = True
MAN_DEC_IN = True            # -> decoder_in_dim = 2 + 3 = 5
MAX_IN_SEQ_LEN = 16
TGT_SEQ_LEN = 8
FEATURE_SIZE = 4             # input_dim
MAP_FEATURES = 4             # map_dim
USE_MAP_FEATURES = True

DECODER_IN_DIM = 2 + (3 if MAN_DEC_IN else 0)
OUTPUT_DIM = 5 if PROB_OUTPUT else 2
MAN_OUTPUT_DIM = (1 + 3 * MAN_PER_MODE + TGT_SEQ_LEN) * N_MODE  # classification -> 45
DEC_MAN_FC1_IN = (128 if USE_MAP_FEATURES else 0) + MAX_IN_SEQ_LEN * MODEL_DIM
HEAD_DIM = MODEL_DIM // HEAD_NUM

ENC_PER_LAYER = 12   # packed tensors per encoder layer
DEC_PER_LAYER = 20   # packed tensors per decoder layer

# TODO(synk): utils.prob_activation_func is not defined in the source repo; PROB_OUTPUT=False path implemented.


# ------------------------- in-kernel building blocks --------------------------
def _layernorm(x, g, b, eps=1e-5):
    mu = jnp.mean(x, axis=-1, keepdims=True)
    var = jnp.mean(jnp.square(x - mu), axis=-1, keepdims=True)
    return (x - mu) * jax.lax.rsqrt(var + eps) * g + b


def _softmax_rows(s):
    m = jnp.max(s, axis=-1, keepdims=True)
    p = jnp.exp(s - m)
    inv = pl.reciprocal(jnp.sum(p, axis=-1, keepdims=True), approx=True)
    return p * inv


def _attention(q2d, kv2d, sq, sk, wo, bo, bias_fn):
    """Multi-head attention over pre-projected operands, fully unrolled (B, H static).

    q2d:  (B*sq, D)   already q-scaled (scale folded into Wq at pack time)
    kv2d: (B*sk, 2D)  k in columns [0:D), v in columns [D:2D)
    wo:   (D, D), bo: (1, D).  bias_fn(b) -> additive bias broadcastable to (sq, sk).
    Output projection is folded per head: out = sum_h o_h @ Wo[h*Dh:(h+1)*Dh, :] + bo,
    which avoids any head-concat / relayout.
    """
    bsz = q2d.shape[0] // sq
    outs = []
    for b in range(bsz):
        acc = bo
        for h in range(HEAD_NUM):
            q = q2d[b * sq:(b + 1) * sq, h * HEAD_DIM:(h + 1) * HEAD_DIM]
            k = kv2d[b * sk:(b + 1) * sk, h * HEAD_DIM:(h + 1) * HEAD_DIM]
            v = kv2d[b * sk:(b + 1) * sk,
                     MODEL_DIM + h * HEAD_DIM:MODEL_DIM + (h + 1) * HEAD_DIM]
            s = jnp.dot(q, k.T, preferred_element_type=jnp.float32) + bias_fn(b)
            p = _softmax_rows(s)
            o = jnp.dot(p, v, preferred_element_type=jnp.float32)          # (sq, Dh)
            acc = acc + jnp.dot(o, wo[h * HEAD_DIM:(h + 1) * HEAD_DIM, :],
                                preferred_element_type=jnp.float32)
        outs.append(acc)
    return jnp.concatenate(outs, axis=0)                                    # (B*sq, D)


# ------------------------------ fused kernel 1 --------------------------------
def _encoder_kernel(*refs):
    """Encoder embedding + pos-enc + LAYERS_NUM encoder layers + map FF, one program."""
    n_w = 4 + ENC_PER_LAYER * LAYERS_NUM
    x_ref, pad_ref, pe_ref, map_ref = refs[:4]
    w = refs[4:4 + n_w]
    enc_out_ref, map_out_ref = refs[4 + n_w:]

    emb_w, emb_b, map_w, map_b = w[:4]

    pad = pad_ref[...]                         # (B, S)  1.0 where padded
    key_bias = pad * NEG_INF                   # additive key-padding bias

    h = jnp.dot(x_ref[...], emb_w[...], preferred_element_type=jnp.float32) + emb_b[...]
    h = h + pe_ref[...]                        # (B*S, D)   (dropout = identity)

    for l in range(LAYERS_NUM):
        (wqkv, bqkv, wo, bo, ln1g, ln1b,
         f1w, f1b, f2w, f2b, ln2g, ln2b) = w[4 + l * ENC_PER_LAYER:
                                             4 + (l + 1) * ENC_PER_LAYER]
        # fused QKV projection (96-wide)
        qkv = jnp.dot(h, wqkv[...], preferred_element_type=jnp.float32) + bqkv[...]
        attn = _attention(qkv[:, :MODEL_DIM], qkv[:, MODEL_DIM:],
                          MAX_IN_SEQ_LEN, MAX_IN_SEQ_LEN, wo[...], bo[...],
                          lambda b: key_bias[b:b + 1, :])
        h = _layernorm(h + attn, ln1g[...], ln1b[...])
        ff = jnp.maximum(
            jnp.dot(h, f1w[...], preferred_element_type=jnp.float32) + f1b[...], 0.0)
        ff = jnp.dot(ff, f2w[...], preferred_element_type=jnp.float32) + f2b[...]
        h = _layernorm(h + ff, ln2g[...], ln2b[...])

    enc_out_ref[...] = h.astype(enc_out_ref.dtype)

    mo = jnp.dot(map_ref[...], map_w[...], preferred_element_type=jnp.float32) + map_b[...]
    map_out_ref[...] = jnp.maximum(mo, 0.0).astype(map_out_ref.dtype)


# ------------------------------ fused kernel 2 --------------------------------
def _decoder_kernel(*refs):
    """Manoeuvre decoder + trajectory decoder (+ fused lk/rlc/llc heads), one program."""
    n_w = 2 + DEC_PER_LAYER * LAYERS_NUM + 6
    enc_ref, man_in_ref, y_ref, pad_ref, ymask_ref, pe_ref = refs[:6]
    w = refs[6:6 + n_w]
    man_out_ref, traj_out_ref = refs[6 + n_w:]

    demb_w, demb_b = w[:2]
    fc1_w, fc1_b, fc2_w, fc2_b, head_w, head_b = w[2 + DEC_PER_LAYER * LAYERS_NUM:]

    pad = pad_ref[...]
    mem_bias = pad * NEG_INF                   # (B, S) memory key-padding bias
    ymask = ymask_ref[...]                     # (T, T) additive causal mask
    enc = enc_ref[...]                         # (B*S, D)

    t = jnp.dot(y_ref[...], demb_w[...], preferred_element_type=jnp.float32) + demb_b[...]
    t = t + pe_ref[...]                        # (B*T, D)

    for l in range(LAYERS_NUM):
        (sa_wqkv, sa_bqkv, sa_wo, sa_bo, ln1g, ln1b,
         ca_wq, ca_bq, ca_wkv, ca_bkv, ca_wo, ca_bo, ln2g, ln2b,
         f1w, f1b, f2w, f2b, ln3g, ln3b) = w[2 + l * DEC_PER_LAYER:
                                             2 + (l + 1) * DEC_PER_LAYER]
        # masked self-attention
        qkv = jnp.dot(t, sa_wqkv[...], preferred_element_type=jnp.float32) + sa_bqkv[...]
        sa = _attention(qkv[:, :MODEL_DIM], qkv[:, MODEL_DIM:],
                        TGT_SEQ_LEN, TGT_SEQ_LEN, sa_wo[...], sa_bo[...],
                        lambda b: ymask)
        t = _layernorm(t + sa, ln1g[...], ln1b[...])
        # cross-attention over encoder memory
        q2d = jnp.dot(t, ca_wq[...], preferred_element_type=jnp.float32) + ca_bq[...]
        kv2d = jnp.dot(enc, ca_wkv[...], preferred_element_type=jnp.float32) + ca_bkv[...]
        ca = _attention(q2d, kv2d, TGT_SEQ_LEN, MAX_IN_SEQ_LEN, ca_wo[...], ca_bo[...],
                        lambda b: mem_bias[b:b + 1, :])
        t = _layernorm(t + ca, ln2g[...], ln2b[...])
        # feed-forward
        ff = jnp.maximum(
            jnp.dot(t, f1w[...], preferred_element_type=jnp.float32) + f1b[...], 0.0)
        ff = jnp.dot(ff, f2w[...], preferred_element_type=jnp.float32) + f2b[...]
        t = _layernorm(t + ff, ln3g[...], ln3b[...])

    # fused lk/rlc/llc trajectory heads: (B*T, D) @ (D, 3*OUTPUT_DIM)
    traj_out_ref[...] = (jnp.dot(t, head_w[...], preferred_element_type=jnp.float32)
                         + head_b[...]).astype(traj_out_ref.dtype)

    # manoeuvre branch: fc1 + relu + fc2 fused
    mh = jnp.maximum(
        jnp.dot(man_in_ref[...], fc1_w[...], preferred_element_type=jnp.float32)
        + fc1_b[...], 0.0)
    man_out_ref[...] = (jnp.dot(mh, fc2_w[...], preferred_element_type=jnp.float32)
                        + fc2_b[...]).astype(man_out_ref.dtype)


# ----------------------------- parameter init --------------------------------
def _init_linear(key, in_dim, out_dim):
    kw, kb = jax.random.split(key)
    return {"w": jax.random.normal(kw, (in_dim, out_dim), jnp.float32) * 0.02,
            "b": jax.random.normal(kb, (out_dim,), jnp.float32) * 0.02}


def _init_attn(key, d):
    ks = jax.random.split(key, 4)
    q = _init_linear(ks[0], d, d); k = _init_linear(ks[1], d, d)
    v = _init_linear(ks[2], d, d); o = _init_linear(ks[3], d, d)
    return {"wq": q["w"], "bq": q["b"], "wk": k["w"], "bk": k["b"],
            "wv": v["w"], "bv": v["b"], "wo": o["w"], "bo": o["b"]}


def _init_enc_layer(key, d, ff):
    ks = jax.random.split(key, 3)
    l1 = _init_linear(ks[1], d, ff); l2 = _init_linear(ks[2], ff, d)
    return {"self_attn": _init_attn(ks[0], d),
            "ff1_w": l1["w"], "ff1_b": l1["b"], "ff2_w": l2["w"], "ff2_b": l2["b"],
            "ln1_g": jnp.ones((d,)), "ln1_b": jnp.zeros((d,)),
            "ln2_g": jnp.ones((d,)), "ln2_b": jnp.zeros((d,))}


def _init_dec_layer(key, d, ff):
    ks = jax.random.split(key, 4)
    l1 = _init_linear(ks[2], d, ff); l2 = _init_linear(ks[3], ff, d)
    return {"self_attn": _init_attn(ks[0], d), "cross_attn": _init_attn(ks[1], d),
            "ff1_w": l1["w"], "ff1_b": l1["b"], "ff2_w": l2["w"], "ff2_b": l2["b"],
            "ln1_g": jnp.ones((d,)), "ln1_b": jnp.zeros((d,)),
            "ln2_g": jnp.ones((d,)), "ln2_b": jnp.zeros((d,)),
            "ln3_g": jnp.ones((d,)), "ln3_b": jnp.zeros((d,))}


def init_params(key):
    ks = jax.random.split(key, 16)
    return {
        "enc_emb": _init_linear(ks[0], FEATURE_SIZE, MODEL_DIM),
        "dec_emb": _init_linear(ks[1], DECODER_IN_DIM, MODEL_DIM),
        "map_ff": _init_linear(ks[2], MAP_FEATURES * 15, 128),
        "dec_man_fc1": _init_linear(ks[3], DEC_MAN_FC1_IN, CLASSIFIER_DIM),
        "dec_man_fc2": _init_linear(ks[4], CLASSIFIER_DIM, MAN_OUTPUT_DIM),
        "lk_fc": _init_linear(ks[5], MODEL_DIM, OUTPUT_DIM),
        "rlc_fc": _init_linear(ks[6], MODEL_DIM, OUTPUT_DIM),
        "llc_fc": _init_linear(ks[7], MODEL_DIM, OUTPUT_DIM),
        "enc_layers": [_init_enc_layer(k, MODEL_DIM, FF_DIM)
                       for k in jax.random.split(ks[8], LAYERS_NUM)],
        "dec_layers": [_init_dec_layer(k, MODEL_DIM, FF_DIM)
                       for k in jax.random.split(ks[9], LAYERS_NUM)],
    }


def pack_params(params):
    """Pack weights into the flat lists the two fused kernels expect.

    Fuses Wq/Wk/Wv into (D, 3D), folds the 1/sqrt(head_dim) scale into Wq/bq,
    fuses lk/rlc/llc heads into one (D, 3*OUTPUT_DIM) matrix, reshapes biases/LN
    params to (1, N). Done once, outside jit.
    """
    scale = 1.0 / math.sqrt(HEAD_DIM)

    def row(v):
        return v.reshape(1, -1)

    def qkv_pack(a):
        wqkv = jnp.concatenate([a["wq"] * scale, a["wk"], a["wv"]], axis=1)
        bqkv = jnp.concatenate([a["bq"] * scale, a["bk"], a["bv"]]).reshape(1, -1)
        return wqkv, bqkv

    enc_w = [params["enc_emb"]["w"], row(params["enc_emb"]["b"]),
             params["map_ff"]["w"], row(params["map_ff"]["b"])]
    for lp in params["enc_layers"]:
        wqkv, bqkv = qkv_pack(lp["self_attn"])
        enc_w += [wqkv, bqkv, lp["self_attn"]["wo"], row(lp["self_attn"]["bo"]),
                  row(lp["ln1_g"]), row(lp["ln1_b"]),
                  lp["ff1_w"], row(lp["ff1_b"]), lp["ff2_w"], row(lp["ff2_b"]),
                  row(lp["ln2_g"]), row(lp["ln2_b"])]

    dec_w = [params["dec_emb"]["w"], row(params["dec_emb"]["b"])]
    for lp in params["dec_layers"]:
        sa_wqkv, sa_bqkv = qkv_pack(lp["self_attn"])
        ca = lp["cross_attn"]
        ca_wkv = jnp.concatenate([ca["wk"], ca["wv"]], axis=1)
        ca_bkv = jnp.concatenate([ca["bk"], ca["bv"]]).reshape(1, -1)
        dec_w += [sa_wqkv, sa_bqkv, lp["self_attn"]["wo"], row(lp["self_attn"]["bo"]),
                  row(lp["ln1_g"]), row(lp["ln1_b"]),
                  ca["wq"] * scale, row(ca["bq"] * scale), ca_wkv, ca_bkv,
                  ca["wo"], row(ca["bo"]), row(lp["ln2_g"]), row(lp["ln2_b"]),
                  lp["ff1_w"], row(lp["ff1_b"]), lp["ff2_w"], row(lp["ff2_b"]),
                  row(lp["ln3_g"]), row(lp["ln3_b"])]

    head_w = jnp.concatenate([params["lk_fc"]["w"], params["rlc_fc"]["w"],
                              params["llc_fc"]["w"]], axis=1)
    head_b = jnp.concatenate([params["lk_fc"]["b"], params["rlc_fc"]["b"],
                              params["llc_fc"]["b"]]).reshape(1, -1)
    dec_w += [params["dec_man_fc1"]["w"], row(params["dec_man_fc1"]["b"]),
              params["dec_man_fc2"]["w"], row(params["dec_man_fc2"]["b"]),
              head_w, head_b]
    return {"enc": enc_w, "dec": dec_w}


def make_pos_encoding(max_len, dim):
    pos = jnp.arange(max_len, dtype=jnp.float32)[:, None]
    div = jnp.exp(jnp.arange(0, dim, 2, dtype=jnp.float32) * (-math.log(10000.0) / dim))
    pe = jnp.zeros((max_len, dim), jnp.float32)
    pe = pe.at[:, 0::2].set(jnp.sin(pos * div))
    pe = pe.at[:, 1::2].set(jnp.cos(pos * div))
    return pe


# -------------------------------- POVL forward -------------------------------
def povl_forward(packed, pos_enc, x, y, map_feat, input_padding_mask, y_mask):
    B, S, _ = x.shape
    T = y.shape[2]
    D = MODEL_DIM

    pad_f = input_padding_mask.astype(jnp.float32)          # (B, S) 1.0 = padded
    pe_in = jnp.tile(pos_enc[:S], (B, 1))                    # (B*S, D)
    pe_tgt = jnp.tile(pos_enc[:T], (B, 1))                   # (B*T, D)
    x2d = x.reshape(B * S, FEATURE_SIZE)
    map_flat = map_feat.reshape(B, -1)
    y0 = y[:, 0, :, :DECODER_IN_DIM].reshape(B * T, DECODER_IN_DIM)

    vmem = pl.BlockSpec(memory_space=pltpu.MemorySpace.VMEM)

    # --- fused kernel 1: encoder + map encoder ---
    enc_inputs = [x2d, pad_f, pe_in, map_flat] + packed["enc"]
    enc_out, map_out = pl.pallas_call(
        _encoder_kernel,
        out_shape=(jax.ShapeDtypeStruct((B * S, D), jnp.float32),
                   jax.ShapeDtypeStruct((B, 128), jnp.float32)),
        in_specs=[vmem] * len(enc_inputs),
        out_specs=(vmem, vmem),
    )(*enc_inputs)

    # manoeuvre-decoder input: mask padded steps, flatten, append map features (XLA glue)
    not_pad = 1.0 - pad_f
    man_in = jnp.concatenate(
        [(enc_out.reshape(B, S, D) * not_pad[..., None]).reshape(B, S * D), map_out],
        axis=1)                                              # (B, 640)

    # --- fused kernel 2: manoeuvre decoder + trajectory decoder + heads ---
    dec_inputs = [enc_out, man_in, y0, pad_f, y_mask, pe_tgt] + packed["dec"]
    man_pred, traj6 = pl.pallas_call(
        _decoder_kernel,
        out_shape=(jax.ShapeDtypeStruct((B, MAN_OUTPUT_DIM), jnp.float32),
                   jax.ShapeDtypeStruct((B * T, 3 * OUTPUT_DIM), jnp.float32)),
        in_specs=[vmem] * len(dec_inputs),
        out_specs=(vmem, vmem),
    )(*dec_inputs)

    # columns of traj6 are [lk(2) | rlc(2) | llc(2)] -> (B, 3, T, OUTPUT_DIM)
    traj_pred = traj6.reshape(B, T, 3, OUTPUT_DIM).transpose(0, 2, 1, 3)
    return {"traj_pred": traj_pred, "man_pred": man_pred}


# ------------------------------------ main ------------------------------------
if __name__ == "__main__":
    key = jax.random.PRNGKey(0)
    kp, kx, ky, km = jax.random.split(key, 4)

    B = 2
    params = init_params(kp)
    packed = pack_params(params)               # one-time host-side packing
    pos_enc = make_pos_encoding(100, MODEL_DIM)

    x = jax.random.normal(kx, (B, MAX_IN_SEQ_LEN, FEATURE_SIZE), jnp.float32)
    y = jax.random.normal(ky, (B, 3, TGT_SEQ_LEN, DECODER_IN_DIM), jnp.float32)
    map_feat = jax.random.normal(km, (B, 15, MAP_FEATURES), jnp.float32)

    # pad the last 3 timesteps of batch element 1
    input_padding_mask = jnp.zeros((B, MAX_IN_SEQ_LEN), jnp.bool_)
    input_padding_mask = input_padding_mask.at[1, -3:].set(True)

    # causal target mask (additive, -inf above the diagonal)
    idx = jnp.arange(TGT_SEQ_LEN)
    y_mask = jnp.where(idx[None, :] > idx[:, None], NEG_INF, 0.0).astype(jnp.float32)

    fwd = jax.jit(povl_forward)
    out = fwd(packed, pos_enc, x, y, map_feat, input_padding_mask, y_mask)
    jax.block_until_ready(out)

    assert out["traj_pred"].shape == (B, 3, TGT_SEQ_LEN, OUTPUT_DIM)
    assert out["man_pred"].shape == (B, MAN_OUTPUT_DIM)
    assert bool(jnp.all(jnp.isfinite(out["traj_pred"]))) and bool(jnp.all(jnp.isfinite(out["man_pred"])))
    print("KERNEL_OK")
</pallas_src>

<mosaic_0001>
module attributes {stable_mosaic.version = 11 : i64} {
  func.func @_encoder_kernel(%arg0: memref<32x4xf32, #tpu.memory_space<vmem>>, %arg1: memref<2x16xf32, #tpu.memory_space<vmem>>, %arg2: memref<32x32xf32, #tpu.memory_space<vmem>>, %arg3: memref<2x60xf32, #tpu.memory_space<vmem>>, %arg4: memref<4x32xf32, #tpu.memory_space<vmem>>, %arg5: memref<1x32xf32, #tpu.memory_space<vmem>>, %arg6: memref<60x128xf32, #tpu.memory_space<vmem>>, %arg7: memref<1x128xf32, #tpu.memory_space<vmem>>, %arg8: memref<32x96xf32, #tpu.memory_space<vmem>>, %arg9: memref<1x96xf32, #tpu.memory_space<vmem>>, %arg10: memref<32x32xf32, #tpu.memory_space<vmem>>, %arg11: memref<1x32xf32, #tpu.memory_space<vmem>>, %arg12: memref<1x32xf32, #tpu.memory_space<vmem>>, %arg13: memref<1x32xf32, #tpu.memory_space<vmem>>, %arg14: memref<32x64xf32, #tpu.memory_space<vmem>>, %arg15: memref<1x64xf32, #tpu.memory_space<vmem>>, %arg16: memref<64x32xf32, #tpu.memory_space<vmem>>, %arg17: memref<1x32xf32, #tpu.memory_space<vmem>>, %arg18: memref<1x32xf32, #tpu.memory_space<vmem>>, %arg19: memref<1x32xf32, #tpu.memory_space<vmem>>, %arg20: memref<32x96xf32, #tpu.memory_space<vmem>>, %arg21: memref<1x96xf32, #tpu.memory_space<vmem>>, %arg22: memref<32x32xf32, #tpu.memory_space<vmem>>, %arg23: memref<1x32xf32, #tpu.memory_space<vmem>>, %arg24: memref<1x32xf32, #tpu.memory_space<vmem>>, %arg25: memref<1x32xf32, #tpu.memory_space<vmem>>, %arg26: memref<32x64xf32, #tpu.memory_space<vmem>>, %arg27: memref<1x64xf32, #tpu.memory_space<vmem>>, %arg28: memref<64x32xf32, #tpu.memory_space<vmem>>, %arg29: memref<1x32xf32, #tpu.memory_space<vmem>>, %arg30: memref<1x32xf32, #tpu.memory_space<vmem>>, %arg31: memref<1x32xf32, #tpu.memory_space<vmem>>, %arg32: memref<32x32xf32, #tpu.memory_space<vmem>>, %arg33: memref<2x128xf32, #tpu.memory_space<vmem>>) attributes {dimension_semantics = [], scalar_prefetch = 0 : i64, scratch_operands = 0 : i64, tpu.core_type = #tpu.core_type<tc>} {
    %c0 = arith.constant 0 : index
    %c0_0 = arith.constant 0 : index
    %0 = vector.load %arg1[%c0, %c0_0] : memref<2x16xf32, #tpu.memory_space<vmem>>, vector<2x16xf32>
    %cst = arith.constant -1.000000e+09 : f32
    %1 = vector.broadcast %cst : f32 to vector<2x16xf32>
    %2 = arith.mulf %0, %1 : vector<2x16xf32>
    %c0_1 = arith.constant 0 : index
    %c0_2 = arith.constant 0 : index
    %3 = vector.load %arg0[%c0_1, %c0_2] : memref<32x4xf32, #tpu.memory_space<vmem>>, vector<32x4xf32>
    %c0_3 = arith.constant 0 : index
    %c0_4 = arith.constant 0 : index
    %4 = vector.load %arg4[%c0_3, %c0_4] : memref<4x32xf32, #tpu.memory_space<vmem>>, vector<4x32xf32>
    %cst_5 = arith.constant dense<0.000000e+00> : vector<32x32xf32>
    %5 = tpu.matmul %3, %4, %cst_5 {dimension_numbers = #tpu.dot_dimension_numbers<[1], [0], [0], [1], [0, 0, 1, 1], [], []>} : vector<32x4xf32>, vector<4x32xf32>, vector<32x32xf32> -> vector<32x32xf32>
    %c0_6 = arith.constant 0 : index
    %c0_7 = arith.constant 0 : index
    %6 = vector.load %arg5[%c0_6, %c0_7] : memref<1x32xf32, #tpu.memory_space<vmem>>, vector<1x32xf32>
    %7 = vector.broadcast %6 : vector<1x32xf32> to vector<32x32xf32>
    %8 = arith.addf %5, %7 : vector<32x32xf32>
    %c0_8 = arith.constant 0 : index
    %c0_9 = arith.constant 0 : index
    %9 = vector.load %arg2[%c0_8, %c0_9] : memref<32x32xf32, #tpu.memory_space<vmem>>, vector<32x32xf32>
    %10 = arith.addf %8, %9 : vector<32x32xf32>
    %c0_10 = arith.constant 0 : index
    %c0_11 = arith.constant 0 : index
    %11 = vector.load %arg8[%c0_10, %c0_11] : memref<32x96xf32, #tpu.memory_space<vmem>>, vector<32x96xf32>
    %cst_12 = arith.constant dense<0.000000e+00> : vector<32x96xf32>
    %12 = tpu.matmul %10, %11, %cst_12 {dimension_numbers = #tpu.dot_dimension_numbers<[1], [0], [0], [1], [0, 0, 1, 1], [], []>} : vector<32x32xf32>, vector<32x96xf32>, vector<32x96xf32> -> vector<32x96xf32>
    %c0_13 = arith.constant 0 : index
    %c0_14 = arith.constant 0 : index
    %13 = vector.load %arg9[%c0_13, %c0_14] : memref<1x96xf32, #tpu.memory_space<vmem>>, vector<1x96xf32>
    %14 = vector.broadcast %13 : vector<1x96xf32> to vector<32x96xf32>
    %15 = arith.addf %12, %14 : vector<32x96xf32>
    %16 = vector.extract_strided_slice %15 {offsets = [0, 0], sizes = [32, 32], strides = [1, 1]} : vector<32x96xf32> to vector<32x32xf32>
    %17 = vector.extract_strided_slice %15 {offsets = [0, 32], sizes = [32, 64], strides = [1, 1]} : vector<32x96xf32> to vector<32x64xf32>
    %c0_15 = arith.constant 0 : index
    %c0_16 = arith.constant 0 : index
    %18 = vector.load %arg10[%c0_15, %c0_16] : memref<32x32xf32, #tpu.memory_space<vmem>>, vector<32x32xf32>
    %c0_17 = arith.constant 0 : index
    %c0_18 = arith.constant 0 : index
    %19 = vector.load %arg11[%c0_17, %c0_18] : memref<1x32xf32, #tpu.memory_space<vmem>>, vector<1x32xf32>
    %20 = vector.extract_strided_slice %16 {offsets = [0, 0], sizes = [16, 16], strides = [1, 1]} : vector<32x32xf32> to vector<16x16xf32>
    %21 = vector.extract_strided_slice %17 {offsets = [0, 0], sizes = [16, 16], strides = [1, 1]} : vector<32x64xf32> to vector<16x16xf32>
    %22 = vector.extract_strided_slice %17 {offsets = [0, 32], sizes = [16, 16], strides = [1, 1]} : vector<32x64xf32> to vector<16x16xf32>
    %23 = tpu.transpose %21, [1, 0] : vector<16x16xf32> -> vector<16x16xf32>
    %cst_19 = arith.constant dense<0.000000e+00> : vector<16x16xf32>
    %24 = tpu.matmul %20, %23, %cst_19 {dimension_numbers = #tpu.dot_dimension_numbers<[1], [0], [0], [1], [0, 0, 1, 1], [], []>} : vector<16x16xf32>, vector<16x16xf32>, vector<16x16xf32> -> vector<16x16xf32>
    %25 = vector.extract_strided_slice %2 {offsets = [0, 0], sizes = [1, 16], strides = [1, 1]} : vector<2x16xf32> to vector<1x16xf32>
    %26 = vector.broadcast %25 : vector<1x16xf32> to vector<16x16xf32>
    %27 = arith.addf %24, %26 : vector<16x16xf32>
    %cst_20 = arith.constant dense<0xFF800000> : vector<16xf32>
    %28 = vector.multi_reduction <maximumf>, %27, %cst_20 [1] : vector<16x16xf32> to vector<16xf32>
    %29 = vector.shape_cast %28 : vector<16xf32> to vector<16x1xf32>
    %30 = vector.broadcast %29 : vector<16x1xf32> to vector<16x16xf32>
    %31 = arith.subf %27, %30 : vector<16x16xf32>
    %32 = math.exp %31 : vector<16x16xf32>
    %cst_21 = arith.constant dense<0.000000e+00> : vector<16xf32>
    %33 = vector.multi_reduction <add>, %32, %cst_21 [1] : vector<16x16xf32> to vector<16xf32>
    %34 = vector.shape_cast %33 : vector<16xf32> to vector<16x1xf32>
    %35 = tpu.reciprocal %34 {approx = true} : vector<16x1xf32> -> vector<16x1xf32>
    %36 = vector.broadcast %35 : vector<16x1xf32> to vector<16x16xf32>
    %37 = arith.mulf %32, %36 : vector<16x16xf32>
    %cst_22 = arith.constant dense<0.000000e+00> : vector<16x16xf32>
    %38 = tpu.matmul %37, %22, %cst_22 {dimension_numbers = #tpu.dot_dimension_numbers<[1], [0], [0], [1], [0, 0, 1, 1], [], []>} : vector<16x16xf32>, vector<16x16xf32>, vector<16x16xf32> -> vector<16x16xf32>
    %39 = vector.extract_strided_slice %18 {offsets = [0, 0], sizes = [16, 32], strides = [1, 1]} : vector<32x32xf32> to vector<16x32xf32>
    %cst_23 = arith.constant dense<0.000000e+00> : vector<16x32xf32>
    %40 = tpu.matmul %38, %39, %cst_23 {dimension_numbers = #tpu.dot_dimension_numbers<[1], [0], [0], [1], [0, 0, 1, 1], [], []>} : vector<16x16xf32>, vector<16x32xf32>, vector<16x32xf32> -> vector<16x32xf32>
    %41 = vector.broadcast %19 : vector<1x32xf32> to vector<16x32xf32>
    %42 = arith.addf %41, %40 : vector<16x32xf32>
    %43 = vector.extract_strided_slice %16 {offsets = [0, 16], sizes = [16, 16], strides = [1, 1]} : vector<32x32xf32> to vector<16x16xf32>
    %44 = vector.extract_strided_slice %17 {offsets = [0, 16], sizes = [16, 16], strides = [1, 1]} : vector<32x64xf32> to vector<16x16xf32>
    %45 = vector.extract_strided_slice %17 {offsets = [0, 48], sizes = [16, 16], strides = [1, 1]} : vector<32x64xf32> to vector<16x16xf32>
    %46 = tpu.transpose %44, [1, 0] : vector<16x16xf32> -> vector<16x16xf32>
    %cst_24 = arith.constant dense<0.000000e+00> : vector<16x16xf32>
    %47 = tpu.matmul %43, %46, %cst_24 {dimension_numbers = #tpu.dot_dimension_numbers<[1], [0], [0], [1], [0, 0, 1, 1], [], []>} : vector<16x16xf32>, vector<16x16xf32>, vector<16x16xf32> -> vector<16x16xf32>
    %48 = vector.extract_strided_slice %2 {offsets = [0, 0], sizes = [1, 16], strides = [1, 1]} : vector<2x16xf32> to vector<1x16xf32>
    %49 = vector.broadcast %48 : vector<1x16xf32> to vector<16x16xf32>
    %50 = arith.addf %47, %49 : vector<16x16xf32>
    %cst_25 = arith.constant dense<0xFF800000> : vector<16xf32>
    %51 = vector.multi_reduction <maximumf>, %50, %cst_25 [1] : vector<16x16xf32> to vector<16xf32>
    %52 = vector.shape_cast %51 : vector<16xf32> to vector<16x1xf32>
    %53 = vector.broadcast %52 : vector<16x1xf32> to vector<16x16xf32>
    %54 = arith.subf %50, %53 : vector<16x16xf32>
    %55 = math.exp %54 : vector<16x16xf32>
    %cst_26 = arith.constant dense<0.000000e+00> : vector<16xf32>
    %56 = vector.multi_reduction <add>, %55, %cst_26 [1] : vector<16x16xf32> to vector<16xf32>
    %57 = vector.shape_cast %56 : vector<16xf32> to vector<16x1xf32>
    %58 = tpu.reciprocal %57 {approx = true} : vector<16x1xf32> -> vector<16x1xf32>
    %59 = vector.broadcast %58 : vector<16x1xf32> to vector<16x16xf32>
    %60 = arith.mulf %55, %59 : vector<16x16xf32>
    %cst_27 = arith.constant dense<0.000000e+00> : vector<16x16xf32>
    %61 = tpu.matmul %60, %45, %cst_27 {dimension_numbers = #tpu.dot_dimension_numbers<[1], [0], [0], [1], [0, 0, 1, 1], [], []>} : vector<16x16xf32>, vector<16x16xf32>, vector<16x16xf32> -> vector<16x16xf32>
    %62 = vector.extract_strided_slice %18 {offsets = [16, 0], sizes = [16, 32], strides = [1, 1]} : vector<32x32xf32> to vector<16x32xf32>
    %cst_28 = arith.constant dense<0.000000e+00> : vector<16x32xf32>
    %63 = tpu.matmul %61, %62, %cst_28 {dimension_numbers = #tpu.dot_dimension_numbers<[1], [0], [0], [1], [0, 0, 1, 1], [], []>} : vector<16x16xf32>, vector<16x32xf32>, vector<16x32xf32> -> vector<16x32xf32>
    %64 = arith.addf %42, %63 : vector<16x32xf32>
    %65 = vector.extract_strided_slice %16 {offsets = [16, 0], sizes = [16, 16], strides = [1, 1]} : vector<32x32xf32> to vector<16x16xf32>
    %66 = vector.extract_strided_slice %17 {offsets = [16, 0], sizes = [16, 16], strides = [1, 1]} : vector<32x64xf32> to vector<16x16xf32>
    %67 = vector.extract_strided_slice %17 {offsets = [16, 32], sizes = [16, 16], strides = [1, 1]} : vector<32x64xf32> to vector<16x16xf32>
    %68 = tpu.transpose %66, [1, 0] : vector<16x16xf32> -> vector<16x16xf32>
    %cst_29 = arith.constant dense<0.000000e+00> : vector<16x16xf32>
    %69 = tpu.matmul %65, %68, %cst_29 {dimension_numbers = #tpu.dot_dimension_numbers<[1], [0], [0], [1], [0, 0, 1, 1], [], []>} : vector<16x16xf32>, vector<16x16xf32>, vector<16x16xf32> -> vector<16x16xf32>
    %70 = vector.extract_strided_slice %2 {offsets = [1, 0], sizes = [1, 16], strides = [1, 1]} : vector<2x16xf32> to vector<1x16xf32>
    %71 = vector.broadcast %70 : vector<1x16xf32> to vector<16x16xf32>
    %72 = arith.addf %69, %71 : vector<16x16xf32>
    %cst_30 = arith.constant dense<0xFF800000> : vector<16xf32>
    %73 = vector.multi_reduction <maximumf>, %72, %cst_30 [1] : vector<16x16xf32> to vector<16xf32>
    %74 = vector.shape_cast %73 : vector<16xf32> to vector<16x1xf32>
    %75 = vector.broadcast %74 : vector<16x1xf32> to vector<16x16xf32>
    %76 = arith.subf %72, %75 : vector<16x16xf32>
    %77 = math.exp %76 : vector<16x16xf32>
    %cst_31 = arith.constant dense<0.000000e+00> : vector<16xf32>
    %78 = vector.multi_reduction <add>, %77, %cst_31 [1] : vector<16x16xf32> to vector<16xf32>
    %79 = vector.shape_cast %78 : vector<16xf32> to vector<16x1xf32>
    %80 = tpu.reciprocal %79 {approx = true} : vector<16x1xf32> -> vector<16x1xf32>
    %81 = vector.broadcast %80 : vector<16x1xf32> to vector<16x16xf32>
    %82 = arith.mulf %77, %81 : vector<16x16xf32>
    %cst_32 = arith.constant dense<0.000000e+00> : vector<16x16xf32>
    %83 = tpu.matmul %82, %67, %cst_32 {dimension_numbers = #tpu.dot_dimension_numbers<[1], [0], [0], [1], [0, 0, 1, 1], [], []>} : vector<16x16xf32>, vector<16x16xf32>, vector<16x16xf32> -> vector<16x16xf32>
    %84 = vector.extract_strided_slice %18 {offsets = [0, 0], sizes = [16, 32], strides = [1, 1]} : vector<32x32xf32> to vector<16x32xf32>
    %cst_33 = arith.constant dense<0.000000e+00> : vector<16x32xf32>
    %85 = tpu.matmul %83, %84, %cst_33 {dimension_numbers = #tpu.dot_dimension_numbers<[1], [0], [0], [1], [0, 0, 1, 1], [], []>} : vector<16x16xf32>, vector<16x32xf32>, vector<16x32xf32> -> vector<16x32xf32>
    %86 = vector.broadcast %19 : vector<1x32xf32> to vector<16x32xf32>
    %87 = arith.addf %86, %85 : vector<16x32xf32>
    %88 = vector.extract_strided_slice %16 {offsets = [16, 16], sizes = [16, 16], strides = [1, 1]} : vector<32x32xf32> to vector<16x16xf32>
    %89 = vector.extract_strided_slice %17 {offsets = [16, 16], sizes = [16, 16], strides = [1, 1]} : vector<32x64xf32> to vector<16x16xf32>
    %90 = vector.extract_strided_slice %17 {offsets = [16, 48], sizes = [16, 16], strides = [1, 1]} : vector<32x64xf32> to vector<16x16xf32>
    %91 = tpu.transpose %89, [1, 0] : vector<16x16xf32> -> vector<16x16xf32>
    %cst_34 = arith.constant dense<0.000000e+00> : vector<16x16xf32>
    %92 = tpu.matmul %88, %91, %cst_34 {dimension_numbers = #tpu.dot_dimension_numbers<[1], [0], [0], [1], [0, 0, 1, 1], [], []>} : vector<16x16xf32>, vector<16x16xf32>, vector<16x16xf32> -> vector<16x16xf32>
    %93 = vector.extract_strided_slice %2 {offsets = [1, 0], sizes = [1, 16], strides = [1, 1]} : vector<2x16xf32> to vector<1x16xf32>
    %94 = vector.broadcast %93 : vector<1x16xf32> to vector<16x16xf32>
    %95 = arith.addf %92, %94 : vector<16x16xf32>
    %cst_35 = arith.constant dense<0xFF800000> : vector<16xf32>
    %96 = vector.multi_reduction <maximumf>, %95, %cst_35 [1] : vector<16x16xf32> to vector<16xf32>
    %97 = vector.shape_cast %96 : vector<16xf32> to vector<16x1xf32>
    %98 = vector.broadcast %97 : vector<16x1xf32> to vector<16x16xf32>
    %99 = arith.subf %95, %98 : vector<16x16xf32>
    %100 = math.exp %99 : vector<16x16xf32>
    %cst_36 = arith.constant dense<0.000000e+00> : vector<16xf32>
    %101 = vector.multi_reduction <add>, %100, %cst_36 [1] : vector<16x16xf32> to vector<16xf32>
    %102 = vector.shape_cast %101 : vector<16xf32> to vector<16x1xf32>
    %103 = tpu.reciprocal %102 {approx = true} : vector<16x1xf32> -> vector<16x1xf32>
    %104 = vector.broadcast %103 : vector<16x1xf32> to vector<16x16xf32>
    %105 = arith.mulf %100, %104 : vector<16x16xf32>
    %cst_37 = arith.constant dense<0.000000e+00> : vector<16x16xf32>
    %106 = tpu.matmul %105, %90, %cst_37 {dimension_numbers = #tpu.dot_dimension_numbers<[1], [0], [0], [1], [0, 0, 1, 1], [], []>} : vector<16x16xf32>, vector<16x16xf32>, vector<16x16xf32> -> vector<16x16xf32>
    %107 = vector.extract_strided_slice %18 {offsets = [16, 0], sizes = [16, 32], strides = [1, 1]} : vector<32x32xf32> to vector<16x32xf32>
    %cst_38 = arith.constant dense<0.000000e+00> : vector<16x32xf32>
    %108 = tpu.matmul %106, %107, %cst_38 {dimension_numbers = #tpu.dot_dimension_numbers<[1], [0], [0], [1], [0, 0, 1, 1], [], []>} : vector<16x16xf32>, vector<16x32xf32>, vector<16x32xf32> -> vector<16x32xf32>
    %109 = arith.addf %87, %108 : vector<16x32xf32>
    %110 = tpu.concatenate %64, %109 in 0 : vector<16x32xf32>, vector<16x32xf32> -> vector<32x32xf32>
    %111 = arith.addf %10, %110 : vector<32x32xf32>
    %c0_39 = arith.constant 0 : index
    %c0_40 = arith.constant 0 : index
    %112 = vector.load %arg12[%c0_39, %c0_40] : memref<1x32xf32, #tpu.memory_space<vmem>>, vector<1x32xf32>
    %c0_41 = arith.constant 0 : index
    %c0_42 = arith.constant 0 : index
    %113 = vector.load %arg13[%c0_41, %c0_42] : memref<1x32xf32, #tpu.memory_space<vmem>>, vector<1x32xf32>
    %cst_43 = arith.constant dense<0.000000e+00> : vector<32xf32>
    %114 = vector.multi_reduction <add>, %111, %cst_43 [1] : vector<32x32xf32> to vector<32xf32>
    %115 = vector.shape_cast %114 : vector<32xf32> to vector<32x1xf32>
    %cst_44 = arith.constant 3.200000e+01 : f32
    %116 = vector.broadcast %cst_44 : f32 to vector<32x1xf32>
    %117 = arith.divf %115, %116 : vector<32x1xf32>
    %118 = vector.broadcast %117 : vector<32x1xf32> to vector<32x32xf32>
    %119 = arith.subf %111, %118 : vector<32x32xf32>
    %120 = arith.mulf %119, %119 : vector<32x32xf32>
    %cst_45 = arith.constant dense<0.000000e+00> : vector<32xf32>
    %121 = vector.multi_reduction <add>, %120, %cst_45 [1] : vector<32x32xf32> to vector<32xf32>
    %122 = vector.shape_cast %121 : vector<32xf32> to vector<32x1xf32>
    %cst_46 = arith.constant 3.200000e+01 : f32
    %123 = vector.broadcast %cst_46 : f32 to vector<32x1xf32>
    %124 = arith.divf %122, %123 : vector<32x1xf32>
    %125 = vector.broadcast %117 : vector<32x1xf32> to vector<32x32xf32>
    %126 = arith.subf %111, %125 : vector<32x32xf32>
    %cst_47 = arith.constant 9.99999974E-6 : f32
    %127 = vector.broadcast %cst_47 : f32 to vector<32x1xf32>
    %128 = arith.addf %124, %127 : vector<32x1xf32>
    %129 = math.rsqrt %128 : vector<32x1xf32>
    %130 = vector.broadcast %129 : vector<32x1xf32> to vector<32x32xf32>
    %131 = arith.mulf %126, %130 : vector<32x32xf32>
    %132 = vector.broadcast %112 : vector<1x32xf32> to vector<32x32xf32>
    %133 = arith.mulf %131, %132 : vector<32x32xf32>
    %134 = vector.broadcast %113 : vector<1x32xf32> to vector<32x32xf32>
    %135 = arith.addf %133, %134 : vector<32x32xf32>
    %c0_48 = arith.constant 0 : index
    %c0_49 = arith.constant 0 : index
    %136 = vector.load %arg14[%c0_48, %c0_49] : memref<32x64xf32, #tpu.memory_space<vmem>>, vector<32x64xf32>
    %cst_50 = arith.constant dense<0.000000e+00> : vector<32x64xf32>
    %137 = tpu.matmul %135, %136, %cst_50 {dimension_numbers = #tpu.dot_dimension_numbers<[1], [0], [0], [1], [0, 0, 1, 1], [], []>} : vector<32x32xf32>, vector<32x64xf32>, vector<32x64xf32> -> vector<32x64xf32>
    %c0_51 = arith.constant 0 : index
    %c0_52 = arith.constant 0 : index
    %138 = vector.load %arg15[%c0_51, %c0_52] : memref<1x64xf32, #tpu.memory_space<vmem>>, vector<1x64xf32>
    %139 = vector.broadcast %138 : vector<1x64xf32> to vector<32x64xf32>
    %140 = arith.addf %137, %139 : vector<32x64xf32>
    %cst_53 = arith.constant 0.000000e+00 : f32
    %141 = vector.broadcast %cst_53 : f32 to vector<32x64xf32>
    %142 = arith.maximumf %140, %141 : vector<32x64xf32>
    %c0_54 = arith.constant 0 : index
    %c0_55 = arith.constant 0 : index
    %143 = vector.load %arg16[%c0_54, %c0_55] : memref<64x32xf32, #tpu.memory_space<vmem>>, vector<64x32xf32>
    %cst_56 = arith.constant dense<0.000000e+00> : vector<32x32xf32>
    %144 = tpu.matmul %142, %143, %cst_56 {dimension_numbers = #tpu.dot_dimension_numbers<[1], [0], [0], [1], [0, 0, 1, 1], [], []>} : vector<32x64xf32>, vector<64x32xf32>, vector<32x32xf32> -> vector<32x32xf32>
    %c0_57 = arith.constant 0 : index
    %c0_58 = arith.constant 0 : index
    %145 = vector.load %arg17[%c0_57, %c0_58] : memref<1x32xf32, #tpu.memory_space<vmem>>, vector<1x32xf32>
    %146 = vector.broadcast %145 : vector<1x32xf32> to vector<32x32xf32>
    %147 = arith.addf %144, %146 : vector<32x32xf32>
    %148 = arith.addf %135, %147 : vector<32x32xf32>
    %c0_59 = arith.constant 0 : index
    %c0_60 = arith.constant 0 : index
    %149 = vector.load %arg18[%c0_59, %c0_60] : memref<1x32xf32, #tpu.memory_space<vmem>>, vector<1x32xf32>
    %c0_61 = arith.constant 0 : index
    %c0_62 = arith.constant 0 : index
    %150 = vector.load %arg19[%c0_61, %c0_62] : memref<1x32xf32, #tpu.memory_space<vmem>>, vector<1x32xf32>
    %cst_63 = arith.constant dense<0.000000e+00> : vector<32xf32>
    %151 = vector.multi_reduction <add>, %148, %cst_63 [1] : vector<32x32xf32> to vector<32xf32>
    %152 = vector.shape_cast %151 : vector<32xf32> to vector<32x1xf32>
    %cst_64 = arith.constant 3.200000e+01 : f32
    %153 = vector.broadcast %cst_64 : f32 to vector<32x1xf32>
    %154 = arith.divf %152, %153 : vector<32x1xf32>
    %155 = vector.broadcast %154 : vector<32x1xf32> to vector<32x32xf32>
    %156 = arith.subf %148, %155 : vector<32x32xf32>
    %157 = arith.mulf %156, %156 : vector<32x32xf32>
    %cst_65 = arith.constant dense<0.000000e+00> : vector<32xf32>
    %158 = vector.multi_reduction <add>, %157, %cst_65 [1] : vector<32x32xf32> to vector<32xf32>
    %159 = vector.shape_cast %158 : vector<32xf32> to vector<32x1xf32>
    %cst_66 = arith.constant 3.200000e+01 : f32
    %160 = vector.broadcast %cst_66 : f32 to vector<32x1xf32>
    %161 = arith.divf %159, %160 : vector<32x1xf32>
    %162 = vector.broadcast %154 : vector<32x1xf32> to vector<32x32xf32>
    %163 = arith.subf %148, %162 : vector<32x32xf32>
    %cst_67 = arith.constant 9.99999974E-6 : f32
    %164 = vector.broadcast %cst_67 : f32 to vector<32x1xf32>
    %165 = arith.addf %161, %164 : vector<32x1xf32>
    %166 = math.rsqrt %165 : vector<32x1xf32>
    %167 = vector.broadcast %166 : vector<32x1xf32> to vector<32x32xf32>
    %168 = arith.mulf %163, %167 : vector<32x32xf32>
    %169 = vector.broadcast %149 : vector<1x32xf32> to vector<32x32xf32>
    %170 = arith.mulf %168, %169 : vector<32x32xf32>
    %171 = vector.broadcast %150 : vector<1x32xf32> to vector<32x32xf32>
    %172 = arith.addf %170, %171 : vector<32x32xf32>
    %c0_68 = arith.constant 0 : index
    %c0_69 = arith.constant 0 : index
    %173 = vector.load %arg20[%c0_68, %c0_69] : memref<32x96xf32, #tpu.memory_space<vmem>>, vector<32x96xf32>
    %cst_70 = arith.constant dense<0.000000e+00> : vector<32x96xf32>
    %174 = tpu.matmul %172, %173, %cst_70 {dimension_numbers = #tpu.dot_dimension_numbers<[1], [0], [0], [1], [0, 0, 1, 1], [], []>} : vector<32x32xf32>, vector<32x96xf32>, vector<32x96xf32> -> vector<32x96xf32>
    %c0_71 = arith.constant 0 : index
    %c0_72 = arith.constant 0 : index
    %175 = vector.load %arg21[%c0_71, %c0_72] : memref<1x96xf32, #tpu.memory_space<vmem>>, vector<1x96xf32>
    %176 = vector.broadcast %175 : vector<1x96xf32> to vector<32x96xf32>
    %177 = arith.addf %174, %176 : vector<32x96xf32>
    %178 = vector.extract_strided_slice %177 {offsets = [0, 0], sizes = [32, 32], strides = [1, 1]} : vector<32x96xf32> to vector<32x32xf32>
    %179 = vector.extract_strided_slice %177 {offsets = [0, 32], sizes = [32, 64], strides = [1, 1]} : vector<32x96xf32> to vector<32x64xf32>
    %c0_73 = arith.constant 0 : index
    %c0_74 = arith.constant 0 : index
    %180 = vector.load %arg22[%c0_73, %c0_74] : memref<32x32xf32, #tpu.memory_space<vmem>>, vector<32x32xf32>
    %c0_75 = arith.constant 0 : index
    %c0_76 = arith.constant 0 : index
    %181 = vector.load %arg23[%c0_75, %c0_76] : memref<1x32xf32, #tpu.memory_space<vmem>>, vector<1x32xf32>
    %182 = vector.extract_strided_slice %178 {offsets = [0, 0], sizes = [16, 16], strides = [1, 1]} : vector<32x32xf32> to vector<16x16xf32>
    %183 = vector.extract_strided_slice %179 {offsets = [0, 0], sizes = [16, 16], strides = [1, 1]} : vector<32x64xf32> to vector<16x16xf32>
    %184 = vector.extract_strided_slice %179 {offsets = [0, 32], sizes = [16, 16], strides = [1, 1]} : vector<32x64xf32> to vector<16x16xf32>
    %185 = tpu.transpose %183, [1, 0] : vector<16x16xf32> -> vector<16x16xf32>
    %cst_77 = arith.constant dense<0.000000e+00> : vector<16x16xf32>
    %186 = tpu.matmul %182, %185, %cst_77 {dimension_numbers = #tpu.dot_dimension_numbers<[1], [0], [0], [1], [0, 0, 1, 1], [], []>} : vector<16x16xf32>, vector<16x16xf32>, vector<16x16xf32> -> vector<16x16xf32>
    %187 = vector.extract_strided_slice %2 {offsets = [0, 0], sizes = [1, 16], strides = [1, 1]} : vector<2x16xf32> to vector<1x16xf32>
    %188 = vector.broadcast %187 : vector<1x16xf32> to vector<16x16xf32>
    %189 = arith.addf %186, %188 : vector<16x16xf32>
    %cst_78 = arith.constant dense<0xFF800000> : vector<16xf32>
    %190 = vector.multi_reduction <maximumf>, %189, %cst_78 [1] : vector<16x16xf32> to vector<16xf32>
    %191 = vector.shape_cast %190 : vector<16xf32> to vector<16x1xf32>
    %192 = vector.broadcast %191 : vector<16x1xf32> to vector<16x16xf32>
    %193 = arith.subf %189, %192 : vector<16x16xf32>
    %194 = math.exp %193 : vector<16x16xf32>
    %cst_79 = arith.constant dense<0.000000e+00> : vector<16xf32>
    %195 = vector.multi_reduction <add>, %194, %cst_79 [1] : vector<16x16xf32> to vector<16xf32>
    %196 = vector.shape_cast %195 : vector<16xf32> to vector<16x1xf32>
    %197 = tpu.reciprocal %196 {approx = true} : vector<16x1xf32> -> vector<16x1xf32>
    %198 = vector.broadcast %197 : vector<16x1xf32> to vector<16x16xf32>
    %199 = arith.mulf %194, %198 : vector<16x16xf32>
    %cst_80 = arith.constant dense<0.000000e+00> : vector<16x16xf32>
    %200 = tpu.matmul %199, %184, %cst_80 {dimension_numbers = #tpu.dot_dimension_numbers<[1], [0], [0], [1], [0, 0, 1, 1], [], []>} : vector<16x16xf32>, vector<16x16xf32>, vector<16x16xf32> -> vector<16x16xf32>
    %201 = vector.extract_strided_slice %180 {offsets = [0, 0], sizes = [16, 32], strides = [1, 1]} : vector<32x32xf32> to vector<16x32xf32>
    %cst_81 = arith.constant dense<0.000000e+00> : vector<16x32xf32>
    %202 = tpu.matmul %200, %201, %cst_81 {dimension_numbers = #tpu.dot_dimension_numbers<[1], [0], [0], [1], [0, 0, 1, 1], [], []>} : vector<16x16xf32>, vector<16x32xf32>, vector<16x32xf32> -> vector<16x32xf32>
    %203 = vector.broadcast %181 : vector<1x32xf32> to vector<16x32xf32>
    %204 = arith.addf %203, %202 : vector<16x32xf32>
    %205 = vector.extract_strided_slice %178 {offsets = [0, 16], sizes = [16, 16], strides = [1, 1]} : vector<32x32xf32> to vector<16x16xf32>
    %206 = vector.extract_strided_slice %179 {offsets = [0, 16], sizes = [16, 16], strides = [1, 1]} : vector<32x64xf32> to vector<16x16xf32>
    %207 = vector.extract_strided_slice %179 {offsets = [0, 48], sizes = [16, 16], strides = [1, 1]} : vector<32x64xf32> to vector<16x16xf32>
    %208 = tpu.transpose %206, [1, 0] : vector<16x16xf32> -> vector<16x16xf32>
    %cst_82 = arith.constant dense<0.000000e+00> : vector<16x16xf32>
    %209 = tpu.matmul %205, %208, %cst_82 {dimension_numbers = #tpu.dot_dimension_numbers<[1], [0], [0], [1], [0, 0, 1, 1], [], []>} : vector<16x16xf32>, vector<16x16xf32>, vector<16x16xf32> -> vector<16x16xf32>
    %210 = vector.extract_strided_slice %2 {offsets = [0, 0], sizes = [1, 16], strides = [1, 1]} : vector<2x16xf32> to vector<1x16xf32>
    %211 = vector.broadcast %210 : vector<1x16xf32> to vector<16x16xf32>
    %212 = arith.addf %209, %211 : vector<16x16xf32>
    %cst_83 = arith.constant dense<0xFF800000> : vector<16xf32>
    %213 = vector.multi_reduction <maximumf>, %212, %cst_83 [1] : vector<16x16xf32> to vector<16xf32>
    %214 = vector.shape_cast %213 : vector<16xf32> to vector<16x1xf32>
    %215 = vector.broadcast %214 : vector<16x1xf32> to vector<16x16xf32>
    %216 = arith.subf %212, %215 : vector<16x16xf32>
    %217 = math.exp %216 : vector<16x16xf32>
    %cst_84 = arith.constant dense<0.000000e+00> : vector<16xf32>
    %218 = vector.multi_reduction <add>, %217, %cst_84 [1] : vector<16x16xf32> to vector<16xf32>
    %219 = vector.shape_cast %218 : vector<16xf32> to vector<16x1xf32>
    %220 = tpu.reciprocal %219 {approx = true} : vector<16x1xf32> -> vector<16x1xf32>
    %221 = vector.broadcast %220 : vector<16x1xf32> to vector<16x16xf32>
    %222 = arith.mulf %217, %221 : vector<16x16xf32>
    %cst_85 = arith.constant dense<0.000000e+00> : vector<16x16xf32>
    %223 = tpu.matmul %222, %207, %cst_85 {dimension_numbers = #tpu.dot_dimension_numbers<[1], [0], [0], [1], [0, 0, 1, 1], [], []>} : vector<16x16xf32>, vector<16x16xf32>, vector<16x16xf32> -> vector<16x16xf32>
    %224 = vector.extract_strided_slice %180 {offsets = [16, 0], sizes = [16, 32], strides = [1, 1]} : vector<32x32xf32> to vector<16x32xf32>
    %cst_86 = arith.constant dense<0.000000e+00> : vector<16x32xf32>
    %225 = tpu.matmul %223, %224, %cst_86 {dimension_numbers = #tpu.dot_dimension_numbers<[1], [0], [0], [1], [0, 0, 1, 1], [], []>} : vector<16x16xf32>, vector<16x32xf32>, vector<16x32xf32> -> vector<16x32xf32>
    %226 = arith.addf %204, %225 : vector<16x32xf32>
    %227 = vector.extract_strided_slice %178 {offsets = [16, 0], sizes = [16, 16], strides = [1, 1]} : vector<32x32xf32> to vector<16x16xf32>
    %228 = vector.extract_strided_slice %179 {offsets = [16, 0], sizes = [16, 16], strides = [1, 1]} : vector<32x64xf32> to vector<16x16xf32>
    %229 = vector.extract_strided_slice %179 {offsets = [16, 32], sizes = [16, 16], strides = [1, 1]} : vector<32x64xf32> to vector<16x16xf32>
    %230 = tpu.transpose %228, [1, 0] : vector<16x16xf32> -> vector<16x16xf32>
    %cst_87 = arith.constant dense<0.000000e+00> : vector<16x16xf32>
    %231 = tpu.matmul %227, %230, %cst_87 {dimension_numbers = #tpu.dot_dimension_numbers<[1], [0], [0], [1], [0, 0, 1, 1], [], []>} : vector<16x16xf32>, vector<16x16xf32>, vector<16x16xf32> -> vector<16x16xf32>
    %232 = vector.extract_strided_slice %2 {offsets = [1, 0], sizes = [1, 16], strides = [1, 1]} : vector<2x16xf32> to vector<1x16xf32>
    %233 = vector.broadcast %232 : vector<1x16xf32> to vector<16x16xf32>
    %234 = arith.addf %231, %233 : vector<16x16xf32>
    %cst_88 = arith.constant dense<0xFF800000> : vector<16xf32>
    %235 = vector.multi_reduction <maximumf>, %234, %cst_88 [1] : vector<16x16xf32> to vector<16xf32>
    %236 = vector.shape_cast %235 : vector<16xf32> to vector<16x1xf32>
    %237 = vector.broadcast %236 : vector<16x1xf32> to vector<16x16xf32>
    %238 = arith.subf %234, %237 : vector<16x16xf32>
    %239 = math.exp %238 : vector<16x16xf32>
    %cst_89 = arith.constant dense<0.000000e+00> : vector<16xf32>
    %240 = vector.multi_reduction <add>, %239, %cst_89 [1] : vector<16x16xf32> to vector<16xf32>
    %241 = vector.shape_cast %240 : vector<16xf32> to vector<16x1xf32>
    %242 = tpu.reciprocal %241 {approx = true} : vector<16x1xf32> -> vector<16x1xf32>
    %243 = vector.broadcast %242 : vector<16x1xf32> to vector<16x16xf32>
    %244 = arith.mulf %239, %243 : vector<16x16xf32>
    %cst_90 = arith.constant dense<0.000000e+00> : vector<16x16xf32>
    %245 = tpu.matmul %244, %229, %cst_90 {dimension_numbers = #tpu.dot_dimension_numbers<[1], [0], [0], [1], [0, 0, 1, 1], [], []>} : vector<16x16xf32>, vector<16x16xf32>, vector<16x16xf32> -> vector<16x16xf32>
    %246 = vector.extract_strided_slice %180 {offsets = [0, 0], sizes = [16, 32], strides = [1, 1]} : vector<32x32xf32> to vector<16x32xf32>
    %cst_91 = arith.constant dense<0.000000e+00> : vector<16x32xf32>
    %247 = tpu.matmul %245, %246, %cst_91 {dimension_numbers = #tpu.dot_dimension_numbers<[1], [0], [0], [1], [0, 0, 1, 1], [], []>} : vector<16x16xf32>, vector<16x32xf32>, vector<16x32xf32> -> vector<16x32xf32>
    %248 = vector.broadcast %181 : vector<1x32xf32> to vector<16x32xf32>
    %249 = arith.addf %248, %247 : vector<16x32xf32>
    %250 = vector.extract_strided_slice %178 {offsets = [16, 16], sizes = [16, 16], strides = [1, 1]} : vector<32x32xf32> to vector<16x16xf32>
    %251 = vector.extract_strided_slice %179 {offsets = [16, 16], sizes = [16, 16], strides = [1, 1]} : vector<32x64xf32> to vector<16x16xf32>
    %252 = vector.extract_strided_slice %179 {offsets = [16, 48], sizes = [16, 16], strides = [1, 1]} : vector<32x64xf32> to vector<16x16xf32>
    %253 = tpu.transpose %251, [1, 0] : vector<16x16xf32> -> vector<16x16xf32>
    %cst_92 = arith.constant dense<0.000000e+00> : vector<16x16xf32>
    %254 = tpu.matmul %250, %253, %cst_92 {dimension_numbers = #tpu.dot_dimension_numbers<[1], [0], [0], [1], [0, 0, 1, 1], [], []>} : vector<16x16xf32>, vector<16x16xf32>, vector<16x16xf32> -> vector<16x16xf32>
    %255 = vector.extract_strided_slice %2 {offsets = [1, 0], sizes = [1, 16], strides = [1, 1]} : vector<2x16xf32> to vector<1x16xf32>
    %256 = vector.broadcast %255 : vector<1x16xf32> to vector<16x16xf32>
    %257 = arith.addf %254, %256 : vector<16x16xf32>
    %cst_93 = arith.constant dense<0xFF800000> : vector<16xf32>
    %258 = vector.multi_reduction <maximumf>, %257, %cst_93 [1] : vector<16x16xf32> to vector<16xf32>
    %259 = vector.shape_cast %258 : vector<16xf32> to vector<16x1xf32>
    %260 = vector.broadcast %259 : vector<16x1xf32> to vector<16x16xf32>
    %261 = arith.subf %257, %260 : vector<16x16xf32>
    %262 = math.exp %261 : vector<16x16xf32>
    %cst_94 = arith.constant dense<0.000000e+00> : vector<16xf32>
    %263 = vector.multi_reduction <add>, %262, %cst_94 [1] : vector<16x16xf32> to vector<16xf32>
    %264 = vector.shape_cast %263 : vector<16xf32> to vector<16x1xf32>
    %265 = tpu.reciprocal %264 {approx = true} : vector<16x1xf32> -> vector<16x1xf32>
    %266 = vector.broadcast %265 : vector<16x1xf32> to vector<16x16xf32>
    %267 = arith.mulf %262, %266 : vector<16x16xf32>
    %cst_95 = arith.constant dense<0.000000e+00> : vector<16x16xf32>
    %268 = tpu.matmul %267, %252, %cst_95 {dimension_numbers = #tpu.dot_dimension_numbers<[1], [0], [0], [1], [0, 0, 1, 1], [], []>} : vector<16x16xf32>, vector<16x16xf32>, vector<16x16xf32> -> vector<16x16xf32>
    %269 = vector.extract_strided_slice %180 {offsets = [16, 0], sizes = [16, 32], strides = [1, 1]} : vector<32x32xf32> to vector<16x32xf32>
    %cst_96 = arith.constant dense<0.000000e+00> : vector<16x32xf32>
    %270 = tpu.matmul %268, %269, %cst_96 {dimension_numbers = #tpu.dot_dimension_numbers<[1], [0], [0], [1], [0, 0, 1, 1], [], []>} : vector<16x16xf32>, vector<16x32xf32>, vector<16x32xf32> -> vector<16x32xf32>
    %271 = arith.addf %249, %270 : vector<16x32xf32>
    %272 = tpu.concatenate %226, %271 in 0 : vector<16x32xf32>, vector<16x32xf32> -> vector<32x32xf32>
    %273 = arith.addf %172, %272 : vector<32x32xf32>
    %c0_97 = arith.constant 0 : index
    %c0_98 = arith.constant 0 : index
    %274 = vector.load %arg24[%c0_97, %c0_98] : memref<1x32xf32, #tpu.memory_space<vmem>>, vector<1x32xf32>
    %c0_99 = arith.constant 0 : index
    %c0_100 = arith.constant 0 : index
    %275 = vector.load %arg25[%c0_99, %c0_100] : memref<1x32xf32, #tpu.memory_space<vmem>>, vector<1x32xf32>
    %cst_101 = arith.constant dense<0.000000e+00> : vector<32xf32>
    %276 = vector.multi_reduction <add>, %273, %cst_101 [1] : vector<32x32xf32> to vector<32xf32>
    %277 = vector.shape_cast %276 : vector<32xf32> to vector<32x1xf32>
    %cst_102 = arith.constant 3.200000e+01 : f32
    %278 = vector.broadcast %cst_102 : f32 to vector<32x1xf32>
    %279 = arith.divf %277, %278 : vector<32x1xf32>
    %280 = vector.broadcast %279 : vector<32x1xf32> to vector<32x32xf32>
    %281 = arith.subf %273, %280 : vector<32x32xf32>
    %282 = arith.mulf %281, %281 : vector<32x32xf32>
    %cst_103 = arith.constant dense<0.000000e+00> : vector<32xf32>
    %283 = vector.multi_reduction <add>, %282, %cst_103 [1] : vector<32x32xf32> to vector<32xf32>
    %284 = vector.shape_cast %283 : vector<32xf32> to vector<32x1xf32>
    %cst_104 = arith.constant 3.200000e+01 : f32
    %285 = vector.broadcast %cst_104 : f32 to vector<32x1xf32>
    %286 = arith.divf %284, %285 : vector<32x1xf32>
    %287 = vector.broadcast %279 : vector<32x1xf32> to vector<32x32xf32>
    %288 = arith.subf %273, %287 : vector<32x32xf32>
    %cst_105 = arith.constant 9.99999974E-6 : f32
    %289 = vector.broadcast %cst_105 : f32 to vector<32x1xf32>
    %290 = arith.addf %286, %289 : vector<32x1xf32>
    %291 = math.rsqrt %290 : vector<32x1xf32>
    %292 = vector.broadcast %291 : vector<32x1xf32> to vector<32x32xf32>
    %293 = arith.mulf %288, %292 : vector<32x32xf32>
    %294 = vector.broadcast %274 : vector<1x32xf32> to vector<32x32xf32>
    %295 = arith.mulf %293, %294 : vector<32x32xf32>
    %296 = vector.broadcast %275 : vector<1x32xf32> to vector<32x32xf32>
    %297 = arith.addf %295, %296 : vector<32x32xf32>
    %c0_106 = arith.constant 0 : index
    %c0_107 = arith.constant 0 : index
    %298 = vector.load %arg26[%c0_106, %c0_107] : memref<32x64xf32, #tpu.memory_space<vmem>>, vector<32x64xf32>
    %cst_108 = arith.constant dense<0.000000e+00> : vector<32x64xf32>
    %299 = tpu.matmul %297, %298, %cst_108 {dimension_numbers = #tpu.dot_dimension_numbers<[1], [0], [0], [1], [0, 0, 1, 1], [], []>} : vector<32x32xf32>, vector<32x64xf32>, vector<32x64xf32> -> vector<32x64xf32>
    %c0_109 = arith.constant 0 : index
    %c0_110 = arith.constant 0 : index
    %300 = vector.load %arg27[%c0_109, %c0_110] : memref<1x64xf32, #tpu.memory_space<vmem>>, vector<1x64xf32>
    %301 = vector.broadcast %300 : vector<1x64xf32> to vector<32x64xf32>
    %302 = arith.addf %299, %301 : vector<32x64xf32>
    %cst_111 = arith.constant 0.000000e+00 : f32
    %303 = vector.broadcast %cst_111 : f32 to vector<32x64xf32>
    %304 = arith.maximumf %302, %303 : vector<32x64xf32>
    %c0_112 = arith.constant 0 : index
    %c0_113 = arith.constant 0 : index
    %305 = vector.load %arg28[%c0_112, %c0_113] : memref<64x32xf32, #tpu.memory_space<vmem>>, vector<64x32xf32>
    %cst_114 = arith.constant dense<0.000000e+00> : vector<32x32xf32>
    %306 = tpu.matmul %304, %305, %cst_114 {dimension_numbers = #tpu.dot_dimension_numbers<[1], [0], [0], [1], [0, 0, 1, 1], [], []>} : vector<32x64xf32>, vector<64x32xf32>, vector<32x32xf32> -> vector<32x32xf32>
    %c0_115 = arith.constant 0 : index
    %c0_116 = arith.constant 0 : index
    %307 = vector.load %arg29[%c0_115, %c0_116] : memref<1x32xf32, #tpu.memory_space<vmem>>, vector<1x32xf32>
    %308 = vector.broadcast %307 : vector<1x32xf32> to vector<32x32xf32>
    %309 = arith.addf %306, %308 : vector<32x32xf32>
    %310 = arith.addf %297, %309 : vector<32x32xf32>
    %c0_117 = arith.constant 0 : index
    %c0_118 = arith.constant 0 : index
    %311 = vector.load %arg30[%c0_117, %c0_118] : memref<1x32xf32, #tpu.memory_space<vmem>>, vector<1x32xf32>
    %c0_119 = arith.constant 0 : index
    %c0_120 = arith.constant 0 : index
    %312 = vector.load %arg31[%c0_119, %c0_120] : memref<1x32xf32, #tpu.memory_space<vmem>>, vector<1x32xf32>
    %cst_121 = arith.constant dense<0.000000e+00> : vector<32xf32>
    %313 = vector.multi_reduction <add>, %310, %cst_121 [1] : vector<32x32xf32> to vector<32xf32>
    %314 = vector.shape_cast %313 : vector<32xf32> to vector<32x1xf32>
    %cst_122 = arith.constant 3.200000e+01 : f32
    %315 = vector.broadcast %cst_122 : f32 to vector<32x1xf32>
    %316 = arith.divf %314, %315 : vector<32x1xf32>
    %317 = vector.broadcast %316 : vector<32x1xf32> to vector<32x32xf32>
    %318 = arith.subf %310, %317 : vector<32x32xf32>
    %319 = arith.mulf %318, %318 : vector<32x32xf32>
    %cst_123 = arith.constant dense<0.000000e+00> : vector<32xf32>
    %320 = vector.multi_reduction <add>, %319, %cst_123 [1] : vector<32x32xf32> to vector<32xf32>
    %321 = vector.shape_cast %320 : vector<32xf32> to vector<32x1xf32>
    %cst_124 = arith.constant 3.200000e+01 : f32
    %322 = vector.broadcast %cst_124 : f32 to vector<32x1xf32>
    %323 = arith.divf %321, %322 : vector<32x1xf32>
    %324 = vector.broadcast %316 : vector<32x1xf32> to vector<32x32xf32>
    %325 = arith.subf %310, %324 : vector<32x32xf32>
    %cst_125 = arith.constant 9.99999974E-6 : f32
    %326 = vector.broadcast %cst_125 : f32 to vector<32x1xf32>
    %327 = arith.addf %323, %326 : vector<32x1xf32>
    %328 = math.rsqrt %327 : vector<32x1xf32>
    %329 = vector.broadcast %328 : vector<32x1xf32> to vector<32x32xf32>
    %330 = arith.mulf %325, %329 : vector<32x32xf32>
    %331 = vector.broadcast %311 : vector<1x32xf32> to vector<32x32xf32>
    %332 = arith.mulf %330, %331 : vector<32x32xf32>
    %333 = vector.broadcast %312 : vector<1x32xf32> to vector<32x32xf32>
    %334 = arith.addf %332, %333 : vector<32x32xf32>
    %c0_126 = arith.constant 0 : index
    %c0_127 = arith.constant 0 : index
    %335 = vector.load %arg32[%c0_126, %c0_127] : memref<32x32xf32, #tpu.memory_space<vmem>>, vector<32x32xf32>
    tpu.vector_store %arg32[%c0_126, %c0_127], %334 {strides = array<i32>} : memref<32x32xf32, #tpu.memory_space<vmem>>, vector<32x32xf32>,
    %c0_128 = arith.constant 0 : index
    %c0_129 = arith.constant 0 : index
    %336 = vector.load %arg3[%c0_128, %c0_129] : memref<2x60xf32, #tpu.memory_space<vmem>>, vector<2x60xf32>
    %c0_130 = arith.constant 0 : index
    %c0_131 = arith.constant 0 : index
    %337 = vector.load %arg6[%c0_130, %c0_131] : memref<60x128xf32, #tpu.memory_space<vmem>>, vector<60x128xf32>
    %cst_132 = arith.constant dense<0.000000e+00> : vector<2x128xf32>
    %338 = tpu.matmul %336, %337, %cst_132 {dimension_numbers = #tpu.dot_dimension_numbers<[1], [0], [0], [1], [0, 0, 1, 1], [], []>} : vector<2x60xf32>, vector<60x128xf32>, vector<2x128xf32> -> vector<2x128xf32>
    %c0_133 = arith.constant 0 : index
    %c0_134 = arith.constant 0 : index
    %339 = vector.load %arg7[%c0_133, %c0_134] : memref<1x128xf32, #tpu.memory_space<vmem>>, vector<1x128xf32>
    %340 = vector.broadcast %339 : vector<1x128xf32> to vector<2x128xf32>
    %341 = arith.addf %338, %340 : vector<2x128xf32>
    %cst_135 = arith.constant 0.000000e+00 : f32
    %342 = vector.broadcast %cst_135 : f32 to vector<2x128xf32>
    %343 = arith.maximumf %341, %342 : vector<2x128xf32>
    %c0_136 = arith.constant 0 : index
    %c0_137 = arith.constant 0 : index
    %344 = vector.load %arg33[%c0_136, %c0_137] : memref<2x128xf32, #tpu.memory_space<vmem>>, vector<2x128xf32>
    tpu.vector_store %arg33[%c0_136, %c0_137], %343 {strides = array<i32>} : memref<2x128xf32, #tpu.memory_space<vmem>>, vector<2x128xf32>,
    return
  }
}

module attributes {stable_mosaic.version = 11 : i64} {
  func.func @_decoder_kernel(%arg0: memref<32x32xf32, #tpu.memory_space<vmem>>, %arg1: memref<2x640xf32, #tpu.memory_space<vmem>>, %arg2: memref<16x5xf32, #tpu.memory_space<vmem>>, %arg3: memref<2x16xf32, #tpu.memory_space<vmem>>, %arg4: memref<8x8xf32, #tpu.memory_space<vmem>>, %arg5: memref<16x32xf32, #tpu.memory_space<vmem>>, %arg6: memref<5x32xf32, #tpu.memory_space<vmem>>, %arg7: memref<1x32xf32, #tpu.memory_space<vmem>>, %arg8: memref<32x96xf32, #tpu.memory_space<vmem>>, %arg9: memref<1x96xf32, #tpu.memory_space<vmem>>, %arg10: memref<32x32xf32, #tpu.memory_space<vmem>>, %arg11: memref<1x32xf32, #tpu.memory_space<vmem>>, %arg12: memref<1x32xf32, #tpu.memory_space<vmem>>, %arg13: memref<1x32xf32, #tpu.memory_space<vmem>>, %arg14: memref<32x32xf32, #tpu.memory_space<vmem>>, %arg15: memref<1x32xf32, #tpu.memory_space<vmem>>, %arg16: memref<32x64xf32, #tpu.memory_space<vmem>>, %arg17: memref<1x64xf32, #tpu.memory_space<vmem>>, %arg18: memref<32x32xf32, #tpu.memory_space<vmem>>, %arg19: memref<1x32xf32, #tpu.memory_space<vmem>>, %arg20: memref<1x32xf32, #tpu.memory_space<vmem>>, %arg21: memref<1x32xf32, #tpu.memory_space<vmem>>, %arg22: memref<32x64xf32, #tpu.memory_space<vmem>>, %arg23: memref<1x64xf32, #tpu.memory_space<vmem>>, %arg24: memref<64x32xf32, #tpu.memory_space<vmem>>, %arg25: memref<1x32xf32, #tpu.memory_space<vmem>>, %arg26: memref<1x32xf32, #tpu.memory_space<vmem>>, %arg27: memref<1x32xf32, #tpu.memory_space<vmem>>, %arg28: memref<32x96xf32, #tpu.memory_space<vmem>>, %arg29: memref<1x96xf32, #tpu.memory_space<vmem>>, %arg30: memref<32x32xf32, #tpu.memory_space<vmem>>, %arg31: memref<1x32xf32, #tpu.memory_space<vmem>>, %arg32: memref<1x32xf32, #tpu.memory_space<vmem>>, %arg33: memref<1x32xf32, #tpu.memory_space<vmem>>, %arg34: memref<32x32xf32, #tpu.memory_space<vmem>>, %arg35: memref<1x32xf32, #tpu.memory_space<vmem>>, %arg36: memref<32x64xf32, #tpu.memory_space<vmem>>, %arg37: memref<1x64xf32, #tpu.memory_space<vmem>>, %arg38: memref<32x32xf32, #tpu.memory_space<vmem>>, %arg39: memref<1x32xf32, #tpu.memory_space<vmem>>, %arg40: memref<1x32xf32, #tpu.memory_space<vmem>>, %arg41: memref<1x32xf32, #tpu.memory_space<vmem>>, %arg42: memref<32x64xf32, #tpu.memory_space<vmem>>, %arg43: memref<1x64xf32, #tpu.memory_space<vmem>>, %arg44: memref<64x32xf32, #tpu.memory_space<vmem>>, %arg45: memref<1x32xf32, #tpu.memory_space<vmem>>, %arg46: memref<1x32xf32, #tpu.memory_space<vmem>>, %arg47: memref<1x32xf32, #tpu.memory_space<vmem>>, %arg48: memref<640x32xf32, #tpu.memory_space<vmem>>, %arg49: memref<1x32xf32, #tpu.memory_space<vmem>>, %arg50: memref<32x45xf32, #tpu.memory_space<vmem>>, %arg51: memref<1x45xf32, #tpu.memory_space<vmem>>, %arg52: memref<32x6xf32, #tpu.memory_space<vmem>>, %arg53: memref<1x6xf32, #tpu.memory_space<vmem>>, %arg54: memref<2x45xf32, #tpu.memory_space<vmem>>, %arg55: memref<16x6xf32, #tpu.memory_space<vmem>>) attributes {dimension_semantics = [], scalar_prefetch = 0 : i64, scratch_operands = 0 : i64, tpu.core_type = #tpu.core_type<tc>} {
    %c0 = arith.constant 0 : index
    %c0_0 = arith.constant 0 : index
    %0 = vector.load %arg3[%c0, %c0_0] : memref<2x16xf32, #tpu.memory_space<vmem>>, vector<2x16xf32>
    %cst = arith.constant -1.000000e+09 : f32
    %1 = vector.broadcast %cst : f32 to vector<2x16xf32>
    %2 = arith.mulf %0, %1 : vector<2x16xf32>
    %c0_1 = arith.constant 0 : index
    %c0_2 = arith.constant 0 : index
    %3 = vector.load %arg4[%c0_1, %c0_2] : memref<8x8xf32, #tpu.memory_space<vmem>>, vector<8x8xf32>
    %c0_3 = arith.constant 0 : index
    %c0_4 = arith.constant 0 : index
    %4 = vector.load %arg0[%c0_3, %c0_4] : memref<32x32xf32, #tpu.memory_space<vmem>>, vector<32x32xf32>
    %c0_5 = arith.constant 0 : index
    %c0_6 = arith.constant 0 : index
    %5 = vector.load %arg2[%c0_5, %c0_6] : memref<16x5xf32, #tpu.memory_space<vmem>>, vector<16x5xf32>
    %c0_7 = arith.constant 0 : index
    %c0_8 = arith.constant 0 : index
    %6 = vector.load %arg6[%c0_7, %c0_8] : memref<5x32xf32, #tpu.memory_space<vmem>>, vector<5x32xf32>
    %cst_9 = arith.constant dense<0.000000e+00> : vector<16x32xf32>
    %7 = tpu.matmul %5, %6, %cst_9 {dimension_numbers = #tpu.dot_dimension_numbers<[1], [0], [0], [1], [0, 0, 1, 1], [], []>} : vector<16x5xf32>, vector<5x32xf32>, vector<16x32xf32> -> vector<16x32xf32>
    %c0_10 = arith.constant 0 : index
    %c0_11 = arith.constant 0 : index
    %8 = vector.load %arg7[%c0_10, %c0_11] : memref<1x32xf32, #tpu.memory_space<vmem>>, vector<1x32xf32>
    %9 = vector.broadcast %8 : vector<1x32xf32> to vector<16x32xf32>
    %10 = arith.addf %7, %9 : vector<16x32xf32>
    %c0_12 = arith.constant 0 : index
    %c0_13 = arith.constant 0 : index
    %11 = vector.load %arg5[%c0_12, %c0_13] : memref<16x32xf32, #tpu.memory_space<vmem>>, vector<16x32xf32>
    %12 = arith.addf %10, %11 : vector<16x32xf32>
    %c0_14 = arith.constant 0 : index
    %c0_15 = arith.constant 0 : index
    %13 = vector.load %arg8[%c0_14, %c0_15] : memref<32x96xf32, #tpu.memory_space<vmem>>, vector<32x96xf32>
    %cst_16 = arith.constant dense<0.000000e+00> : vector<16x96xf32>
    %14 = tpu.matmul %12, %13, %cst_16 {dimension_numbers = #tpu.dot_dimension_numbers<[1], [0], [0], [1], [0, 0, 1, 1], [], []>} : vector<16x32xf32>, vector<32x96xf32>, vector<16x96xf32> -> vector<16x96xf32>
    %c0_17 = arith.constant 0 : index
    %c0_18 = arith.constant 0 : index
    %15 = vector.load %arg9[%c0_17, %c0_18] : memref<1x96xf32, #tpu.memory_space<vmem>>, vector<1x96xf32>
    %16 = vector.broadcast %15 : vector<1x96xf32> to vector<16x96xf32>
    %17 = arith.addf %14, %16 : vector<16x96xf32>
    %18 = vector.extract_strided_slice %17 {offsets = [0, 0], sizes = [16, 32], strides = [1, 1]} : vector<16x96xf32> to vector<16x32xf32>
    %19 = vector.extract_strided_slice %17 {offsets = [0, 32], sizes = [16, 64], strides = [1, 1]} : vector<16x96xf32> to vector<16x64xf32>
    %c0_19 = arith.constant 0 : index
    %c0_20 = arith.constant 0 : index
    %20 = vector.load %arg10[%c0_19, %c0_20] : memref<32x32xf32, #tpu.memory_space<vmem>>, vector<32x32xf32>
    %c0_21 = arith.constant 0 : index
    %c0_22 = arith.constant 0 : index
    %21 = vector.load %arg11[%c0_21, %c0_22] : memref<1x32xf32, #tpu.memory_space<vmem>>, vector<1x32xf32>
    %22 = vector.extract_strided_slice %18 {offsets = [0, 0], sizes = [8, 16], strides = [1, 1]} : vector<16x32xf32> to vector<8x16xf32>
    %23 = vector.extract_strided_slice %19 {offsets = [0, 0], sizes = [8, 16], strides = [1, 1]} : vector<16x64xf32> to vector<8x16xf32>
    %24 = vector.extract_strided_slice %19 {offsets = [0, 32], sizes = [8, 16], strides = [1, 1]} : vector<16x64xf32> to vector<8x16xf32>
    %25 = tpu.transpose %23, [1, 0] : vector<8x16xf32> -> vector<16x8xf32>
    %cst_23 = arith.constant dense<0.000000e+00> : vector<8x8xf32>
    %26 = tpu.matmul %22, %25, %cst_23 {dimension_numbers = #tpu.dot_dimension_numbers<[1], [0], [0], [1], [0, 0, 1, 1], [], []>} : vector<8x16xf32>, vector<16x8xf32>, vector<8x8xf32> -> vector<8x8xf32>
    %27 = arith.addf %26, %3 : vector<8x8xf32>
    %cst_24 = arith.constant dense<0xFF800000> : vector<8xf32>
    %28 = vector.multi_reduction <maximumf>, %27, %cst_24 [1] : vector<8x8xf32> to vector<8xf32>
    %29 = vector.shape_cast %28 : vector<8xf32> to vector<8x1xf32>
    %30 = vector.broadcast %29 : vector<8x1xf32> to vector<8x8xf32>
    %31 = arith.subf %27, %30 : vector<8x8xf32>
    %32 = math.exp %31 : vector<8x8xf32>
    %cst_25 = arith.constant dense<0.000000e+00> : vector<8xf32>
    %33 = vector.multi_reduction <add>, %32, %cst_25 [1] : vector<8x8xf32> to vector<8xf32>
    %34 = vector.shape_cast %33 : vector<8xf32> to vector<8x1xf32>
    %35 = tpu.reciprocal %34 {approx = true} : vector<8x1xf32> -> vector<8x1xf32>
    %36 = vector.broadcast %35 : vector<8x1xf32> to vector<8x8xf32>
    %37 = arith.mulf %32, %36 : vector<8x8xf32>
    %cst_26 = arith.constant dense<0.000000e+00> : vector<8x16xf32>
    %38 = tpu.matmul %37, %24, %cst_26 {dimension_numbers = #tpu.dot_dimension_numbers<[1], [0], [0], [1], [0, 0, 1, 1], [], []>} : vector<8x8xf32>, vector<8x16xf32>, vector<8x16xf32> -> vector<8x16xf32>
    %39 = vector.extract_strided_slice %20 {offsets = [0, 0], sizes = [16, 32], strides = [1, 1]} : vector<32x32xf32> to vector<16x32xf32>
    %cst_27 = arith.constant dense<0.000000e+00> : vector<8x32xf32>
    %40 = tpu.matmul %38, %39, %cst_27 {dimension_numbers = #tpu.dot_dimension_numbers<[1], [0], [0], [1], [0, 0, 1, 1], [], []>} : vector<8x16xf32>, vector<16x32xf32>, vector<8x32xf32> -> vector<8x32xf32>
    %41 = vector.broadcast %21 : vector<1x32xf32> to vector<8x32xf32>
    %42 = arith.addf %41, %40 : vector<8x32xf32>
    %43 = vector.extract_strided_slice %18 {offsets = [0, 16], sizes = [8, 16], strides = [1, 1]} : vector<16x32xf32> to vector<8x16xf32>
    %44 = vector.extract_strided_slice %19 {offsets = [0, 16], sizes = [8, 16], strides = [1, 1]} : vector<16x64xf32> to vector<8x16xf32>
    %45 = vector.extract_strided_slice %19 {offsets = [0, 48], sizes = [8, 16], strides = [1, 1]} : vector<16x64xf32> to vector<8x16xf32>
    %46 = tpu.transpose %44, [1, 0] : vector<8x16xf32> -> vector<16x8xf32>
    %cst_28 = arith.constant dense<0.000000e+00> : vector<8x8xf32>
    %47 = tpu.matmul %43, %46, %cst_28 {dimension_numbers = #tpu.dot_dimension_numbers<[1], [0], [0], [1], [0, 0, 1, 1], [], []>} : vector<8x16xf32>, vector<16x8xf32>, vector<8x8xf32> -> vector<8x8xf32>
    %48 = arith.addf %47, %3 : vector<8x8xf32>
    %cst_29 = arith.constant dense<0xFF800000> : vector<8xf32>
    %49 = vector.multi_reduction <maximumf>, %48, %cst_29 [1] : vector<8x8xf32> to vector<8xf32>
    %50 = vector.shape_cast %49 : vector<8xf32> to vector<8x1xf32>
    %51 = vector.broadcast %50 : vector<8x1xf32> to vector<8x8xf32>
    %52 = arith.subf %48, %51 : vector<8x8xf32>
    %53 = math.exp %52 : vector<8x8xf32>
    %cst_30 = arith.constant dense<0.000000e+00> : vector<8xf32>
    %54 = vector.multi_reduction <add>, %53, %cst_30 [1] : vector<8x8xf32> to vector<8xf32>
    %55 = vector.shape_cast %54 : vector<8xf32> to vector<8x1xf32>
    %56 = tpu.reciprocal %55 {approx = true} : vector<8x1xf32> -> vector<8x1xf32>
    %57 = vector.broadcast %56 : vector<8x1xf32> to vector<8x8xf32>
    %58 = arith.mulf %53, %57 : vector<8x8xf32>
    %cst_31 = arith.constant dense<0.000000e+00> : vector<8x16xf32>
    %59 = tpu.matmul %58, %45, %cst_31 {dimension_numbers = #tpu.dot_dimension_numbers<[1], [0], [0], [1], [0, 0, 1, 1], [], []>} : vector<8x8xf32>, vector<8x16xf32>, vector<8x16xf32> -> vector<8x16xf32>
    %60 = vector.extract_strided_slice %20 {offsets = [16, 0], sizes = [16, 32], strides = [1, 1]} : vector<32x32xf32> to vector<16x32xf32>
    %cst_32 = arith.constant dense<0.000000e+00> : vector<8x32xf32>
    %61 = tpu.matmul %59, %60, %cst_32 {dimension_numbers = #tpu.dot_dimension_numbers<[1], [0], [0], [1], [0, 0, 1, 1], [], []>} : vector<8x16xf32>, vector<16x32xf32>, vector<8x32xf32> -> vector<8x32xf32>
    %62 = arith.addf %42, %61 : vector<8x32xf32>
    %63 = vector.extract_strided_slice %18 {offsets = [8, 0], sizes = [8, 16], strides = [1, 1]} : vector<16x32xf32> to vector<8x16xf32>
    %64 = vector.extract_strided_slice %19 {offsets = [8, 0], sizes = [8, 16], strides = [1, 1]} : vector<16x64xf32> to vector<8x16xf32>
    %65 = vector.extract_strided_slice %19 {offsets = [8, 32], sizes = [8, 16], strides = [1, 1]} : vector<16x64xf32> to vector<8x16xf32>
    %66 = tpu.transpose %64, [1, 0] : vector<8x16xf32> -> vector<16x8xf32>
    %cst_33 = arith.constant dense<0.000000e+00> : vector<8x8xf32>
    %67 = tpu.matmul %63, %66, %cst_33 {dimension_numbers = #tpu.dot_dimension_numbers<[1], [0], [0], [1], [0, 0, 1, 1], [], []>} : vector<8x16xf32>, vector<16x8xf32>, vector<8x8xf32> -> vector<8x8xf32>
    %68 = arith.addf %67, %3 : vector<8x8xf32>
    %cst_34 = arith.constant dense<0xFF800000> : vector<8xf32>
    %69 = vector.multi_reduction <maximumf>, %68, %cst_34 [1] : vector<8x8xf32> to vector<8xf32>
    %70 = vector.shape_cast %69 : vector<8xf32> to vector<8x1xf32>
    %71 = vector.broadcast %70 : vector<8x1xf32> to vector<8x8xf32>
    %72 = arith.subf %68, %71 : vector<8x8xf32>
    %73 = math.exp %72 : vector<8x8xf32>
    %cst_35 = arith.constant dense<0.000000e+00> : vector<8xf32>
    %74 = vector.multi_reduction <add>, %73, %cst_35 [1] : vector<8x8xf32> to vector<8xf32>
    %75 = vector.shape_cast %74 : vector<8xf32> to vector<8x1xf32>
    %76 = tpu.reciprocal %75 {approx = true} : vector<8x1xf32> -> vector<8x1xf32>
    %77 = vector.broadcast %76 : vector<8x1xf32> to vector<8x8xf32>
    %78 = arith.mulf %73, %77 : vector<8x8xf32>
    %cst_36 = arith.constant dense<0.000000e+00> : vector<8x16xf32>
    %79 = tpu.matmul %78, %65, %cst_36 {dimension_numbers = #tpu.dot_dimension_numbers<[1], [0], [0], [1], [0, 0, 1, 1], [], []>} : vector<8x8xf32>, vector<8x16xf32>, vector<8x16xf32> -> vector<8x16xf32>
    %80 = vector.extract_strided_slice %20 {offsets = [0, 0], sizes = [16, 32], strides = [1, 1]} : vector<32x32xf32> to vector<16x32xf32>
    %cst_37 = arith.constant dense<0.000000e+00> : vector<8x32xf32>
    %81 = tpu.matmul %79, %80, %cst_37 {dimension_numbers = #tpu.dot_dimension_numbers<[1], [0], [0], [1], [0, 0, 1, 1], [], []>} : vector<8x16xf32>, vector<16x32xf32>, vector<8x32xf32> -> vector<8x32xf32>
    %82 = vector.broadcast %21 : vector<1x32xf32> to vector<8x32xf32>
    %83 = arith.addf %82, %81 : vector<8x32xf32>
    %84 = vector.extract_strided_slice %18 {offsets = [8, 16], sizes = [8, 16], strides = [1, 1]} : vector<16x32xf32> to vector<8x16xf32>
    %85 = vector.extract_strided_slice %19 {offsets = [8, 16], sizes = [8, 16], strides = [1, 1]} : vector<16x64xf32> to vector<8x16xf32>
    %86 = vector.extract_strided_slice %19 {offsets = [8, 48], sizes = [8, 16], strides = [1, 1]} : vector<16x64xf32> to vector<8x16xf32>
    %87 = tpu.transpose %85, [1, 0] : vector<8x16xf32> -> vector<16x8xf32>
    %cst_38 = arith.constant dense<0.000000e+00> : vector<8x8xf32>
    %88 = tpu.matmul %84, %87, %cst_38 {dimension_numbers = #tpu.dot_dimension_numbers<[1], [0], [0], [1], [0, 0, 1, 1], [], []>} : vector<8x16xf32>, vector<16x8xf32>, vector<8x8xf32> -> vector<8x8xf32>
    %89 = arith.addf %88, %3 : vector<8x8xf32>
    %cst_39 = arith.constant dense<0xFF800000> : vector<8xf32>
    %90 = vector.multi_reduction <maximumf>, %89, %cst_39 [1] : vector<8x8xf32> to vector<8xf32>
    %91 = vector.shape_cast %90 : vector<8xf32> to vector<8x1xf32>
    %92 = vector.broadcast %91 : vector<8x1xf32> to vector<8x8xf32>
    %93 = arith.subf %89, %92 : vector<8x8xf32>
    %94 = math.exp %93 : vector<8x8xf32>
    %cst_40 = arith.constant dense<0.000000e+00> : vector<8xf32>
    %95 = vector.multi_reduction <add>, %94, %cst_40 [1] : vector<8x8xf32> to vector<8xf32>
    %96 = vector.shape_cast %95 : vector<8xf32> to vector<8x1xf32>
    %97 = tpu.reciprocal %96 {approx = true} : vector<8x1xf32> -> vector<8x1xf32>
    %98 = vector.broadcast %97 : vector<8x1xf32> to vector<8x8xf32>
    %99 = arith.mulf %94, %98 : vector<8x8xf32>
    %cst_41 = arith.constant dense<0.000000e+00> : vector<8x16xf32>
    %100 = tpu.matmul %99, %86, %cst_41 {dimension_numbers = #tpu.dot_dimension_numbers<[1], [0], [0], [1], [0, 0, 1, 1], [], []>} : vector<8x8xf32>, vector<8x16xf32>, vector<8x16xf32> -> vector<8x16xf32>
    %101 = vector.extract_strided_slice %20 {offsets = [16, 0], sizes = [16, 32], strides = [1, 1]} : vector<32x32xf32> to vector<16x32xf32>
    %cst_42 = arith.constant dense<0.000000e+00> : vector<8x32xf32>
    %102 = tpu.matmul %100, %101, %cst_42 {dimension_numbers = #tpu.dot_dimension_numbers<[1], [0], [0], [1], [0, 0, 1, 1], [], []>} : vector<8x16xf32>, vector<16x32xf32>, vector<8x32xf32> -> vector<8x32xf32>
    %103 = arith.addf %83, %102 : vector<8x32xf32>
    %104 = tpu.concatenate %62, %103 in 0 : vector<8x32xf32>, vector<8x32xf32> -> vector<16x32xf32>
    %105 = arith.addf %12, %104 : vector<16x32xf32>
    %c0_43 = arith.constant 0 : index
    %c0_44 = arith.constant 0 : index
    %106 = vector.load %arg12[%c0_43, %c0_44] : memref<1x32xf32, #tpu.memory_space<vmem>>, vector<1x32xf32>
    %c0_45 = arith.constant 0 : index
    %c0_46 = arith.constant 0 : index
    %107 = vector.load %arg13[%c0_45, %c0_46] : memref<1x32xf32, #tpu.memory_space<vmem>>, vector<1x32xf32>
    %cst_47 = arith.constant dense<0.000000e+00> : vector<16xf32>
    %108 = vector.multi_reduction <add>, %105, %cst_47 [1] : vector<16x32xf32> to vector<16xf32>
    %109 = vector.shape_cast %108 : vector<16xf32> to vector<16x1xf32>
    %cst_48 = arith.constant 3.200000e+01 : f32
    %110 = vector.broadcast %cst_48 : f32 to vector<16x1xf32>
    %111 = arith.divf %109, %110 : vector<16x1xf32>
    %112 = vector.broadcast %111 : vector<16x1xf32> to vector<16x32xf32>
    %113 = arith.subf %105, %112 : vector<16x32xf32>
    %114 = arith.mulf %113, %113 : vector<16x32xf32>
    %cst_49 = arith.constant dense<0.000000e+00> : vector<16xf32>
    %115 = vector.multi_reduction <add>, %114, %cst_49 [1] : vector<16x32xf32> to vector<16xf32>
    %116 = vector.shape_cast %115 : vector<16xf32> to vector<16x1xf32>
    %cst_50 = arith.constant 3.200000e+01 : f32
    %117 = vector.broadcast %cst_50 : f32 to vector<16x1xf32>
    %118 = arith.divf %116, %117 : vector<16x1xf32>
    %119 = vector.broadcast %111 : vector<16x1xf32> to vector<16x32xf32>
    %120 = arith.subf %105, %119 : vector<16x32xf32>
    %cst_51 = arith.constant 9.99999974E-6 : f32
    %121 = vector.broadcast %cst_51 : f32 to vector<16x1xf32>
    %122 = arith.addf %118, %121 : vector<16x1xf32>
    %123 = math.rsqrt %122 : vector<16x1xf32>
    %124 = vector.broadcast %123 : vector<16x1xf32> to vector<16x32xf32>
    %125 = arith.mulf %120, %124 : vector<16x32xf32>
    %126 = vector.broadcast %106 : vector<1x32xf32> to vector<16x32xf32>
    %127 = arith.mulf %125, %126 : vector<16x32xf32>
    %128 = vector.broadcast %107 : vector<1x32xf32> to vector<16x32xf32>
    %129 = arith.addf %127, %128 : vector<16x32xf32>
    %c0_52 = arith.constant 0 : index
    %c0_53 = arith.constant 0 : index
    %130 = vector.load %arg14[%c0_52, %c0_53] : memref<32x32xf32, #tpu.memory_space<vmem>>, vector<32x32xf32>
    %cst_54 = arith.constant dense<0.000000e+00> : vector<16x32xf32>
    %131 = tpu.matmul %129, %130, %cst_54 {dimension_numbers = #tpu.dot_dimension_numbers<[1], [0], [0], [1], [0, 0, 1, 1], [], []>} : vector<16x32xf32>, vector<32x32xf32>, vector<16x32xf32> -> vector<16x32xf32>
    %c0_55 = arith.constant 0 : index
    %c0_56 = arith.constant 0 : index
    %132 = vector.load %arg15[%c0_55, %c0_56] : memref<1x32xf32, #tpu.memory_space<vmem>>, vector<1x32xf32>
    %133 = vector.broadcast %132 : vector<1x32xf32> to vector<16x32xf32>
    %134 = arith.addf %131, %133 : vector<16x32xf32>
    %c0_57 = arith.constant 0 : index
    %c0_58 = arith.constant 0 : index
    %135 = vector.load %arg16[%c0_57, %c0_58] : memref<32x64xf32, #tpu.memory_space<vmem>>, vector<32x64xf32>
    %cst_59 = arith.constant dense<0.000000e+00> : vector<32x64xf32>
    %136 = tpu.matmul %4, %135, %cst_59 {dimension_numbers = #tpu.dot_dimension_numbers<[1], [0], [0], [1], [0, 0, 1, 1], [], []>} : vector<32x32xf32>, vector<32x64xf32>, vector<32x64xf32> -> vector<32x64xf32>
    %c0_60 = arith.constant 0 : index
    %c0_61 = arith.constant 0 : index
    %137 = vector.load %arg17[%c0_60, %c0_61] : memref<1x64xf32, #tpu.memory_space<vmem>>, vector<1x64xf32>
    %138 = vector.broadcast %137 : vector<1x64xf32> to vector<32x64xf32>
    %139 = arith.addf %136, %138 : vector<32x64xf32>
    %c0_62 = arith.constant 0 : index
    %c0_63 = arith.constant 0 : index
    %140 = vector.load %arg18[%c0_62, %c0_63] : memref<32x32xf32, #tpu.memory_space<vmem>>, vector<32x32xf32>
    %c0_64 = arith.constant 0 : index
    %c0_65 = arith.constant 0 : index
    %141 = vector.load %arg19[%c0_64, %c0_65] : memref<1x32xf32, #tpu.memory_space<vmem>>, vector<1x32xf32>
    %142 = vector.extract_strided_slice %134 {offsets = [0, 0], sizes = [8, 16], strides = [1, 1]} : vector<16x32xf32> to vector<8x16xf32>
    %143 = vector.extract_strided_slice %139 {offsets = [0, 0], sizes = [16, 16], strides = [1, 1]} : vector<32x64xf32> to vector<16x16xf32>
    %144 = vector.extract_strided_slice %139 {offsets = [0, 32], sizes = [16, 16], strides = [1, 1]} : vector<32x64xf32> to vector<16x16xf32>
    %145 = tpu.transpose %143, [1, 0] : vector<16x16xf32> -> vector<16x16xf32>
    %cst_66 = arith.constant dense<0.000000e+00> : vector<8x16xf32>
    %146 = tpu.matmul %142, %145, %cst_66 {dimension_numbers = #tpu.dot_dimension_numbers<[1], [0], [0], [1], [0, 0, 1, 1], [], []>} : vector<8x16xf32>, vector<16x16xf32>, vector<8x16xf32> -> vector<8x16xf32>
    %147 = vector.extract_strided_slice %2 {offsets = [0, 0], sizes = [1, 16], strides = [1, 1]} : vector<2x16xf32> to vector<1x16xf32>
    %148 = vector.broadcast %147 : vector<1x16xf32> to vector<8x16xf32>
    %149 = arith.addf %146, %148 : vector<8x16xf32>
    %cst_67 = arith.constant dense<0xFF800000> : vector<8xf32>
    %150 = vector.multi_reduction <maximumf>, %149, %cst_67 [1] : vector<8x16xf32> to vector<8xf32>
    %151 = vector.shape_cast %150 : vector<8xf32> to vector<8x1xf32>
    %152 = vector.broadcast %151 : vector<8x1xf32> to vector<8x16xf32>
    %153 = arith.subf %149, %152 : vector<8x16xf32>
    %154 = math.exp %153 : vector<8x16xf32>
    %cst_68 = arith.constant dense<0.000000e+00> : vector<8xf32>
    %155 = vector.multi_reduction <add>, %154, %cst_68 [1] : vector<8x16xf32> to vector<8xf32>
    %156 = vector.shape_cast %155 : vector<8xf32> to vector<8x1xf32>
    %157 = tpu.reciprocal %156 {approx = true} : vector<8x1xf32> -> vector<8x1xf32>
    %158 = vector.broadcast %157 : vector<8x1xf32> to vector<8x16xf32>
    %159 = arith.mulf %154, %158 : vector<8x16xf32>
    %cst_69 = arith.constant dense<0.000000e+00> : vector<8x16xf32>
    %160 = tpu.matmul %159, %144, %cst_69 {dimension_numbers = #tpu.dot_dimension_numbers<[1], [0], [0], [1], [0, 0, 1, 1], [], []>} : vector<8x16xf32>, vector<16x16xf32>, vector<8x16xf32> -> vector<8x16xf32>
    %161 = vector.extract_strided_slice %140 {offsets = [0, 0], sizes = [16, 32], strides = [1, 1]} : vector<32x32xf32> to vector<16x32xf32>
    %cst_70 = arith.constant dense<0.000000e+00> : vector<8x32xf32>
    %162 = tpu.matmul %160, %161, %cst_70 {dimension_numbers = #tpu.dot_dimension_numbers<[1], [0], [0], [1], [0, 0, 1, 1], [], []>} : vector<8x16xf32>, vector<16x32xf32>, vector<8x32xf32> -> vector<8x32xf32>
    %163 = vector.broadcast %141 : vector<1x32xf32> to vector<8x32xf32>
    %164 = arith.addf %163, %162 : vector<8x32xf32>
    %165 = vector.extract_strided_slice %134 {offsets = [0, 16], sizes = [8, 16], strides = [1, 1]} : vector<16x32xf32> to vector<8x16xf32>
    %166 = vector.extract_strided_slice %139 {offsets = [0, 16], sizes = [16, 16], strides = [1, 1]} : vector<32x64xf32> to vector<16x16xf32>
    %167 = vector.extract_strided_slice %139 {offsets = [0, 48], sizes = [16, 16], strides = [1, 1]} : vector<32x64xf32> to vector<16x16xf32>
    %168 = tpu.transpose %166, [1, 0] : vector<16x16xf32> -> vector<16x16xf32>
    %cst_71 = arith.constant dense<0.000000e+00> : vector<8x16xf32>
    %169 = tpu.matmul %165, %168, %cst_71 {dimension_numbers = #tpu.dot_dimension_numbers<[1], [0], [0], [1], [0, 0, 1, 1], [], []>} : vector<8x16xf32>, vector<16x16xf32>, vector<8x16xf32> -> vector<8x16xf32>
    %170 = vector.extract_strided_slice %2 {offsets = [0, 0], sizes = [1, 16], strides = [1, 1]} : vector<2x16xf32> to vector<1x16xf32>
    %171 = vector.broadcast %170 : vector<1x16xf32> to vector<8x16xf32>
    %172 = arith.addf %169, %171 : vector<8x16xf32>
    %cst_72 = arith.constant dense<0xFF800000> : vector<8xf32>
    %173 = vector.multi_reduction <maximumf>, %172, %cst_72 [1] : vector<8x16xf32> to vector<8xf32>
    %174 = vector.shape_cast %173 : vector<8xf32> to vector<8x1xf32>
    %175 = vector.broadcast %174 : vector<8x1xf32> to vector<8x16xf32>
    %176 = arith.subf %172, %175 : vector<8x16xf32>
    %177 = math.exp %176 : vector<8x16xf32>
    %cst_73 = arith.constant dense<0.000000e+00> : vector<8xf32>
    %178 = vector.multi_reduction <add>, %177, %cst_73 [1] : vector<8x16xf32> to vector<8xf32>
    %179 = vector.shape_cast %178 : vector<8xf32> to vector<8x1xf32>
    %180 = tpu.reciprocal %179 {approx = true} : vector<8x1xf32> -> vector<8x1xf32>
    %181 = vector.broadcast %180 : vector<8x1xf32> to vector<8x16xf32>
    %182 = arith.mulf %177, %181 : vector<8x16xf32>
    %cst_74 = arith.constant dense<0.000000e+00> : vector<8x16xf32>
    %183 = tpu.matmul %182, %167, %cst_74 {dimension_numbers = #tpu.dot_dimension_numbers<[1], [0], [0], [1], [0, 0, 1, 1], [], []>} : vector<8x16xf32>, vector<16x16xf32>, vector<8x16xf32> -> vector<8x16xf32>
    %184 = vector.extract_strided_slice %140 {offsets = [16, 0], sizes = [16, 32], strides = [1, 1]} : vector<32x32xf32> to vector<16x32xf32>
    %cst_75 = arith.constant dense<0.000000e+00> : vector<8x32xf32>
    %185 = tpu.matmul %183, %184, %cst_75 {dimension_numbers = #tpu.dot_dimension_numbers<[1], [0], [0], [1], [0, 0, 1, 1], [], []>} : vector<8x16xf32>, vector<16x32xf32>, vector<8x32xf32> -> vector<8x32xf32>
    %186 = arith.addf %164, %185 : vector<8x32xf32>
    %187 = vector.extract_strided_slice %134 {offsets = [8, 0], sizes = [8, 16], strides = [1, 1]} : vector<16x32xf32> to vector<8x16xf32>
    %188 = vector.extract_strided_slice %139 {offsets = [16, 0], sizes = [16, 16], strides = [1, 1]} : vector<32x64xf32> to vector<16x16xf32>
    %189 = vector.extract_strided_slice %139 {offsets = [16, 32], sizes = [16, 16], strides = [1, 1]} : vector<32x64xf32> to vector<16x16xf32>
    %190 = tpu.transpose %188, [1, 0] : vector<16x16xf32> -> vector<16x16xf32>
    %cst_76 = arith.constant dense<0.000000e+00> : vector<8x16xf32>
    %191 = tpu.matmul %187, %190, %cst_76 {dimension_numbers = #tpu.dot_dimension_numbers<[1], [0], [0], [1], [0, 0, 1, 1], [], []>} : vector<8x16xf32>, vector<16x16xf32>, vector<8x16xf32> -> vector<8x16xf32>
    %192 = vector.extract_strided_slice %2 {offsets = [1, 0], sizes = [1, 16], strides = [1, 1]} : vector<2x16xf32> to vector<1x16xf32>
    %193 = vector.broadcast %192 : vector<1x16xf32> to vector<8x16xf32>
    %194 = arith.addf %191, %193 : vector<8x16xf32>
    %cst_77 = arith.constant dense<0xFF800000> : vector<8xf32>
    %195 = vector.multi_reduction <maximumf>, %194, %cst_77 [1] : vector<8x16xf32> to vector<8xf32>
    %196 = vector.shape_cast %195 : vector<8xf32> to vector<8x1xf32>
    %197 = vector.broadcast %196 : vector<8x1xf32> to vector<8x16xf32>
    %198 = arith.subf %194, %197 : vector<8x16xf32>
    %199 = math.exp %198 : vector<8x16xf32>
    %cst_78 = arith.constant dense<0.000000e+00> : vector<8xf32>
    %200 = vector.multi_reduction <add>, %199, %cst_78 [1] : vector<8x16xf32> to vector<8xf32>
    %201 = vector.shape_cast %200 : vector<8xf32> to vector<8x1xf32>
    %202 = tpu.reciprocal %201 {approx = true} : vector<8x1xf32> -> vector<8x1xf32>
    %203 = vector.broadcast %202 : vector<8x1xf32> to vector<8x16xf32>
    %204 = arith.mulf %199, %203 : vector<8x16xf32>
    %cst_79 = arith.constant dense<0.000000e+00> : vector<8x16xf32>
    %205 = tpu.matmul %204, %189, %cst_79 {dimension_numbers = #tpu.dot_dimension_numbers<[1], [0], [0], [1], [0, 0, 1, 1], [], []>} : vector<8x16xf32>, vector<16x16xf32>, vector<8x16xf32> -> vector<8x16xf32>
    %206 = vector.extract_strided_slice %140 {offsets = [0, 0], sizes = [16, 32], strides = [1, 1]} : vector<32x32xf32> to vector<16x32xf32>
    %cst_80 = arith.constant dense<0.000000e+00> : vector<8x32xf32>
    %207 = tpu.matmul %205, %206, %cst_80 {dimension_numbers = #tpu.dot_dimension_numbers<[1], [0], [0], [1], [0, 0, 1, 1], [], []>} : vector<8x16xf32>, vector<16x32xf32>, vector<8x32xf32> -> vector<8x32xf32>
    %208 = vector.broadcast %141 : vector<1x32xf32> to vector<8x32xf32>
    %209 = arith.addf %208, %207 : vector<8x32xf32>
    %210 = vector.extract_strided_slice %134 {offsets = [8, 16], sizes = [8, 16], strides = [1, 1]} : vector<16x32xf32> to vector<8x16xf32>
    %211 = vector.extract_strided_slice %139 {offsets = [16, 16], sizes = [16, 16], strides = [1, 1]} : vector<32x64xf32> to vector<16x16xf32>
    %212 = vector.extract_strided_slice %139 {offsets = [16, 48], sizes = [16, 16], strides = [1, 1]} : vector<32x64xf32> to vector<16x16xf32>
    %213 = tpu.transpose %211, [1, 0] : vector<16x16xf32> -> vector<16x16xf32>
    %cst_81 = arith.constant dense<0.000000e+00> : vector<8x16xf32>
    %214 = tpu.matmul %210, %213, %cst_81 {dimension_numbers = #tpu.dot_dimension_numbers<[1], [0], [0], [1], [0, 0, 1, 1], [], []>} : vector<8x16xf32>, vector<16x16xf32>, vector<8x16xf32> -> vector<8x16xf32>
    %215 = vector.extract_strided_slice %2 {offsets = [1, 0], sizes = [1, 16], strides = [1, 1]} : vector<2x16xf32> to vector<1x16xf32>
    %216 = vector.broadcast %215 : vector<1x16xf32> to vector<8x16xf32>
    %217 = arith.addf %214, %216 : vector<8x16xf32>
    %cst_82 = arith.constant dense<0xFF800000> : vector<8xf32>
    %218 = vector.multi_reduction <maximumf>, %217, %cst_82 [1] : vector<8x16xf32> to vector<8xf32>
    %219 = vector.shape_cast %218 : vector<8xf32> to vector<8x1xf32>
    %220 = vector.broadcast %219 : vector<8x1xf32> to vector<8x16xf32>
    %221 = arith.subf %217, %220 : vector<8x16xf32>
    %222 = math.exp %221 : vector<8x16xf32>
    %cst_83 = arith.constant dense<0.000000e+00> : vector<8xf32>
    %223 = vector.multi_reduction <add>, %222, %cst_83 [1] : vector<8x16xf32> to vector<8xf32>
    %224 = vector.shape_cast %223 : vector<8xf32> to vector<8x1xf32>
    %225 = tpu.reciprocal %224 {approx = true} : vector<8x1xf32> -> vector<8x1xf32>
    %226 = vector.broadcast %225 : vector<8x1xf32> to vector<8x16xf32>
    %227 = arith.mulf %222, %226 : vector<8x16xf32>
    %cst_84 = arith.constant dense<0.000000e+00> : vector<8x16xf32>
    %228 = tpu.matmul %227, %212, %cst_84 {dimension_numbers = #tpu.dot_dimension_numbers<[1], [0], [0], [1], [0, 0, 1, 1], [], []>} : vector<8x16xf32>, vector<16x16xf32>, vector<8x16xf32> -> vector<8x16xf32>
    %229 = vector.extract_strided_slice %140 {offsets = [16, 0], sizes = [16, 32], strides = [1, 1]} : vector<32x32xf32> to vector<16x32xf32>
    %cst_85 = arith.constant dense<0.000000e+00> : vector<8x32xf32>
    %230 = tpu.matmul %228, %229, %cst_85 {dimension_numbers = #tpu.dot_dimension_numbers<[1], [0], [0], [1], [0, 0, 1, 1], [], []>} : vector<8x16xf32>, vector<16x32xf32>, vector<8x32xf32> -> vector<8x32xf32>
    %231 = arith.addf %209, %230 : vector<8x32xf32>
    %232 = tpu.concatenate %186, %231 in 0 : vector<8x32xf32>, vector<8x32xf32> -> vector<16x32xf32>
    %233 = arith.addf %129, %232 : vector<16x32xf32>
    %c0_86 = arith.constant 0 : index
    %c0_87 = arith.constant 0 : index
    %234 = vector.load %arg20[%c0_86, %c0_87] : memref<1x32xf32, #tpu.memory_space<vmem>>, vector<1x32xf32>
    %c0_88 = arith.constant 0 : index
    %c0_89 = arith.constant 0 : index
    %235 = vector.load %arg21[%c0_88, %c0_89] : memref<1x32xf32, #tpu.memory_space<vmem>>, vector<1x32xf32>
    %cst_90 = arith.constant dense<0.000000e+00> : vector<16xf32>
    %236 = vector.multi_reduction <add>, %233, %cst_90 [1] : vector<16x32xf32> to vector<16xf32>
    %237 = vector.shape_cast %236 : vector<16xf32> to vector<16x1xf32>
    %cst_91 = arith.constant 3.200000e+01 : f32
    %238 = vector.broadcast %cst_91 : f32 to vector<16x1xf32>
    %239 = arith.divf %237, %238 : vector<16x1xf32>
    %240 = vector.broadcast %239 : vector<16x1xf32> to vector<16x32xf32>
    %241 = arith.subf %233, %240 : vector<16x32xf32>
    %242 = arith.mulf %241, %241 : vector<16x32xf32>
    %cst_92 = arith.constant dense<0.000000e+00> : vector<16xf32>
    %243 = vector.multi_reduction <add>, %242, %cst_92 [1] : vector<16x32xf32> to vector<16xf32>
    %244 = vector.shape_cast %243 : vector<16xf32> to vector<16x1xf32>
    %cst_93 = arith.constant 3.200000e+01 : f32
    %245 = vector.broadcast %cst_93 : f32 to vector<16x1xf32>
    %246 = arith.divf %244, %245 : vector<16x1xf32>
    %247 = vector.broadcast %239 : vector<16x1xf32> to vector<16x32xf32>
    %248 = arith.subf %233, %247 : vector<16x32xf32>
    %cst_94 = arith.constant 9.99999974E-6 : f32
    %249 = vector.broadcast %cst_94 : f32 to vector<16x1xf32>
    %250 = arith.addf %246, %249 : vector<16x1xf32>
    %251 = math.rsqrt %250 : vector<16x1xf32>
    %252 = vector.broadcast %251 : vector<16x1xf32> to vector<16x32xf32>
    %253 = arith.mulf %248, %252 : vector<16x32xf32>
    %254 = vector.broadcast %234 : vector<1x32xf32> to vector<16x32xf32>
    %255 = arith.mulf %253, %254 : vector<16x32xf32>
    %256 = vector.broadcast %235 : vector<1x32xf32> to vector<16x32xf32>
    %257 = arith.addf %255, %256 : vector<16x32xf32>
    %c0_95 = arith.constant 0 : index
    %c0_96 = arith.constant 0 : index
    %258 = vector.load %arg22[%c0_95, %c0_96] : memref<32x64xf32, #tpu.memory_space<vmem>>, vector<32x64xf32>
    %cst_97 = arith.constant dense<0.000000e+00> : vector<16x64xf32>
    %259 = tpu.matmul %257, %258, %cst_97 {dimension_numbers = #tpu.dot_dimension_numbers<[1], [0], [0], [1], [0, 0, 1, 1], [], []>} : vector<16x32xf32>, vector<32x64xf32>, vector<16x64xf32> -> vector<16x64xf32>
    %c0_98 = arith.constant 0 : index
    %c0_99 = arith.constant 0 : index
    %260 = vector.load %arg23[%c0_98, %c0_99] : memref<1x64xf32, #tpu.memory_space<vmem>>, vector<1x64xf32>
    %261 = vector.broadcast %260 : vector<1x64xf32> to vector<16x64xf32>
    %262 = arith.addf %259, %261 : vector<16x64xf32>
    %cst_100 = arith.constant 0.000000e+00 : f32
    %263 = vector.broadcast %cst_100 : f32 to vector<16x64xf32>
    %264 = arith.maximumf %262, %263 : vector<16x64xf32>
    %c0_101 = arith.constant 0 : index
    %c0_102 = arith.constant 0 : index
    %265 = vector.load %arg24[%c0_101, %c0_102] : memref<64x32xf32, #tpu.memory_space<vmem>>, vector<64x32xf32>
    %cst_103 = arith.constant dense<0.000000e+00> : vector<16x32xf32>
    %266 = tpu.matmul %264, %265, %cst_103 {dimension_numbers = #tpu.dot_dimension_numbers<[1], [0], [0], [1], [0, 0, 1, 1], [], []>} : vector<16x64xf32>, vector<64x32xf32>, vector<16x32xf32> -> vector<16x32xf32>
    %c0_104 = arith.constant 0 : index
    %c0_105 = arith.constant 0 : index
    %267 = vector.load %arg25[%c0_104, %c0_105] : memref<1x32xf32, #tpu.memory_space<vmem>>, vector<1x32xf32>
    %268 = vector.broadcast %267 : vector<1x32xf32> to vector<16x32xf32>
    %269 = arith.addf %266, %268 : vector<16x32xf32>
    %270 = arith.addf %257, %269 : vector<16x32xf32>
    %c0_106 = arith.constant 0 : index
    %c0_107 = arith.constant 0 : index
    %271 = vector.load %arg26[%c0_106, %c0_107] : memref<1x32xf32, #tpu.memory_space<vmem>>, vector<1x32xf32>
    %c0_108 = arith.constant 0 : index
    %c0_109 = arith.constant 0 : index
    %272 = vector.load %arg27[%c0_108, %c0_109] : memref<1x32xf32, #tpu.memory_space<vmem>>, vector<1x32xf32>
    %cst_110 = arith.constant dense<0.000000e+00> : vector<16xf32>
    %273 = vector.multi_reduction <add>, %270, %cst_110 [1] : vector<16x32xf32> to vector<16xf32>
    %274 = vector.shape_cast %273 : vector<16xf32> to vector<16x1xf32>
    %cst_111 = arith.constant 3.200000e+01 : f32
    %275 = vector.broadcast %cst_111 : f32 to vector<16x1xf32>
    %276 = arith.divf %274, %275 : vector<16x1xf32>
    %277 = vector.broadcast %276 : vector<16x1xf32> to vector<16x32xf32>
    %278 = arith.subf %270, %277 : vector<16x32xf32>
    %279 = arith.mulf %278, %278 : vector<16x32xf32>
    %cst_112 = arith.constant dense<0.000000e+00> : vector<16xf32>
    %280 = vector.multi_reduction <add>, %279, %cst_112 [1] : vector<16x32xf32> to vector<16xf32>
    %281 = vector.shape_cast %280 : vector<16xf32> to vector<16x1xf32>
    %cst_113 = arith.constant 3.200000e+01 : f32
    %282 = vector.broadcast %cst_113 : f32 to vector<16x1xf32>
    %283 = arith.divf %281, %282 : vector<16x1xf32>
    %284 = vector.broadcast %276 : vector<16x1xf32> to vector<16x32xf32>
    %285 = arith.subf %270, %284 : vector<16x32xf32>
    %cst_114 = arith.constant 9.99999974E-6 : f32
    %286 = vector.broadcast %cst_114 : f32 to vector<16x1xf32>
    %287 = arith.addf %283, %286 : vector<16x1xf32>
    %288 = math.rsqrt %287 : vector<16x1xf32>
    %289 = vector.broadcast %288 : vector<16x1xf32> to vector<16x32xf32>
    %290 = arith.mulf %285, %289 : vector<16x32xf32>
    %291 = vector.broadcast %271 : vector<1x32xf32> to vector<16x32xf32>
    %292 = arith.mulf %290, %291 : vector<16x32xf32>
    %293 = vector.broadcast %272 : vector<1x32xf32> to vector<16x32xf32>
    %294 = arith.addf %292, %293 : vector<16x32xf32>
    %c0_115 = arith.constant 0 : index
    %c0_116 = arith.constant 0 : index
    %295 = vector.load %arg28[%c0_115, %c0_116] : memref<32x96xf32, #tpu.memory_space<vmem>>, vector<32x96xf32>
    %cst_117 = arith.constant dense<0.000000e+00> : vector<16x96xf32>
    %296 = tpu.matmul %294, %295, %cst_117 {dimension_numbers = #tpu.dot_dimension_numbers<[1], [0], [0], [1], [0, 0, 1, 1], [], []>} : vector<16x32xf32>, vector<32x96xf32>, vector<16x96xf32> -> vector<16x96xf32>
    %c0_118 = arith.constant 0 : index
    %c0_119 = arith.constant 0 : index
    %297 = vector.load %arg29[%c0_118, %c0_119] : memref<1x96xf32, #tpu.memory_space<vmem>>, vector<1x96xf32>
    %298 = vector.broadcast %297 : vector<1x96xf32> to vector<16x96xf32>
    %299 = arith.addf %296, %298 : vector<16x96xf32>
    %300 = vector.extract_strided_slice %299 {offsets = [0, 0], sizes = [16, 32], strides = [1, 1]} : vector<16x96xf32> to vector<16x32xf32>
    %301 = vector.extract_strided_slice %299 {offsets = [0, 32], sizes = [16, 64], strides = [1, 1]} : vector<16x96xf32> to vector<16x64xf32>
    %c0_120 = arith.constant 0 : index
    %c0_121 = arith.constant 0 : index
    %302 = vector.load %arg30[%c0_120, %c0_121] : memref<32x32xf32, #tpu.memory_space<vmem>>, vector<32x32xf32>
    %c0_122 = arith.constant 0 : index
    %c0_123 = arith.constant 0 : index
    %303 = vector.load %arg31[%c0_122, %c0_123] : memref<1x32xf32, #tpu.memory_space<vmem>>, vector<1x32xf32>
    %304 = vector.extract_strided_slice %300 {offsets = [0, 0], sizes = [8, 16], strides = [1, 1]} : vector<16x32xf32> to vector<8x16xf32>
    %305 = vector.extract_strided_slice %301 {offsets = [0, 0], sizes = [8, 16], strides = [1, 1]} : vector<16x64xf32> to vector<8x16xf32>
    %306 = vector.extract_strided_slice %301 {offsets = [0, 32], sizes = [8, 16], strides = [1, 1]} : vector<16x64xf32> to vector<8x16xf32>
    %307 = tpu.transpose %305, [1, 0] : vector<8x16xf32> -> vector<16x8xf32>
    %cst_124 = arith.constant dense<0.000000e+00> : vector<8x8xf32>
    %308 = tpu.matmul %304, %307, %cst_124 {dimension_numbers = #tpu.dot_dimension_numbers<[1], [0], [0], [1], [0, 0, 1, 1], [], []>} : vector<8x16xf32>, vector<16x8xf32>, vector<8x8xf32> -> vector<8x8xf32>
    %309 = arith.addf %308, %3 : vector<8x8xf32>
    %cst_125 = arith.constant dense<0xFF800000> : vector<8xf32>
    %310 = vector.multi_reduction <maximumf>, %309, %cst_125 [1] : vector<8x8xf32> to vector<8xf32>
    %311 = vector.shape_cast %310 : vector<8xf32> to vector<8x1xf32>
    %312 = vector.broadcast %311 : vector<8x1xf32> to vector<8x8xf32>
    %313 = arith.subf %309, %312 : vector<8x8xf32>
    %314 = math.exp %313 : vector<8x8xf32>
    %cst_126 = arith.constant dense<0.000000e+00> : vector<8xf32>
    %315 = vector.multi_reduction <add>, %314, %cst_126 [1] : vector<8x8xf32> to vector<8xf32>
    %316 = vector.shape_cast %315 : vector<8xf32> to vector<8x1xf32>
    %317 = tpu.reciprocal %316 {approx = true} : vector<8x1xf32> -> vector<8x1xf32>
    %318 = vector.broadcast %317 : vector<8x1xf32> to vector<8x8xf32>
    %319 = arith.mulf %314, %318 : vector<8x8xf32>
    %cst_127 = arith.constant dense<0.000000e+00> : vector<8x16xf32>
    %320 = tpu.matmul %319, %306, %cst_127 {dimension_numbers = #tpu.dot_dimension_numbers<[1], [0], [0], [1], [0, 0, 1, 1], [], []>} : vector<8x8xf32>, vector<8x16xf32>, vector<8x16xf32> -> vector<8x16xf32>
    %321 = vector.extract_strided_slice %302 {offsets = [0, 0], sizes = [16, 32], strides = [1, 1]} : vector<32x32xf32> to vector<16x32xf32>
    %cst_128 = arith.constant dense<0.000000e+00> : vector<8x32xf32>
    %322 = tpu.matmul %320, %321, %cst_128 {dimension_numbers = #tpu.dot_dimension_numbers<[1], [0], [0], [1], [0, 0, 1, 1], [], []>} : vector<8x16xf32>, vector<16x32xf32>, vector<8x32xf32> -> vector<8x32xf32>
    %323 = vector.broadcast %303 : vector<1x32xf32> to vector<8x32xf32>
    %324 = arith.addf %323, %322 : vector<8x32xf32>
    %325 = vector.extract_strided_slice %300 {offsets = [0, 16], sizes = [8, 16], strides = [1, 1]} : vector<16x32xf32> to vector<8x16xf32>
    %326 = vector.extract_strided_slice %301 {offsets = [0, 16], sizes = [8, 16], strides = [1, 1]} : vector<16x64xf32> to vector<8x16xf32>
    %327 = vector.extract_strided_slice %301 {offsets = [0, 48], sizes = [8, 16], strides = [1, 1]} : vector<16x64xf32> to vector<8x16xf32>
    %328 = tpu.transpose %326, [1, 0] : vector<8x16xf32> -> vector<16x8xf32>
    %cst_129 = arith.constant dense<0.000000e+00> : vector<8x8xf32>
    %329 = tpu.matmul %325, %328, %cst_129 {dimension_numbers = #tpu.dot_dimension_numbers<[1], [0], [0], [1], [0, 0, 1, 1], [], []>} : vector<8x16xf32>, vector<16x8xf32>, vector<8x8xf32> -> vector<8x8xf32>
    %330 = arith.addf %329, %3 : vector<8x8xf32>
    %cst_130 = arith.constant dense<0xFF800000> : vector<8xf32>
    %331 = vector.multi_reduction <maximumf>, %330, %cst_130 [1] : vector<8x8xf32> to vector<8xf32>
    %332 = vector.shape_cast %331 : vector<8xf32> to vector<8x1xf32>
    %333 = vector.broadcast %332 : vector<8x1xf32> to vector<8x8xf32>
    %334 = arith.subf %330, %333 : vector<8x8xf32>
    %335 = math.exp %334 : vector<8x8xf32>
    %cst_131 = arith.constant dense<0.000000e+00> : vector<8xf32>
    %336 = vector.multi_reduction <add>, %335, %cst_131 [1] : vector<8x8xf32> to vector<8xf32>
    %337 = vector.shape_cast %336 : vector<8xf32> to vector<8x1xf32>
    %338 = tpu.reciprocal %337 {approx = true} : vector<8x1xf32> -> vector<8x1xf32>
    %339 = vector.broadcast %338 : vector<8x1xf32> to vector<8x8xf32>
    %340 = arith.mulf %335, %339 : vector<8x8xf32>
    %cst_132 = arith.constant dense<0.000000e+00> : vector<8x16xf32>
    %341 = tpu.matmul %340, %327, %cst_132 {dimension_numbers = #tpu.dot_dimension_numbers<[1], [0], [0], [1], [0, 0, 1, 1], [], []>} : vector<8x8xf32>, vector<8x16xf32>, vector<8x16xf32> -> vector<8x16xf32>
    %342 = vector.extract_strided_slice %302 {offsets = [16, 0], sizes = [16, 32], strides = [1, 1]} : vector<32x32xf32> to vector<16x32xf32>
    %cst_133 = arith.constant dense<0.000000e+00> : vector<8x32xf32>
    %343 = tpu.matmul %341, %342, %cst_133 {dimension_numbers = #tpu.dot_dimension_numbers<[1], [0], [0], [1], [0, 0, 1, 1], [], []>} : vector<8x16xf32>, vector<16x32xf32>, vector<8x32xf32> -> vector<8x32xf32>
    %344 = arith.addf %324, %343 : vector<8x32xf32>
    %345 = vector.extract_strided_slice %300 {offsets = [8, 0], sizes = [8, 16], strides = [1, 1]} : vector<16x32xf32> to vector<8x16xf32>
    %346 = vector.extract_strided_slice %301 {offsets = [8, 0], sizes = [8, 16], strides = [1, 1]} : vector<16x64xf32> to vector<8x16xf32>
    %347 = vector.extract_strided_slice %301 {offsets = [8, 32], sizes = [8, 16], strides = [1, 1]} : vector<16x64xf32> to vector<8x16xf32>
    %348 = tpu.transpose %346, [1, 0] : vector<8x16xf32> -> vector<16x8xf32>
    %cst_134 = arith.constant dense<0.000000e+00> : vector<8x8xf32>
    %349 = tpu.matmul %345, %348, %cst_134 {dimension_numbers = #tpu.dot_dimension_numbers<[1], [0], [0], [1], [0, 0, 1, 1], [], []>} : vector<8x16xf32>, vector<16x8xf32>, vector<8x8xf32> -> vector<8x8xf32>
    %350 = arith.addf %349, %3 : vector<8x8xf32>
    %cst_135 = arith.constant dense<0xFF800000> : vector<8xf32>
    %351 = vector.multi_reduction <maximumf>, %350, %cst_135 [1] : vector<8x8xf32> to vector<8xf32>
    %352 = vector.shape_cast %351 : vector<8xf32> to vector<8x1xf32>
    %353 = vector.broadcast %352 : vector<8x1xf32> to vector<8x8xf32>
    %354 = arith.subf %350, %353 : vector<8x8xf32>
    %355 = math.exp %354 : vector<8x8xf32>
    %cst_136 = arith.constant dense<0.000000e+00> : vector<8xf32>
    %356 = vector.multi_reduction <add>, %355, %cst_136 [1] : vector<8x8xf32> to vector<8xf32>
    %357 = vector.shape_cast %356 : vector<8xf32> to vector<8x1xf32>
    %358 = tpu.reciprocal %357 {approx = true} : vector<8x1xf32> -> vector<8x1xf32>
    %359 = vector.broadcast %358 : vector<8x1xf32> to vector<8x8xf32>
    %360 = arith.mulf %355, %359 : vector<8x8xf32>
    %cst_137 = arith.constant dense<0.000000e+00> : vector<8x16xf32>
    %361 = tpu.matmul %360, %347, %cst_137 {dimension_numbers = #tpu.dot_dimension_numbers<[1], [0], [0], [1], [0, 0, 1, 1], [], []>} : vector<8x8xf32>, vector<8x16xf32>, vector<8x16xf32> -> vector<8x16xf32>
    %362 = vector.extract_strided_slice %302 {offsets = [0, 0], sizes = [16, 32], strides = [1, 1]} : vector<32x32xf32> to vector<16x32xf32>
    %cst_138 = arith.constant dense<0.000000e+00> : vector<8x32xf32>
    %363 = tpu.matmul %361, %362, %cst_138 {dimension_numbers = #tpu.dot_dimension_numbers<[1], [0], [0], [1], [0, 0, 1, 1], [], []>} : vector<8x16xf32>, vector<16x32xf32>, vector<8x32xf32> -> vector<8x32xf32>
    %364 = vector.broadcast %303 : vector<1x32xf32> to vector<8x32xf32>
    %365 = arith.addf %364, %363 : vector<8x32xf32>
    %366 = vector.extract_strided_slice %300 {offsets = [8, 16], sizes = [8, 16], strides = [1, 1]} : vector<16x32xf32> to vector<8x16xf32>
    %367 = vector.extract_strided_slice %301 {offsets = [8, 16], sizes = [8, 16], strides = [1, 1]} : vector<16x64xf32> to vector<8x16xf32>
    %368 = vector.extract_strided_slice %301 {offsets = [8, 48], sizes = [8, 16], strides = [1, 1]} : vector<16x64xf32> to vector<8x16xf32>
    %369 = tpu.transpose %367, [1, 0] : vector<8x16xf32> -> vector<16x8xf32>
    %cst_139 = arith.constant dense<0.000000e+00> : vector<8x8xf32>
    %370 = tpu.matmul %366, %369, %cst_139 {dimension_numbers = #tpu.dot_dimension_numbers<[1], [0], [0], [1], [0, 0, 1, 1], [], []>} : vector<8x16xf32>, vector<16x8xf32>, vector<8x8xf32> -> vector<8x8xf32>
    %371 = arith.addf %370, %3 : vector<8x8xf32>
    %cst_140 = arith.constant dense<0xFF800000> : vector<8xf32>
    %372 = vector.multi_reduction <maximumf>, %371, %cst_140 [1] : vector<8x8xf32> to vector<8xf32>
    %373 = vector.shape_cast %372 : vector<8xf32> to vector<8x1xf32>
    %374 = vector.broadcast %373 : vector<8x1xf32> to vector<8x8xf32>
    %375 = arith.subf %371, %374 : vector<8x8xf32>
    %376 = math.exp %375 : vector<8x8xf32>
    %cst_141 = arith.constant dense<0.000000e+00> : vector<8xf32>
    %377 = vector.multi_reduction <add>, %376, %cst_141 [1] : vector<8x8xf32> to vector<8xf32>
    %378 = vector.shape_cast %377 : vector<8xf32> to vector<8x1xf32>
    %379 = tpu.reciprocal %378 {approx = true} : vector<8x1xf32> -> vector<8x1xf32>
    %380 = vector.broadcast %379 : vector<8x1xf32> to vector<8x8xf32>
    %381 = arith.mulf %376, %380 : vector<8x8xf32>
    %cst_142 = arith.constant dense<0.000000e+00> : vector<8x16xf32>
    %382 = tpu.matmul %381, %368, %cst_142 {dimension_numbers = #tpu.dot_dimension_numbers<[1], [0], [0], [1], [0, 0, 1, 1], [], []>} : vector<8x8xf32>, vector<8x16xf32>, vector<8x16xf32> -> vector<8x16xf32>
    %383 = vector.extract_strided_slice %302 {offsets = [16, 0], sizes = [16, 32], strides = [1, 1]} : vector<32x32xf32> to vector<16x32xf32>
    %cst_143 = arith.constant dense<0.000000e+00> : vector<8x32xf32>
    %384 = tpu.matmul %382, %383, %cst_143 {dimension_numbers = #tpu.dot_dimension_numbers<[1], [0], [0], [1], [0, 0, 1, 1], [], []>} : vector<8x16xf32>, vector<16x32xf32>, vector<8x32xf32> -> vector<8x32xf32>
    %385 = arith.addf %365, %384 : vector<8x32xf32>
    %386 = tpu.concatenate %344, %385 in 0 : vector<8x32xf32>, vector<8x32xf32> -> vector<16x32xf32>
    %387 = arith.addf %294, %386 : vector<16x32xf32>
    %c0_144 = arith.constant 0 : index
    %c0_145 = arith.constant 0 : index
    %388 = vector.load %arg32[%c0_144, %c0_145] : memref<1x32xf32, #tpu.memory_space<vmem>>, vector<1x32xf32>
    %c0_146 = arith.constant 0 : index
    %c0_147 = arith.constant 0 : index
    %389 = vector.load %arg33[%c0_146, %c0_147] : memref<1x32xf32, #tpu.memory_space<vmem>>, vector<1x32xf32>
    %cst_148 = arith.constant dense<0.000000e+00> : vector<16xf32>
    %390 = vector.multi_reduction <add>, %387, %cst_148 [1] : vector<16x32xf32> to vector<16xf32>
    %391 = vector.shape_cast %390 : vector<16xf32> to vector<16x1xf32>
    %cst_149 = arith.constant 3.200000e+01 : f32
    %392 = vector.broadcast %cst_149 : f32 to vector<16x1xf32>
    %393 = arith.divf %391, %392 : vector<16x1xf32>
    %394 = vector.broadcast %393 : vector<16x1xf32> to vector<16x32xf32>
    %395 = arith.subf %387, %394 : vector<16x32xf32>
    %396 = arith.mulf %395, %395 : vector<16x32xf32>
    %cst_150 = arith.constant dense<0.000000e+00> : vector<16xf32>
    %397 = vector.multi_reduction <add>, %396, %cst_150 [1] : vector<16x32xf32> to vector<16xf32>
    %398 = vector.shape_cast %397 : vector<16xf32> to vector<16x1xf32>
    %cst_151 = arith.constant 3.200000e+01 : f32
    %399 = vector.broadcast %cst_151 : f32 to vector<16x1xf32>
    %400 = arith.divf %398, %399 : vector<16x1xf32>
    %401 = vector.broadcast %393 : vector<16x1xf32> to vector<16x32xf32>
    %402 = arith.subf %387, %401 : vector<16x32xf32>
    %cst_152 = arith.constant 9.99999974E-6 : f32
    %403 = vector.broadcast %cst_152 : f32 to vector<16x1xf32>
    %404 = arith.addf %400, %403 : vector<16x1xf32>
    %405 = math.rsqrt %404 : vector<16x1xf32>
    %406 = vector.broadcast %405 : vector<16x1xf32> to vector<16x32xf32>
    %407 = arith.mulf %402, %406 : vector<16x32xf32>
    %408 = vector.broadcast %388 : vector<1x32xf32> to vector<16x32xf32>
    %409 = arith.mulf %407, %408 : vector<16x32xf32>
    %410 = vector.broadcast %389 : vector<1x32xf32> to vector<16x32xf32>
    %411 = arith.addf %409, %410 : vector<16x32xf32>
    %c0_153 = arith.constant 0 : index
    %c0_154 = arith.constant 0 : index
    %412 = vector.load %arg34[%c0_153, %c0_154] : memref<32x32xf32, #tpu.memory_space<vmem>>, vector<32x32xf32>
    %cst_155 = arith.constant dense<0.000000e+00> : vector<16x32xf32>
    %413 = tpu.matmul %411, %412, %cst_155 {dimension_numbers = #tpu.dot_dimension_numbers<[1], [0], [0], [1], [0, 0, 1, 1], [], []>} : vector<16x32xf32>, vector<32x32xf32>, vector<16x32xf32> -> vector<16x32xf32>
    %c0_156 = arith.constant 0 : index
    %c0_157 = arith.constant 0 : index
    %414 = vector.load %arg35[%c0_156, %c0_157] : memref<1x32xf32, #tpu.memory_space<vmem>>, vector<1x32xf32>
    %415 = vector.broadcast %414 : vector<1x32xf32> to vector<16x32xf32>
    %416 = arith.addf %413, %415 : vector<16x32xf32>
    %c0_158 = arith.constant 0 : index
    %c0_159 = arith.constant 0 : index
    %417 = vector.load %arg36[%c0_158, %c0_159] : memref<32x64xf32, #tpu.memory_space<vmem>>, vector<32x64xf32>
    %cst_160 = arith.constant dense<0.000000e+00> : vector<32x64xf32>
    %418 = tpu.matmul %4, %417, %cst_160 {dimension_numbers = #tpu.dot_dimension_numbers<[1], [0], [0], [1], [0, 0, 1, 1], [], []>} : vector<32x32xf32>, vector<32x64xf32>, vector<32x64xf32> -> vector<32x64xf32>
    %c0_161 = arith.constant 0 : index
    %c0_162 = arith.constant 0 : index
    %419 = vector.load %arg37[%c0_161, %c0_162] : memref<1x64xf32, #tpu.memory_space<vmem>>, vector<1x64xf32>
    %420 = vector.broadcast %419 : vector<1x64xf32> to vector<32x64xf32>
    %421 = arith.addf %418, %420 : vector<32x64xf32>
    %c0_163 = arith.constant 0 : index
    %c0_164 = arith.constant 0 : index
    %422 = vector.load %arg38[%c0_163, %c0_164] : memref<32x32xf32, #tpu.memory_space<vmem>>, vector<32x32xf32>
    %c0_165 = arith.constant 0 : index
    %c0_166 = arith.constant 0 : index
    %423 = vector.load %arg39[%c0_165, %c0_166] : memref<1x32xf32, #tpu.memory_space<vmem>>, vector<1x32xf32>
    %424 = vector.extract_strided_slice %416 {offsets = [0, 0], sizes = [8, 16], strides = [1, 1]} : vector<16x32xf32> to vector<8x16xf32>
    %425 = vector.extract_strided_slice %421 {offsets = [0, 0], sizes = [16, 16], strides = [1, 1]} : vector<32x64xf32> to vector<16x16xf32>
    %426 = vector.extract_strided_slice %421 {offsets = [0, 32], sizes = [16, 16], strides = [1, 1]} : vector<32x64xf32> to vector<16x16xf32>
    %427 = tpu.transpose %425, [1, 0] : vector<16x16xf32> -> vector<16x16xf32>
    %cst_167 = arith.constant dense<0.000000e+00> : vector<8x16xf32>
    %428 = tpu.matmul %424, %427, %cst_167 {dimension_numbers = #tpu.dot_dimension_numbers<[1], [0], [0], [1], [0, 0, 1, 1], [], []>} : vector<8x16xf32>, vector<16x16xf32>, vector<8x16xf32> -> vector<8x16xf32>
    %429 = vector.extract_strided_slice %2 {offsets = [0, 0], sizes = [1, 16], strides = [1, 1]} : vector<2x16xf32> to vector<1x16xf32>
    %430 = vector.broadcast %429 : vector<1x16xf32> to vector<8x16xf32>
    %431 = arith.addf %428, %430 : vector<8x16xf32>
    %cst_168 = arith.constant dense<0xFF800000> : vector<8xf32>
    %432 = vector.multi_reduction <maximumf>, %431, %cst_168 [1] : vector<8x16xf32> to vector<8xf32>
    %433 = vector.shape_cast %432 : vector<8xf32> to vector<8x1xf32>
    %434 = vector.broadcast %433 : vector<8x1xf32> to vector<8x16xf32>
    %435 = arith.subf %431, %434 : vector<8x16xf32>
    %436 = math.exp %435 : vector<8x16xf32>
    %cst_169 = arith.constant dense<0.000000e+00> : vector<8xf32>
    %437 = vector.multi_reduction <add>, %436, %cst_169 [1] : vector<8x16xf32> to vector<8xf32>
    %438 = vector.shape_cast %437 : vector<8xf32> to vector<8x1xf32>
    %439 = tpu.reciprocal %438 {approx = true} : vector<8x1xf32> -> vector<8x1xf32>
    %440 = vector.broadcast %439 : vector<8x1xf32> to vector<8x16xf32>
    %441 = arith.mulf %436, %440 : vector<8x16xf32>
    %cst_170 = arith.constant dense<0.000000e+00> : vector<8x16xf32>
    %442 = tpu.matmul %441, %426, %cst_170 {dimension_numbers = #tpu.dot_dimension_numbers<[1], [0], [0], [1], [0, 0, 1, 1], [], []>} : vector<8x16xf32>, vector<16x16xf32>, vector<8x16xf32> -> vector<8x16xf32>
    %443 = vector.extract_strided_slice %422 {offsets = [0, 0], sizes = [16, 32], strides = [1, 1]} : vector<32x32xf32> to vector<16x32xf32>
    %cst_171 = arith.constant dense<0.000000e+00> : vector<8x32xf32>
    %444 = tpu.matmul %442, %443, %cst_171 {dimension_numbers = #tpu.dot_dimension_numbers<[1], [0], [0], [1], [0, 0, 1, 1], [], []>} : vector<8x16xf32>, vector<16x32xf32>, vector<8x32xf32> -> vector<8x32xf32>
    %445 = vector.broadcast %423 : vector<1x32xf32> to vector<8x32xf32>
    %446 = arith.addf %445, %444 : vector<8x32xf32>
    %447 = vector.extract_strided_slice %416 {offsets = [0, 16], sizes = [8, 16], strides = [1, 1]} : vector<16x32xf32> to vector<8x16xf32>
    %448 = vector.extract_strided_slice %421 {offsets = [0, 16], sizes = [16, 16], strides = [1, 1]} : vector<32x64xf32> to vector<16x16xf32>
    %449 = vector.extract_strided_slice %421 {offsets = [0, 48], sizes = [16, 16], strides = [1, 1]} : vector<32x64xf32> to vector<16x16xf32>
    %450 = tpu.transpose %448, [1, 0] : vector<16x16xf32> -> vector<16x16xf32>
    %cst_172 = arith.constant dense<0.000000e+00> : vector<8x16xf32>
    %451 = tpu.matmul %447, %450, %cst_172 {dimension_numbers = #tpu.dot_dimension_numbers<[1], [0], [0], [1], [0, 0, 1, 1], [], []>} : vector<8x16xf32>, vector<16x16xf32>, vector<8x16xf32> -> vector<8x16xf32>
    %452 = vector.extract_strided_slice %2 {offsets = [0, 0], sizes = [1, 16], strides = [1, 1]} : vector<2x16xf32> to vector<1x16xf32>
    %453 = vector.broadcast %452 : vector<1x16xf32> to vector<8x16xf32>
    %454 = arith.addf %451, %453 : vector<8x16xf32>
    %cst_173 = arith.constant dense<0xFF800000> : vector<8xf32>
    %455 = vector.multi_reduction <maximumf>, %454, %cst_173 [1] : vector<8x16xf32> to vector<8xf32>
    %456 = vector.shape_cast %455 : vector<8xf32> to vector<8x1xf32>
    %457 = vector.broadcast %456 : vector<8x1xf32> to vector<8x16xf32>
    %458 = arith.subf %454, %457 : vector<8x16xf32>
    %459 = math.exp %458 : vector<8x16xf32>
    %cst_174 = arith.constant dense<0.000000e+00> : vector<8xf32>
    %460 = vector.multi_reduction <add>, %459, %cst_174 [1] : vector<8x16xf32> to vector<8xf32>
    %461 = vector.shape_cast %460 : vector<8xf32> to vector<8x1xf32>
    %462 = tpu.reciprocal %461 {approx = true} : vector<8x1xf32> -> vector<8x1xf32>
    %463 = vector.broadcast %462 : vector<8x1xf32> to vector<8x16xf32>
    %464 = arith.mulf %459, %463 : vector<8x16xf32>
    %cst_175 = arith.constant dense<0.000000e+00> : vector<8x16xf32>
    %465 = tpu.matmul %464, %449, %cst_175 {dimension_numbers = #tpu.dot_dimension_numbers<[1], [0], [0], [1], [0, 0, 1, 1], [], []>} : vector<8x16xf32>, vector<16x16xf32>, vector<8x16xf32> -> vector<8x16xf32>
    %466 = vector.extract_strided_slice %422 {offsets = [16, 0], sizes = [16, 32], strides = [1, 1]} : vector<32x32xf32> to vector<16x32xf32>
    %cst_176 = arith.constant dense<0.000000e+00> : vector<8x32xf32>
    %467 = tpu.matmul %465, %466, %cst_176 {dimension_numbers = #tpu.dot_dimension_numbers<[1], [0], [0], [1], [0, 0, 1, 1], [], []>} : vector<8x16xf32>, vector<16x32xf32>, vector<8x32xf32> -> vector<8x32xf32>
    %468 = arith.addf %446, %467 : vector<8x32xf32>
    %469 = vector.extract_strided_slice %416 {offsets = [8, 0], sizes = [8, 16], strides = [1, 1]} : vector<16x32xf32> to vector<8x16xf32>
    %470 = vector.extract_strided_slice %421 {offsets = [16, 0], sizes = [16, 16], strides = [1, 1]} : vector<32x64xf32> to vector<16x16xf32>
    %471 = vector.extract_strided_slice %421 {offsets = [16, 32], sizes = [16, 16], strides = [1, 1]} : vector<32x64xf32> to vector<16x16xf32>
    %472 = tpu.transpose %470, [1, 0] : vector<16x16xf32> -> vector<16x16xf32>
    %cst_177 = arith.constant dense<0.000000e+00> : vector<8x16xf32>
    %473 = tpu.matmul %469, %472, %cst_177 {dimension_numbers = #tpu.dot_dimension_numbers<[1], [0], [0], [1], [0, 0, 1, 1], [], []>} : vector<8x16xf32>, vector<16x16xf32>, vector<8x16xf32> -> vector<8x16xf32>
    %474 = vector.extract_strided_slice %2 {offsets = [1, 0], sizes = [1, 16], strides = [1, 1]} : vector<2x16xf32> to vector<1x16xf32>
    %475 = vector.broadcast %474 : vector<1x16xf32> to vector<8x16xf32>
    %476 = arith.addf %473, %475 : vector<8x16xf32>
    %cst_178 = arith.constant dense<0xFF800000> : vector<8xf32>
    %477 = vector.multi_reduction <maximumf>, %476, %cst_178 [1] : vector<8x16xf32> to vector<8xf32>
    %478 = vector.shape_cast %477 : vector<8xf32> to vector<8x1xf32>
    %479 = vector.broadcast %478 : vector<8x1xf32> to vector<8x16xf32>
    %480 = arith.subf %476, %479 : vector<8x16xf32>
    %481 = math.exp %480 : vector<8x16xf32>
    %cst_179 = arith.constant dense<0.000000e+00> : vector<8xf32>
    %482 = vector.multi_reduction <add>, %481, %cst_179 [1] : vector<8x16xf32> to vector<8xf32>
    %483 = vector.shape_cast %482 : vector<8xf32> to vector<8x1xf32>
    %484 = tpu.reciprocal %483 {approx = true} : vector<8x1xf32> -> vector<8x1xf32>
    %485 = vector.broadcast %484 : vector<8x1xf32> to vector<8x16xf32>
    %486 = arith.mulf %481, %485 : vector<8x16xf32>
    %cst_180 = arith.constant dense<0.000000e+00> : vector<8x16xf32>
    %487 = tpu.matmul %486, %471, %cst_180 {dimension_numbers = #tpu.dot_dimension_numbers<[1], [0], [0], [1], [0, 0, 1, 1], [], []>} : vector<8x16xf32>, vector<16x16xf32>, vector<8x16xf32> -> vector<8x16xf32>
    %488 = vector.extract_strided_slice %422 {offsets = [0, 0], sizes = [16, 32], strides = [1, 1]} : vector<32x32xf32> to vector<16x32xf32>
    %cst_181 = arith.constant dense<0.000000e+00> : vector<8x32xf32>
    %489 = tpu.matmul %487, %488, %cst_181 {dimension_numbers = #tpu.dot_dimension_numbers<[1], [0], [0], [1], [0, 0, 1, 1], [], []>} : vector<8x16xf32>, vector<16x32xf32>, vector<8x32xf32> -> vector<8x32xf32>
    %490 = vector.broadcast %423 : vector<1x32xf32> to vector<8x32xf32>
    %491 = arith.addf %490, %489 : vector<8x32xf32>
    %492 = vector.extract_strided_slice %416 {offsets = [8, 16], sizes = [8, 16], strides = [1, 1]} : vector<16x32xf32> to vector<8x16xf32>
    %493 = vector.extract_strided_slice %421 {offsets = [16, 16], sizes = [16, 16], strides = [1, 1]} : vector<32x64xf32> to vector<16x16xf32>
    %494 = vector.extract_strided_slice %421 {offsets = [16, 48], sizes = [16, 16], strides = [1, 1]} : vector<32x64xf32> to vector<16x16xf32>
    %495 = tpu.transpose %493, [1, 0] : vector<16x16xf32> -> vector<16x16xf32>
    %cst_182 = arith.constant dense<0.000000e+00> : vector<8x16xf32>
    %496 = tpu.matmul %492, %495, %cst_182 {dimension_numbers = #tpu.dot_dimension_numbers<[1], [0], [0], [1], [0, 0, 1, 1], [], []>} : vector<8x16xf32>, vector<16x16xf32>, vector<8x16xf32> -> vector<8x16xf32>
    %497 = vector.extract_strided_slice %2 {offsets = [1, 0], sizes = [1, 16], strides = [1, 1]} : vector<2x16xf32> to vector<1x16xf32>
    %498 = vector.broadcast %497 : vector<1x16xf32> to vector<8x16xf32>
    %499 = arith.addf %496, %498 : vector<8x16xf32>
    %cst_183 = arith.constant dense<0xFF800000> : vector<8xf32>
    %500 = vector.multi_reduction <maximumf>, %499, %cst_183 [1] : vector<8x16xf32> to vector<8xf32>
    %501 = vector.shape_cast %500 : vector<8xf32> to vector<8x1xf32>
    %502 = vector.broadcast %501 : vector<8x1xf32> to vector<8x16xf32>
    %503 = arith.subf %499, %502 : vector<8x16xf32>
    %504 = math.exp %503 : vector<8x16xf32>
    %cst_184 = arith.constant dense<0.000000e+00> : vector<8xf32>
    %505 = vector.multi_reduction <add>, %504, %cst_184 [1] : vector<8x16xf32> to vector<8xf32>
    %506 = vector.shape_cast %505 : vector<8xf32> to vector<8x1xf32>
    %507 = tpu.reciprocal %506 {approx = true} : vector<8x1xf32> -> vector<8x1xf32>
    %508 = vector.broadcast %507 : vector<8x1xf32> to vector<8x16xf32>
    %509 = arith.mulf %504, %508 : vector<8x16xf32>
    %cst_185 = arith.constant dense<0.000000e+00> : vector<8x16xf32>
    %510 = tpu.matmul %509, %494, %cst_185 {dimension_numbers = #tpu.dot_dimension_numbers<[1], [0], [0], [1], [0, 0, 1, 1], [], []>} : vector<8x16xf32>, vector<16x16xf32>, vector<8x16xf32> -> vector<8x16xf32>
    %511 = vector.extract_strided_slice %422 {offsets = [16, 0], sizes = [16, 32], strides = [1, 1]} : vector<32x32xf32> to vector<16x32xf32>
    %cst_186 = arith.constant dense<0.000000e+00> : vector<8x32xf32>
    %512 = tpu.matmul %510, %511, %cst_186 {dimension_numbers = #tpu.dot_dimension_numbers<[1], [0], [0], [1], [0, 0, 1, 1], [], []>} : vector<8x16xf32>, vector<16x32xf32>, vector<8x32xf32> -> vector<8x32xf32>
    %513 = arith.addf %491, %512 : vector<8x32xf32>
    %514 = tpu.concatenate %468, %513 in 0 : vector<8x32xf32>, vector<8x32xf32> -> vector<16x32xf32>
    %515 = arith.addf %411, %514 : vector<16x32xf32>
    %c0_187 = arith.constant 0 : index
    %c0_188 = arith.constant 0 : index
    %516 = vector.load %arg40[%c0_187, %c0_188] : memref<1x32xf32, #tpu.memory_space<vmem>>, vector<1x32xf32>
    %c0_189 = arith.constant 0 : index
    %c0_190 = arith.constant 0 : index
    %517 = vector.load %arg41[%c0_189, %c0_190] : memref<1x32xf32, #tpu.memory_space<vmem>>, vector<1x32xf32>
    %cst_191 = arith.constant dense<0.000000e+00> : vector<16xf32>
    %518 = vector.multi_reduction <add>, %515, %cst_191 [1] : vector<16x32xf32> to vector<16xf32>
    %519 = vector.shape_cast %518 : vector<16xf32> to vector<16x1xf32>
    %cst_192 = arith.constant 3.200000e+01 : f32
    %520 = vector.broadcast %cst_192 : f32 to vector<16x1xf32>
    %521 = arith.divf %519, %520 : vector<16x1xf32>
    %522 = vector.broadcast %521 : vector<16x1xf32> to vector<16x32xf32>
    %523 = arith.subf %515, %522 : vector<16x32xf32>
    %524 = arith.mulf %523, %523 : vector<16x32xf32>
    %cst_193 = arith.constant dense<0.000000e+00> : vector<16xf32>
    %525 = vector.multi_reduction <add>, %524, %cst_193 [1] : vector<16x32xf32> to vector<16xf32>
    %526 = vector.shape_cast %525 : vector<16xf32> to vector<16x1xf32>
    %cst_194 = arith.constant 3.200000e+01 : f32
    %527 = vector.broadcast %cst_194 : f32 to vector<16x1xf32>
    %528 = arith.divf %526, %527 : vector<16x1xf32>
    %529 = vector.broadcast %521 : vector<16x1xf32> to vector<16x32xf32>
    %530 = arith.subf %515, %529 : vector<16x32xf32>
    %cst_195 = arith.constant 9.99999974E-6 : f32
    %531 = vector.broadcast %cst_195 : f32 to vector<16x1xf32>
    %532 = arith.addf %528, %531 : vector<16x1xf32>
    %533 = math.rsqrt %532 : vector<16x1xf32>
    %534 = vector.broadcast %533 : vector<16x1xf32> to vector<16x32xf32>
    %535 = arith.mulf %530, %534 : vector<16x32xf32>
    %536 = vector.broadcast %516 : vector<1x32xf32> to vector<16x32xf32>
    %537 = arith.mulf %535, %536 : vector<16x32xf32>
    %538 = vector.broadcast %517 : vector<1x32xf32> to vector<16x32xf32>
    %539 = arith.addf %537, %538 : vector<16x32xf32>
    %c0_196 = arith.constant 0 : index
    %c0_197 = arith.constant 0 : index
    %540 = vector.load %arg42[%c0_196, %c0_197] : memref<32x64xf32, #tpu.memory_space<vmem>>, vector<32x64xf32>
    %cst_198 = arith.constant dense<0.000000e+00> : vector<16x64xf32>
    %541 = tpu.matmul %539, %540, %cst_198 {dimension_numbers = #tpu.dot_dimension_numbers<[1], [0], [0], [1], [0, 0, 1, 1], [], []>} : vector<16x32xf32>, vector<32x64xf32>, vector<16x64xf32> -> vector<16x64xf32>
    %c0_199 = arith.constant 0 : index
    %c0_200 = arith.constant 0 : index
    %542 = vector.load %arg43[%c0_199, %c0_200] : memref<1x64xf32, #tpu.memory_space<vmem>>, vector<1x64xf32>
    %543 = vector.broadcast %542 : vector<1x64xf32> to vector<16x64xf32>
    %544 = arith.addf %541, %543 : vector<16x64xf32>
    %cst_201 = arith.constant 0.000000e+00 : f32
    %545 = vector.broadcast %cst_201 : f32 to vector<16x64xf32>
    %546 = arith.maximumf %544, %545 : vector<16x64xf32>
    %c0_202 = arith.constant 0 : index
    %c0_203 = arith.constant 0 : index
    %547 = vector.load %arg44[%c0_202, %c0_203] : memref<64x32xf32, #tpu.memory_space<vmem>>, vector<64x32xf32>
    %cst_204 = arith.constant dense<0.000000e+00> : vector<16x32xf32>
    %548 = tpu.matmul %546, %547, %cst_204 {dimension_numbers = #tpu.dot_dimension_numbers<[1], [0], [0], [1], [0, 0, 1, 1], [], []>} : vector<16x64xf32>, vector<64x32xf32>, vector<16x32xf32> -> vector<16x32xf32>
    %c0_205 = arith.constant 0 : index
    %c0_206 = arith.constant 0 : index
    %549 = vector.load %arg45[%c0_205, %c0_206] : memref<1x32xf32, #tpu.memory_space<vmem>>, vector<1x32xf32>
    %550 = vector.broadcast %549 : vector<1x32xf32> to vector<16x32xf32>
    %551 = arith.addf %548, %550 : vector<16x32xf32>
    %552 = arith.addf %539, %551 : vector<16x32xf32>
    %c0_207 = arith.constant 0 : index
    %c0_208 = arith.constant 0 : index
    %553 = vector.load %arg46[%c0_207, %c0_208] : memref<1x32xf32, #tpu.memory_space<vmem>>, vector<1x32xf32>
    %c0_209 = arith.constant 0 : index
    %c0_210 = arith.constant 0 : index
    %554 = vector.load %arg47[%c0_209, %c0_210] : memref<1x32xf32, #tpu.memory_space<vmem>>, vector<1x32xf32>
    %cst_211 = arith.constant dense<0.000000e+00> : vector<16xf32>
    %555 = vector.multi_reduction <add>, %552, %cst_211 [1] : vector<16x32xf32> to vector<16xf32>
    %556 = vector.shape_cast %555 : vector<16xf32> to vector<16x1xf32>
    %cst_212 = arith.constant 3.200000e+01 : f32
    %557 = vector.broadcast %cst_212 : f32 to vector<16x1xf32>
    %558 = arith.divf %556, %557 : vector<16x1xf32>
    %559 = vector.broadcast %558 : vector<16x1xf32> to vector<16x32xf32>
    %560 = arith.subf %552, %559 : vector<16x32xf32>
    %561 = arith.mulf %560, %560 : vector<16x32xf32>
    %cst_213 = arith.constant dense<0.000000e+00> : vector<16xf32>
    %562 = vector.multi_reduction <add>, %561, %cst_213 [1] : vector<16x32xf32> to vector<16xf32>
    %563 = vector.shape_cast %562 : vector<16xf32> to vector<16x1xf32>
    %cst_214 = arith.constant 3.200000e+01 : f32
    %564 = vector.broadcast %cst_214 : f32 to vector<16x1xf32>
    %565 = arith.divf %563, %564 : vector<16x1xf32>
    %566 = vector.broadcast %558 : vector<16x1xf32> to vector<16x32xf32>
    %567 = arith.subf %552, %566 : vector<16x32xf32>
    %cst_215 = arith.constant 9.99999974E-6 : f32
    %568 = vector.broadcast %cst_215 : f32 to vector<16x1xf32>
    %569 = arith.addf %565, %568 : vector<16x1xf32>
    %570 = math.rsqrt %569 : vector<16x1xf32>
    %571 = vector.broadcast %570 : vector<16x1xf32> to vector<16x32xf32>
    %572 = arith.mulf %567, %571 : vector<16x32xf32>
    %573 = vector.broadcast %553 : vector<1x32xf32> to vector<16x32xf32>
    %574 = arith.mulf %572, %573 : vector<16x32xf32>
    %575 = vector.broadcast %554 : vector<1x32xf32> to vector<16x32xf32>
    %576 = arith.addf %574, %575 : vector<16x32xf32>
    %c0_216 = arith.constant 0 : index
    %c0_217 = arith.constant 0 : index
    %577 = vector.load %arg52[%c0_216, %c0_217] : memref<32x6xf32, #tpu.memory_space<vmem>>, vector<32x6xf32>
    %cst_218 = arith.constant dense<0.000000e+00> : vector<16x6xf32>
    %578 = tpu.matmul %576, %577, %cst_218 {dimension_numbers = #tpu.dot_dimension_numbers<[1], [0], [0], [1], [0, 0, 1, 1], [], []>} : vector<16x32xf32>, vector<32x6xf32>, vector<16x6xf32> -> vector<16x6xf32>
    %c0_219 = arith.constant 0 : index
    %c0_220 = arith.constant 0 : index
    %579 = vector.load %arg53[%c0_219, %c0_220] : memref<1x6xf32, #tpu.memory_space<vmem>>, vector<1x6xf32>
    %580 = vector.broadcast %579 : vector<1x6xf32> to vector<16x6xf32>
    %581 = arith.addf %578, %580 : vector<16x6xf32>
    %c0_221 = arith.constant 0 : index
    %c0_222 = arith.constant 0 : index
    %582 = vector.load %arg55[%c0_221, %c0_222] : memref<16x6xf32, #tpu.memory_space<vmem>>, vector<16x6xf32>
    tpu.vector_store %arg55[%c0_221, %c0_222], %581 {strides = array<i32>} : memref<16x6xf32, #tpu.memory_space<vmem>>, vector<16x6xf32>,
    %c0_223 = arith.constant 0 : index
    %c0_224 = arith.constant 0 : index
    %583 = vector.load %arg1[%c0_223, %c0_224] : memref<2x640xf32, #tpu.memory_space<vmem>>, vector<2x640xf32>
    %c0_225 = arith.constant 0 : index
    %c0_226 = arith.constant 0 : index
    %584 = vector.load %arg48[%c0_225, %c0_226] : memref<640x32xf32, #tpu.memory_space<vmem>>, vector<640x32xf32>
    %cst_227 = arith.constant dense<0.000000e+00> : vector<2x32xf32>
    %585 = tpu.matmul %583, %584, %cst_227 {dimension_numbers = #tpu.dot_dimension_numbers<[1], [0], [0], [1], [0, 0, 1, 1], [], []>} : vector<2x640xf32>, vector<640x32xf32>, vector<2x32xf32> -> vector<2x32xf32>
    %c0_228 = arith.constant 0 : index
    %c0_229 = arith.constant 0 : index
    %586 = vector.load %arg49[%c0_228, %c0_229] : memref<1x32xf32, #tpu.memory_space<vmem>>, vector<1x32xf32>
    %587 = vector.broadcast %586 : vector<1x32xf32> to vector<2x32xf32>
    %588 = arith.addf %585, %587 : vector<2x32xf32>
    %cst_230 = arith.constant 0.000000e+00 : f32
    %589 = vector.broadcast %cst_230 : f32 to vector<2x32xf32>
    %590 = arith.maximumf %588, %589 : vector<2x32xf32>
    %c0_231 = arith.constant 0 : index
    %c0_232 = arith.constant 0 : index
    %591 = vector.load %arg50[%c0_231, %c0_232] : memref<32x45xf32, #tpu.memory_space<vmem>>, vector<32x45xf32>
    %cst_233 = arith.constant dense<0.000000e+00> : vector<2x45xf32>
    %592 = tpu.matmul %590, %591, %cst_233 {dimension_numbers = #tpu.dot_dimension_numbers<[1], [0], [0], [1], [0, 0, 1, 1], [], []>} : vector<2x32xf32>, vector<32x45xf32>, vector<2x45xf32> -> vector<2x45xf32>
    %c0_234 = arith.constant 0 : index
    %c0_235 = arith.constant 0 : index
    %593 = vector.load %arg51[%c0_234, %c0_235] : memref<1x45xf32, #tpu.memory_space<vmem>>, vector<1x45xf32>
    %594 = vector.broadcast %593 : vector<1x45xf32> to vector<2x45xf32>
    %595 = arith.addf %592, %594 : vector<2x45xf32>
    %c0_236 = arith.constant 0 : index
    %c0_237 = arith.constant 0 : index
    %596 = vector.load %arg54[%c0_236, %c0_237] : memref<2x45xf32, #tpu.memory_space<vmem>>, vector<2x45xf32>
    tpu.vector_store %arg54[%c0_236, %c0_237], %595 {strides = array<i32>} : memref<2x45xf32, #tpu.memory_space<vmem>>, vector<2x45xf32>,
    return
  }
}

</mosaic_0001>

<bundles_post_ra>
// kernel: mul.0
= control target key start
LH: loop header
LB: loop body
LE: loop exit
PB: predicated region body
PF: predicated region fallthrough
CT: control target
= control target key end

     0   :  { %s100_s0 = inlined_call_operand.vmem [shape: f32[2,512], index: 0, kind: input, shape index: {}]   ;;  %s101_s1 = inlined_call_operand.vmem [shape: f32[2,512], index: 1, kind: input, shape index: {}]   ;;  %s102_s2 = inlined_call_operand.vmem [shape: f32[2,512], index: 2, kind: output, shape index: {}]  }
   0x1   :  { %v3_v0 = vld [vmem:[%s100_s0] sm:$0x3]  ;;  %v40_v2 = vld [vmem:[%s100_s0 + $0x2] sm:$0x3]  ;;  %v43_v5 = vld [vmem:[%s100_s0 + $0x4] sm:$0x3] }
   0x2   :  { %v4_v1 = vld [vmem:[%s101_s1] sm:$0x3]  ;;  %v41_v4 = vld [vmem:[%s101_s1 + $0x2] sm:$0x3]  ;;  %v44_v6 = vld [vmem:[%s101_s1 + $0x4] sm:$0x3] }
   0x3   :  { %v7_v3 = vmul.f32 %v4_v1, %v3_v0  ;;  %v16_v7 = vmul.f32 %v41_v4, %v40_v2  ;;  %v26_v8 = vmul.f32 %v44_v6, %v43_v5  ;;  %v46_v9 = vld [vmem:[%s100_s0 + $0x6] sm:$0x3] }
   0x4   :  { %v47_v10 = vld [vmem:[%s101_s1 + $0x6] sm:$0x3] }
   0x5   :  { %9 = vst [vmem:[%s102_s2] sm:$0x3] %v7_v3  ;;  %v36_v11 = vmul.f32 %v47_v10, %v46_v9  ;;  %42 = vst [vmem:[%s102_s2 + $0x2] sm:$0x3] %v16_v7 }
   0x6   :  { %45 = vst [vmem:[%s102_s2 + $0x4] sm:$0x3] %v26_v8 }
   0x7   :  { %48 = vst [vmem:[%s102_s2 + $0x6] sm:$0x3] %v36_v11 }

// kernel: povl_forward.2
= control target key start
LH: loop header
LB: loop body
LE: loop exit
PB: predicated region body
PF: predicated region fallthrough
CT: control target
= control target key end

     0   :  { %s4664_s3 = smov 4   ;;  %s4665_s10 = smov 8   ;;  %vm164_vm0 = vcmask 1043456   ;;  %vm151_vm1 = vcmask 31744   ;;  %vm272_vm2 = vcmask 261120   ;;  %vm385_vm3 = vcmask 130048   ;;  %s5281_s0 = inlined_call_operand.smem [shape: u32[34], index: -1, kind: input, shape index: {}] }
   0x1   :  { %s3637_s6 = sld [smem:[%s5281_s0 + %s4664_s3]]   ;;  %s4666_s14 = smov 5   ;;  %vm4778_vm4 = vmpackc.low %vm385_vm3, %vm385_vm3  ;;  %v375_v39 = vlaneseq  ;;  %vm1724_vm5 = vcmask 523264   ;;  %vm4697_vm6 = vmmov 0   ;;  %vm4700_vm7 = vmmov 1  }
   0x2   :  { %s4717_s9 = sld [smem:[%s5281_s0]]   ;;  %s4667_s18 = smov 2   ;;  %vm4428_vm8 = vmpackc.low %vm164_vm0, %vm4700_vm7  ;;  %vm3547_vm9 = vcmask 490496  }
   0x3   :  { %s3641_s13 = sld [smem:[%s5281_s0 + %s4665_s10]]   ;;  %s4668_s22 = smov 9   ;;  %v4790_v40 = vshrl.u32 %v375_v39, 7 }
   0x4   :  { %s3638_s17 = sld [smem:[%s5281_s0 + %s4666_s14]]   ;;  %s4669_s26 = smov 96  }
   0x5   :  { %s4734_s21 = sld [smem:[%s5281_s0 + %s4667_s18]]   ;;  %s4670_s27 = smov 1   ;;  %v377_v43 = vsub.s32 0, %v4790_v40 }
   0x6   :  { %s3642_s25 = sld [smem:[%s5281_s0 + %s4668_s22]]   ;;  %s4671_s1 = smov 64  }
   0x7   :  { %v143_v0 = vld [vmem:[%s3637_s6] sm:$0xf]  ;;  %s3634_s30 = sld [smem:[%s5281_s0 + %s4670_s27]]   ;;  %s4672_s2 = smov 80  }
   0x8   :  { %v139_v1 = vld [vmem:[%s4717_s9] sm:$0xff]  ;;  %v140_v2 = vld [vmem:[%s4717_s9 + $0x8] sm:$0xff]  ;;  %3946 = vmatprep.subr.msk.mxu0 %vm164_vm0, %v143_v0  ;;  %v141_v18 = vld [vmem:[%s4717_s9 + $0x10] sm:$0xff]  ;;  %s4673_s3 = smov 112   ;;  %s4674_s4 = smov 10  }
   0x9   :  { %3948 = vmatprep.mubr.msk.f32.mxu0 %vm151_vm1, %v139_v1  ;;  %v261_v3 = vld [vmem:[%s3641_s13] sm:$0xff]  ;;  %v262_v4 = vld [vmem:[%s3641_s13 + $0x8] sm:$0xff]  ;;  %3947 = vmatpush3.msk.msra.mxu0 %vm164_vm0, %v143_v0  ;;  %v263_v6 = vld [vmem:[%s3641_s13 + $0x10] sm:$0xff]  ;;  %s4828_s7 = sld [smem:[%s5281_s0 + %s4674_s4]]   ;;  %s4675_s8 = smov 48  }
   0xa   :  { %v4241_v5 = vpack.c.bf16 %v262_v4, %v261_v3  ;;  %3949 = vmatmul.mubr.msk.f32.vlgmr.msra.gmra.mrb[0].mxu0 %vm151_vm1, %v140_v2  ;;  %v264_v7 = vld [vmem:[%s3641_s13 + $0x18] sm:$0xff]  ;;  %v3667_v9 = vld [vmem:[%s3638_s17] ss:$0 sm:$0xff]  ;;  %s4677_s13 = smov 14   ;;  %s4678_s17 = smov 16  }
   0xb   :  { %v4245_v8 = vpack.c.bf16 %v264_v7, %v263_v6  ;;  %v253_v13 = vld [vmem:[%s4734_s21] sm:$0xff]  ;;  %v254_v14 = vld [vmem:[%s4734_s21 + $0x8] sm:$0xff]  ;;  %3951 = vmatprep.mubr.msk.f32.mxu0 %vm151_vm1, %v141_v18  ;;  %v142_v19 = vld [vmem:[%s4717_s9 + $0x18] sm:$0xff]  ;;  %s4676_s9 = smov 11   ;;  %s3647_s16 = sld [smem:[%s5281_s0 + %s4677_s13]]  }
   0xc   :  { %4242 = vmatprep.subr.bf16.mxu1 %v4241_v5  ;;  %v4753_v20 = vld [vmem:[%s3642_s25] ss:$0 sm:$0xff]  ;;  %v256_v27 = vld [vmem:[%s4734_s21 + $0x18] sm:$0xff]  ;;  %v255_v30 = vld [vmem:[%s4734_s21 + $0x10] sm:$0xff]  ;;  %s3644_s12 = sld [smem:[%s5281_s0 + %s4676_s9]]   ;;  %s4679_s21 = smov 12  }
   0xd   :  { %4244 = vmatpush3.bf16.msra.mxu1 %v4241_v5  ;;  %v137_v41 = vld [vmem:[%s3634_s30] sm:$0x3]  ;;  %s4931_s20 = sld [smem:[%s5281_s0 + %s4678_s17]]   ;;  %s4680_s25 = smov 13  }
   0xe   :  { %4246 = vmatprep.subr.bf16.mxu1 %v4245_v8  ;;  %3952 = vmatmul.mubr.msk.f32.gmra.mrb[2].mxu0 %vm151_vm1, %v142_v19  ;;  %v4792_v42 = vmul.f32 -1e+09, %v137_v41  ;;  %s3645_s24 = sld [smem:[%s5281_s0 + %s4679_s21]]   ;;  %s4681_s30 = smov 15  }
   0xf   :  { %s3646_s29 = sld [smem:[%s5281_s0 + %s4680_s25]]   ;;  %s4690_s10 = smov 24  }
  0x10   :  { %v4796_v44 = vrot.slane %v4792_v42, %v377_v43  ;;  %v952_v43 = vsub.s32 1, %v4790_v40  ;;  %s3648_s6 = sld [smem:[%s5281_s0 + %s4681_s30]]   ;;  %s4691_s14 = smov 25  }
  0x11   :  { %4248 = vmatpush3.bf16.msra.mxu1 %v4245_v8  ;;  %s3657_s13 = sld [smem:[%s5281_s0 + %s4690_s10]]   ;;  %s4692_s18 = smov 28  }
  0x12   :  { %s3658_s17 = sld [smem:[%s5281_s0 + %s4691_s14]]   ;;  %s4693_s22 = smov 27  }
  0x13   :  { %s3661_s21 = sld [smem:[%s5281_s0 + %s4692_s18]]   ;;  %s4694_s27 = smov 29  }
  0x14   :  { %s3660_s25 = sld [smem:[%s5281_s0 + %s4693_s22]]   ;;  %s4696_s30 = smov 6  }
  0xdd   :  { %v3950_v10 = vpop.f32.mrb[0].mxu0 }
  0xde   :  { %v240_v11 = vadd.f32 %v3950_v10, %v3667_v9  ;;  %v234_v12 = vpop.f32.mrb[1].mxu0  ;;  %v370_v10 = vld [vmem:[%s4828_s7] sm:$0xff] }
  0xdf   :  { %v235_v15 = vadd.f32 %v3667_v9, %v234_v12 }
  0xe0   :  { %v4740_v17 = vadd.f32 %v254_v14, %v240_v11  ;;  %v371_v11 = vld [vmem:[%s4828_s7 + $0x8] sm:$0xff] }
  0xe1   :  { %v4738_v16 = vadd.f32 %v253_v13, %v235_v15  ;;  %v3953_v26 = vpop.f32.mrb[2].mxu0  ;;  %v4832_v12 = vpack.c.bf16 %v371_v11, %v370_v10 }
  0xe2   :  { %v250_v28 = vadd.f32 %v3953_v26, %v3667_v9  ;;  %v244_v29 = vpop.f32.mrb[3].mxu0 }
  0xe3   :  { %3962 = vmatprep.mubr.msk.f32.mxu1 %vm272_vm2, %v4738_v16  ;;  %v245_v31 = vadd.f32 %v3667_v9, %v244_v29  ;;  %4260 = vmatprep.subr.bf16.mxu1 %v4832_v12 }
  0xe4   :  { %3963 = vmatmul.mubr.msk.f32.vlgmr.msra.gmra.mrb[0].mxu1 %vm272_vm2, %v4740_v17  ;;  %v4768_v32 = vadd.f32 %v256_v27, %v250_v28 }
  0xe5   :  { %v4770_v33 = vadd.f32 %v255_v30, %v245_v31  ;;  %4262 = vmatpush3.bf16.msra.mxu1 %v4832_v12 }
  0xe7   :  { %3965 = vmatprep.mubr.msk.f32.mxu1 %vm272_vm2, %v4770_v33 }
  0xe8   :  { %3966 = vmatmul.mubr.msk.f32.gmra.mrb[2].mxu1 %vm272_vm2, %v4768_v32 }
 0x1b7   :  { %v3964_v21 = vpop.f32.mrb[0].mxu1 }
 0x1b8   :  { %v357_v22 = vadd.f32 %v3964_v21, %v4753_v20  ;;  %v351_v23 = vpop.f32.mrb[1].mxu1 }
 0x1b9   :  { %v4757_v24 = vadd.f32 %v4753_v20, %v351_v23 }
 0x1bb   :  { %3972 = vmatprep.mubr.msk.f32.mxu0 %vm385_vm3, %v4757_v24  ;;  %v4762_v25 = vpack.i.bf16 %v357_v22, %v4757_v24  ;;  %v3967_v51 = vpop.f32.mrb[2].mxu1 }
 0x1bc   :  { %v361_v52 = vpop.f32.mrb[3].mxu1  ;;  %v4812_v7 = vadd.f32 %v3967_v51, %v4753_v20 }
 0x1bd   :  { %4489 = vrot.lane.b32.xlu0 %v4762_v25, %s4669_s26  ;;  %v4815_v8 = vadd.f32 %v4753_v20, %v361_v52 }
 0x1bf   :  { %v4821_v9 = vpack.i.bf16 %v4812_v7, %v4815_v8 }
 0x22f   :  { %v4490_v34 = vpop.permute.xlu0 %4489 }
 0x230   :  { %v4492_v35 = vunpack.i.h.bf16 %v4490_v34  ;;  %v4491_v36 = vunpack.i.l.bf16 %v4490_v34 }
 0x232   :  { %v4249_v38 = vpack.c.bf16 %v4492_v35, %v4491_v36 }
 0x234   :  { %4251 = vmatprep.subr.msk.bf16.mxu0 %vm4778_vm4, %v4249_v38 }
 0x235   :  { %4254 = vmatpush3.bf16.xpose.msk.msra.mxu0 %vm4778_vm4, %v4249_v38 }
 0x23c   :  { %3973 = vmatmul.mubr.msk.f32.vlgmr.msra.gmra.mrb[4].mxu0 %vm385_vm3, %v357_v22 }
 0x30f   :  { %v3974_v45 = vpop.f32.mrb[4].mxu0 }
 0x310   :  { %v466_v46 = vadd.f32 %v3974_v45, %v4796_v44  ;;  %v460_v47 = vpop.f32.mrb[5].mxu0  ;;  %v4860_v45 = vrot.slane %v4792_v42, %v952_v43 }
 0x311   :  { %v461_v48 = vadd.f32 %v460_v47, %v4796_v44 }
 0x312   :  { %v472_v49 = vsel %vm385_vm3, %v466_v46, -inf }
 0x313   :  { %473 = vmax.xlane.f32.xlu1 %v472_v49  ;;  %v469_v50 = vsel %vm385_vm3, %v461_v48, -inf }
 0x314   :  { %470 = vmax.xlane.f32.xlu0 %v469_v50 }
 0x324   :  { %4494 = vrot.lane.b32.xlu1 %v4762_v25, %s4671_s1 }
 0x328   :  { %4499 = vrot.lane.b32.xlu1 %v4762_v25, %s4672_s2 }
 0x32a   :  { %669 = vrot.lane.b32.xlu0 %v357_v22, %s4673_s3 }
 0x3a0   :  { %v474_v53 = vpop.xlane.xlu1 %473 }
 0x3a1   :  { %v476_v54 = vsub.f32 %v466_v46, %v474_v53  ;;  %v471_v55 = vpop.xlane.xlu0 %470 }
 0x3a2   :  { %v475_v56 = vsub.f32 %v461_v48, %v471_v55 }
 0x3a3   :  { %v479_v57 = vmul.f32 1.442695, %v476_v54 }
 0x3a4   :  { %v477_v58 = vmul.f32 1.442695, %v475_v56  ;;  %v4495_v59 = vpop.permute.xlu1 %4494 }
 0x3a5   :  { %4568 = vpow2.f32 %v479_v57  ;;  %v4497_v60 = vunpack.i.h.bf16 %v4495_v59  ;;  %v4496_v61 = vunpack.i.l.bf16 %v4495_v59  ;;  %v670_v27 = vpop.permute.xlu0 %669 }
 0x3a6   :  { %4570 = vpow2.f32 %v477_v58 }
 0x3a7   :  { %v4255_v62 = vpack.c.bf16 %v4497_v60, %v4496_v61 }
 0x3a8   :  { %v4500_v63 = vpop.permute.xlu1 %4499 }
 0x3a9   :  { %v4502_v0 = vunpack.i.h.bf16 %v4500_v63  ;;  %v4501_v1 = vunpack.i.l.bf16 %v4500_v63  ;;  %4256 = vmatprep.subr.bf16.mxu0 %v4255_v62 }
 0x3aa   :  { %4258 = vmatpush3.bf16.msra.mxu0 %v4255_v62 }
 0x3ab   :  { %v4263_v2 = vpack.c.bf16 %v4502_v0, %v4501_v1 }
 0x3ad   :  { %4265 = vmatprep.subr.msk.bf16.mxu0 %vm4778_vm4, %v4263_v2 }
 0x3af   :  { %v4569_v3 = vpop.eup %4568 }
 0x3b0   :  { %v484_v4 = vsel %vm385_vm3, %v4569_v3, 0.0  ;;  %v4571_v5 = vpop.eup %4570 }
 0x3b1   :  { %485 = vadd.xlane.f32.xlu1 %v484_v4  ;;  %v481_v6 = vsel %vm385_vm3, %v4571_v5, 0.0 }
 0x3b5   :  { %482 = vadd.xlane.f32.xlu1 %v481_v6  ;;  %v373_v6 = vld [vmem:[%s4828_s7 + $0x18] sm:$0xff] }
 0x3c6   :  { %667 = vrot.lane.b32.xlu1 %v4757_v24, %s4673_s3 }
 0x3ca   :  { %4504 = vrot.lane.b32.xlu1 %v4821_v9, %s4669_s26 }
 0x43e   :  { %v486_v13 = vpop.xlane.xlu1 %485 }
 0x43f   :  { %4572 = vrcp.f32 %v486_v13 }
 0x442   :  { %v483_v14 = vpop.xlane.xlu1 %482 }
 0x443   :  { %4574 = vrcp.f32 %v483_v14 }
 0x446   :  { %v668_v15 = vpop.permute.xlu1 %667 }
 0x449   :  { %v4573_v21 = vpop.eup %4572 }
 0x44a   :  { %v4505_v18 = vpop.permute.xlu1 %4504  ;;  %v490_v24 = vmul.f32 %v4573_v21, %v4569_v3 }
 0x44b   :  { %v4507_v19 = vunpack.i.h.bf16 %v4505_v18  ;;  %v4506_v20 = vunpack.i.l.bf16 %v4505_v18 }
 0x44d   :  { %v4575_v22 = vpop.eup %4574  ;;  %v4277_v26 = vpack.c.bf16 %v4507_v19, %v4506_v20 }
 0x44e   :  { %v489_v23 = vmul.f32 %v4575_v22, %v4571_v5  ;;  %v372_v5 = vld [vmem:[%s4828_s7 + $0x10] sm:$0xff]  ;;  %s4682_s7 = smov 17  }
 0x44f   :  { %v4885_v11 = vpack.c.bf16 %v373_v6, %v372_v5  ;;  %s3650_s11 = sld [smem:[%s5281_s0 + %s4682_s7]]   ;;  %s4701_s7 = smov 30  }
 0x450   :  { %3979 = vmatprep.mubr.msk.f32.mxu0 %vm385_vm3, %v489_v23 }
 0x451   :  { %3980 = vmatmul.mubr.msk.f32.vlgmr.msra.gmra.mrb[6].mxu0 %vm385_vm3, %v490_v24 }
 0x452   :  { %4268 = vmatpush3.bf16.xpose.msk.msra.mxu0 %vm4778_vm4, %v4263_v2  ;;  %3993 = vmatprep.mubr.msk.f32.mxu0 %vm385_vm3, %v668_v15 }
 0x453   :  { %4279 = vmatprep.subr.msk.bf16.mxu0 %vm4778_vm4, %v4277_v26 }
 0x459   :  { %3994 = vmatmul.mubr.msk.f32.vlgmr.msra.gmra.mrb[8].mxu0 %vm385_vm3, %v670_v27 }
 0x45a   :  { %4282 = vmatpush3.bf16.xpose.msk.msra.mxu0 %vm4778_vm4, %v4277_v26  ;;  %4014 = vmatprep.mubr.msk.f32.mxu0 %vm385_vm3, %v4815_v8 }
 0x461   :  { %4015 = vmatmul.mubr.msk.f32.vlgmr.msra.gmra.mrb[10].mxu0 %vm385_vm3, %v4812_v7 }
 0x524   :  { %v3981_v28 = vpop.f32.mrb[6].mxu0 }
 0x525   :  { %v569_v29 = vpop.f32.mrb[7].mxu0 }
 0x526   :  { %3986 = vmatprep.mubr.msk.f32.mxu1 %vm385_vm3, %v569_v29 }
 0x527   :  { %3987 = vmatmul.mubr.msk.f32.vlgmr.msra.gmra.mrb[4].mxu1 %vm385_vm3, %v3981_v28 }
 0x52c   :  { %v3995_v30 = vpop.f32.mrb[8].mxu0 }
 0x52d   :  { %v755_v31 = vadd.f32 %v3995_v30, %v4796_v44  ;;  %v749_v34 = vpop.f32.mrb[9].mxu0 }
 0x52e   :  { %v750_v35 = vadd.f32 %v749_v34, %v4796_v44 }
 0x52f   :  { %v761_v36 = vsel %vm385_vm3, %v755_v31, -inf }
 0x530   :  { %762 = vmax.xlane.f32.xlu0 %v761_v36  ;;  %v758_v38 = vsel %vm385_vm3, %v750_v35, -inf }
 0x531   :  { %759 = vmax.xlane.f32.xlu1 %v758_v38 }
 0x534   :  { %v4016_v39 = vpop.f32.mrb[10].mxu0 }
 0x535   :  { %v1034_v41 = vpop.f32.mrb[11].mxu0  ;;  %v1040_v1 = vadd.f32 %v4016_v39, %v4860_v45 }
 0x536   :  { %v1035_v46 = vadd.f32 %v1034_v41, %v4860_v45 }
 0x538   :  { %v1043_v47 = vsel %vm385_vm3, %v1035_v46, -inf }
 0x546   :  { %4514 = vrot.lane.b32.xlu0 %v4821_v9, %s4672_s2 }
 0x565   :  { %1044 = vmax.xlane.f32.xlu0 %v1043_v47 }
 0x5bd   :  { %v763_v48 = vpop.xlane.xlu0 %762 }
 0x5be   :  { %v765_v49 = vsub.f32 %v755_v31, %v763_v48  ;;  %v760_v50 = vpop.xlane.xlu1 %759 }
 0x5bf   :  { %v764_v51 = vsub.f32 %v750_v35, %v760_v50 }
 0x5c0   :  { %v768_v52 = vmul.f32 1.442695, %v765_v49 }
 0x5c1   :  { %v766_v53 = vmul.f32 1.442695, %v764_v51  ;;  %v4515_v54 = vpop.permute.xlu0 %4514 }
 0x5c2   :  { %4576 = vpow2.f32 %v768_v52  ;;  %v4517_v55 = vunpack.i.h.bf16 %v4515_v54  ;;  %v4516_v56 = vunpack.i.l.bf16 %v4515_v54 }
 0x5c3   :  { %4578 = vpow2.f32 %v766_v53 }
 0x5c4   :  { %v4291_v40 = vpack.c.bf16 %v4517_v55, %v4516_v56 }
 0x5c6   :  { %4293 = vmatprep.subr.msk.bf16.mxu0 %vm4778_vm4, %v4291_v40 }
 0x5c7   :  { %4296 = vmatpush3.bf16.xpose.msk.msra.mxu0 %vm4778_vm4, %v4291_v40 }
 0x5cc   :  { %v4577_v42 = vpop.eup %4576 }
 0x5cd   :  { %v773_v57 = vsel %vm385_vm3, %v4577_v42, 0.0  ;;  %v4579_v58 = vpop.eup %4578 }
 0x5ce   :  { %774 = vadd.xlane.f32.xlu1 %v773_v57  ;;  %v770_v59 = vsel %vm385_vm3, %v4579_v58, 0.0 }
 0x5d2   :  { %771 = vadd.xlane.f32.xlu1 %v770_v59 }
 0x5e3   :  { %4509 = vrot.lane.b32.xlu1 %v4762_v25, %s4675_s8  ;;  %v1046_v25 = vsel %vm385_vm3, %v1040_v1, -inf }
 0x5e7   :  { %1235 = vrot.lane.b32.xlu1 %v4815_v8, %s4673_s3 }
 0x5eb   :  { %1237 = vrot.lane.b32.xlu1 %v4812_v7, %s4673_s3 }
 0x5f2   :  { %v1045_v60 = vpop.xlane.xlu0 %1044 }
 0x5f3   :  { %v1049_v61 = vsub.f32 %v1035_v46, %v1045_v60 }
 0x5f5   :  { %v1051_v62 = vmul.f32 1.442695, %v1049_v61 }
 0x5f7   :  { %4580 = vpow2.f32 %v1051_v62 }
 0x601   :  { %v4581_v63 = vpop.eup %4580 }
 0x602   :  { %v1055_v0 = vsel %vm385_vm3, %v4581_v63, 0.0 }
 0x603   :  { %1056 = vadd.xlane.f32.xlu0 %v1055_v0 }
 0x60f   :  { %1047 = vmax.xlane.f32.xlu1 %v1046_v25 }
 0x620   :  { %4519 = vrot.lane.b32.xlu1 %v4821_v9, %s4671_s1 }
 0x624   :  { %4524 = vrot.lane.b32.xlu1 %v4821_v9, %s4675_s8 }
 0x65b   :  { %v775_v2 = vpop.xlane.xlu1 %774 }
 0x65c   :  { %4582 = vrcp.f32 %v775_v2 }
 0x65f   :  { %v772_v3 = vpop.xlane.xlu1 %771 }
 0x660   :  { %4584 = vrcp.f32 %v772_v3 }
 0x663   :  { %v4510_v4 = vpop.permute.xlu1 %4509 }
 0x664   :  { %v4512_v7 = vunpack.i.h.bf16 %v4510_v4  ;;  %v4511_v8 = vunpack.i.l.bf16 %v4510_v4 }
 0x666   :  { %v4269_v10 = vpack.c.bf16 %v4512_v7, %v4511_v8  ;;  %v4583_v14 = vpop.eup %4582 }
 0x667   :  { %v1236_v13 = vpop.permute.xlu1 %1235  ;;  %v779_v19 = vmul.f32 %v4583_v14, %v4577_v42 }
 0x668   :  { %4270 = vmatprep.subr.bf16.mxu1 %v4269_v10  ;;  %4035 = vmatprep.mubr.msk.f32.mxu0 %vm385_vm3, %v1236_v13 }
 0x669   :  { %4272 = vmatpush3.bf16.msra.mxu1 %v4269_v10 }
 0x66a   :  { %v4585_v15 = vpop.eup %4584  ;;  %4274 = vmatprep.subr.bf16.mxu1 %v4885_v11 }
 0x66b   :  { %v1238_v9 = vpop.permute.xlu1 %1237  ;;  %v778_v18 = vmul.f32 %v4585_v15, %v4579_v58 }
 0x66c   :  { %4036 = vmatmul.mubr.msk.f32.vlgmr.msra.gmra.mrb[12].mxu0 %vm385_vm3, %v1238_v9 }
 0x66d   :  { %4000 = vmatprep.mubr.msk.f32.mxu1 %vm385_vm3, %v778_v18 }
 0x66e   :  { %4001 = vmatmul.mubr.msk.f32.vlgmr.msra.gmra.mrb[6].mxu1 %vm385_vm3, %v779_v19 }
 0x66f   :  { %4276 = vmatpush3.bf16.msra.mxu1 %v4885_v11 }
 0x690   :  { %v1057_v30 = vpop.xlane.xlu0 %1056 }
 0x69c   :  { %v1048_v20 = vpop.xlane.xlu1 %1047 }
 0x69d   :  { %v1050_v21 = vsub.f32 %v1040_v1, %v1048_v20 }
 0x69f   :  { %v1053_v22 = vmul.f32 1.442695, %v1050_v21 }
 0x6a0   :  { %v4520_v23 = vpop.permute.xlu1 %4519 }
 0x6a1   :  { %4586 = vpow2.f32 %v1053_v22  ;;  %v4522_v24 = vunpack.i.h.bf16 %v4520_v23  ;;  %v4521_v26 = vunpack.i.l.bf16 %v4520_v23 }
 0x6a2   :  { %4588 = vrcp.f32 %v1057_v30  ;;  %v1600_v30 = vld [vmem:[%s3647_s16 + $0x18] sm:$0xff] }
 0x6a3   :  { %v4283_v27 = vpack.c.bf16 %v4522_v24, %v4521_v26 }
 0x6a4   :  { %v4525_v38 = vpop.permute.xlu1 %4524 }
 0x6a5   :  { %4284 = vmatprep.subr.bf16.mxu1 %v4283_v27  ;;  %v4527_v49 = vunpack.i.h.bf16 %v4525_v38  ;;  %v4526_v50 = vunpack.i.l.bf16 %v4525_v38 }
 0x6a7   :  { %v4297_v54 = vpack.c.bf16 %v4527_v49, %v4526_v50  ;;  %v4941_v49 = vld [vmem:[%s3645_s24] ss:$0 sm:$0xff]  ;;  %s4686_s24 = smov 21  }
 0x6a8   :  { %s3654_s28 = sld [smem:[%s5281_s0 + %s4686_s24]]   ;;  %s4705_s24 = smov 33  }
 0x6ab   :  { %v4587_v28 = vpop.eup %4586 }
 0x6ac   :  { %v1058_v29 = vsel %vm385_vm3, %v4587_v28, 0.0  ;;  %v4589_v35 = vpop.eup %4588 }
 0x6ad   :  { %1059 = vadd.xlane.f32.xlu0 %v1058_v29  ;;  %v1063_v48 = vmul.f32 %v4589_v35, %v4581_v63  ;;  %v1599_v29 = vld [vmem:[%s3647_s16 + $0x10] sm:$0xff]  ;;  %v1710_v35 = vld [vmem:[%s4931_s20 + $0x8] sm:$0xff] }
 0x73a   :  { %v1060_v31 = vpop.xlane.xlu0 %1059 }
 0x73b   :  { %4590 = vrcp.f32 %v1060_v31  ;;  %v4309_v31 = vpack.c.bf16 %v1600_v30, %v1599_v29 }
 0x73f   :  { %v4037_v34 = vpop.f32.mrb[12].mxu0 }
 0x740   :  { %v1317_v36 = vpop.f32.mrb[13].mxu0  ;;  %v1323_v46 = vadd.f32 %v4037_v34, %v4860_v45  ;;  %v1709_v34 = vld [vmem:[%s4931_s20] sm:$0xff] }
 0x741   :  { %v1318_v39 = vadd.f32 %v1317_v36, %v4860_v45  ;;  %v4002_v41 = vpop.f32.mrb[6].mxu1  ;;  %v4313_v36 = vpack.c.bf16 %v1710_v35, %v1709_v34 }
 0x742   :  { %v858_v43 = vpop.f32.mrb[7].mxu1  ;;  %v1329_v53 = vsel %vm385_vm3, %v1323_v46, -inf }
 0x743   :  { %4007 = vmatprep.mubr.msk.f32.mxu1 %vm385_vm3, %v858_v43  ;;  %v1326_v47 = vsel %vm385_vm3, %v1318_v39, -inf }
 0x744   :  { %1327 = vmax.xlane.f32.xlu0 %v1326_v47  ;;  %4008 = vmatmul.mubr.msk.f32.vlgmr.msra.gmra.mrb[4].mxu1 %vm385_vm3, %v4002_v41 }
 0x745   :  { %v4591_v51 = vpop.eup %4590  ;;  %4286 = vmatpush3.bf16.msra.mxu1 %v4283_v27  ;;  %4021 = vmatprep.mubr.msk.f32.mxu1 %vm385_vm3, %v1063_v48  ;;  %v1598_v27 = vld [vmem:[%s3647_s16 + $0x8] sm:$0xff] }
 0x746   :  { %v1064_v52 = vmul.f32 %v4591_v51, %v4587_v28  ;;  %4288 = vmatprep.subr.bf16.mxu1 %v4832_v12  ;;  %v4943_v51 = vld [vmem:[%s3646_s29] ss:$0 sm:$0xff]  ;;  %s3662_s29 = sld [smem:[%s5281_s0 + %s4694_s27]]  }
 0x748   :  { %1330 = vmax.xlane.f32.xlu0 %v1329_v53  ;;  %4022 = vmatmul.mubr.msk.f32.vlgmr.msra.gmra.mrb[8].mxu1 %vm385_vm3, %v1064_v52  ;;  %v1711_v53 = vld [vmem:[%s4931_s20 + $0x10] sm:$0xff] }
 0x749   :  { %4290 = vmatpush3.bf16.msra.mxu1 %v4832_v12  ;;  %v4909_v12 = vld [vmem:[%s3644_s12] ss:$0 sm:$0xff]  ;;  %s4683_s12 = smov 20  }
 0x74a   :  { %4298 = vmatprep.subr.bf16.mxu1 %v4297_v54  ;;  %s3653_s15 = sld [smem:[%s5281_s0 + %s4683_s12]]   ;;  %s4702_s12 = smov 31  }
 0x7d1   :  { %v1328_v55 = vpop.xlane.xlu0 %1327 }
 0x7d2   :  { %v1332_v56 = vsub.f32 %v1318_v39, %v1328_v55 }
 0x7d4   :  { %v1334_v40 = vmul.f32 1.442695, %v1332_v56 }
 0x7d5   :  { %v1331_v42 = vpop.xlane.xlu0 %1330 }
 0x7d6   :  { %4592 = vpow2.f32 %v1334_v40  ;;  %v1333_v57 = vsub.f32 %v1323_v46, %v1331_v42 }
 0x7d8   :  { %v1336_v58 = vmul.f32 1.442695, %v1333_v57 }
 0x7da   :  { %4594 = vpow2.f32 %v1336_v58 }
 0x7e0   :  { %v4593_v59 = vpop.eup %4592 }
 0x7e1   :  { %v1338_v60 = vsel %vm385_vm3, %v4593_v59, 0.0 }
 0x7e2   :  { %1339 = vadd.xlane.f32.xlu0 %v1338_v60 }
 0x7e4   :  { %v4595_v61 = vpop.eup %4594 }
 0x7e5   :  { %v1341_v62 = vsel %vm385_vm3, %v4595_v61, 0.0 }
 0x7e6   :  { %1342 = vadd.xlane.f32.xlu0 %v1341_v62  ;;  %v1714_v62 = vld [vmem:[%s4931_s20 + $0x28] sm:$0xff] }
 0x817   :  { %v4009_v63 = vpop.f32.mrb[4].mxu1 }
 0x818   :  { %v4430_v0 = vadd.f32 %v4009_v63, %v4909_v12  ;;  %v939_v1 = vpop.f32.mrb[5].mxu1 }
 0x819   :  { %v4431_v25 = vadd.f32 %v4909_v12, %v939_v1  ;;  %v1716_v1 = vld [vmem:[%s4931_s20 + $0x38] sm:$0xff] }
 0x81a   :  { %v1519_v2 = vadd.f32 %v4430_v0, %v4740_v17  ;;  %v1715_v0 = vld [vmem:[%s4931_s20 + $0x30] sm:$0xff] }
 0x81b   :  { %v4023_v3 = vpop.f32.mrb[8].mxu1  ;;  %v1518_v4 = vadd.f32 %v4431_v25, %v4738_v16  ;;  %v4325_v25 = vpack.c.bf16 %v1716_v1, %v1715_v0 }
 0x81c   :  { %v1143_v5 = vpop.f32.mrb[9].mxu1  ;;  %v1527_v6 = vsel %vm272_vm2, %v1519_v2, 0.0 }
 0x81d   :  { %1528 = vadd.xlane.f32.xlu1 %v1527_v6  ;;  %4028 = vmatprep.mubr.msk.f32.mxu1 %vm385_vm3, %v1143_v5  ;;  %v1524_v7 = vsel %vm272_vm2, %v1518_v4, 0.0 }
 0x81e   :  { %4029 = vmatmul.mubr.msk.f32.vlgmr.msra.gmra.mrb[10].mxu1 %vm385_vm3, %v4023_v3  ;;  %1525 = vadd.xlane.f32.xlu0 %v1524_v7 }
 0x81f   :  { %4300 = vmatpush3.bf16.msra.mxu1 %v4297_v54  ;;  %v1712_v54 = vld [vmem:[%s4931_s20 + $0x18] sm:$0xff] }
 0x820   :  { %4302 = vmatprep.subr.bf16.mxu1 %v4885_v11  ;;  %v4317_v58 = vpack.c.bf16 %v1712_v54, %v1711_v53 }
 0x86f   :  { %v1340_v8 = vpop.xlane.xlu0 %1339 }
 0x870   :  { %4596 = vrcp.f32 %v1340_v8 }
 0x873   :  { %v1343_v17 = vpop.xlane.xlu0 %1342 }
 0x874   :  { %4598 = vrcp.f32 %v1343_v17 }
 0x87a   :  { %v4597_v10 = vpop.eup %4596 }
 0x87b   :  { %v1346_v16 = vmul.f32 %v4597_v10, %v4593_v59 }
 0x87d   :  { %4042 = vmatprep.mubr.msk.f32.mxu1 %vm385_vm3, %v1346_v16 }
 0x87e   :  { %v4599_v13 = vpop.eup %4598 }
 0x87f   :  { %v1347_v14 = vmul.f32 %v4599_v13, %v4595_v61  ;;  %v1713_v61 = vld [vmem:[%s4931_s20 + $0x20] sm:$0xff]  ;;  %s4685_s20 = smov 19  }
 0x880   :  { %v4321_v63 = vpack.c.bf16 %v1714_v62, %v1713_v61  ;;  %s3652_s23 = sld [smem:[%s5281_s0 + %s4685_s20]]   ;;  %s4704_s20 = smov 7  }
 0x881   :  { %4043 = vmatmul.mubr.msk.f32.vlgmr.msra.gmra.mrb[12].mxu1 %vm385_vm3, %v1347_v14 }
 0x882   :  { %4304 = vmatpush3.bf16.msra.mxu1 %v4885_v11  ;;  %v1597_v11 = vld [vmem:[%s3647_s16] sm:$0xff]  ;;  %s4684_s16 = smov 18  }
 0x883   :  { %v4305_v28 = vpack.c.bf16 %v1598_v27, %v1597_v11  ;;  %4314 = vmatprep.subr.bf16.mxu1 %v4313_v36  ;;  %v4982_v11 = vld [vmem:[%s3650_s11] ss:$0 sm:$0xff]  ;;  %s3651_s19 = sld [smem:[%s5281_s0 + %s4684_s16]]   ;;  %s4703_s16 = smov 32  }
 0x884   :  { %s3663_s11 = sld [smem:[%s5281_s0 + %s4701_s7]]  }
 0x885   :  { %4306 = vmatprep.subr.bf16.mxu0 %v4305_v28 }
 0x886   :  { %4308 = vmatpush3.bf16.msra.mxu0 %v4305_v28 }
 0x887   :  { %4310 = vmatprep.subr.bf16.mxu0 %v4309_v31 }
 0x88a   :  { %4312 = vmatpush3.bf16.msra.mxu0 %v4309_v31 }
 0x8aa   :  { %v1529_v15 = vpop.xlane.xlu1 %1528 }
 0x8ab   :  { %v1538_v9 = vmul.f32 0.03125, %v1529_v15  ;;  %v1526_v18 = vpop.xlane.xlu0 %1525 }
 0x8ac   :  { %v1537_v19 = vmul.f32 0.03125, %v1526_v18 }
 0x8ad   :  { %v1542_v20 = vsub.f32 %v1519_v2, %v1538_v9 }
 0x8ae   :  { %v1541_v21 = vsub.f32 %v1518_v4, %v1537_v19  ;;  %v4965_v4 = vld [vmem:[%s3648_s6] ss:$0 sm:$0xff] }
 0x8af   :  { %v1546_v24 = vmul.f32 %v1542_v20, %v1542_v20 }
 0x8b0   :  { %v1545_v22 = vmul.f32 %v1541_v21, %v1541_v21 }
 0x8b1   :  { %v1552_v26 = vsel %vm272_vm2, %v1546_v24, 0.0 }
 0x8b2   :  { %v1549_v23 = vsel %vm272_vm2, %v1545_v22, 0.0 }
 0x8b3   :  { %1550 = vadd.xlane.f32.xlu0 %v1549_v23 }
 0x8b7   :  { %1553 = vadd.xlane.f32.xlu0 %v1552_v26 }
 0x940   :  { %v1551_v38 = vpop.xlane.xlu0 %1550 }
 0x941   :  { %v1561_v39 = vmul.f32 0.03125, %v1551_v38 }
 0x943   :  { %v1565_v41 = vadd.f32 1e-05, %v1561_v39 }
 0x944   :  { %v1554_v43 = vpop.xlane.xlu0 %1553 }
 0x945   :  { %4600 = vrsqrt.f32 %v1565_v41  ;;  %v1562_v46 = vmul.f32 0.03125, %v1554_v43 }
 0x947   :  { %v1566_v47 = vadd.f32 1e-05, %v1562_v46 }
 0x949   :  { %4602 = vrsqrt.f32 %v1566_v47 }
 0x94f   :  { %v4601_v48 = vpop.eup %4600 }
 0x950   :  { %v1573_v50 = vmul.f32 %v4601_v48, %v1541_v21 }
 0x952   :  { %v1583_v52 = vmul.f32 %v4941_v49, %v1573_v50 }
 0x953   :  { %v4603_v55 = vpop.eup %4602 }
 0x954   :  { %v1574_v56 = vmul.f32 %v4603_v55, %v1542_v20  ;;  %v4044_v40 = vpop.f32.mrb[12].mxu1  ;;  %v4949_v42 = vadd.f32 %v4943_v51, %v1583_v52 }
 0x955   :  { %v1426_v57 = vpop.f32.mrb[13].mxu1 }
 0x956   :  { %4049 = vmatprep.mubr.msk.f32.mxu1 %vm385_vm3, %v1426_v57  ;;  %4060 = vmatprep.mubr.msk.f32.mxu0 %vm272_vm2, %v4949_v42  ;;  %v1584_v59 = vmul.f32 %v4941_v49, %v1574_v56 }
 0x957   :  { %4050 = vmatmul.mubr.msk.f32.vlgmr.msra.gmra.mrb[10].mxu1 %vm385_vm3, %v4044_v40 }
 0x958   :  { %v1594_v60 = vadd.f32 %v4943_v51, %v1584_v59  ;;  %4316 = vmatpush3.bf16.msra.mxu1 %v4313_v36 }
 0x959   :  { %4318 = vmatprep.subr.bf16.mxu1 %v4317_v58 }
 0x95a   :  { %4061 = vmatmul.mubr.msk.f32.vlgmr.msra.gmra.mrb[14].mxu0 %vm272_vm2, %v1594_v60 }
 0x95c   :  { %4320 = vmatpush3.bf16.msra.mxu1 %v4317_v58 }
 0x95d   :  { %4322 = vmatprep.subr.bf16.mxu1 %v4321_v63 }
 0x960   :  { %4324 = vmatpush3.bf16.msra.mxu1 %v4321_v63 }
 0x961   :  { %4326 = vmatprep.subr.bf16.mxu1 %v4325_v25 }
 0x964   :  { %4328 = vmatpush3.bf16.msra.mxu1 %v4325_v25 }
 0xa2a   :  { %v4051_v2 = vpop.f32.mrb[10].mxu1 }
 0xa2b   :  { %v1507_v3 = vpop.f32.mrb[11].mxu1  ;;  %v4432_v5 = vadd.f32 %v4051_v2, %v4909_v12  ;;  %v1902_v2 = vld [vmem:[%s3653_s15 + $0x10] sm:$0xff] }
 0xa2c   :  { %v4433_v6 = vadd.f32 %v4909_v12, %v1507_v3  ;;  %v1903_v3 = vld [vmem:[%s3653_s15 + $0x18] sm:$0xff] }
 0xa2d   :  { %v4062_v7 = vpop.f32.mrb[14].mxu0  ;;  %v1521_v14 = vadd.f32 %v4432_v5, %v4768_v32  ;;  %v4333_v5 = vpack.c.bf16 %v1903_v3, %v1902_v2 }
 0xa2e   :  { %v1692_v8 = vadd.f32 %v4062_v7, %v4965_v4  ;;  %v1686_v17 = vpop.f32.mrb[15].mxu0  ;;  %v1520_v10 = vadd.f32 %v4433_v6, %v4770_v33 }
 0xa2f   :  { %v1687_v16 = vadd.f32 %v4965_v4, %v1686_v17  ;;  %v1533_v12 = vsel %vm272_vm2, %v1521_v14, 0.0 }
 0xa30   :  { %v1530_v13 = vsel %vm272_vm2, %v1520_v10, 0.0  ;;  %v1706_v9 = vmax.f32 %v1692_v8, 0.0 }
 0xa31   :  { %v1705_v15 = vmax.f32 %v1687_v16, 0.0  ;;  %1531 = vadd.xlane.f32.xlu0 %v1530_v13 }
 0xa33   :  { %4082 = vmatprep.mubr.msk.f32.mxu1 %vm1724_vm5, %v1705_v15 }
 0xa34   :  { %4083 = vmatmul.mubr.msk.f32.vlgmr.msra.gmra.mrb[14].mxu1 %vm1724_vm5, %v1706_v9 }
 0xa35   :  { %1534 = vadd.xlane.f32.xlu0 %v1533_v12 }
 0xabe   :  { %v1532_v18 = vpop.xlane.xlu0 %1531 }
 0xabf   :  { %v1539_v19 = vmul.f32 0.03125, %v1532_v18 }
 0xac1   :  { %v1543_v33 = vsub.f32 %v1520_v10, %v1539_v19  ;;  %v5015_v19 = vld [vmem:[%s3652_s23] ss:$0 sm:$0xff]  ;;  %s3640_s23 = sld [smem:[%s5281_s0 + %s4704_s20]]  }
 0xac2   :  { %v1535_v20 = vpop.xlane.xlu0 %1534 }
 0xac3   :  { %v1540_v21 = vmul.f32 0.03125, %v1535_v20  ;;  %v1547_v22 = vmul.f32 %v1543_v33, %v1543_v33 }
 0xac5   :  { %v1544_v23 = vsub.f32 %v1521_v14, %v1540_v21  ;;  %v1555_v24 = vsel %vm272_vm2, %v1547_v22, 0.0  ;;  %v5012_v14 = vld [vmem:[%s3651_s19] ss:$0 sm:$0xff]  ;;  %s5265_s19 = sld [smem:[%s5281_s0 + %s4703_s16]]  }
 0xac6   :  { %1556 = vadd.xlane.f32.xlu0 %v1555_v24 }
 0xac7   :  { %v1548_v32 = vmul.f32 %v1544_v23, %v1544_v23 }
 0xac9   :  { %v1558_v26 = vsel %vm272_vm2, %v1548_v32, 0.0 }
 0xaca   :  { %1559 = vadd.xlane.f32.xlu0 %v1558_v26 }
 0xb07   :  { %v4084_v27 = vpop.f32.mrb[14].mxu1 }
 0xb08   :  { %v1803_v28 = vpop.f32.mrb[15].mxu1  ;;  %v1809_v29 = vadd.f32 %v4084_v27, %v4982_v11 }
 0xb09   :  { %v1804_v30 = vadd.f32 %v4982_v11, %v1803_v28 }
 0xb0a   :  { %v1823_v35 = vadd.f32 %v1809_v29, %v1594_v60 }
 0xb0b   :  { %v1822_v31 = vadd.f32 %v1804_v30, %v4949_v42 }
 0xb0c   :  { %v1831_v36 = vsel %vm272_vm2, %v1823_v35, 0.0 }
 0xb0d   :  { %v1828_v34 = vsel %vm272_vm2, %v1822_v31, 0.0 }
 0xb0e   :  { %1829 = vadd.xlane.f32.xlu0 %v1828_v34 }
 0xb12   :  { %1832 = vadd.xlane.f32.xlu0 %v1831_v36 }
 0xb53   :  { %v1557_v38 = vpop.xlane.xlu0 %1556 }
 0xb54   :  { %v1563_v39 = vmul.f32 0.03125, %v1557_v38 }
 0xb56   :  { %v1567_v41 = vadd.f32 1e-05, %v1563_v39 }
 0xb57   :  { %v1560_v43 = vpop.xlane.xlu0 %1559 }
 0xb58   :  { %4604 = vrsqrt.f32 %v1567_v41  ;;  %v1564_v46 = vmul.f32 0.03125, %v1560_v43 }
 0xb5a   :  { %v1568_v47 = vadd.f32 1e-05, %v1564_v46 }
 0xb5c   :  { %4606 = vrsqrt.f32 %v1568_v47 }
 0xb62   :  { %v4605_v48 = vpop.eup %4604 }
 0xb63   :  { %v1575_v50 = vmul.f32 %v4605_v48, %v1543_v33 }
 0xb65   :  { %v1585_v52 = vmul.f32 %v4941_v49, %v1575_v50 }
 0xb66   :  { %v4607_v53 = vpop.eup %4606 }
 0xb67   :  { %v4991_v54 = vadd.f32 %v4943_v51, %v1585_v52  ;;  %v1576_v55 = vmul.f32 %v4607_v53, %v1544_v23 }
 0xb69   :  { %4063 = vmatprep.mubr.msk.f32.mxu0 %vm272_vm2, %v4991_v54  ;;  %v1586_v56 = vmul.f32 %v4941_v49, %v1576_v55  ;;  %v1900_v49 = vld [vmem:[%s3653_s15] sm:$0xff] }
 0xb6b   :  { %v4997_v40 = vadd.f32 %v4943_v51, %v1586_v56  ;;  %v1901_v51 = vld [vmem:[%s3653_s15 + $0x8] sm:$0xff]  ;;  %s3664_s15 = sld [smem:[%s5281_s0 + %s4702_s12]]  }
 0xb6c   :  { %v4329_v25 = vpack.c.bf16 %v1901_v51, %v1900_v49 }
 0xb6d   :  { %4064 = vmatmul.mubr.msk.f32.gmra.mrb[16].mxu0 %vm272_vm2, %v4997_v40 }
 0xb6e   :  { %4330 = vmatprep.subr.bf16.mxu0 %v4329_v25 }
 0xb6f   :  { %4332 = vmatpush3.bf16.msra.mxu0 %v4329_v25 }
 0xb70   :  { %4334 = vmatprep.subr.bf16.mxu0 %v4333_v5 }
 0xb73   :  { %4336 = vmatpush3.bf16.msra.mxu0 %v4333_v5 }
 0xb9b   :  { %v1830_v42 = vpop.xlane.xlu0 %1829 }
 0xb9c   :  { %v1840_v57 = vmul.f32 0.03125, %v1830_v42 }
 0xb9e   :  { %v1844_v58 = vsub.f32 %v1822_v31, %v1840_v57 }
 0xb9f   :  { %v1833_v59 = vpop.xlane.xlu0 %1832 }
 0xba0   :  { %v1841_v60 = vmul.f32 0.03125, %v1833_v59  ;;  %v1848_v61 = vmul.f32 %v1844_v58, %v1844_v58 }
 0xba2   :  { %v1845_v62 = vsub.f32 %v1823_v35, %v1841_v60  ;;  %v1852_v63 = vsel %vm272_vm2, %v1848_v61, 0.0 }
 0xba3   :  { %1853 = vadd.xlane.f32.xlu0 %v1852_v63 }
 0xba4   :  { %v1849_v0 = vmul.f32 %v1845_v62, %v1845_v62 }
 0xba6   :  { %v1855_v1 = vsel %vm272_vm2, %v1849_v0, 0.0 }
 0xba7   :  { %1856 = vadd.xlane.f32.xlu1 %v1855_v1 }
 0xc30   :  { %v1854_v6 = vpop.xlane.xlu0 %1853 }
 0xc31   :  { %v1864_v7 = vmul.f32 0.03125, %v1854_v6 }
 0xc33   :  { %v1868_v8 = vadd.f32 1e-05, %v1864_v7 }
 0xc34   :  { %v1857_v17 = vpop.xlane.xlu1 %1856 }
 0xc35   :  { %4608 = vrsqrt.f32 %v1868_v8  ;;  %v1865_v10 = vmul.f32 0.03125, %v1857_v17 }
 0xc37   :  { %v1869_v16 = vadd.f32 1e-05, %v1865_v10 }
 0xc39   :  { %4610 = vrsqrt.f32 %v1869_v16 }
 0xc3f   :  { %v4609_v13 = vpop.eup %4608 }
 0xc40   :  { %v4065_v15 = vpop.f32.mrb[16].mxu0  ;;  %v1876_v9 = vmul.f32 %v4609_v13, %v1844_v58 }
 0xc41   :  { %v1702_v12 = vadd.f32 %v4065_v15, %v4965_v4  ;;  %v1696_v18 = vpop.f32.mrb[17].mxu0 }
 0xc42   :  { %v1697_v33 = vadd.f32 %v4965_v4, %v1696_v18  ;;  %v1886_v20 = vmul.f32 %v5012_v14, %v1876_v9 }
 0xc43   :  { %v4611_v21 = vpop.eup %4610  ;;  %v1708_v32 = vmax.f32 %v1702_v12, 0.0 }
 0xc44   :  { %v1877_v22 = vmul.f32 %v4611_v21, %v1845_v62  ;;  %v1707_v23 = vmax.f32 %v1697_v33, 0.0  ;;  %v5020_v24 = vadd.f32 %v5015_v19, %v1886_v20 }
 0xc46   :  { %4085 = vmatprep.mubr.msk.f32.mxu1 %vm1724_vm5, %v1707_v23  ;;  %v1887_v26 = vmul.f32 %v5012_v14, %v1877_v22  ;;  %4096 = vmatprep.mubr.msk.f32.mxu0 %vm272_vm2, %v5020_v24 }
 0xc47   :  { %4086 = vmatmul.mubr.msk.f32.gmra.mrb[16].mxu1 %vm1724_vm5, %v1708_v32 }
 0xc48   :  { %v5028_v4 = vadd.f32 %v5015_v19, %v1887_v26 }
 0xc4a   :  { %4097 = vmatmul.mubr.msk.f32.vlgmr.msra.gmra.mrb[18].mxu0 %vm272_vm2, %v5028_v4 }
 0xd1a   :  { %v4087_v27 = vpop.f32.mrb[16].mxu1 }
 0xd1b   :  { %v1819_v28 = vadd.f32 %v4087_v27, %v4982_v11  ;;  %v1813_v29 = vpop.f32.mrb[17].mxu1 }
 0xd1c   :  { %v1814_v30 = vadd.f32 %v4982_v11, %v1813_v29 }
 0xd1d   :  { %v4098_v31 = vpop.f32.mrb[18].mxu0  ;;  %v1825_v34 = vadd.f32 %v1819_v28, %v4997_v40 }
 0xd1e   :  { %v1989_v35 = vpop.f32.mrb[19].mxu0  ;;  %v1824_v36 = vadd.f32 %v1814_v30, %v4991_v54  ;;  %v3725_v54 = vld [vmem:[%s3654_s28] ss:$0 sm:$0xff]  ;;  %s3666_s28 = sld [smem:[%s5281_s0 + %s4705_s24]]  }
 0xd1f   :  { %v1837_v38 = vsel %vm272_vm2, %v1825_v34, 0.0  ;;  %v1995_v56 = vadd.f32 %v4098_v31, %v3725_v54  ;;  %v1990_v40 = vadd.f32 %v3725_v54, %v1989_v35 }
 0xd20   :  { %1838 = vadd.xlane.f32.xlu1 %v1837_v38  ;;  %v1834_v39 = vsel %vm272_vm2, %v1824_v36, 0.0 }
 0xd21   :  { %1835 = vadd.xlane.f32.xlu0 %v1834_v39  ;;  %v5043_v42 = vpack.i.bf16 %v1995_v56, %v1990_v40 }
 0xdad   :  { %v1839_v41 = vpop.xlane.xlu1 %1838 }
 0xdae   :  { %v1843_v43 = vmul.f32 0.03125, %v1839_v41  ;;  %v1836_v46 = vpop.xlane.xlu0 %1835 }
 0xdaf   :  { %v1842_v47 = vmul.f32 0.03125, %v1836_v46 }
 0xdb0   :  { %v1847_v48 = vsub.f32 %v1825_v34, %v1843_v43 }
 0xdb1   :  { %v1846_v50 = vsub.f32 %v1824_v36, %v1842_v47 }
 0xdb2   :  { %v1851_v52 = vmul.f32 %v1847_v48, %v1847_v48 }
 0xdb3   :  { %v1850_v11 = vmul.f32 %v1846_v50, %v1846_v50 }
 0xdb4   :  { %v1861_v53 = vsel %vm272_vm2, %v1851_v52, 0.0 }
 0xdb5   :  { %1862 = vadd.xlane.f32.xlu1 %v1861_v53  ;;  %v1858_v55 = vsel %vm272_vm2, %v1850_v11, 0.0 }
 0xdb6   :  { %1859 = vadd.xlane.f32.xlu0 %v1858_v55 }
 0xdcc   :  { %4529 = vrot.lane.b32.xlu0 %v5043_v42, %s4669_s26 }
 0xdd0   :  { %4539 = vrot.lane.b32.xlu0 %v5043_v42, %s4672_s2 }
 0xdd4   :  { %2300 = vrot.lane.b32.xlu0 %v1990_v40, %s4673_s3 }
 0xdd8   :  { %2302 = vrot.lane.b32.xlu0 %v1995_v56, %s4673_s3 }
 0xe42   :  { %v1863_v57 = vpop.xlane.xlu1 %1862 }
 0xe43   :  { %v1867_v58 = vmul.f32 0.03125, %v1863_v57  ;;  %v1860_v59 = vpop.xlane.xlu0 %1859 }
 0xe44   :  { %v1866_v60 = vmul.f32 0.03125, %v1860_v59 }
 0xe45   :  { %v1871_v61 = vadd.f32 1e-05, %v1867_v58 }
 0xe46   :  { %v1870_v62 = vadd.f32 1e-05, %v1866_v60 }
 0xe47   :  { %4612 = vrsqrt.f32 %v1871_v61  ;;  %v4530_v63 = vpop.permute.xlu0 %4529 }
 0xe48   :  { %4614 = vrsqrt.f32 %v1870_v62  ;;  %v4532_v0 = vunpack.i.h.bf16 %v4530_v63  ;;  %v4531_v1 = vunpack.i.l.bf16 %v4530_v63 }
 0xe4a   :  { %v4337_v49 = vpack.c.bf16 %v4532_v0, %v4531_v1 }
 0xe4b   :  { %v4540_v36 = vpop.permute.xlu0 %4539 }
 0xe4c   :  { %4339 = vmatprep.subr.msk.bf16.mxu0 %vm4778_vm4, %v4337_v49  ;;  %v4542_v46 = vunpack.i.h.bf16 %v4540_v36  ;;  %v4541_v47 = vunpack.i.l.bf16 %v4540_v36 }
 0xe4d   :  { %4342 = vmatpush3.bf16.xpose.msk.msra.mxu0 %vm4778_vm4, %v4337_v49 }
 0xe4e   :  { %v4351_v53 = vpack.c.bf16 %v4542_v46, %v4541_v47 }
 0xe4f   :  { %v2301_v41 = vpop.permute.xlu0 %2300 }
 0xe51   :  { %v4613_v51 = vpop.eup %4612 }
 0xe52   :  { %v4615_v25 = vpop.eup %4614  ;;  %v1879_v2 = vmul.f32 %v4613_v51, %v1847_v48 }
 0xe53   :  { %v1878_v3 = vmul.f32 %v4615_v25, %v1846_v50  ;;  %v2303_v52 = vpop.permute.xlu0 %2302 }
 0xe54   :  { %v1889_v5 = vmul.f32 %v5012_v14, %v1879_v2 }
 0xe55   :  { %v1888_v6 = vmul.f32 %v5012_v14, %v1878_v3 }
 0xe56   :  { %v5061_v8 = vadd.f32 %v5015_v19, %v1889_v5 }
 0xe57   :  { %v5058_v7 = vadd.f32 %v5015_v19, %v1888_v6 }
 0xe59   :  { %4099 = vmatprep.mubr.msk.f32.mxu0 %vm272_vm2, %v5058_v7 }
 0xe5a   :  { %4100 = vmatmul.mubr.msk.f32.gmra.mrb[20].mxu0 %vm272_vm2, %v5061_v8 }
 0xe5b   :  { %4106 = vmatprep.mubr.msk.f32.mxu0 %vm385_vm3, %v1990_v40 }
 0xe5e   :  { %4107 = vmatmul.mubr.msk.f32.vlgmr.msra.gmra.mrb[22].mxu0 %vm385_vm3, %v1995_v56 }
 0xf2d   :  { %v4101_v17 = vpop.f32.mrb[20].mxu0 }
 0xf2e   :  { %v5069_v10 = vadd.f32 %v4101_v17, %v3725_v54  ;;  %v1999_v16 = vpop.f32.mrb[21].mxu0 }
 0xf2f   :  { %v5071_v13 = vadd.f32 %v3725_v54, %v1999_v16 }
 0xf31   :  { %v4108_v14 = vpop.f32.mrb[22].mxu0  ;;  %v5075_v15 = vpack.i.bf16 %v5069_v10, %v5071_v13 }
 0xf32   :  { %v2093_v9 = vpop.f32.mrb[23].mxu0  ;;  %v2099_v18 = vadd.f32 %v4108_v14, %v4796_v44 }
 0xf33   :  { %v2094_v12 = vadd.f32 %v2093_v9, %v4796_v44  ;;  %4544 = vrot.lane.b32.xlu0 %v5075_v15, %s4669_s26  ;;  %s4687_s26 = smov 22  }
 0xf34   :  { %v2105_v33 = vsel %vm385_vm3, %v2099_v18, -inf  ;;  %s5090_s4 = sld [smem:[%s5281_s0 + %s4687_s26]]  }
 0xf35   :  { %v2102_v19 = vsel %vm385_vm3, %v2094_v12, -inf }
 0xf36   :  { %2103 = vmax.xlane.f32.xlu1 %v2102_v19 }
 0xf3a   :  { %2106 = vmax.xlane.f32.xlu1 %v2105_v33  ;;  %v2008_v31 = vld [vmem:[%s5090_s4] sm:$0xff]  ;;  %v2009_v34 = vld [vmem:[%s5090_s4 + $0x8] sm:$0xff] }
 0xf3b   :  { %v5094_v35 = vpack.c.bf16 %v2009_v34, %v2008_v31 }
 0xf3d   :  { %4348 = vmatprep.subr.bf16.mxu0 %v5094_v35 }
 0xf3e   :  { %4350 = vmatpush3.bf16.msra.mxu0 %v5094_v35 }
 0xfa5   :  { %v4545_v56 = vpop.permute.xlu0 %4544 }
 0xfa6   :  { %v4547_v58 = vunpack.i.h.bf16 %v4545_v56  ;;  %v4546_v59 = vunpack.i.l.bf16 %v4545_v56  ;;  %v2011_v56 = vld [vmem:[%s5090_s4 + $0x18] sm:$0xff] }
 0xfa8   :  { %v4365_v60 = vpack.c.bf16 %v4547_v58, %v4546_v59 }
 0xfc3   :  { %v2104_v20 = vpop.xlane.xlu1 %2103 }
 0xfc4   :  { %v2108_v21 = vsub.f32 %v2094_v12, %v2104_v20 }
 0xfc6   :  { %v2110_v32 = vmul.f32 1.442695, %v2108_v21 }
 0xfc7   :  { %v2107_v22 = vpop.xlane.xlu1 %2106 }
 0xfc8   :  { %v2109_v23 = vsub.f32 %v2099_v18, %v2107_v22 }
 0xfca   :  { %v2112_v26 = vmul.f32 1.442695, %v2109_v23 }
 0xfcc   :  { %4616 = vpow2.f32 %v2112_v26 }
 0xfcd   :  { %4618 = vpow2.f32 %v2110_v32 }
 0xfd6   :  { %v4617_v27 = vpop.eup %4616 }
 0xfd7   :  { %v2117_v28 = vsel %vm385_vm3, %v4617_v27, 0.0  ;;  %v4619_v29 = vpop.eup %4618 }
 0xfd8   :  { %2118 = vadd.xlane.f32.xlu1 %v2117_v28  ;;  %v2114_v30 = vsel %vm385_vm3, %v4619_v29, 0.0 }
 0xfdc   :  { %2115 = vadd.xlane.f32.xlu1 %v2114_v30 }
 0xfed   :  { %4534 = vrot.lane.b32.xlu1 %v5043_v42, %s4671_s1 }
0x1065   :  { %v2119_v38 = vpop.xlane.xlu1 %2118 }
0x1066   :  { %4620 = vrcp.f32 %v2119_v38 }
0x1069   :  { %v2116_v39 = vpop.xlane.xlu1 %2115 }
0x106a   :  { %4622 = vrcp.f32 %v2116_v39 }
0x106d   :  { %v4535_v43 = vpop.permute.xlu1 %4534 }
0x106e   :  { %v4537_v48 = vunpack.i.h.bf16 %v4535_v43  ;;  %v4536_v50 = vunpack.i.l.bf16 %v4535_v43 }
0x1070   :  { %v4343_v11 = vpack.c.bf16 %v4537_v48, %v4536_v50  ;;  %v4621_v55 = vpop.eup %4620 }
0x1071   :  { %v2123_v57 = vmul.f32 %v4621_v55, %v4617_v27 }
0x1072   :  { %4344 = vmatprep.subr.bf16.mxu1 %v4343_v11 }
0x1073   :  { %4346 = vmatpush3.bf16.msra.mxu1 %v4343_v11 }
0x1074   :  { %v4623_v54 = vpop.eup %4622  ;;  %4353 = vmatprep.subr.msk.bf16.mxu1 %vm4778_vm4, %v4351_v53 }
0x1075   :  { %v2122_v40 = vmul.f32 %v4623_v54, %v4619_v29  ;;  %v2010_v54 = vld [vmem:[%s5090_s4 + $0x10] sm:$0xff] }
0x1077   :  { %4113 = vmatprep.mubr.msk.f32.mxu1 %vm385_vm3, %v2122_v40  ;;  %v5146_v40 = vpack.c.bf16 %v2011_v56, %v2010_v54 }
0x1078   :  { %4114 = vmatmul.mubr.msk.f32.vlgmr.msra.gmra.mrb[18].mxu1 %vm385_vm3, %v2123_v57 }
0x1079   :  { %4127 = vmatprep.mubr.msk.f32.mxu1 %vm385_vm3, %v2301_v41 }
0x107c   :  { %4356 = vmatpush3.bf16.xpose.msk.msra.mxu1 %vm4778_vm4, %v4351_v53 }
0x107d   :  { %4367 = vmatprep.subr.msk.bf16.mxu1 %vm4778_vm4, %v4365_v60 }
0x1083   :  { %4128 = vmatmul.mubr.msk.f32.vlgmr.msra.gmra.mrb[20].mxu1 %vm385_vm3, %v2303_v52 }
0x1084   :  { %4370 = vmatpush3.bf16.xpose.msk.msra.mxu1 %vm4778_vm4, %v4365_v60  ;;  %4148 = vmatprep.mubr.msk.f32.mxu1 %vm385_vm3, %v5071_v13 }
0x108b   :  { %4149 = vmatmul.mubr.msk.f32.vlgmr.msra.gmra.mrb[22].mxu1 %vm385_vm3, %v5069_v10 }
0x114b   :  { %v4115_v61 = vpop.f32.mrb[18].mxu1 }
0x114c   :  { %v2202_v62 = vpop.f32.mrb[19].mxu1 }
0x114d   :  { %4120 = vmatprep.mubr.msk.f32.mxu0 %vm385_vm3, %v2202_v62 }
0x114e   :  { %4121 = vmatmul.mubr.msk.f32.vlgmr.msra.gmra.mrb[24].mxu0 %vm385_vm3, %v4115_v61 }
0x1156   :  { %v4129_v63 = vpop.f32.mrb[20].mxu1 }
0x1157   :  { %v2388_v0 = vadd.f32 %v4129_v63, %v4796_v44  ;;  %v2382_v1 = vpop.f32.mrb[21].mxu1 }
0x1158   :  { %v2383_v49 = vadd.f32 %v2382_v1, %v4796_v44 }
0x1159   :  { %v2394_v51 = vsel %vm385_vm3, %v2388_v0, -inf }
0x115a   :  { %2395 = vmax.xlane.f32.xlu0 %v2394_v51  ;;  %v2391_v25 = vsel %vm385_vm3, %v2383_v49, -inf }
0x115b   :  { %2392 = vmax.xlane.f32.xlu1 %v2391_v25 }
0x115e   :  { %v4150_v2 = vpop.f32.mrb[22].mxu1 }
0x115f   :  { %v2663_v3 = vpop.f32.mrb[23].mxu1  ;;  %v2669_v20 = vadd.f32 %v4150_v2, %v4860_v45 }
0x1160   :  { %v2664_v33 = vadd.f32 %v2663_v3, %v4860_v45 }
0x1161   :  { %v2675_v22 = vsel %vm385_vm3, %v2669_v20, -inf }
0x1162   :  { %v2672_v21 = vsel %vm385_vm3, %v2664_v33, -inf }
0x11e7   :  { %v2396_v5 = vpop.xlane.xlu0 %2395 }
0x11e8   :  { %v2398_v6 = vsub.f32 %v2388_v0, %v2396_v5  ;;  %v2393_v17 = vpop.xlane.xlu1 %2392 }
0x11e9   :  { %v2397_v16 = vsub.f32 %v2383_v49, %v2393_v17 }
0x11ea   :  { %v2401_v14 = vmul.f32 1.442695, %v2398_v6 }
0x11eb   :  { %v2399_v9 = vmul.f32 1.442695, %v2397_v16 }
0x11ec   :  { %4624 = vpow2.f32 %v2401_v14 }
0x11ed   :  { %4626 = vpow2.f32 %v2399_v9 }
0x11f6   :  { %v4625_v12 = vpop.eup %4624 }
0x11f7   :  { %v4627_v18 = vpop.eup %4626  ;;  %v2406_v44 = vsel %vm385_vm3, %v4625_v12, 0.0 }
0x11f8   :  { %2407 = vadd.xlane.f32.xlu1 %v2406_v44  ;;  %v2403_v19 = vsel %vm385_vm3, %v4627_v18, 0.0 }
0x11f9   :  { %2404 = vadd.xlane.f32.xlu0 %v2403_v19 }
0x1209   :  { %4554 = vrot.lane.b32.xlu1 %v5075_v15, %s4672_s2  ;;  %s3639_s2 = sld [smem:[%s5281_s0 + %s4696_s30]]  }
0x120d   :  { %2864 = vrot.lane.b32.xlu1 %v5071_v13, %s4673_s3 }
0x120f   :  { %4549 = vrot.lane.b32.xlu0 %v5043_v42, %s4675_s8 }
0x1213   :  { %2866 = vrot.lane.b32.xlu0 %v5069_v10, %s4673_s3  ;;  %s4699_s3 = smov 3  }
0x1214   :  { %s3636_s6 = sld [smem:[%s5281_s0 + %s4699_s3]]  }
0x1231   :  { %2673 = vmax.xlane.f32.xlu1 %v2672_v21 }
0x1232   :  { %2676 = vmax.xlane.f32.xlu0 %v2675_v22 }
0x1285   :  { %v2408_v23 = vpop.xlane.xlu1 %2407 }
0x1286   :  { %4628 = vrcp.f32 %v2408_v23  ;;  %v2405_v32 = vpop.xlane.xlu0 %2404 }
0x1287   :  { %4630 = vrcp.f32 %v2405_v32 }
0x1289   :  { %v4555_v13 = vpop.permute.xlu1 %4554 }
0x128a   :  { %v4557_v26 = vunpack.i.h.bf16 %v4555_v13  ;;  %v4556_v42 = vunpack.i.l.bf16 %v4555_v13  ;;  %v4550_v27 = vpop.permute.xlu0 %4549 }
0x128b   :  { %v4552_v28 = vunpack.i.h.bf16 %v4550_v27  ;;  %v4551_v10 = vunpack.i.l.bf16 %v4550_v27 }
0x128c   :  { %v4379_v29 = vpack.c.bf16 %v4557_v26, %v4556_v42 }
0x128d   :  { %v4357_v30 = vpack.c.bf16 %v4552_v28, %v4551_v10  ;;  %v2865_v31 = vpop.permute.xlu1 %2864 }
0x128e   :  { %4381 = vmatprep.subr.msk.bf16.mxu1 %vm4778_vm4, %v4379_v29  ;;  %4169 = vmatprep.mubr.msk.f32.mxu1 %vm385_vm3, %v2865_v31  ;;  %v2867_v41 = vpop.permute.xlu0 %2866 }
0x128f   :  { %4358 = vmatprep.subr.bf16.mxu0 %v4357_v30  ;;  %4384 = vmatpush3.bf16.xpose.msk.msra.mxu1 %vm4778_vm4, %v4379_v29 }
0x1290   :  { %v4629_v34 = vpop.eup %4628  ;;  %4360 = vmatpush3.bf16.msra.mxu0 %v4357_v30 }
0x1291   :  { %v4631_v36 = vpop.eup %4630  ;;  %v2412_v39 = vmul.f32 %v4629_v34, %v4625_v12  ;;  %4362 = vmatprep.subr.bf16.mxu0 %v5146_v40 }
0x1292   :  { %v2411_v38 = vmul.f32 %v4631_v36, %v4627_v18 }
0x1294   :  { %4134 = vmatprep.mubr.msk.f32.mxu0 %vm385_vm3, %v2411_v38 }
0x1295   :  { %4135 = vmatmul.mubr.msk.f32.vlgmr.msra.gmra.mrb[26].mxu0 %vm385_vm3, %v2412_v39 }
0x1296   :  { %4170 = vmatmul.mubr.msk.f32.vlgmr.msra.gmra.mrb[24].mxu1 %vm385_vm3, %v2867_v41  ;;  %4364 = vmatpush3.bf16.msra.mxu0 %v5146_v40 }
0x12be   :  { %v2674_v43 = vpop.xlane.xlu1 %2673 }
0x12bf   :  { %v2678_v46 = vsub.f32 %v2664_v33, %v2674_v43  ;;  %v2677_v47 = vpop.xlane.xlu0 %2676 }
0x12c0   :  { %v2679_v48 = vsub.f32 %v2669_v20, %v2677_v47 }
0x12c1   :  { %v2680_v37 = vmul.f32 1.442695, %v2678_v46 }
0x12c2   :  { %v2682_v50 = vmul.f32 1.442695, %v2679_v48 }
0x12c3   :  { %4632 = vpow2.f32 %v2680_v37 }
0x12c4   :  { %4634 = vpow2.f32 %v2682_v50 }
0x12cd   :  { %v4633_v52 = vpop.eup %4632 }
0x12ce   :  { %v4635_v11 = vpop.eup %4634  ;;  %v2684_v53 = vsel %vm385_vm3, %v4633_v52, 0.0 }
0x12cf   :  { %2685 = vadd.xlane.f32.xlu0 %v2684_v53  ;;  %v2687_v55 = vsel %vm385_vm3, %v4635_v11, 0.0 }
0x12d0   :  { %2688 = vadd.xlane.f32.xlu1 %v2687_v55 }
0x12e5   :  { %4559 = vrot.lane.b32.xlu0 %v5075_v15, %s4671_s1  ;;  %s4688_s1 = smov 23  }
0x12e6   :  { %s3656_s5 = sld [smem:[%s5281_s0 + %s4688_s1]]  }
0x135c   :  { %v2686_v57 = vpop.xlane.xlu0 %2685 }
0x135d   :  { %4636 = vrcp.f32 %v2686_v57  ;;  %v2689_v58 = vpop.xlane.xlu1 %2688 }
0x135e   :  { %4638 = vrcp.f32 %v2689_v58 }
0x1360   :  { %v4560_v59 = vpop.permute.xlu0 %4559 }
0x1361   :  { %v4562_v60 = vunpack.i.h.bf16 %v4560_v59  ;;  %v4561_v61 = vunpack.i.l.bf16 %v4560_v59 }
0x1363   :  { %v4371_v62 = vpack.c.bf16 %v4562_v60, %v4561_v61 }
0x1365   :  { %4372 = vmatprep.subr.bf16.mxu0 %v4371_v62 }
0x1367   :  { %v4637_v63 = vpop.eup %4636 }
0x1368   :  { %v4136_v0 = vpop.f32.mrb[26].mxu0  ;;  %v4639_v51 = vpop.eup %4638  ;;  %v2692_v2 = vmul.f32 %v4637_v63, %v4633_v52 }
0x1369   :  { %v2491_v1 = vpop.f32.mrb[27].mxu0  ;;  %v4171_v49 = vpop.f32.mrb[24].mxu1  ;;  %v2693_v5 = vmul.f32 %v4639_v51, %v4635_v11 }
0x136a   :  { %4141 = vmatprep.mubr.msk.f32.mxu0 %vm385_vm3, %v2491_v1  ;;  %v2946_v25 = vpop.f32.mrb[25].mxu1  ;;  %v2952_v6 = vadd.f32 %v4171_v49, %v4860_v45 }
0x136b   :  { %v2947_v3 = vadd.f32 %v2946_v25, %v4860_v45  ;;  %4142 = vmatmul.mubr.msk.f32.vlgmr.msra.gmra.mrb[24].mxu0 %vm385_vm3, %v4136_v0 }
0x136c   :  { %4374 = vmatpush3.bf16.msra.mxu0 %v4371_v62  ;;  %4155 = vmatprep.mubr.msk.f32.mxu0 %vm385_vm3, %v2692_v2  ;;  %v2958_v16 = vsel %vm385_vm3, %v2952_v6, -inf }
0x136d   :  { %v2955_v17 = vsel %vm385_vm3, %v2947_v3, -inf  ;;  %4376 = vmatprep.subr.bf16.mxu0 %v5094_v35 }
0x136e   :  { %2956 = vmax.xlane.f32.xlu1 %v2955_v17 }
0x136f   :  { %4156 = vmatmul.mubr.msk.f32.vlgmr.msra.gmra.mrb[28].mxu0 %vm385_vm3, %v2693_v5 }
0x1370   :  { %4378 = vmatpush3.bf16.msra.mxu0 %v5094_v35  ;;  %v3738_v35 = vld [vmem:[%s3656_s5] ss:$0 sm:$0xff] }
0x1372   :  { %2959 = vmax.xlane.f32.xlu1 %v2958_v16 }
0x13fb   :  { %v2957_v14 = vpop.xlane.xlu1 %2956 }
0x13fc   :  { %v2961_v9 = vsub.f32 %v2947_v3, %v2957_v14 }
0x13fe   :  { %v2963_v44 = vmul.f32 1.442695, %v2961_v9 }
0x13ff   :  { %v2960_v12 = vpop.xlane.xlu1 %2959 }
0x1400   :  { %v2962_v18 = vsub.f32 %v2952_v6, %v2960_v12 }
0x1402   :  { %v2965_v19 = vmul.f32 1.442695, %v2962_v18 }
0x1404   :  { %4640 = vpow2.f32 %v2965_v19 }
0x1405   :  { %4642 = vpow2.f32 %v2963_v44 }
0x140e   :  { %v4641_v45 = vpop.eup %4640 }
0x140f   :  { %v2970_v33 = vsel %vm385_vm3, %v4641_v45, 0.0  ;;  %v4643_v20 = vpop.eup %4642 }
0x1410   :  { %2971 = vadd.xlane.f32.xlu1 %v2970_v33  ;;  %v2967_v21 = vsel %vm385_vm3, %v4643_v20, 0.0 }
0x1414   :  { %2968 = vadd.xlane.f32.xlu1 %v2967_v21 }
0x1425   :  { %4564 = vrot.lane.b32.xlu1 %v5075_v15, %s4675_s8  ;;  %s4689_s8 = smov 26  }
0x1426   :  { %s3659_s9 = sld [smem:[%s5281_s0 + %s4689_s8]]  }
0x142c   :  { %v3227_v1 = vld [vmem:[%s3659_s9 + $0x10] sm:$0xff]  ;;  %v3228_v49 = vld [vmem:[%s3659_s9 + $0x18] sm:$0xff] }
0x142d   :  { %v4397_v51 = vpack.c.bf16 %v3228_v49, %v3227_v1 }
0x143e   :  { %v4143_v22 = vpop.f32.mrb[24].mxu0 }
0x143f   :  { %v2572_v23 = vpop.f32.mrb[25].mxu0  ;;  %v4434_v32 = vadd.f32 %v4143_v22, %v3738_v35 }
0x1440   :  { %v4435_v13 = vadd.f32 %v3738_v35, %v2572_v23  ;;  %v3764_v23 = vld [vmem:[%s3658_s17] ss:$0 sm:$0xff] }
0x1441   :  { %v3148_v15 = vadd.f32 %v4434_v32, %v5028_v4 }
0x1442   :  { %v4157_v26 = vpop.f32.mrb[28].mxu0  ;;  %v3147_v42 = vadd.f32 %v4435_v13, %v5020_v24 }
0x1443   :  { %v2772_v27 = vpop.f32.mrb[29].mxu0  ;;  %v3156_v10 = vsel %vm272_vm2, %v3148_v15, 0.0 }
0x1444   :  { %4162 = vmatprep.mubr.msk.f32.mxu0 %vm385_vm3, %v2772_v27  ;;  %v3153_v28 = vsel %vm272_vm2, %v3147_v42, 0.0 }
0x1445   :  { %4163 = vmatmul.mubr.msk.f32.vlgmr.msra.gmra.mrb[30].mxu0 %vm385_vm3, %v4157_v26  ;;  %3154 = vadd.xlane.f32.xlu0 %v3153_v28 }
0x1449   :  { %3157 = vadd.xlane.f32.xlu1 %v3156_v10  ;;  %v3338_v10 = vld [vmem:[%s3661_s21 + $0x8] sm:$0xff] }
0x149d   :  { %v2972_v29 = vpop.xlane.xlu1 %2971 }
0x149e   :  { %4644 = vrcp.f32 %v2972_v29  ;;  %v3339_v29 = vld [vmem:[%s3661_s21 + $0x10] sm:$0xff] }
0x14a1   :  { %v2969_v30 = vpop.xlane.xlu1 %2968 }
0x14a2   :  { %4646 = vrcp.f32 %v2969_v30 }
0x14a5   :  { %v4565_v31 = vpop.permute.xlu1 %4564 }
0x14a6   :  { %v4567_v34 = vunpack.i.h.bf16 %v4565_v31  ;;  %v4566_v24 = vunpack.i.l.bf16 %v4565_v31  ;;  %v3340_v31 = vld [vmem:[%s3661_s21 + $0x18] sm:$0xff] }
0x14a8   :  { %v4385_v36 = vpack.c.bf16 %v4567_v34, %v4566_v24  ;;  %v4645_v38 = vpop.eup %4644  ;;  %v4405_v34 = vpack.c.bf16 %v3340_v31, %v3339_v29  ;;  %v3341_v24 = vld [vmem:[%s3661_s21 + $0x20] sm:$0xff] }
0x14a9   :  { %v2976_v41 = vmul.f32 %v4645_v38, %v4641_v45 }
0x14aa   :  { %4386 = vmatprep.subr.bf16.mxu0 %v4385_v36 }
0x14ab   :  { %4388 = vmatpush3.bf16.msra.mxu0 %v4385_v36  ;;  %v3342_v36 = vld [vmem:[%s3661_s21 + $0x28] sm:$0xff] }
0x14ac   :  { %v4647_v39 = vpop.eup %4646  ;;  %4390 = vmatprep.subr.bf16.mxu0 %v5146_v40  ;;  %v4409_v38 = vpack.c.bf16 %v3342_v36, %v3341_v24 }
0x14ad   :  { %v2975_v4 = vmul.f32 %v4647_v39, %v4643_v20  ;;  %v3343_v39 = vld [vmem:[%s3661_s21 + $0x30] sm:$0xff] }
0x14af   :  { %4176 = vmatprep.mubr.msk.f32.mxu0 %vm385_vm3, %v2975_v4  ;;  %v3344_v4 = vld [vmem:[%s3661_s21 + $0x38] sm:$0xff] }
0x14b0   :  { %4177 = vmatmul.mubr.msk.f32.vlgmr.msra.gmra.mrb[32].mxu0 %vm385_vm3, %v2976_v41  ;;  %v4413_v41 = vpack.c.bf16 %v3344_v4, %v3343_v39 }
0x14b1   :  { %4392 = vmatpush3.bf16.msra.mxu0 %v5146_v40 }
0x14d2   :  { %v3155_v47 = vpop.xlane.xlu0 %3154 }
0x14d3   :  { %v3165_v50 = vmul.f32 0.03125, %v3155_v47 }
0x14d5   :  { %v3169_v54 = vsub.f32 %v3147_v42, %v3165_v50 }
0x14d6   :  { %v3158_v53 = vpop.xlane.xlu1 %3157 }
0x14d7   :  { %v3166_v56 = vmul.f32 0.03125, %v3158_v53  ;;  %v3173_v60 = vmul.f32 %v3169_v54, %v3169_v54 }
0x14d9   :  { %v3170_v58 = vsub.f32 %v3148_v15, %v3166_v56  ;;  %v3177_v61 = vsel %vm272_vm2, %v3173_v60, 0.0  ;;  %v3337_v15 = vld [vmem:[%s3661_s21] sm:$0xff] }
0x14da   :  { %v4401_v30 = vpack.c.bf16 %v3338_v10, %v3337_v15 }
0x14db   :  { %v3174_v62 = vmul.f32 %v3170_v58, %v3170_v58 }
0x14dc   :  { %4402 = vmatprep.subr.bf16.mxu0 %v4401_v30 }
0x14dd   :  { %v3180_v63 = vsel %vm272_vm2, %v3174_v62, 0.0 }
0x1583   :  { %v4178_v43 = vpop.f32.mrb[32].mxu0 }
0x1584   :  { %v3055_v46 = vpop.f32.mrb[33].mxu0 }
0x1585   :  { %4183 = vmatprep.mubr.msk.f32.mxu0 %vm385_vm3, %v3055_v46 }
0x1586   :  { %4184 = vmatmul.mubr.msk.f32.vlgmr.msra.gmra.mrb[30].mxu0 %vm385_vm3, %v4178_v43 }
0x1587   :  { %4404 = vmatpush3.bf16.msra.mxu0 %v4401_v30 }
0x1588   :  { %4406 = vmatprep.subr.bf16.mxu0 %v4405_v34 }
0x158b   :  { %4408 = vmatpush3.bf16.msra.mxu0 %v4405_v34 }
0x158c   :  { %4410 = vmatprep.subr.bf16.mxu0 %v4409_v38 }
0x158f   :  { %4412 = vmatpush3.bf16.msra.mxu0 %v4409_v38 }
0x1590   :  { %4414 = vmatprep.subr.bf16.mxu0 %v4413_v41 }
0x1593   :  { %4416 = vmatpush3.bf16.msra.mxu0 %v4413_v41 }
0x1659   :  { %v4185_v48 = vpop.f32.mrb[30].mxu0 }
0x165a   :  { %v3136_v37 = vpop.f32.mrb[31].mxu0  ;;  %v4436_v52 = vadd.f32 %v4185_v48, %v3738_v35 }
0x165b   :  { %v4437_v11 = vadd.f32 %v3738_v35, %v3136_v37  ;;  %v3763_v35 = vld [vmem:[%s3657_s13] ss:$0 sm:$0xff] }
0x165c   :  { %v3150_v40 = vadd.f32 %v4436_v52, %v5061_v8  ;;  %v3226_v8 = vld [vmem:[%s3659_s9 + $0x8] sm:$0xff] }
0x165d   :  { %v3149_v55 = vadd.f32 %v4437_v11, %v5058_v7  ;;  %v3225_v7 = vld [vmem:[%s3659_s9] sm:$0xff] }
0x165e   :  { %v3162_v59 = vsel %vm272_vm2, %v3150_v40, 0.0  ;;  %v4393_v0 = vpack.c.bf16 %v3226_v8, %v3225_v7 }
0x165f   :  { %v3159_v57 = vsel %vm272_vm2, %v3149_v55, 0.0 }
0x1660   :  { %3160 = vadd.xlane.f32.xlu0 %v3159_v57  ;;  %4394 = vmatprep.subr.bf16.mxu1 %v4393_v0 }
0x1661   :  { %4396 = vmatpush3.bf16.msra.mxu1 %v4393_v0 }
0x1662   :  { %4398 = vmatprep.subr.bf16.mxu1 %v4397_v51 }
0x1664   :  { %3163 = vadd.xlane.f32.xlu0 %v3162_v59 }
0x1665   :  { %4400 = vmatpush3.bf16.msra.mxu1 %v4397_v51 }
0x1668   :  { %3178 = vadd.xlane.f32.xlu0 %v3177_v61 }
0x166c   :  { %3181 = vadd.xlane.f32.xlu0 %v3180_v63 }
0x16ed   :  { %v3161_v25 = vpop.xlane.xlu0 %3160 }
0x16ee   :  { %v3167_v2 = vmul.f32 0.03125, %v3161_v25 }
0x16f0   :  { %v5190_v3 = vsub.f32 %v3149_v55, %v3167_v2  ;;  %v3770_v2 = vld [vmem:[%s3662_s29] ss:$0 sm:$0xff] }
0x16f1   :  { %v3164_v5 = vpop.xlane.xlu0 %3163 }
0x16f2   :  { %v3168_v6 = vmul.f32 0.03125, %v3164_v5  ;;  %v3175_v17 = vmul.f32 %v5190_v3, %v5190_v3 }
0x16f4   :  { %v5194_v16 = vsub.f32 %v3150_v40, %v3168_v6  ;;  %v3183_v14 = vsel %vm272_vm2, %v3175_v17, 0.0 }
0x16f5   :  { %3184 = vadd.xlane.f32.xlu0 %v3183_v14  ;;  %v3179_v9 = vpop.xlane.xlu0 %3178 }
0x16f6   :  { %v3189_v12 = vmul.f32 0.03125, %v3179_v9  ;;  %v3176_v18 = vmul.f32 %v5194_v16, %v5194_v16 }
0x16f8   :  { %v3193_v44 = vadd.f32 1e-05, %v3189_v12  ;;  %v3186_v19 = vsel %vm272_vm2, %v3176_v18, 0.0  ;;  %v4695_v18 = vmov 0.0|0.0  }
0x16f9   :  { %3187 = vadd.xlane.f32.xlu1 %v3186_v19  ;;  %v3182_v45 = vpop.xlane.xlu0 %3181  ;;  %4417 = vmatprep.subr.bf16.mxu1 %v4695_v18  ;;  %v3532_v19 = vld [vmem:[%s3639_s2] sm:$0xff] }
0x16fa   :  { %4648 = vrsqrt.f32 %v3193_v44  ;;  %v3190_v33 = vmul.f32 0.03125, %v3182_v45  ;;  %v4698_v44 = vmov 0.0   ;;  %v3533_v45 = vld [vmem:[%s3639_s2 + $0x8] sm:$0xff] }
0x16fc   :  { %v3194_v20 = vadd.f32 1e-05, %v3190_v33  ;;  %v3534_v33 = vld [vmem:[%s3639_s2 + $0x10] sm:$0xff] }
0x16fe   :  { %4650 = vrsqrt.f32 %v3194_v20  ;;  %v4418_v20 = vpack.c.bf16 %v3533_v45, %v3532_v19 }
0x1704   :  { %v4649_v21 = vpop.eup %4648 }
0x1705   :  { %v3201_v22 = vmul.f32 %v4649_v21, %v3169_v54  ;;  %v3535_v21 = vld [vmem:[%s3639_s2 + $0x18] sm:$0xff] }
0x1707   :  { %v3211_v32 = vmul.f32 %v3763_v35, %v3201_v22  ;;  %v3536_v22 = vld [vmem:[%s3639_s2 + $0x20] sm:$0xff] }
0x1708   :  { %v4651_v13 = vpop.eup %4650 }
0x1709   :  { %v3202_v26 = vmul.f32 %v4651_v13, %v3170_v58  ;;  %v5206_v42 = vadd.f32 %v3764_v23, %v3211_v32  ;;  %v3765_v58 = vld [vmem:[%s3660_s25] ss:$0 sm:$0xff]  ;;  %v3538_v13 = vld [vmem:[%s3639_s2 + $0x30] sm:$0xff] }
0x170b   :  { %4194 = vmatprep.mubr.msk.f32.mxu1 %vm272_vm2, %v5206_v42  ;;  %v3212_v27 = vmul.f32 %v3763_v35, %v3202_v26  ;;  %v3539_v26 = vld [vmem:[%s3639_s2 + $0x38] sm:$0xf] }
0x170d   :  { %v5210_v28 = vadd.f32 %v3764_v23, %v3212_v27  ;;  %v3531_v27 = vld [vmem:[%s3636_s6] sm:$0x3] }
0x170f   :  { %4195 = vmatmul.mubr.msk.f32.vlgmr.msra.gmra.mrb[26].mxu1 %vm272_vm2, %v5210_v28 }
0x1710   :  { %4419 = vmatpush3.bf16.msra.mxu1 %v4418_v20 }
0x1711   :  { %4420 = vmatprep.subr.bf16.mxu1 %v4695_v18 }
0x1782   :  { %v3185_v43 = vpop.xlane.xlu0 %3184 }
0x1783   :  { %v3191_v46 = vmul.f32 0.03125, %v3185_v43 }
0x1785   :  { %v3195_v47 = vadd.f32 1e-05, %v3191_v46 }
0x1786   :  { %v3188_v48 = vpop.xlane.xlu1 %3187 }
0x1787   :  { %4652 = vrsqrt.f32 %v3195_v47  ;;  %v3192_v37 = vmul.f32 0.03125, %v3188_v48 }
0x1789   :  { %v3196_v50 = vadd.f32 1e-05, %v3192_v37 }
0x178b   :  { %4654 = vrsqrt.f32 %v3196_v50 }
0x1791   :  { %v4653_v52 = vpop.eup %4652 }
0x1792   :  { %v3203_v11 = vmul.f32 %v4653_v52, %v5190_v3 }
0x1794   :  { %v3213_v53 = vmul.f32 %v3763_v35, %v3203_v11 }
0x1795   :  { %v4655_v55 = vpop.eup %4654 }
0x1796   :  { %v5218_v54 = vadd.f32 %v3764_v23, %v3213_v53  ;;  %v3204_v56 = vmul.f32 %v4655_v55, %v5194_v16 }
0x1798   :  { %4197 = vmatprep.mubr.msk.f32.mxu1 %vm272_vm2, %v5218_v54  ;;  %v3214_v57 = vmul.f32 %v3763_v35, %v3204_v56  ;;  %v4421_v35 = vpack.c.bf16 %v3535_v21, %v3534_v33 }
0x179a   :  { %v5223_v40 = vadd.f32 %v3764_v23, %v3214_v57  ;;  %v3537_v23 = vld [vmem:[%s3639_s2 + $0x28] sm:$0xff]  ;;  %4422 = vmatpush3.bf16.msra.mxu1 %v4421_v35 }
0x179b   :  { %v4424_v32 = vpack.c.bf16 %v3537_v23, %v3536_v22  ;;  %4423 = vmatprep.subr.bf16.mxu1 %v4695_v18 }
0x179c   :  { %4198 = vmatmul.mubr.msk.f32.gmra.mrb[28].mxu1 %vm272_vm2, %v5223_v40 }
0x179d   :  { %4238 = vmatprep.mubr.msk.f32.mxu1 %vm4697_vm6, %v4698_v44 }
0x179e   :  { %4425 = vmatpush3.bf16.msra.mxu1 %v4424_v32 }
0x179f   :  { %4426 = vmatprep.subr.bf16.mxu1 %v4695_v18 }
0x17e2   :  { %v4196_v59 = vpop.f32.mrb[26].mxu1 }
0x17e3   :  { %v3320_v60 = vadd.f32 %v4196_v59, %v3765_v58  ;;  %v3314_v61 = vpop.f32.mrb[27].mxu1 }
0x17e4   :  { %v3315_v62 = vadd.f32 %v3765_v58, %v3314_v61 }
0x17e5   :  { %v3334_v7 = vmax.f32 %v3320_v60, 0.0 }
0x17e6   :  { %v3333_v63 = vmax.f32 %v3315_v62, 0.0 }
0x17e8   :  { %4216 = vmatprep.mubr.msk.f32.mxu0 %vm1724_vm5, %v3333_v63 }
0x17e9   :  { %4217 = vmatmul.mubr.msk.f32.vlgmr.msra.gmra.mrb[34].mxu0 %vm1724_vm5, %v3334_v7 }
0x186f   :  { %v4199_v8 = vpop.f32.mrb[28].mxu1 }
0x1870   :  { %v3330_v0 = vadd.f32 %v4199_v8, %v3765_v58  ;;  %v3324_v1 = vpop.f32.mrb[29].mxu1 }
0x1871   :  { %v3325_v49 = vadd.f32 %v3765_v58, %v3324_v1 }
0x1872   :  { %v3336_v25 = vmax.f32 %v3330_v0, 0.0  ;;  %v3775_v0 = vld [vmem:[%s3663_s11] ss:$0 sm:$0xff] }
0x1873   :  { %v3335_v51 = vmax.f32 %v3325_v49, 0.0 }
0x1875   :  { %4219 = vmatprep.mubr.msk.f32.mxu0 %vm1724_vm5, %v3335_v51  ;;  %v3776_v51 = vld [vmem:[%s3664_s15] ss:$0 sm:$0xff] }
0x1876   :  { %4220 = vmatmul.mubr.msk.f32.gmra.mrb[36].mxu0 %vm1724_vm5, %v3336_v25 }
0x18bc   :  { %v4218_v3 = vpop.f32.mrb[34].mxu0 }
0x18bd   :  { %v3436_v5 = vadd.f32 %v4218_v3, %v3770_v2  ;;  %v3430_v6 = vpop.f32.mrb[35].mxu0 }
0x18be   :  { %v3431_v17 = vadd.f32 %v3770_v2, %v3430_v6 }
0x18bf   :  { %v3450_v16 = vadd.f32 %v3436_v5, %v5210_v28 }
0x18c0   :  { %v3449_v14 = vadd.f32 %v3431_v17, %v5206_v42  ;;  %v4427_v42 = vpack.c.bf16 %v3539_v26, %v3538_v13 }
0x18c1   :  { %v3458_v9 = vsel %vm272_vm2, %v3450_v16, 0.0 }
0x18c2   :  { %3459 = vadd.xlane.f32.xlu1 %v3458_v9  ;;  %v3455_v12 = vsel %vm272_vm2, %v3449_v14, 0.0  ;;  %4429 = vmatpush3.bf16.msk.msra.mxu1 %vm4428_vm8, %v4427_v42 }
0x18c3   :  { %3456 = vadd.xlane.f32.xlu0 %v3455_v12 }
0x18c5   :  { %4239 = vmatmul.mubr.msk.f32.vlgmr.msra.gmra.mrb[30].mxu1 %vm3547_vm9, %v3531_v27 }
0x1949   :  { %v4221_v28 = vpop.f32.mrb[36].mxu0 }
0x194a   :  { %v3446_v15 = vadd.f32 %v4221_v28, %v3770_v2  ;;  %v3440_v10 = vpop.f32.mrb[37].mxu0 }
0x194b   :  { %v3441_v29 = vadd.f32 %v3770_v2, %v3440_v10 }
0x194c   :  { %v3452_v30 = vadd.f32 %v3446_v15, %v5223_v40 }
0x194d   :  { %v3451_v31 = vadd.f32 %v3441_v29, %v5218_v54 }
0x194e   :  { %v3464_v34 = vsel %vm272_vm2, %v3452_v30, 0.0 }
0x194f   :  { %v3460_v24 = vpop.xlane.xlu1 %3459  ;;  %3465 = vadd.xlane.f32.xlu1 %v3464_v34  ;;  %v3461_v36 = vsel %vm272_vm2, %v3451_v31, 0.0 }
0x1950   :  { %v3468_v38 = vmul.f32 0.03125, %v3460_v24  ;;  %3462 = vadd.xlane.f32.xlu0 %v3461_v36  ;;  %v3457_v39 = vpop.xlane.xlu0 %3456 }
0x1951   :  { %v3467_v4 = vmul.f32 0.03125, %v3457_v39 }
0x1952   :  { %v3472_v41 = vsub.f32 %v3450_v16, %v3468_v38  ;;  %v3777_v16 = vld [vmem:[%s3640_s23] ss:$0 sm:$0xff] }
0x1953   :  { %v3471_v43 = vsub.f32 %v3449_v14, %v3467_v4 }
0x1954   :  { %v3476_v46 = vmul.f32 %v3472_v41, %v3472_v41 }
0x1955   :  { %v3475_v47 = vmul.f32 %v3471_v43, %v3471_v43 }
0x1956   :  { %v3482_v48 = vsel %vm272_vm2, %v3476_v46, 0.0 }
0x1957   :  { %3483 = vadd.xlane.f32.xlu1 %v3482_v48  ;;  %v3479_v37 = vsel %vm272_vm2, %v3475_v47, 0.0 }
0x1958   :  { %3480 = vadd.xlane.f32.xlu0 %v3479_v37 }
0x1998   :  { %v3620_v17 = vpop.f32.mrb[30].mxu1 }
0x1999   :  { %v4240_v14 = vpop.f32.mrb[31].mxu1  ;;  %v3621_v9 = vadd.f32 %v3777_v16, %v3620_v17 }
0x199b   :  { %v3624_v12 = vmax.f32 %v3621_v9, 0.0 }
0x199d   :  { %3625 = vst [vmem:[%s3666_s28] sm:$0x3] %v3624_v12 }
0x19dc   :  { %v3466_v50 = vpop.xlane.xlu1 %3465 }
0x19dd   :  { %v3470_v52 = vmul.f32 0.03125, %v3466_v50  ;;  %v3463_v11 = vpop.xlane.xlu0 %3462 }
0x19de   :  { %v3469_v53 = vmul.f32 0.03125, %v3463_v11 }
0x19df   :  { %v3474_v55 = vsub.f32 %v3452_v30, %v3470_v52 }
0x19e0   :  { %v3473_v54 = vsub.f32 %v3451_v31, %v3469_v53 }
0x19e1   :  { %v3478_v56 = vmul.f32 %v3474_v55, %v3474_v55 }
0x19e2   :  { %v3477_v57 = vmul.f32 %v3473_v54, %v3473_v54 }
0x19e3   :  { %v3488_v40 = vsel %vm272_vm2, %v3478_v56, 0.0 }
0x19e4   :  { %3489 = vadd.xlane.f32.xlu1 %v3488_v40  ;;  %v3484_v58 = vpop.xlane.xlu1 %3483  ;;  %v3485_v59 = vsel %vm272_vm2, %v3477_v57, 0.0 }
0x19e5   :  { %v3492_v60 = vmul.f32 0.03125, %v3484_v58  ;;  %3486 = vadd.xlane.f32.xlu0 %v3485_v59  ;;  %v3481_v61 = vpop.xlane.xlu0 %3480 }
0x19e6   :  { %v3491_v62 = vmul.f32 0.03125, %v3481_v61 }
0x19e7   :  { %v3496_v63 = vadd.f32 1e-05, %v3492_v60 }
0x19e8   :  { %v3495_v7 = vadd.f32 1e-05, %v3491_v62 }
0x19e9   :  { %4656 = vrsqrt.f32 %v3496_v63 }
0x19ea   :  { %4658 = vrsqrt.f32 %v3495_v7 }
0x19f3   :  { %v4657_v8 = vpop.eup %4656 }
0x19f4   :  { %v4659_v1 = vpop.eup %4658  ;;  %v3504_v49 = vmul.f32 %v4657_v8, %v3472_v41 }
0x19f5   :  { %v3503_v25 = vmul.f32 %v4659_v1, %v3471_v43 }
0x19f6   :  { %v3514_v2 = vmul.f32 %v3775_v0, %v3504_v49 }
0x19f7   :  { %v3513_v3 = vmul.f32 %v3775_v0, %v3503_v25 }
0x19f8   :  { %v3524_v5 = vadd.f32 %v3776_v51, %v3514_v2 }
0x19f9   :  { %v3523_v6 = vadd.f32 %v3776_v51, %v3513_v3 }
0x19fa   :  { %3528 = vst.msk [vmem:[%s5265_s19 + $0x8] sm:$0xff] %vm272_vm2, %v3524_v5 }
0x19fb   :  { %3527 = vst.msk [vmem:[%s5265_s19] sm:$0xff] %vm272_vm2, %v3523_v6 }
0x1a71   :  { %v3490_v18 = vpop.xlane.xlu1 %3489 }
0x1a72   :  { %v3494_v44 = vmul.f32 0.03125, %v3490_v18  ;;  %v3487_v19 = vpop.xlane.xlu0 %3486 }
0x1a73   :  { %v3493_v45 = vmul.f32 0.03125, %v3487_v19 }
0x1a74   :  { %v3498_v33 = vadd.f32 1e-05, %v3494_v44 }
0x1a75   :  { %v3497_v20 = vadd.f32 1e-05, %v3493_v45 }
0x1a76   :  { %4660 = vrsqrt.f32 %v3498_v33 }
0x1a77   :  { %4662 = vrsqrt.f32 %v3497_v20 }
0x1a80   :  { %v4661_v21 = vpop.eup %4660 }
0x1a81   :  { %v4663_v35 = vpop.eup %4662  ;;  %v3506_v22 = vmul.f32 %v4661_v21, %v3474_v55 }
0x1a82   :  { %v3505_v23 = vmul.f32 %v4663_v35, %v3473_v54 }
0x1a83   :  { %v3516_v32 = vmul.f32 %v3775_v0, %v3506_v22 }
0x1a84   :  { %v3515_v13 = vmul.f32 %v3775_v0, %v3505_v23 }
0x1a85   :  { %v3526_v26 = vadd.f32 %v3776_v51, %v3516_v32 }
0x1a86   :  { %v3525_v42 = vadd.f32 %v3776_v51, %v3515_v13 }
0x1a87   :  { %3530 = vst.msk [vmem:[%s5265_s19 + $0x18] sm:$0xff] %vm272_vm2, %v3526_v26 }
0x1a88   :  { %3529 = vst.msk [vmem:[%s5265_s19 + $0x10] sm:$0xff] %vm272_vm2, %v3525_v42 }

// kernel: povl_forward.3
= control target key start
LH: loop header
LB: loop body
LE: loop exit
PB: predicated region body
PF: predicated region fallthrough
CT: control target
= control target key end

     0   :  { %s7764_s6 = smov 1   ;;  %s7765_s10 = smov 2   ;;  %s8856_s0 = inlined_call_operand.smem [shape: u32[56], index: -1, kind: input, shape index: {}] }
   0x1   :  { %s7843_s5 = sld [smem:[%s8856_s0]]   ;;  %s7766_s14 = smov 3  }
   0x2   :  { %s7848_s9 = sld [smem:[%s8856_s0 + %s7764_s6]]   ;;  %s7767_s18 = smov 4  }
   0x3   :  { %s7853_s13 = sld [smem:[%s8856_s0 + %s7765_s10]]   ;;  %s7768_s22 = smov 5  }
   0x4   :  { %s7858_s17 = sld [smem:[%s8856_s0 + %s7766_s14]]   ;;  %s7769_s26 = smov 6  }
   0x5   :  { %s7863_s21 = sld [smem:[%s8856_s0 + %s7767_s18]]   ;;  %s7770_s30 = smov 7  }
   0x6   :  { %s7868_s25 = sld [smem:[%s8856_s0 + %s7768_s22]]   ;;  %s7771_s4 = smov 8  }
   0x7   :  { %8873 = sst [smem:[#allocation19_spill]] %s7843_s5  ;;  %s7772_s10 = smov 9  }
   0x8   :  { %8874 = sst [smem:[#allocation20_spill]] %s7848_s9  ;;  %s7773_s15 = smov 10  }
   0x9   :  { %s7873_s29 = sld [smem:[%s8856_s0 + %s7769_s26]]   ;;  %s7774_s20 = smov 11  }
   0xa   :  { %8875 = sst [smem:[#allocation21_spill]] %s7858_s17  ;;  %s7775_s26 = smov 12  }
   0xb   :  { %s7878_s3 = sld [smem:[%s8856_s0 + %s7770_s30]]   ;;  %s7776_s1 = smov 13  }
   0xc   :  { %s7883_s8 = sld [smem:[%s8856_s0 + %s7771_s4]]   ;;  %s7777_s7 = smov 14  }
   0xd   :  { %s7888_s14 = sld [smem:[%s8856_s0 + %s7772_s10]]   ;;  %s7779_s22 = smov 16  }
   0xe   :  { %s7893_s19 = sld [smem:[%s8856_s0 + %s7773_s15]]   ;;  %s7778_s15 = smov 15  }
   0xf   :  { %s7898_s24 = sld [smem:[%s8856_s0 + %s7774_s20]]   ;;  %s7780_s28 = smov 17  }
  0x10   :  { %s7903_s30 = sld [smem:[%s8856_s0 + %s7775_s26]]  }
  0x11   :  { %s7908_s6 = sld [smem:[%s8856_s0 + %s7776_s1]]  }
  0x12   :  { %s7913_s12 = sld [smem:[%s8856_s0 + %s7777_s7]]   ;;  %s7781_s7 = smov 18  }
  0x13   :  { %s7918_s20 = sld [smem:[%s8856_s0 + %s7778_s15]]   ;;  %s7782_s15 = smov 19  }
  0x14   :  { %s7923_s27 = sld [smem:[%s8856_s0 + %s7779_s22]]   ;;  %s7783_s22 = smov 20  }
  0x15   :  { %s7928_s4 = sld [smem:[%s8856_s0 + %s7780_s28]]   ;;  %s7784_s28 = smov 21  }
  0x16   :  { %8876 = sst [smem:[#allocation22_spill]] %s7903_s30 }
  0x17   :  { %8877 = sst [smem:[#allocation23_spill]] %s7908_s6 }
  0x18   :  { %8878 = sst [smem:[#allocation24_spill]] %s7913_s12 }
  0x19   :  { %8879 = sst [smem:[#allocation25_spill]] %s7918_s20 }
  0x1a   :  { %8880 = sst [smem:[#allocation26_spill]] %s7923_s27 }
  0x1b   :  { %8881 = sst [smem:[#allocation27_spill]] %s7928_s4 }
  0x1c   :  { %s7933_s9 = sld [smem:[%s8856_s0 + %s7781_s7]]   ;;  %s7785_s7 = smov 22  }
  0x1d   :  { %s7938_s17 = sld [smem:[%s8856_s0 + %s7782_s15]]   ;;  %s7786_s15 = smov 23  }
  0x1e   :  { %s7943_s20 = sld [smem:[%s8856_s0 + %s7783_s22]]   ;;  %s7787_s22 = smov 24  }
  0x1f   :  { %s7948_s4 = sld [smem:[%s8856_s0 + %s7784_s28]]   ;;  %s7788_s28 = smov 25  }
  0x22   :  { %8882 = sst [smem:[#allocation28_spill]] %s7933_s9 }
  0x23   :  { %8883 = sst [smem:[#allocation29_spill]] %s7938_s17 }
  0x24   :  { %8884 = sst [smem:[#allocation30_spill]] %s7943_s20 }
  0x25   :  { %8885 = sst [smem:[#allocation31_spill]] %s7948_s4 }
  0x26   :  { %s7953_s9 = sld [smem:[%s8856_s0 + %s7785_s7]]   ;;  %s7789_s7 = smov 26  }
  0x27   :  { %s7958_s17 = sld [smem:[%s8856_s0 + %s7786_s15]]   ;;  %s7790_s15 = smov 27  }
  0x28   :  { %s7963_s20 = sld [smem:[%s8856_s0 + %s7787_s22]]   ;;  %s7791_s22 = smov 28  }
  0x29   :  { %s7968_s4 = sld [smem:[%s8856_s0 + %s7788_s28]]   ;;  %s7792_s28 = smov 29  }
  0x2c   :  { %8886 = sst [smem:[#allocation32_spill]] %s7953_s9 }
  0x2d   :  { %8887 = sst [smem:[#allocation33_spill]] %s7958_s17 }
  0x2e   :  { %8888 = sst [smem:[#allocation34_spill]] %s7963_s20 }
  0x2f   :  { %8889 = sst [smem:[#allocation35_spill]] %s7968_s4 }
  0x30   :  { %s7973_s9 = sld [smem:[%s8856_s0 + %s7789_s7]]   ;;  %s7793_s7 = smov 30  }
  0x31   :  { %s7978_s17 = sld [smem:[%s8856_s0 + %s7790_s15]]   ;;  %s7794_s15 = smov 31  }
  0x32   :  { %s7983_s20 = sld [smem:[%s8856_s0 + %s7791_s22]]   ;;  %s7795_s22 = smov 32  }
  0x33   :  { %s7988_s4 = sld [smem:[%s8856_s0 + %s7792_s28]]   ;;  %s7796_s28 = smov 33  }
  0x36   :  { %8890 = sst [smem:[#allocation36_spill]] %s7973_s9 }
  0x37   :  { %8891 = sst [smem:[#allocation37_spill]] %s7978_s17 }
  0x38   :  { %8892 = sst [smem:[#allocation38_spill]] %s7983_s20 }
  0x39   :  { %8893 = sst [smem:[#allocation39_spill]] %s7988_s4 }
  0x3a   :  { %s7993_s9 = sld [smem:[%s8856_s0 + %s7793_s7]]   ;;  %s7797_s7 = smov 34  }
  0x3b   :  { %s7998_s17 = sld [smem:[%s8856_s0 + %s7794_s15]]   ;;  %s7798_s15 = smov 35  }
  0x3c   :  { %s8003_s20 = sld [smem:[%s8856_s0 + %s7795_s22]]   ;;  %s7799_s22 = smov 36  }
  0x3d   :  { %s8008_s4 = sld [smem:[%s8856_s0 + %s7796_s28]]   ;;  %s7800_s28 = smov 37  }
  0x40   :  { %8894 = sst [smem:[#allocation40_spill]] %s7993_s9 }
  0x41   :  { %8895 = sst [smem:[#allocation41_spill]] %s7998_s17 }
  0x42   :  { %8896 = sst [smem:[#allocation42_spill]] %s8003_s20 }
  0x43   :  { %8897 = sst [smem:[#allocation43_spill]] %s8008_s4 }
  0x44   :  { %s8013_s9 = sld [smem:[%s8856_s0 + %s7797_s7]]   ;;  %s7801_s7 = smov 38  }
  0x45   :  { %s8018_s17 = sld [smem:[%s8856_s0 + %s7798_s15]]   ;;  %s7802_s15 = smov 39  }
  0x46   :  { %s8023_s20 = sld [smem:[%s8856_s0 + %s7799_s22]]   ;;  %s7803_s22 = smov 40  }
  0x47   :  { %s8028_s4 = sld [smem:[%s8856_s0 + %s7800_s28]]   ;;  %s7804_s28 = smov 41  }
  0x4a   :  { %8898 = sst [smem:[#allocation44_spill]] %s8013_s9 }
  0x4b   :  { %8899 = sst [smem:[#allocation45_spill]] %s8018_s17 }
  0x4c   :  { %8900 = sst [smem:[#allocation46_spill]] %s8023_s20 }
  0x4d   :  { %8901 = sst [smem:[#allocation47_spill]] %s8028_s4 }
  0x4e   :  { %s8033_s9 = sld [smem:[%s8856_s0 + %s7801_s7]]   ;;  %s7805_s7 = smov 42  }
  0x4f   :  { %s8038_s17 = sld [smem:[%s8856_s0 + %s7802_s15]]   ;;  %s7806_s15 = smov 43  }
  0x50   :  { %s8043_s20 = sld [smem:[%s8856_s0 + %s7803_s22]]   ;;  %s7807_s22 = smov 44  }
  0x51   :  { %s8048_s4 = sld [smem:[%s8856_s0 + %s7804_s28]]   ;;  %s7808_s28 = smov 45  }
  0x54   :  { %8902 = sst [smem:[#allocation48_spill]] %s8033_s9 }
  0x55   :  { %8903 = sst [smem:[#allocation49_spill]] %s8038_s17 }
  0x56   :  { %8904 = sst [smem:[#allocation50_spill]] %s8043_s20 }
  0x57   :  { %8905 = sst [smem:[#allocation51_spill]] %s8048_s4 }
  0x58   :  { %s8053_s9 = sld [smem:[%s8856_s0 + %s7805_s7]]   ;;  %s7809_s7 = smov 46  }
  0x59   :  { %s8058_s17 = sld [smem:[%s8856_s0 + %s7806_s15]]   ;;  %s7810_s15 = smov 47  }
  0x5a   :  { %s8063_s20 = sld [smem:[%s8856_s0 + %s7807_s22]]   ;;  %s7811_s22 = smov 48  }
  0x5b   :  { %s8068_s4 = sld [smem:[%s8856_s0 + %s7808_s28]]   ;;  %s7812_s28 = smov 49  }
  0x5c   :  { %s8088_s12 = sld [smem:[%s8856_s0 + %s7812_s28]]   ;;  %s7816_s28 = smov 53  }
  0x5d   :  { %s8108_s6 = sld [smem:[%s8856_s0 + %s7816_s28]]  }
  0x5e   :  { %8906 = sst [smem:[#allocation52_spill]] %s8053_s9 }
  0x5f   :  { %8907 = sst [smem:[#allocation53_spill]] %s8058_s17 }
  0x60   :  { %8908 = sst [smem:[#allocation54_spill]] %s8063_s20 }
  0x61   :  { %s8073_s9 = sld [smem:[%s8856_s0 + %s7809_s7]]   ;;  %s7813_s7 = smov 50  }
  0x62   :  { %s8078_s17 = sld [smem:[%s8856_s0 + %s7810_s15]]   ;;  %s7814_s15 = smov 51  }
  0x63   :  { %s8083_s20 = sld [smem:[%s8856_s0 + %s7811_s22]]   ;;  %s7815_s22 = smov 52  }
  0x64   :  { %s8093_s5 = sld [smem:[%s8856_s0 + %s7813_s7]]   ;;  %s7817_s7 = smov 54  }
  0x65   :  { %s8098_s27 = sld [smem:[%s8856_s0 + %s7814_s15]]   ;;  %s7818_s15 = smov 55  }
  0x66   :  { %s8118_s30 = sld [smem:[%s8856_s0 + %s7818_s15]]  }
  0x69   :  { %8909 = sst [smem:[#allocation55_spill]] %s8083_s20 }
  0x6a   :  { %8910 = sst [smem:[#allocation56_spill]] %s8093_s5 }
  0x6b   :  { %s8103_s20 = sld [smem:[%s8856_s0 + %s7815_s22]]  }
  0x6c   :  { %s8113_s5 = sld [smem:[%s8856_s0 + %s7817_s7]]  }
  0x6d   :  { %117 = vsyncpa [#allocation3], 0 }
  0x6e   :  { %118 = vsyncpa [#allocation6], 0 }
  0x6f   :  { %119 = vsyncpa [#allocation9], 0 }
  0x70   :  { %120 = vsyncpa [#allocation12], 0 }
  0x71   :  { %121 = vsyncpa [#allocation4], 0  ;;  %s7819_s22 = smov [#allocation5]   ;;  %s7820_s26 = smov [#allocation8]  }
  0x72   :  { %s228_s23 = sshll.u32 %s7819_s22, 4  ;;  %s250_s28 = sshll.u32 %s7820_s26, 4  ;;  %s229_s23 = int_to_ptr.vmem [resolvable:$true] %s228_s23  ;;  %s251_s28 = int_to_ptr.vmem [resolvable:$true] %s250_s28 }
  0x73   :  { %s7600_s1 = scalar_lea.hbm %s8073_s9, 16 }
  0x74   :  { %p7601_p0 = scmp.ne.s32.totalorder %s8073_s9, %s7600_s1  ;;  %p7604_p1 = scmp.lt.u32.totalorder %s7600_s1, %s8073_s9 }
  0x76   :  { %p7606_p2 = pnand %p7604_p1, %p7601_p0 }
  0x78   :  { %7609 = shalt.err (!%p7606_p2)
}
  0x79   :  { %s7610_s0 = scalar_lea.vmem %s229_s23, 16  ;;  %s7614_s2 = scalar_lea.vmem %s229_s23, 32 }
  0x7a   :  { %p7611_p3 = scmp.ne.s32.totalorder %s229_s23, %s7610_s0  ;;  %p7615_p4 = scmp.lt.s32.totalorder %s229_s23, %s229_s23 }
  0x7b   :  { %p7616_p5 = scmp.lt.s32.totalorder %s7614_s2, %s7610_s0 }
  0x7d   :  { %p7617_p6 = por %p7616_p5, %p7615_p4 }
  0x7f   :  { %p7618_p7 = pnand %p7617_p6, %p7611_p3 }
  0x81   :  { %7621 = shalt.err (!%p7618_p7)
}
  0x82   :  { %231 = dma.hbm_to_vmem [thread:$0]  %s8073_s9, 16, %s229_s23, [#allocation6]  }
  0x83   :  { %s7622_s7 = scalar_lea.hbm %s8088_s12, 16 }
  0x84   :  { %p7623_p8 = scmp.ne.s32.totalorder %s8088_s12, %s7622_s7  ;;  %p7626_p9 = scmp.lt.u32.totalorder %s7622_s7, %s8088_s12 }
  0x86   :  { %p7628_p10 = pnand %p7626_p9, %p7623_p8 }
  0x88   :  { %7631 = shalt.err (!%p7628_p10)
}
  0x89   :  { %s7632_s10 = scalar_lea.vmem %s251_s28, 16  ;;  %s7636_s11 = scalar_lea.vmem %s251_s28, 32 }
  0x8a   :  { %p7633_p11 = scmp.ne.s32.totalorder %s251_s28, %s7632_s10  ;;  %p7637_p12 = scmp.lt.s32.totalorder %s251_s28, %s251_s28 }
  0x8b   :  { %p7638_p13 = scmp.lt.s32.totalorder %s7636_s11, %s7632_s10 }
  0x8d   :  { %p7639_p0 = por %p7638_p13, %p7637_p12 }
  0x8f   :  { %p7640_p1 = pnand %p7639_p0, %p7633_p11 }
  0x91   :  { %7643 = shalt.err (!%p7640_p1)
}
  0x92   :  { %253 = dma.hbm_to_vmem [thread:$0]  %s8088_s12, 16, %s251_s28, [#allocation9]  }
  0x93   :  { %s7821_s15 = smov [#allocation2]   ;;  %s7822_s16 = smov [#allocation7]  }
  0x94   :  { %s218_s9 = sshll.u32 %s7821_s15, 4  ;;  %s238_s18 = sshll.u32 %s7822_s16, 4  ;;  %s219_s9 = int_to_ptr.vmem [resolvable:$true] %s218_s9  ;;  %s239_s18 = int_to_ptr.vmem [resolvable:$true] %s238_s18 }
  0x95   :  { %s7644_s22 = scalar_lea.hbm %s8068_s4, 16 }
  0x96   :  { %p7645_p2 = scmp.ne.s32.totalorder %s8068_s4, %s7644_s22  ;;  %p7648_p3 = scmp.lt.u32.totalorder %s7644_s22, %s8068_s4 }
  0x98   :  { %p7650_p4 = pnand %p7648_p3, %p7645_p2 }
  0x9a   :  { %7653 = shalt.err (!%p7650_p4)
}
  0x9b   :  { %s7654_s23 = scalar_lea.vmem %s219_s9, 16  ;;  %s7658_s26 = scalar_lea.vmem %s219_s9, 32 }
  0x9c   :  { %p7655_p5 = scmp.ne.s32.totalorder %s219_s9, %s7654_s23  ;;  %p7659_p6 = scmp.lt.s32.totalorder %s219_s9, %s219_s9 }
  0x9d   :  { %p7660_p7 = scmp.lt.s32.totalorder %s7658_s26, %s7654_s23 }
  0x9f   :  { %p7661_p8 = por %p7660_p7, %p7659_p6 }
  0xa1   :  { %p7662_p9 = pnand %p7661_p8, %p7655_p5 }
  0xa3   :  { %7665 = shalt.err (!%p7662_p9)
}
  0xa4   :  { %221 = dma.hbm_to_vmem [thread:$0]  %s8068_s4, 16, %s219_s9, [#allocation3]  }
  0xa5   :  { %s7666_s12 = scalar_lea.hbm %s8078_s17, 16 }
  0xa6   :  { %p7667_p10 = scmp.ne.s32.totalorder %s8078_s17, %s7666_s12  ;;  %p7670_p11 = scmp.lt.u32.totalorder %s7666_s12, %s8078_s17 }
  0xa8   :  { %p7672_p12 = pnand %p7670_p11, %p7667_p10 }
  0xaa   :  { %7675 = shalt.err (!%p7672_p12)
}
  0xab   :  { %s7676_s28 = scalar_lea.vmem %s239_s18, 16  ;;  %s7680_s1 = scalar_lea.vmem %s239_s18, 32 }
  0xac   :  { %p7677_p13 = scmp.ne.s32.totalorder %s239_s18, %s7676_s28  ;;  %p7681_p0 = scmp.lt.s32.totalorder %s239_s18, %s239_s18 }
  0xad   :  { %p7682_p1 = scmp.lt.s32.totalorder %s7680_s1, %s7676_s28 }
  0xaf   :  { %p7683_p2 = por %p7682_p1, %p7681_p0 }
  0xb1   :  { %p7684_p3 = pnand %p7683_p2, %p7677_p13 }
  0xb3   :  { %7687 = shalt.err (!%p7684_p3)
}
  0xb4   :  { %241 = dma.hbm_to_vmem [thread:$0]  %s8078_s17, 16, %s239_s18, [#allocation6]  }
  0xb5   :  { %s7823_s0 = smov [#allocation10]   ;;  %s7824_s2 = smov [#allocation11]  }
  0xb6   :  { %s262_s4 = sshll.u32 %s7823_s0, 4  ;;  %s274_s7 = sshll.u32 %s7824_s2, 4  ;;  %s263_s4 = int_to_ptr.vmem [resolvable:$true] %s262_s4  ;;  %s275_s7 = int_to_ptr.vmem [resolvable:$true] %s274_s7 }
  0xb7   :  { %s7688_s10 = scalar_lea.hbm %s8098_s27, 16 }
  0xb8   :  { %p7689_p4 = scmp.ne.s32.totalorder %s8098_s27, %s7688_s10  ;;  %p7692_p5 = scmp.lt.u32.totalorder %s7688_s10, %s8098_s27 }
  0xba   :  { %p7694_p6 = pnand %p7692_p5, %p7689_p4 }
  0xbc   :  { %7697 = shalt.err (!%p7694_p6)
}
  0xbd   :  { %s7698_s11 = scalar_lea.vmem %s263_s4, 16  ;;  %s7702_s15 = scalar_lea.vmem %s263_s4, 32 }
  0xbe   :  { %p7699_p7 = scmp.ne.s32.totalorder %s263_s4, %s7698_s11  ;;  %p7703_p8 = scmp.lt.s32.totalorder %s263_s4, %s263_s4 }
  0xbf   :  { %p7704_p9 = scmp.lt.s32.totalorder %s7702_s15, %s7698_s11 }
  0xc1   :  { %p7705_p10 = por %p7704_p9, %p7703_p8 }
  0xc3   :  { %p7706_p11 = pnand %p7705_p10, %p7699_p7 }
  0xc5   :  { %7709 = shalt.err (!%p7706_p11)
}
  0xc6   :  { %265 = dma.hbm_to_vmem [thread:$0]  %s8098_s27, 16, %s263_s4, [#allocation9]  }
  0xc7   :  { %s7710_s17 = scalar_lea.hbm %s8108_s6, 16 }
  0xc8   :  { %p7711_p12 = scmp.ne.s32.totalorder %s8108_s6, %s7710_s17  ;;  %p7714_p13 = scmp.lt.u32.totalorder %s7710_s17, %s8108_s6 }
  0xca   :  { %p7716_p0 = pnand %p7714_p13, %p7711_p12 }
  0xcc   :  { %7719 = shalt.err (!%p7716_p0)
}
  0xcd   :  { %s7720_s9 = scalar_lea.vmem %s275_s7, 16  ;;  %s7724_s16 = scalar_lea.vmem %s275_s7, 32 }
  0xce   :  { %p7721_p1 = scmp.ne.s32.totalorder %s275_s7, %s7720_s9  ;;  %p7725_p2 = scmp.lt.s32.totalorder %s275_s7, %s275_s7 }
  0xcf   :  { %p7726_p3 = scmp.lt.s32.totalorder %s7724_s16, %s7720_s9 }
  0xd1   :  { %p7727_p4 = por %p7726_p3, %p7725_p2 }
  0xd3   :  { %p7728_p5 = pnand %p7727_p4, %p7721_p1 }
  0xd5   :  { %7731 = shalt.err (!%p7728_p5)
}
  0xd6   :  { %277 = dma.hbm_to_vmem [thread:$0]  %s8108_s6, 16, %s275_s7, [#allocation12]  }
  0xd7   :  { %7754 = dma.done.wait [#allocation3], 16  }
  0xd8   :  { %7755 = vsyncadd [#allocation3], 4294967280 }
  0xd9   :  { %7756 = dma.done.wait [#allocation6], 32  }
  0xda   :  { %7757 = vsyncadd [#allocation6], 4294967264 }
  0xdb   :  { %7758 = dma.done.wait [#allocation9], 32  }
  0xdc   :  { %7759 = vsyncadd [#allocation9], 4294967264 }
  0xdd   :  { %7760 = dma.done.wait [#allocation12], 16  }
  0xde   :  { %7761 = vsyncadd [#allocation12], 4294967280  ;;  %vm320_vm0 = vcmask 1044480   ;;  %vm313_vm1 = vcmask 39936   ;;  %v305_v0 = vld [vmem:[%s7873_s29] sm:$0x1f] }
  0xdf   :  { %v303_v1 = vld [vmem:[%s7853_s13] sm:$0xff]  ;;  %v304_v2 = vld [vmem:[%s7853_s13 + $0x8] sm:$0xff]  ;;  %6575 = vmatprep.subr.msk.mxu0 %vm320_vm0, %v305_v0  ;;  %v405_v6 = vld [vmem:[%s7883_s8 + $0x10] sm:$0xff]  ;;  %vm414_vm2 = vcmask 261120   ;;  %v7825_v18 = vmov 0.0   ;;  %vm7826_vm3 = vmmov 0  }
  0xe0   :  { %6577 = vmatprep.mubr.msk.f32.mxu0 %vm313_vm1, %v303_v1  ;;  %v403_v3 = vld [vmem:[%s7883_s8] sm:$0xff]  ;;  %v404_v4 = vld [vmem:[%s7883_s8 + $0x8] sm:$0xff]  ;;  %6576 = vmatpush3.msk.msra.mxu0 %vm320_vm0, %v305_v0  ;;  %v406_v7 = vld [vmem:[%s7883_s8 + $0x18] sm:$0xff]  ;;  %s7827_s13 = smov 64   ;;  %s7829_s29 = smov 80   ;;  %vm504_vm4 = vcmask 130048  }
  0xe1   :  { %v7073_v5 = vpack.c.bf16 %v404_v4, %v403_v3  ;;  %6578 = vmatmul.mubr.msk.f32.vlgmr.msra.gmra.mrb[0].mxu0 %vm313_vm1, %v304_v2  ;;  %v7077_v8 = vpack.c.bf16 %v406_v7, %v405_v6  ;;  %v6141_v9 = vld [vmem:[%s7878_s3] ss:$0 sm:$0xff]  ;;  %v400_v14 = vld [vmem:[%s7868_s25 + $0x8] sm:$0xff]  ;;  %6591 = vmatprep.subr.mxu0 %v7825_v18  ;;  %vm579_vm5 = vcmask 64512   ;;  %s7830_s3 = smov 48   ;;  %s7831_s8 = smov 112   ;;  %vm8292_vm6 = vmpackc.low %vm504_vm4, %vm504_vm4 }
  0xe2   :  { %v399_v13 = vld [vmem:[%s7868_s25] sm:$0xff]  ;;  %6593 = vmatprep.mubr.msk.f32.mxu0 %vm7826_vm3, %v7825_v18  ;;  %s7828_s25 = smov 96   ;;  %v497_v37 = vld [vmem:[%s7893_s19 + $0x8] sm:$0xff]  ;;  %v7832_v38 = vmov 0.0|0.0   ;;  %v498_v57 = vld [vmem:[%s7893_s19 + $0x10] sm:$0xff]  ;;  %s8914_s6 = sld [smem:[#allocation19_spill]] }
  0xe3   :  { %7074 = vmatprep.subr.bf16.mxu1 %v7073_v5  ;;  %v6145_v19 = vld [vmem:[%s7888_s14] ss:$0 sm:$0xff]  ;;  %v499_v58 = vld [vmem:[%s7893_s19 + $0x18] sm:$0xff]  ;;  %s8911_s14 = sld [smem:[#allocation22_spill]]  ;;  %s8915_s27 = sld [smem:[#allocation24_spill]]  ;;  %vm2862_vm7 = vcmask 523264  }
  0xe4   :  { %7076 = vmatpush3.bf16.msra.mxu1 %v7073_v5  ;;  %v8180_v26 = vld [vmem:[%s7863_s21] sm:$0xff]  ;;  %v7085_v59 = vpack.c.bf16 %v499_v58, %v498_v57  ;;  %s8916_s18 = sld [smem:[#allocation27_spill]]  ;;  %s8917_s22 = sld [smem:[#allocation25_spill]]  ;;  %vm5644_vm8 = vcmask 48128   ;;  %vm6062_vm9 = vcmask 361472  }
  0xe5   :  { %7078 = vmatprep.subr.bf16.mxu1 %v7077_v8  ;;  %v496_v36 = vld [vmem:[%s7893_s19] sm:$0xff]  ;;  %s8912_s19 = sld [smem:[#allocation23_spill]]  ;;  %s8920_s23 = sld [smem:[#allocation21_spill]] }
  0xe6   :  { %v7082_v39 = vpack.c.bf16 %v497_v37, %v496_v36  ;;  %s8921_s26 = sld [smem:[#allocation28_spill]]  ;;  %s8922_s12 = sld [smem:[#allocation29_spill]] }
  0xe7   :  { %s8923_s28 = sld [smem:[#allocation30_spill]]  ;;  %s8924_s1 = sld [smem:[#allocation31_spill]] }
  0xe8   :  { %7080 = vmatpush3.bf16.msra.mxu1 %v7077_v8  ;;  %s8925_s0 = sld [smem:[#allocation32_spill]]  ;;  %s8926_s4 = sld [smem:[#allocation34_spill]] }
  0xe9   :  { %7081 = vmatprep.subr.bf16.mxu1 %v7832_v38  ;;  %s8927_s2 = sld [smem:[#allocation33_spill]]  ;;  %s8928_s7 = sld [smem:[#allocation35_spill]] }
  0xea   :  { %s8929_s10 = sld [smem:[#allocation38_spill]]  ;;  %s8930_s11 = sld [smem:[#allocation36_spill]] }
  0xeb   :  { %s8931_s15 = sld [smem:[#allocation37_spill]]  ;;  %s8932_s17 = sld [smem:[#allocation39_spill]] }
  0xec   :  { %s8933_s9 = sld [smem:[#allocation40_spill]]  ;;  %s8935_s16 = sld [smem:[#allocation42_spill]] }
 0x1b4   :  { %v6579_v10 = vpop.f32.mrb[0].mxu0 }
 0x1b5   :  { %v396_v11 = vadd.f32 %v6579_v10, %v6141_v9  ;;  %v390_v12 = vpop.f32.mrb[1].mxu0 }
 0x1b6   :  { %v391_v15 = vadd.f32 %v6141_v9, %v390_v12 }
 0x1b7   :  { %v8156_v17 = vadd.f32 %v400_v14, %v396_v11  ;;  %v6152_v14 = vld [vmem:[%s7898_s24] ss:$0 sm:$0xff]  ;;  %s8913_s24 = sld [smem:[#allocation26_spill]] }
 0x1b8   :  { %v8154_v16 = vadd.f32 %v399_v13, %v391_v15 }
 0x1ba   :  { %6588 = vmatprep.mubr.msk.f32.mxu1 %vm414_vm2, %v8154_v16 }
 0x1bb   :  { %6589 = vmatmul.mubr.msk.f32.vlgmr.msra.gmra.mrb[0].mxu1 %vm414_vm2, %v8156_v17 }
 0x1bc   :  { %6605 = vmatprep.mubr.msk.f32.mxu1 %vm7826_vm3, %v7825_v18  ;;  %7083 = vmatpush3.bf16.msra.mxu1 %v7082_v39 }
 0x1bd   :  { %6613 = vmatprep.subr.mxu1 %v7825_v18 }
 0x28e   :  { %v6590_v20 = vpop.f32.mrb[0].mxu1 }
 0x28f   :  { %v8168_v21 = vadd.f32 %v6590_v20, %v6145_v19  ;;  %v487_v22 = vpop.f32.mrb[1].mxu1 }
 0x290   :  { %v488_v23 = vadd.f32 %v6145_v19, %v487_v22 }
 0x292   :  { %591 = vrot.lane.b32.xlu1 %v488_v23, %s7827_s13  ;;  %502 = vrot.lane.b32.xlu0 %v488_v23, %s7828_s25 }
 0x296   :  { %749 = vrot.lane.b32.xlu1 %v488_v23, %s7829_s29 }
 0x304   :  { %v503_v24 = vpop.permute.xlu0 %502  ;;  %v592_v25 = vpop.permute.xlu1 %591 }
 0x305   :  { %6592 = vmatpush3.xpose.msk.msra.mxu0 %vm504_vm4, %v503_v24 }
 0x306   :  { %6596 = vmatprep.subr.mxu0 %v7825_v18 }
 0x308   :  { %6594 = vmatmul.mubr.msk.f32.vlgmr.msra.gmra.mrb[2].mxu0 %vm504_vm4, %v488_v23  ;;  %v750_v40 = vpop.permute.xlu1 %749 }
 0x309   :  { %6597 = vmatpush3.msra.mxu0 %v592_v25  ;;  %6598 = vmatprep.mubr.msk.f32.mxu0 %vm7826_vm3, %v7825_v18 }
 0x30a   :  { %6608 = vmatprep.subr.mxu0 %v7825_v18 }
 0x3db   :  { %v575_v27 = vpop.f32.mrb[2].mxu0 }
 0x3dc   :  { %v576_v28 = vadd.f32 %v575_v27, %v8180_v26  ;;  %v6595_v29 = vpop.f32.mrb[3].mxu0 }
 0x3de   :  { %v580_v30 = vsel %vm579_vm5, %v576_v28, -inf }
 0x3df   :  { %581 = vmax.xlane.f32.xlu0 %v580_v30 }
 0x3f5   :  { %836 = vrot.lane.b32.xlu0 %v488_v23, %s7830_s3 }
 0x46c   :  { %v582_v31 = vpop.xlane.xlu0 %581 }
 0x46d   :  { %v583_v32 = vsub.f32 %v576_v28, %v582_v31 }
 0x46f   :  { %v584_v33 = vmul.f32 1.442695, %v583_v32 }
 0x470   :  { %v837_v46 = vpop.permute.xlu0 %836 }
 0x471   :  { %7507 = vpow2.f32 %v584_v33 }
 0x47b   :  { %v7508_v34 = vpop.eup %7507 }
 0x47c   :  { %v586_v35 = vsel %vm579_vm5, %v7508_v34, 0.0 }
 0x47d   :  { %587 = vadd.xlane.f32.xlu1 %v586_v35 }
 0x48e   :  { %747 = vrot.lane.b32.xlu1 %v488_v23, %s7831_s8 }
 0x50a   :  { %v588_v41 = vpop.xlane.xlu1 %587 }
 0x50b   :  { %7509 = vrcp.f32 %v588_v41 }
 0x50e   :  { %v748_v44 = vpop.permute.xlu1 %747 }
 0x515   :  { %v7510_v42 = vpop.eup %7509 }
 0x516   :  { %v590_v43 = vmul.f32 %v7510_v42, %v7508_v34 }
 0x518   :  { %6599 = vmatmul.mubr.msk.f32.vlgmr.msra.gmra.mrb[4].mxu0 %vm579_vm5, %v590_v43 }
 0x519   :  { %6609 = vmatpush3.xpose.msk.msra.mxu0 %vm504_vm4, %v750_v40  ;;  %6610 = vmatprep.mubr.msk.f32.mxu0 %vm7826_vm3, %v7825_v18 }
 0x51a   :  { %7084 = vmatprep.subr.bf16.mxu0 %v7832_v38 }
 0x51c   :  { %6611 = vmatmul.mubr.msk.f32.vlgmr.msra.gmra.mrb[6].mxu0 %vm504_vm4, %v748_v44 }
 0x51d   :  { %6622 = vmatprep.mubr.msk.f32.mxu0 %vm7826_vm3, %v7825_v18  ;;  %7086 = vmatpush3.bf16.msra.mxu0 %v7085_v59 }
 0x51e   :  { %6630 = vmatprep.subr.mxu0 %v7825_v18 }
 0x5eb   :  { %v663_v45 = vpop.f32.mrb[4].mxu0 }
 0x5ec   :  { %v6600_v47 = vpop.f32.mrb[5].mxu0  ;;  %6606 = vmatmul.mubr.msk.f32.vlgmr.msra.gmra.mrb[2].mxu1 %vm504_vm4, %v663_v45 }
 0x5ed   :  { %6614 = vmatpush3.msra.mxu1 %v837_v46  ;;  %6615 = vmatprep.mubr.msk.f32.mxu1 %vm7826_vm3, %v7825_v18 }
 0x5ee   :  { %6625 = vmatprep.subr.mxu1 %v7825_v18 }
 0x5ef   :  { %v821_v48 = vpop.f32.mrb[6].mxu0 }
 0x5f0   :  { %v822_v49 = vadd.f32 %v821_v48, %v8180_v26  ;;  %v6612_v50 = vpop.f32.mrb[7].mxu0 }
 0x5f2   :  { %v825_v51 = vsel %vm579_vm5, %v822_v49, -inf }
 0x5f3   :  { %826 = vmax.xlane.f32.xlu1 %v825_v51 }
 0x604   :  { %1074 = vrot.lane.b32.xlu1 %v8168_v21, %s7827_s13 }
 0x608   :  { %1226 = vrot.lane.b32.xlu1 %v8168_v21, %s7829_s29 }
 0x680   :  { %v827_v52 = vpop.xlane.xlu1 %826 }
 0x681   :  { %v828_v53 = vsub.f32 %v822_v49, %v827_v52 }
 0x683   :  { %v829_v54 = vmul.f32 1.442695, %v828_v53 }
 0x684   :  { %v1075_v3 = vpop.permute.xlu1 %1074 }
 0x685   :  { %7511 = vpow2.f32 %v829_v54 }
 0x688   :  { %v1227_v23 = vpop.permute.xlu1 %1226 }
 0x68f   :  { %v7512_v55 = vpop.eup %7511 }
 0x690   :  { %v831_v56 = vsel %vm579_vm5, %v7512_v55, 0.0 }
 0x691   :  { %832 = vadd.xlane.f32.xlu0 %v831_v56 }
 0x6a7   :  { %987 = vrot.lane.b32.xlu0 %v8168_v21, %s7828_s25 }
 0x6bf   :  { %v736_v60 = vpop.f32.mrb[2].mxu1 }
 0x6c0   :  { %v6607_v61 = vpop.f32.mrb[3].mxu1  ;;  %v746_v15 = vadd.f32 %v6152_v14, %v736_v60 }
 0x71e   :  { %v833_v62 = vpop.xlane.xlu0 %832 }
 0x71f   :  { %7513 = vrcp.f32 %v833_v62 }
 0x722   :  { %v988_v1 = vpop.permute.xlu0 %987 }
 0x729   :  { %v7514_v63 = vpop.eup %7513 }
 0x72a   :  { %v835_v0 = vmul.f32 %v7514_v63, %v7512_v55 }
 0x72c   :  { %6616 = vmatmul.mubr.msk.f32.vlgmr.msra.gmra.mrb[4].mxu1 %vm579_vm5, %v835_v0 }
 0x72d   :  { %6626 = vmatpush3.xpose.msk.msra.mxu1 %vm504_vm4, %v988_v1  ;;  %6627 = vmatprep.mubr.msk.f32.mxu1 %vm7826_vm3, %v7825_v18 }
 0x72e   :  { %7087 = vmatprep.subr.bf16.mxu1 %v7832_v38 }
 0x730   :  { %6628 = vmatmul.mubr.msk.f32.vlgmr.msra.gmra.mrb[6].mxu1 %vm504_vm4, %v8168_v21 }
 0x731   :  { %7089 = vmatpush3.bf16.msra.mxu1 %v7082_v39  ;;  %6639 = vmatprep.mubr.msk.f32.mxu1 %vm7826_vm3, %v7825_v18 }
 0x732   :  { %6647 = vmatprep.subr.mxu1 %v7825_v18 }
 0x7ff   :  { %v908_v2 = vpop.f32.mrb[4].mxu1 }
 0x800   :  { %v6617_v4 = vpop.f32.mrb[5].mxu1  ;;  %6623 = vmatmul.mubr.msk.f32.vlgmr.msra.gmra.mrb[8].mxu0 %vm504_vm4, %v908_v2 }
 0x801   :  { %6631 = vmatpush3.msra.mxu0 %v1075_v3  ;;  %6632 = vmatprep.mubr.msk.f32.mxu0 %vm7826_vm3, %v7825_v18  ;;  %v6165_v3 = vld [vmem:[%s8911_s14] ss:$0 sm:$0xff]  ;;  %s8938_s14 = sld [smem:[#allocation46_spill]] }
 0x802   :  { %6642 = vmatprep.subr.mxu0 %v7825_v18 }
 0x803   :  { %v1059_v5 = vpop.f32.mrb[6].mxu1 }
 0x804   :  { %v1060_v6 = vadd.f32 %v1059_v5, %v8180_v26  ;;  %v6629_v7 = vpop.f32.mrb[7].mxu1  ;;  %v6166_v5 = vld [vmem:[%s8912_s19] ss:$0 sm:$0xff]  ;;  %s8939_s19 = sld [smem:[#allocation45_spill]] }
 0x805   :  { %v1602_v7 = vld [vmem:[%s8913_s24] sm:$0xff] }
 0x806   :  { %v1063_v8 = vsel %vm579_vm5, %v1060_v6, -inf }
 0x807   :  { %1064 = vmax.xlane.f32.xlu0 %v1063_v8  ;;  %v1603_v8 = vld [vmem:[%s8913_s24 + $0x8] sm:$0xff] }
 0x894   :  { %v1065_v9 = vpop.xlane.xlu0 %1064 }
 0x895   :  { %v1066_v10 = vsub.f32 %v1060_v6, %v1065_v9 }
 0x897   :  { %v1067_v11 = vmul.f32 1.442695, %v1066_v10  ;;  %v7101_v10 = vpack.c.bf16 %v1603_v8, %v1602_v7 }
 0x899   :  { %7515 = vpow2.f32 %v1067_v11  ;;  %v1604_v11 = vld [vmem:[%s8913_s24 + $0x10] sm:$0xff] }
 0x8a3   :  { %v7516_v12 = vpop.eup %7515 }
 0x8a4   :  { %v1069_v13 = vsel %vm579_vm5, %v7516_v12, 0.0 }
 0x8a5   :  { %1070 = vadd.xlane.f32.xlu1 %v1069_v13 }
 0x8b6   :  { %1224 = vrot.lane.b32.xlu1 %v8168_v21, %s7831_s8 }
 0x8d3   :  { %v981_v19 = vpop.f32.mrb[8].mxu0 }
 0x8d4   :  { %v985_v20 = vadd.f32 %v981_v19, %v746_v15  ;;  %v6624_v22 = vpop.f32.mrb[9].mxu0  ;;  %v300_v15 = vld [vmem:[%s8914_s6 + $0x8] sm:$0xff]  ;;  %v1510_v19 = vld [vmem:[%s8915_s27] sm:$0xff] }
 0x8d6   :  { %v1463_v43 = vadd.f32 %v985_v20, %v8154_v16  ;;  %v1511_v20 = vld [vmem:[%s8915_s27 + $0x8] sm:$0xff] }
 0x8d7   :  { %v7093_v22 = vpack.c.bf16 %v1511_v20, %v1510_v19 }
 0x932   :  { %v1071_v24 = vpop.xlane.xlu1 %1070 }
 0x933   :  { %7517 = vrcp.f32 %v1071_v24  ;;  %v1513_v24 = vld [vmem:[%s8915_s27 + $0x18] sm:$0xff] }
 0x936   :  { %v1225_v28 = vpop.permute.xlu1 %1224 }
 0x93d   :  { %v7518_v25 = vpop.eup %7517 }
 0x93e   :  { %v1073_v27 = vmul.f32 %v7518_v25, %v7516_v12  ;;  %v1605_v12 = vld [vmem:[%s8913_s24 + $0x18] sm:$0xff]  ;;  %s8940_s24 = sld [smem:[#allocation47_spill]] }
 0x93f   :  { %v7105_v13 = vpack.c.bf16 %v1605_v12, %v1604_v11 }
 0x940   :  { %6633 = vmatmul.mubr.msk.f32.vlgmr.msra.gmra.mrb[10].mxu0 %vm579_vm5, %v1073_v27 }
 0x941   :  { %6643 = vmatpush3.xpose.msk.msra.mxu0 %vm504_vm4, %v1227_v23  ;;  %6644 = vmatprep.mubr.msk.f32.mxu0 %vm7826_vm3, %v7825_v18  ;;  %v1512_v23 = vld [vmem:[%s8915_s27 + $0x10] sm:$0xff]  ;;  %s8945_s27 = sld [smem:[#allocation52_spill]] }
 0x942   :  { %7090 = vmatprep.subr.bf16.mxu0 %v7832_v38  ;;  %v7097_v25 = vpack.c.bf16 %v1513_v24, %v1512_v23 }
 0x944   :  { %6645 = vmatmul.mubr.msk.f32.vlgmr.msra.gmra.mrb[12].mxu0 %vm504_vm4, %v1225_v28 }
 0x945   :  { %7092 = vmatpush3.bf16.msra.mxu0 %v7085_v59  ;;  %6656 = vmatprep.mubr.msk.f32.mxu0 %vm7826_vm3, %v7825_v18 }
 0x946   :  { %7102 = vmatprep.subr.bf16.mxu0 %v7101_v10 }
 0xa13   :  { %v1146_v29 = vpop.f32.mrb[10].mxu0 }
 0xa14   :  { %v6634_v30 = vpop.f32.mrb[11].mxu0  ;;  %6640 = vmatmul.mubr.msk.f32.vlgmr.msra.gmra.mrb[8].mxu1 %vm504_vm4, %v1146_v29 }
 0xa15   :  { %6649 = vmatprep.mubr.msk.f32.mxu1 %vm7826_vm3, %v7825_v18 }
 0xa17   :  { %v1298_v31 = vpop.f32.mrb[12].mxu0 }
 0xa18   :  { %v1299_v32 = vadd.f32 %v1298_v31, %v8180_v26  ;;  %v6646_v33 = vpop.f32.mrb[13].mxu0  ;;  %v1467_v26 = vsel %vm414_vm2, %v1463_v43, 0.0 }
 0xa1a   :  { %v1302_v34 = vsel %vm579_vm5, %v1299_v32, -inf }
 0xa1b   :  { %1303 = vmax.xlane.f32.xlu1 %v1302_v34  ;;  %v8286_v34 = vld [vmem:[%s8916_s18] ss:$0 sm:$0xff]  ;;  %s8946_s18 = sld [smem:[#allocation54_spill]] }
 0xaa8   :  { %v1304_v35 = vpop.xlane.xlu1 %1303 }
 0xaa9   :  { %v1305_v36 = vsub.f32 %v1299_v32, %v1304_v35 }
 0xaab   :  { %v1306_v37 = vmul.f32 1.442695, %v1305_v36 }
 0xaad   :  { %7519 = vpow2.f32 %v1306_v37 }
 0xab7   :  { %v7520_v39 = vpop.eup %7519 }
 0xab8   :  { %v1308_v40 = vsel %vm579_vm5, %v7520_v39, 0.0 }
 0xab9   :  { %1309 = vadd.xlane.f32.xlu0 %v1308_v40 }
 0xacf   :  { %1313 = vrot.lane.b32.xlu0 %v8168_v21, %s7830_s3 }
 0xae7   :  { %v1219_v41 = vpop.f32.mrb[8].mxu1 }
 0xae8   :  { %v6641_v42 = vpop.f32.mrb[9].mxu1  ;;  %v1223_v51 = vadd.f32 %v6152_v14, %v1219_v41  ;;  %v299_v14 = vld [vmem:[%s8914_s6] sm:$0xff] }
 0xaee   :  { %1468 = vadd.xlane.f32.xlu0 %v1467_v26 }
 0xb46   :  { %v1310_v44 = vpop.xlane.xlu0 %1309 }
 0xb47   :  { %7521 = vrcp.f32 %v1310_v44 }
 0xb4a   :  { %v1314_v45 = vpop.permute.xlu0 %1313 }
 0xb4b   :  { %6648 = vmatpush3.msra.mxu1 %v1314_v45 }
 0xb4c   :  { %7094 = vmatprep.subr.bf16.mxu1 %v7093_v22 }
 0xb51   :  { %v7522_v46 = vpop.eup %7521 }
 0xb52   :  { %v1312_v47 = vmul.f32 %v7522_v46, %v7520_v39 }
 0xb54   :  { %6650 = vmatmul.mubr.msk.f32.vlgmr.msra.gmra.mrb[10].mxu1 %vm579_vm5, %v1312_v47  ;;  %v301_v47 = vld [vmem:[%s8914_s6 + $0x10] sm:$0xff] }
 0xb55   :  { %7096 = vmatpush3.bf16.msra.mxu1 %v7093_v22 }
 0xb56   :  { %7098 = vmatprep.subr.bf16.mxu1 %v7097_v25 }
 0xb59   :  { %7100 = vmatpush3.bf16.msra.mxu1 %v7097_v25 }
 0xb5a   :  { %7109 = vmatprep.subr.bf16.mxu1 %v7832_v38 }
 0xb7b   :  { %v1469_v21 = vpop.xlane.xlu0 %1468 }
 0xb7c   :  { %v1474_v50 = vmul.f32 0.03125, %v1469_v21 }
 0xb7e   :  { %v1476_v16 = vsub.f32 %v1463_v43, %v1474_v50  ;;  %v6167_v43 = vld [vmem:[%s8917_s22] ss:$0 sm:$0xff]  ;;  %s8947_s22 = sld [smem:[#allocation53_spill]] }
 0xb7f   :  { %v296_v50 = vld [vmem:[%s8920_s23] sm:$0x3]  ;;  %s8948_s23 = sld [smem:[#allocation55_spill]] }
 0xb80   :  { %v1478_v57 = vmul.f32 %v1476_v16, %v1476_v16 }
 0xb82   :  { %v1480_v58 = vsel %vm414_vm2, %v1478_v57, 0.0 }
 0xc27   :  { %v1385_v48 = vpop.f32.mrb[10].mxu1 }
 0xc28   :  { %v6651_v49 = vpop.f32.mrb[11].mxu1  ;;  %6657 = vmatmul.mubr.msk.f32.vlgmr.msra.gmra.mrb[14].mxu0 %vm504_vm4, %v1385_v48  ;;  %v302_v48 = vld [vmem:[%s8914_s6 + $0x18] sm:$0xff] }
 0xc29   :  { %7104 = vmatpush3.bf16.msra.mxu0 %v7101_v10  ;;  %6678 = vmatprep.mubr.msk.f32.mxu0 %vm414_vm2, %v299_v14  ;;  %v1715_v49 = vlaneseq }
 0xc2a   :  { %7106 = vmatprep.subr.bf16.mxu0 %v7105_v13 }
 0xc2b   :  { %v8315_v21 = vshrl.u32 %v1715_v49, 7 }
 0xc2d   :  { %7108 = vmatpush3.bf16.msra.mxu0 %v7105_v13 }
 0xc2e   :  { %7113 = vmatprep.subr.bf16.mxu0 %v7832_v38 }
 0xc30   :  { %6679 = vmatmul.mubr.msk.f32.vlgmr.msra.gmra.mrb[16].mxu0 %vm414_vm2, %v300_v15 }
 0xc31   :  { %6681 = vmatprep.mubr.msk.f32.mxu0 %vm414_vm2, %v301_v47 }
 0xc34   :  { %6682 = vmatmul.mubr.msk.f32.gmra.mrb[18].mxu0 %vm414_vm2, %v302_v48 }
 0xc35   :  { %6695 = vmatprep.mubr.msk.f32.mxu0 %vm7826_vm3, %v7825_v18 }
 0xcfb   :  { %v1458_v52 = vpop.f32.mrb[14].mxu0 }
 0xcfc   :  { %v1462_v53 = vadd.f32 %v1458_v52, %v1223_v51  ;;  %v6658_v54 = vpop.f32.mrb[15].mxu0  ;;  %v8318_v51 = vmul.f32 -1e+09, %v296_v50  ;;  %v1717_v52 = vsub.s32 0, %v8315_v21 }
 0xcfe   :  { %v1464_v55 = vadd.f32 %v1462_v53, %v8156_v17 }
 0xd00   :  { %v1470_v56 = vsel %vm414_vm2, %v1464_v55, 0.0 }
 0xd01   :  { %1471 = vadd.xlane.f32.xlu1 %v1470_v56 }
 0xd03   :  { %v6680_v35 = vpop.f32.mrb[16].mxu0 }
 0xd04   :  { %v1697_v36 = vadd.f32 %v6680_v35, %v8286_v34  ;;  %v1691_v37 = vpop.f32.mrb[17].mxu0 }
 0xd05   :  { %1481 = vadd.xlane.f32.xlu1 %v1480_v58  ;;  %v1692_v39 = vadd.f32 %v8286_v34, %v1691_v37 }
 0xd07   :  { %v7110_v41 = vpack.c.bf16 %v1697_v36, %v1692_v39  ;;  %v8296_v42 = vpack.i.bf16 %v1697_v36, %v1692_v39 }
 0xd09   :  { %7452 = vrot.lane.b32.xlu0 %v8296_v42, %s7831_s8 }
 0xd7b   :  { %v7453_v7 = vpop.permute.xlu0 %7452 }
 0xd7c   :  { %v7455_v8 = vunpack.i.h.bf16 %v7453_v7  ;;  %v7454_v10 = vunpack.i.l.bf16 %v7453_v7 }
 0xd7e   :  { %v7120_v13 = vpack.c.bf16 %v7455_v8, %v7454_v10 }
 0xd8e   :  { %v1472_v59 = vpop.xlane.xlu1 %1471 }
 0xd8f   :  { %v1475_v60 = vmul.f32 0.03125, %v1472_v59 }
 0xd91   :  { %v1477_v61 = vsub.f32 %v1464_v55, %v1475_v60 }
 0xd92   :  { %v1482_v62 = vpop.xlane.xlu1 %1481 }
 0xd93   :  { %v1486_v63 = vmul.f32 0.03125, %v1482_v62  ;;  %v1479_v0 = vmul.f32 %v1477_v61, %v1477_v61 }
 0xd95   :  { %v1488_v1 = vadd.f32 1e-05, %v1486_v63  ;;  %v1483_v17 = vsel %vm414_vm2, %v1479_v0, 0.0 }
 0xd96   :  { %1484 = vadd.xlane.f32.xlu1 %v1483_v17  ;;  %v6683_v17 = vpop.f32.mrb[18].mxu0 }
 0xd97   :  { %7523 = vrsqrt.f32 %v1488_v1  ;;  %v1707_v14 = vadd.f32 %v6683_v17, %v8286_v34  ;;  %v1712_v17 = vld [vmem:[%s8921_s26 + $0x10] sm:$0xff] }
 0xda1   :  { %v7524_v2 = vpop.eup %7523 }
 0xda2   :  { %v1492_v4 = vmul.f32 %v7524_v2, %v1476_v16  ;;  %v8322_v16 = vrot.slane %v8318_v51, %v1717_v52  ;;  %v1701_v2 = vpop.f32.mrb[19].mxu0 }
 0xda3   :  { %v1702_v15 = vadd.f32 %v8286_v34, %v1701_v2  ;;  %v1713_v2 = vld [vmem:[%s8921_s26 + $0x18] sm:$0xff] }
 0xda4   :  { %v1500_v6 = vmul.f32 %v6165_v3, %v1492_v4  ;;  %v1711_v4 = vld [vmem:[%s8921_s26 + $0x8] sm:$0xff] }
 0xda5   :  { %v7130_v19 = vpack.c.bf16 %v1707_v14, %v1702_v15 }
 0xda6   :  { %v8263_v9 = vadd.f32 %v6166_v5, %v1500_v6 }
 0xda8   :  { %6667 = vmatprep.mubr.msk.f32.mxu1 %vm414_vm2, %v8263_v9 }
 0xe23   :  { %v1485_v27 = vpop.xlane.xlu1 %1484 }
 0xe24   :  { %v1487_v28 = vmul.f32 0.03125, %v1485_v27 }
 0xe26   :  { %v1489_v29 = vadd.f32 1e-05, %v1487_v28 }
 0xe28   :  { %7525 = vrsqrt.f32 %v1489_v29 }
 0xe32   :  { %v7526_v30 = vpop.eup %7525 }
 0xe33   :  { %v1493_v31 = vmul.f32 %v7526_v30, %v1477_v61 }
 0xe35   :  { %v1501_v32 = vmul.f32 %v6165_v3, %v1493_v31  ;;  %v1710_v3 = vld [vmem:[%s8921_s26] sm:$0xff]  ;;  %v8360_v31 = vpack.i.bf16 %v1707_v14, %v1702_v15  ;;  %s8950_s26 = sld [smem:[#allocation56_spill]] }
 0xe37   :  { %v8279_v33 = vadd.f32 %v6166_v5, %v1501_v32  ;;  %v8333_v5 = vpack.c.bf16 %v1711_v4, %v1710_v3  ;;  %v7127_v3 = vpack.c.bf16 %v1713_v2, %v1712_v17 }
 0xe39   :  { %6668 = vmatmul.mubr.msk.f32.vlgmr.msra.gmra.mrb[12].mxu1 %vm414_vm2, %v8279_v33 }
 0xe3a   :  { %6688 = vmatprep.mubr.msk.f32.mxu1 %vm7826_vm3, %v7825_v18  ;;  %7112 = vmatpush3.bf16.xpose.msk.msra.mxu1 %vm8292_vm6, %v7110_v41 }
 0xe3b   :  { %7116 = vmatprep.subr.bf16.mxu1 %v7832_v38 }
 0xf0c   :  { %v6669_v26 = vpop.f32.mrb[12].mxu1 }
 0xf0d   :  { %v8304_v44 = vadd.f32 %v6669_v26, %v6167_v43  ;;  %v1593_v45 = vpop.f32.mrb[13].mxu1 }
 0xf0e   :  { %v1594_v46 = vadd.f32 %v6167_v43, %v1593_v45 }
 0xf10   :  { %6689 = vmatmul.mubr.msk.f32.vlgmr.msra.gmra.mrb[14].mxu1 %vm504_vm4, %v1594_v46 }
 0xf11   :  { %6702 = vmatprep.mubr.msk.f32.mxu1 %vm7826_vm3, %v7825_v18  ;;  %7118 = vmatpush3.bf16.msra.mxu1 %v8333_v5 }
 0xf12   :  { %7123 = vmatprep.subr.bf16.mxu1 %v7832_v38 }
 0xfe3   :  { %v1794_v53 = vpop.f32.mrb[14].mxu1 }
 0xfe4   :  { %v1795_v54 = vadd.f32 %v1794_v53, %v8322_v16  ;;  %v6690_v55 = vpop.f32.mrb[15].mxu1 }
 0xfe6   :  { %v1798_v56 = vsel %vm504_vm4, %v1795_v54, -inf }
 0xfe7   :  { %1799 = vmax.xlane.f32.xlu1 %v1798_v56 }
 0xff8   :  { %7447 = vrot.lane.b32.xlu1 %v8296_v42, %s7828_s25 }
0x1074   :  { %v1800_v57 = vpop.xlane.xlu1 %1799 }
0x1075   :  { %v1801_v58 = vsub.f32 %v1795_v54, %v1800_v57 }
0x1077   :  { %v1802_v59 = vmul.f32 1.442695, %v1801_v58 }
0x1078   :  { %v7448_v60 = vpop.permute.xlu1 %7447 }
0x1079   :  { %7527 = vpow2.f32 %v1802_v59  ;;  %v7450_v61 = vunpack.i.h.bf16 %v7448_v60  ;;  %v7449_v62 = vunpack.i.l.bf16 %v7448_v60 }
0x107b   :  { %v7114_v63 = vpack.c.bf16 %v7450_v61, %v7449_v62 }
0x107d   :  { %7115 = vmatpush3.bf16.msra.mxu0 %v7114_v63 }
0x107e   :  { %7119 = vmatprep.subr.bf16.mxu0 %v7832_v38 }
0x1083   :  { %v7528_v0 = vpop.eup %7527 }
0x1084   :  { %v1804_v1 = vsel %vm504_vm4, %v7528_v0, 0.0 }
0x1085   :  { %1805 = vadd.xlane.f32.xlu1 %v1804_v1 }
0x1096   :  { %1968 = vrot.lane.b32.xlu1 %v1594_v46, %s7831_s8 }
0x1112   :  { %v1806_v6 = vpop.xlane.xlu1 %1805 }
0x1113   :  { %7529 = vrcp.f32 %v1806_v6 }
0x1116   :  { %v1969_v20 = vpop.permute.xlu1 %1968 }
0x111d   :  { %v7530_v11 = vpop.eup %7529 }
0x111e   :  { %v1808_v12 = vmul.f32 %v7530_v11, %v7528_v0 }
0x1120   :  { %6696 = vmatmul.mubr.msk.f32.vlgmr.msra.gmra.mrb[20].mxu0 %vm504_vm4, %v1808_v12 }
0x1121   :  { %7122 = vmatpush3.bf16.xpose.msk.msra.mxu0 %vm8292_vm6, %v7120_v13  ;;  %6709 = vmatprep.mubr.msk.f32.mxu0 %vm7826_vm3, %v7825_v18 }
0x1122   :  { %7129 = vmatprep.subr.bf16.mxu0 %v7832_v38 }
0x1128   :  { %6710 = vmatmul.mubr.msk.f32.vlgmr.msra.gmra.mrb[22].mxu0 %vm504_vm4, %v1969_v20 }
0x1129   :  { %7132 = vmatpush3.bf16.xpose.msk.msra.mxu0 %vm8292_vm6, %v7130_v19  ;;  %6730 = vmatprep.mubr.msk.f32.mxu0 %vm7826_vm3, %v7825_v18 }
0x112a   :  { %7139 = vmatprep.subr.bf16.mxu0 %v7832_v38 }
0x1130   :  { %6731 = vmatmul.mubr.msk.f32.vlgmr.msra.gmra.mrb[24].mxu0 %vm504_vm4, %v8304_v44 }
0x1131   :  { %6751 = vmatprep.mubr.msk.f32.mxu0 %vm7826_vm3, %v7825_v18 }
0x11f3   :  { %v1884_v22 = vpop.f32.mrb[20].mxu0 }
0x11f4   :  { %v6697_v23 = vpop.f32.mrb[21].mxu0  ;;  %6703 = vmatmul.mubr.msk.f32.vlgmr.msra.gmra.mrb[16].mxu1 %vm504_vm4, %v1884_v22 }
0x11f5   :  { %6716 = vmatprep.mubr.msk.f32.mxu1 %vm7826_vm3, %v7825_v18 }
0x11fb   :  { %v2046_v24 = vpop.f32.mrb[22].mxu0 }
0x11fc   :  { %v2047_v25 = vadd.f32 %v2046_v24, %v8322_v16  ;;  %v6711_v27 = vpop.f32.mrb[23].mxu0 }
0x11fe   :  { %v2050_v28 = vsel %vm504_vm4, %v2047_v25, -inf }
0x11ff   :  { %2051 = vmax.xlane.f32.xlu1 %v2050_v28 }
0x1203   :  { %v2293_v29 = vpop.f32.mrb[24].mxu0 }
0x1204   :  { %v6732_v30 = vpop.f32.mrb[25].mxu0 }
0x1210   :  { %7462 = vrot.lane.b32.xlu1 %v8360_v31, %s7831_s8 }
0x1214   :  { %2461 = vrot.lane.b32.xlu1 %v8304_v44, %s7831_s8  ;;  %v2216_v44 = vsub.s32 1, %v8315_v21 }
0x1216   :  { %v8376_v48 = vrot.slane %v8318_v51, %v2216_v44 }
0x1218   :  { %v2294_v49 = vadd.f32 %v2293_v29, %v8376_v48 }
0x121a   :  { %v2297_v50 = vsel %vm504_vm4, %v2294_v49, -inf }
0x128c   :  { %v2052_v32 = vpop.xlane.xlu1 %2051 }
0x128d   :  { %v2053_v34 = vsub.f32 %v2047_v25, %v2052_v32  ;;  %v6180_v25 = vld [vmem:[%s8922_s12] ss:$0 sm:$0xff]  ;;  %s7834_s12 = smov [#allocation13]  }
0x128f   :  { %v2054_v35 = vmul.f32 1.442695, %v2053_v34 }
0x1290   :  { %v7463_v36 = vpop.permute.xlu1 %7462 }
0x1291   :  { %7531 = vpow2.f32 %v2054_v35  ;;  %v7465_v37 = vunpack.i.h.bf16 %v7463_v36  ;;  %v7464_v39 = vunpack.i.l.bf16 %v7463_v36 }
0x1293   :  { %v7140_v41 = vpack.c.bf16 %v7465_v37, %v7464_v39 }
0x1294   :  { %v2462_v26 = vpop.permute.xlu1 %2461 }
0x1295   :  { %7142 = vmatpush3.bf16.xpose.msk.msra.mxu0 %vm8292_vm6, %v7140_v41 }
0x129b   :  { %v7532_v43 = vpop.eup %7531 }
0x129c   :  { %6752 = vmatmul.mubr.msk.f32.vlgmr.msra.gmra.mrb[26].mxu0 %vm504_vm4, %v2462_v26  ;;  %v2056_v45 = vsel %vm504_vm4, %v7532_v43, 0.0 }
0x129d   :  { %2057 = vadd.xlane.f32.xlu0 %v2056_v45 }
0x12b3   :  { %7457 = vrot.lane.b32.xlu0 %v8296_v42, %s7829_s29 }
0x12c7   :  { %v8373_v46 = vpop.f32.mrb[16].mxu1 }
0x12c8   :  { %v6704_v47 = vpop.f32.mrb[17].mxu1  ;;  %v1967_v28 = vadd.f32 %v6180_v25, %v8373_v46 }
0x12d2   :  { %2298 = vmax.xlane.f32.xlu0 %v2297_v50 }
0x12e8   :  { %7467 = vrot.lane.b32.xlu0 %v8360_v31, %s7828_s25 }
0x132a   :  { %v2058_v52 = vpop.xlane.xlu0 %2057 }
0x132b   :  { %7533 = vrcp.f32 %v2058_v52 }
0x132e   :  { %v7458_v53 = vpop.permute.xlu0 %7457 }
0x132f   :  { %v7460_v42 = vunpack.i.h.bf16 %v7458_v53  ;;  %v7459_v54 = vunpack.i.l.bf16 %v7458_v53 }
0x1331   :  { %v7124_v55 = vpack.c.bf16 %v7460_v42, %v7459_v54 }
0x1333   :  { %7125 = vmatpush3.bf16.msra.mxu1 %v7124_v55 }
0x1334   :  { %7126 = vmatprep.subr.bf16.mxu1 %v7832_v38 }
0x1335   :  { %v7534_v56 = vpop.eup %7533 }
0x1336   :  { %v2060_v51 = vmul.f32 %v7534_v56, %v7532_v43  ;;  %v6196_v56 = vld [vmem:[%s8923_s28] ss:$0 sm:$0xff]  ;;  %s6070_s28 = sshll.u32 %s7834_s12, 4  ;;  %s6071_s28 = int_to_ptr.vmem [resolvable:$true] %s6070_s28 }
0x1337   :  { %p7737_p7 = scmp.lt.s32.totalorder %s6071_s28, %s6071_s28 }
0x1338   :  { %6717 = vmatmul.mubr.msk.f32.vlgmr.msra.gmra.mrb[18].mxu1 %vm504_vm4, %v2060_v51 }
0x1339   :  { %6723 = vmatprep.mubr.msk.f32.mxu1 %vm7826_vm3, %v7825_v18  ;;  %7128 = vmatpush3.bf16.msra.mxu1 %v7127_v3 }
0x133a   :  { %7133 = vmatprep.subr.bf16.mxu1 %v7832_v38 }
0x135f   :  { %v2299_v57 = vpop.xlane.xlu0 %2298 }
0x1360   :  { %v2300_v58 = vsub.f32 %v2294_v49, %v2299_v57  ;;  %v6197_v57 = vld [vmem:[%s8924_s1] ss:$0 sm:$0xff] }
0x1362   :  { %v2301_v59 = vmul.f32 1.442695, %v2300_v58 }
0x1363   :  { %v7468_v8 = vpop.permute.xlu0 %7467 }
0x1364   :  { %7535 = vpow2.f32 %v2301_v59  ;;  %v7470_v11 = vunpack.i.h.bf16 %v7468_v8  ;;  %v7469_v12 = vunpack.i.l.bf16 %v7468_v8  ;;  %v2754_v8 = vld [vmem:[%s8925_s0 + $0x8] sm:$0xff] }
0x1366   :  { %v7134_v14 = vpack.c.bf16 %v7470_v11, %v7469_v12  ;;  %v2756_v11 = vld [vmem:[%s8925_s0 + $0x18] sm:$0xff] }
0x136e   :  { %v7536_v60 = vpop.eup %7535 }
0x136f   :  { %v2539_v61 = vpop.f32.mrb[26].mxu0  ;;  %v2303_v62 = vsel %vm504_vm4, %v7536_v60, 0.0 }
0x1370   :  { %v2540_v63 = vadd.f32 %v2539_v61, %v8376_v48  ;;  %2304 = vadd.xlane.f32.xlu1 %v2303_v62  ;;  %v6753_v0 = vpop.f32.mrb[27].mxu0 }
0x1372   :  { %v2543_v1 = vsel %vm504_vm4, %v2540_v63, -inf }
0x1374   :  { %2544 = vmax.xlane.f32.xlu1 %v2543_v1 }
0x13fd   :  { %v2305_v4 = vpop.xlane.xlu1 %2304 }
0x13fe   :  { %7537 = vrcp.f32 %v2305_v4 }
0x1401   :  { %v2545_v6 = vpop.xlane.xlu1 %2544 }
0x1402   :  { %v2546_v7 = vsub.f32 %v2540_v63, %v2545_v6 }
0x1404   :  { %v2547_v10 = vmul.f32 1.442695, %v2546_v7  ;;  %v2753_v7 = vld [vmem:[%s8925_s0] sm:$0xff] }
0x1406   :  { %7539 = vpow2.f32 %v2547_v10  ;;  %v7149_v10 = vpack.c.bf16 %v2754_v8, %v2753_v7 }
0x1408   :  { %v7538_v13 = vpop.eup %7537  ;;  %7150 = vmatprep.subr.bf16.mxu0 %v7149_v10 }
0x1409   :  { %v2307_v20 = vmul.f32 %v7538_v13, %v7536_v60  ;;  %7152 = vmatpush3.bf16.msra.mxu0 %v7149_v10  ;;  %v2847_v13 = vld [vmem:[%s8926_s4] sm:$0xff] }
0x140b   :  { %v2136_v15 = vpop.f32.mrb[18].mxu1 }
0x140c   :  { %v6718_v19 = vpop.f32.mrb[19].mxu1  ;;  %6724 = vmatmul.mubr.msk.f32.vlgmr.msra.gmra.mrb[20].mxu1 %vm504_vm4, %v2136_v15  ;;  %v2849_v15 = vld [vmem:[%s8926_s4 + $0x10] sm:$0xff] }
0x140d   :  { %7135 = vmatpush3.bf16.msra.mxu1 %v7134_v14  ;;  %6737 = vmatprep.mubr.msk.f32.mxu1 %vm7826_vm3, %v7825_v18  ;;  %v2848_v14 = vld [vmem:[%s8926_s4 + $0x8] sm:$0xff] }
0x140e   :  { %7136 = vmatprep.subr.bf16.mxu1 %v7832_v38  ;;  %v7157_v19 = vpack.c.bf16 %v2848_v14, %v2847_v13  ;;  %v6204_v13 = vld [vmem:[%s8930_s11] ss:$0 sm:$0xff] }
0x1410   :  { %v7540_v22 = vpop.eup %7539  ;;  %6738 = vmatmul.mubr.msk.f32.vlgmr.msra.gmra.mrb[22].mxu1 %vm504_vm4, %v2307_v20  ;;  %v2850_v20 = vld [vmem:[%s8926_s4 + $0x18] sm:$0xff] }
0x1411   :  { %v2549_v23 = vsel %vm504_vm4, %v7540_v22, 0.0  ;;  %7138 = vmatpush3.bf16.msra.mxu1 %v8333_v5  ;;  %6744 = vmatprep.mubr.msk.f32.mxu1 %vm7826_vm3, %v7825_v18 }
0x1412   :  { %2550 = vadd.xlane.f32.xlu1 %v2549_v23  ;;  %7143 = vmatprep.subr.bf16.mxu1 %v7832_v38  ;;  %v2851_v23 = vld [vmem:[%s8926_s4 + $0x20] sm:$0xff] }
0x1423   :  { %7472 = vrot.lane.b32.xlu1 %v8360_v31, %s7829_s29 }
0x149f   :  { %v2551_v24 = vpop.xlane.xlu1 %2550 }
0x14a0   :  { %7541 = vrcp.f32 %v2551_v24  ;;  %v2852_v24 = vld [vmem:[%s8926_s4 + $0x28] sm:$0xff] }
0x14a3   :  { %v7473_v27 = vpop.permute.xlu1 %7472 }
0x14a4   :  { %v7475_v29 = vunpack.i.h.bf16 %v7473_v27  ;;  %v7474_v30 = vunpack.i.l.bf16 %v7473_v27 }
0x14a6   :  { %v7144_v37 = vpack.c.bf16 %v7475_v29, %v7474_v30 }
0x14aa   :  { %v7542_v36 = vpop.eup %7541 }
0x14ab   :  { %v2553_v43 = vmul.f32 %v7542_v36, %v7540_v22  ;;  %v7161_v22 = vpack.c.bf16 %v2850_v20, %v2849_v15  ;;  %v2854_v36 = vld [vmem:[%s8926_s4 + $0x38] sm:$0xff]  ;;  %v6205_v15 = vld [vmem:[%s8931_s15] ss:$0 sm:$0xff] }
0x14df   :  { %v2209_v32 = vpop.f32.mrb[20].mxu1 }
0x14e0   :  { %v2213_v34 = vadd.f32 %v2209_v32, %v1967_v28  ;;  %v6725_v5 = vpop.f32.mrb[21].mxu1 }
0x14e2   :  { %v2707_v35 = vadd.f32 %v2213_v34, %v8263_v9 }
0x14e3   :  { %v2383_v39 = vpop.f32.mrb[22].mxu1 }
0x14e4   :  { %v6739_v41 = vpop.f32.mrb[23].mxu1  ;;  %6745 = vmatmul.mubr.msk.f32.vlgmr.msra.gmra.mrb[24].mxu1 %vm504_vm4, %v2383_v39  ;;  %v2711_v31 = vsel %vm414_vm2, %v2707_v35, 0.0  ;;  %v6198_v39 = vld [vmem:[%s8927_s2] ss:$0 sm:$0xff] }
0x14e5   :  { %7145 = vmatpush3.bf16.msra.mxu1 %v7144_v37  ;;  %2712 = vadd.xlane.f32.xlu0 %v2711_v31 }
0x14e6   :  { %6758 = vmatprep.mubr.msk.f32.mxu1 %vm7826_vm3, %v7825_v18  ;;  %7146 = vmatprep.subr.bf16.mxu1 %v7832_v38 }
0x14e8   :  { %6759 = vmatmul.mubr.msk.f32.vlgmr.msra.gmra.mrb[26].mxu1 %vm504_vm4, %v2553_v43 }
0x14e9   :  { %7148 = vmatpush3.bf16.msra.mxu1 %v7127_v3  ;;  %6765 = vmatprep.mubr.msk.f32.mxu1 %vm7826_vm3, %v7825_v18 }
0x14ea   :  { %7158 = vmatprep.subr.bf16.mxu1 %v7157_v19 }
0x1572   :  { %v2713_v9 = vpop.xlane.xlu0 %2712 }
0x1573   :  { %v2717_v26 = vmul.f32 0.03125, %v2713_v9 }
0x1575   :  { %v2719_v45 = vsub.f32 %v2707_v35, %v2717_v26  ;;  %v2853_v35 = vld [vmem:[%s8926_s4 + $0x30] sm:$0xff] }
0x1576   :  { %v7169_v37 = vpack.c.bf16 %v2854_v36, %v2853_v35  ;;  %v8480_v35 = vld [vmem:[%s7863_s21] sm:$0xff]  ;;  %s8934_s21 = sld [smem:[#allocation41_spill]] }
0x1577   :  { %v2721_v44 = vmul.f32 %v2719_v45, %v2719_v45 }
0x1579   :  { %v2723_v46 = vsel %vm414_vm2, %v2721_v44, 0.0  ;;  %v6201_v44 = vld [vmem:[%s8928_s7] ss:$0 sm:$0xff] }
0x157a   :  { %2724 = vadd.xlane.f32.xlu0 %v2723_v46 }
0x15b7   :  { %v2456_v47 = vpop.f32.mrb[24].mxu1 }
0x15b8   :  { %v6746_v49 = vpop.f32.mrb[25].mxu1  ;;  %v2460_v60 = vadd.f32 %v6180_v25, %v2456_v47  ;;  %v7165_v25 = vpack.c.bf16 %v2852_v24, %v2851_v23 }
0x15bb   :  { %v2629_v50 = vpop.f32.mrb[26].mxu1 }
0x15bc   :  { %v6760_v52 = vpop.f32.mrb[27].mxu1  ;;  %6766 = vmatmul.mubr.msk.f32.vlgmr.msra.gmra.mrb[28].mxu1 %vm504_vm4, %v2629_v50 }
0x15bd   :  { %7160 = vmatpush3.bf16.msra.mxu1 %v7157_v19 }
0x15be   :  { %7162 = vmatprep.subr.bf16.mxu1 %v7161_v22 }
0x15c1   :  { %7164 = vmatpush3.bf16.msra.mxu1 %v7161_v22 }
0x15c2   :  { %7166 = vmatprep.subr.bf16.mxu1 %v7165_v25 }
0x15c5   :  { %7168 = vmatpush3.bf16.msra.mxu1 %v7165_v25 }
0x15c6   :  { %7170 = vmatprep.subr.bf16.mxu1 %v7169_v37 }
0x15c9   :  { %7172 = vmatpush3.bf16.msra.mxu1 %v7169_v37 }
0x15ca   :  { %6814 = vmatprep.subr.mxu1 %v7825_v18 }
0x1607   :  { %v2725_v53 = vpop.xlane.xlu0 %2724 }
0x1608   :  { %v2729_v42 = vmul.f32 0.03125, %v2725_v53 }
0x160a   :  { %v2731_v54 = vadd.f32 1e-05, %v2729_v42 }
0x160c   :  { %7543 = vrsqrt.f32 %v2731_v54 }
0x1616   :  { %v7544_v55 = vpop.eup %7543 }
0x1617   :  { %v2735_v51 = vmul.f32 %v7544_v55, %v2719_v45 }
0x1619   :  { %v2743_v58 = vmul.f32 %v6196_v56, %v2735_v51 }
0x161b   :  { %v8419_v59 = vadd.f32 %v6197_v57, %v2743_v58 }
0x161d   :  { %6776 = vmatprep.mubr.msk.f32.mxu0 %vm414_vm2, %v8419_v59 }
0x168f   :  { %v2702_v61 = vpop.f32.mrb[28].mxu1 }
0x1690   :  { %v2706_v62 = vadd.f32 %v2702_v61, %v2460_v60  ;;  %v6767_v63 = vpop.f32.mrb[29].mxu1 }
0x1692   :  { %v2708_v0 = vadd.f32 %v2706_v62, %v8279_v33  ;;  %v2755_v33 = vld [vmem:[%s8925_s0 + $0x10] sm:$0xff] }
0x1693   :  { %v7153_v12 = vpack.c.bf16 %v2756_v11, %v2755_v33 }
0x1694   :  { %v2714_v1 = vsel %vm414_vm2, %v2708_v0, 0.0 }
0x1695   :  { %2715 = vadd.xlane.f32.xlu1 %v2714_v1  ;;  %7154 = vmatprep.subr.bf16.mxu0 %v7153_v12  ;;  %v2991_v1 = vld [vmem:[%s8929_s10 + $0x8] sm:$0xff] }
0x1696   :  { %7156 = vmatpush3.bf16.msra.mxu0 %v7153_v12 }
0x1722   :  { %v2716_v17 = vpop.xlane.xlu1 %2715 }
0x1723   :  { %v2718_v2 = vmul.f32 0.03125, %v2716_v17 }
0x1725   :  { %v2720_v3 = vsub.f32 %v2708_v0, %v2718_v2  ;;  %v2990_v0 = vld [vmem:[%s8929_s10] sm:$0xff]  ;;  %v2992_v2 = vld [vmem:[%s8929_s10 + $0x10] sm:$0xff] }
0x1726   :  { %v7173_v17 = vpack.c.bf16 %v2991_v1, %v2990_v0  ;;  %v3084_v1 = vld [vmem:[%s8933_s9 + $0x10] sm:$0xff] }
0x1727   :  { %v2722_v4 = vmul.f32 %v2720_v3, %v2720_v3 }
0x1728   :  { %7174 = vmatprep.subr.bf16.mxu0 %v7173_v17 }
0x1729   :  { %v2726_v6 = vsel %vm414_vm2, %v2722_v4, 0.0 }
0x172a   :  { %2727 = vadd.xlane.f32.xlu0 %v2726_v6 }
0x17b7   :  { %v2728_v27 = vpop.xlane.xlu0 %2727 }
0x17b8   :  { %v2730_v28 = vmul.f32 0.03125, %v2728_v27  ;;  %v6206_v27 = vld [vmem:[%s8932_s17] ss:$0 sm:$0xff] }
0x17ba   :  { %v2732_v29 = vadd.f32 1e-05, %v2730_v28 }
0x17bc   :  { %7545 = vrsqrt.f32 %v2732_v29 }
0x17c6   :  { %v7546_v30 = vpop.eup %7545 }
0x17c7   :  { %v2736_v32 = vmul.f32 %v7546_v30, %v2720_v3  ;;  %v2993_v3 = vld [vmem:[%s8929_s10 + $0x18] sm:$0xff] }
0x17c8   :  { %v7177_v4 = vpack.c.bf16 %v2993_v3, %v2992_v2 }
0x17c9   :  { %v2744_v34 = vmul.f32 %v6196_v56, %v2736_v32 }
0x17cb   :  { %v2752_v5 = vadd.f32 %v6197_v57, %v2744_v34 }
0x17cd   :  { %6777 = vmatmul.mubr.msk.f32.vlgmr.msra.gmra.mrb[28].mxu0 %vm414_vm2, %v2752_v5 }
0x17ce   :  { %7176 = vmatpush3.bf16.msra.mxu0 %v7173_v17  ;;  %v3085_v17 = vld [vmem:[%s8933_s9 + $0x18] sm:$0xff] }
0x17cf   :  { %7178 = vmatprep.subr.bf16.mxu0 %v7177_v4  ;;  %v7185_v2 = vpack.c.bf16 %v3085_v17, %v3084_v1 }
0x17d2   :  { %7180 = vmatpush3.bf16.msra.mxu0 %v7177_v4 }
0x17d3   :  { %6809 = vmatprep.subr.mxu0 %v7825_v18 }
0x18a0   :  { %v6778_v41 = vpop.f32.mrb[28].mxu0 }
0x18a1   :  { %v2842_v31 = vadd.f32 %v6778_v41, %v6198_v39  ;;  %v2836_v43 = vpop.f32.mrb[29].mxu0 }
0x18a2   :  { %v2837_v9 = vadd.f32 %v6198_v39, %v2836_v43 }
0x18a3   :  { %v2846_v45 = vmax.f32 %v2842_v31, 0.0 }
0x18a4   :  { %v2845_v26 = vmax.f32 %v2837_v9, 0.0 }
0x18a6   :  { %6795 = vmatprep.mubr.msk.f32.mxu1 %vm2862_vm7, %v2845_v26 }
0x18a7   :  { %6796 = vmatmul.mubr.msk.f32.vlgmr.msra.gmra.mrb[30].mxu1 %vm2862_vm7, %v2846_v45  ;;  %v3082_v45 = vld [vmem:[%s8933_s9] sm:$0xff] }
0x18a8   :  { %6816 = vmatprep.mubr.msk.f32.mxu1 %vm7826_vm3, %v7825_v18 }
0x197a   :  { %v6797_v46 = vpop.f32.mrb[30].mxu1 }
0x197b   :  { %v2935_v47 = vpop.f32.mrb[31].mxu1  ;;  %v2941_v49 = vadd.f32 %v6797_v46, %v6201_v44 }
0x197c   :  { %v2936_v50 = vadd.f32 %v6201_v44, %v2935_v47  ;;  %v3083_v44 = vld [vmem:[%s8933_s9 + $0x8] sm:$0xff] }
0x197d   :  { %v2945_v42 = vadd.f32 %v2941_v49, %v2752_v5  ;;  %v7182_v46 = vpack.c.bf16 %v3083_v44, %v3082_v45 }
0x197e   :  { %v2944_v52 = vadd.f32 %v2936_v50, %v8419_v59 }
0x197f   :  { %v2951_v54 = vsel %vm414_vm2, %v2945_v42, 0.0 }
0x1980   :  { %v2948_v53 = vsel %vm414_vm2, %v2944_v52, 0.0 }
0x1981   :  { %2949 = vadd.xlane.f32.xlu0 %v2948_v53 }
0x1985   :  { %2952 = vadd.xlane.f32.xlu0 %v2951_v54 }
0x1a0e   :  { %v2950_v55 = vpop.xlane.xlu0 %2949 }
0x1a0f   :  { %v2954_v56 = vmul.f32 0.03125, %v2950_v55 }
0x1a11   :  { %v2956_v51 = vsub.f32 %v2944_v52, %v2954_v56 }
0x1a12   :  { %v2953_v57 = vpop.xlane.xlu0 %2952 }
0x1a13   :  { %v2955_v58 = vmul.f32 0.03125, %v2953_v57  ;;  %v2958_v60 = vmul.f32 %v2956_v51, %v2956_v51 }
0x1a15   :  { %v2957_v61 = vsub.f32 %v2945_v42, %v2955_v58  ;;  %v2960_v59 = vsel %vm414_vm2, %v2958_v60, 0.0 }
0x1a16   :  { %2961 = vadd.xlane.f32.xlu1 %v2960_v59 }
0x1a17   :  { %v2959_v62 = vmul.f32 %v2957_v61, %v2957_v61 }
0x1a19   :  { %v2963_v63 = vsel %vm414_vm2, %v2959_v62, 0.0 }
0x1a1a   :  { %2964 = vadd.xlane.f32.xlu0 %v2963_v63 }
0x1aa3   :  { %v2962_v6 = vpop.xlane.xlu1 %2961 }
0x1aa4   :  { %v2966_v7 = vmul.f32 0.03125, %v2962_v6 }
0x1aa6   :  { %v2968_v8 = vadd.f32 1e-05, %v2966_v7 }
0x1aa7   :  { %v2965_v10 = vpop.xlane.xlu0 %2964 }
0x1aa8   :  { %7547 = vrsqrt.f32 %v2968_v8  ;;  %v2967_v33 = vmul.f32 0.03125, %v2965_v10 }
0x1aaa   :  { %v2969_v11 = vadd.f32 1e-05, %v2967_v33 }
0x1aac   :  { %7549 = vrsqrt.f32 %v2969_v11 }
0x1ab2   :  { %v7548_v12 = vpop.eup %7547 }
0x1ab3   :  { %v2972_v14 = vmul.f32 %v7548_v12, %v2956_v51 }
0x1ab5   :  { %v2980_v19 = vmul.f32 %v6204_v13, %v2972_v14 }
0x1ab6   :  { %v7550_v20 = vpop.eup %7549 }
0x1ab7   :  { %v2973_v22 = vmul.f32 %v7550_v20, %v2957_v61  ;;  %v8458_v23 = vadd.f32 %v6205_v15, %v2980_v19 }
0x1ab9   :  { %v2981_v24 = vmul.f32 %v6204_v13, %v2973_v22  ;;  %6806 = vmatprep.mubr.msk.f32.mxu0 %vm414_vm2, %v8458_v23 }
0x1abb   :  { %v8462_v25 = vadd.f32 %v6205_v15, %v2981_v24 }
0x1abd   :  { %6807 = vmatmul.mubr.msk.f32.vlgmr.msra.gmra.mrb[30].mxu0 %vm414_vm2, %v8462_v25 }
0x1abe   :  { %6811 = vmatprep.mubr.msk.f32.mxu0 %vm7826_vm3, %v7825_v18 }
0x1b90   :  { %v6808_v28 = vpop.f32.mrb[30].mxu0 }
0x1b91   :  { %v8469_v29 = vadd.f32 %v6808_v28, %v6206_v27  ;;  %v3073_v30 = vpop.f32.mrb[31].mxu0 }
0x1b92   :  { %v3074_v32 = vadd.f32 %v6206_v27, %v3073_v30  ;;  %v6213_v30 = vld [vmem:[%s8934_s21] ss:$0 sm:$0xff] }
0x1b94   :  { %3088 = vrot.lane.b32.xlu1 %v3074_v32, %s7828_s25 }
0x1b98   :  { %3333 = vrot.lane.b32.xlu1 %v3074_v32, %s7829_s29 }
0x1b9c   :  { %3331 = vrot.lane.b32.xlu1 %v3074_v32, %s7831_s8 }
0x1c06   :  { %v3089_v34 = vpop.permute.xlu1 %3088 }
0x1c07   :  { %6810 = vmatpush3.xpose.msk.msra.mxu0 %vm504_vm4, %v3089_v34 }
0x1c08   :  { %7181 = vmatprep.subr.bf16.mxu0 %v7832_v38 }
0x1c0a   :  { %6812 = vmatmul.mubr.msk.f32.vlgmr.msra.gmra.mrb[32].mxu0 %vm504_vm4, %v3074_v32  ;;  %v3334_v52 = vpop.permute.xlu1 %3333 }
0x1c0b   :  { %6823 = vmatprep.mubr.msk.f32.mxu0 %vm7826_vm3, %v7825_v18  ;;  %7183 = vmatpush3.bf16.msra.mxu0 %v7182_v46 }
0x1c0c   :  { %6831 = vmatprep.subr.mxu0 %v7825_v18 }
0x1c0e   :  { %v3332_v42 = vpop.permute.xlu1 %3331 }
0x1cdd   :  { %v3160_v5 = vpop.f32.mrb[32].mxu0 }
0x1cde   :  { %v3161_v36 = vadd.f32 %v8480_v35, %v3160_v5  ;;  %v6813_v37 = vpop.f32.mrb[33].mxu0 }
0x1ce0   :  { %v3164_v39 = vsel %vm579_vm5, %v3161_v36, -inf }
0x1ce1   :  { %3165 = vmax.xlane.f32.xlu0 %v3164_v39 }
0x1d6e   :  { %v3166_v41 = vpop.xlane.xlu0 %3165 }
0x1d6f   :  { %v3167_v31 = vsub.f32 %v3161_v36, %v3166_v41 }
0x1d71   :  { %v3168_v43 = vmul.f32 1.442695, %v3167_v31 }
0x1d73   :  { %7551 = vpow2.f32 %v3168_v43 }
0x1d7d   :  { %v7552_v9 = vpop.eup %7551 }
0x1d7e   :  { %v3170_v26 = vsel %vm579_vm5, %v7552_v9, 0.0 }
0x1d7f   :  { %3171 = vadd.xlane.f32.xlu0 %v3170_v26 }
0x1d95   :  { %3175 = vrot.lane.b32.xlu0 %v3074_v32, %s7827_s13 }
0x1e0c   :  { %v3172_v47 = vpop.xlane.xlu0 %3171 }
0x1e0d   :  { %7553 = vrcp.f32 %v3172_v47 }
0x1e10   :  { %v3176_v49 = vpop.permute.xlu0 %3175 }
0x1e11   :  { %6815 = vmatpush3.msra.mxu1 %v3176_v49 }
0x1e12   :  { %6826 = vmatprep.subr.mxu1 %v7825_v18 }
0x1e17   :  { %v7554_v50 = vpop.eup %7553 }
0x1e18   :  { %v3174_v53 = vmul.f32 %v7554_v50, %v7552_v9 }
0x1e1a   :  { %6817 = vmatmul.mubr.msk.f32.vlgmr.msra.gmra.mrb[32].mxu1 %vm579_vm5, %v3174_v53 }
0x1e1b   :  { %6827 = vmatpush3.xpose.msk.msra.mxu1 %vm504_vm4, %v3334_v52  ;;  %6828 = vmatprep.mubr.msk.f32.mxu1 %vm7826_vm3, %v7825_v18 }
0x1e1c   :  { %7184 = vmatprep.subr.bf16.mxu1 %v7832_v38 }
0x1e1e   :  { %6829 = vmatmul.mubr.msk.f32.vlgmr.msra.gmra.mrb[34].mxu1 %vm504_vm4, %v3332_v42 }
0x1e1f   :  { %6840 = vmatprep.mubr.msk.f32.mxu1 %vm7826_vm3, %v7825_v18  ;;  %7186 = vmatpush3.bf16.msra.mxu1 %v7185_v2 }
0x1e20   :  { %6848 = vmatprep.subr.mxu1 %v7825_v18 }
0x1eed   :  { %v3247_v54 = vpop.f32.mrb[32].mxu1 }
0x1eee   :  { %v6818_v55 = vpop.f32.mrb[33].mxu1  ;;  %6824 = vmatmul.mubr.msk.f32.vlgmr.msra.gmra.mrb[34].mxu0 %vm504_vm4, %v3247_v54 }
0x1eef   :  { %6833 = vmatprep.mubr.msk.f32.mxu0 %vm7826_vm3, %v7825_v18 }
0x1ef1   :  { %v3405_v56 = vpop.f32.mrb[34].mxu1 }
0x1ef2   :  { %v3406_v51 = vadd.f32 %v8480_v35, %v3405_v56  ;;  %v6830_v57 = vpop.f32.mrb[35].mxu1 }
0x1ef4   :  { %v3409_v58 = vsel %vm579_vm5, %v3406_v51, -inf }
0x1ef5   :  { %3410 = vmax.xlane.f32.xlu1 %v3409_v58 }
0x1f06   :  { %3420 = vrot.lane.b32.xlu1 %v3074_v32, %s7830_s3 }
0x1f82   :  { %v3411_v60 = vpop.xlane.xlu1 %3410 }
0x1f83   :  { %v3412_v61 = vsub.f32 %v3406_v51, %v3411_v60 }
0x1f85   :  { %v3413_v59 = vmul.f32 1.442695, %v3412_v61 }
0x1f86   :  { %v3421_v62 = vpop.permute.xlu1 %3420 }
0x1f87   :  { %7555 = vpow2.f32 %v3413_v59  ;;  %6832 = vmatpush3.msra.mxu0 %v3421_v62 }
0x1f88   :  { %6843 = vmatprep.subr.mxu0 %v7825_v18 }
0x1f91   :  { %v7556_v63 = vpop.eup %7555 }
0x1f92   :  { %v3415_v0 = vsel %vm579_vm5, %v7556_v63, 0.0 }
0x1f93   :  { %3416 = vadd.xlane.f32.xlu0 %v3415_v0 }
0x1fa9   :  { %3571 = vrot.lane.b32.xlu0 %v8469_v29, %s7828_s25 }
0x1fc1   :  { %v3320_v3 = vpop.f32.mrb[34].mxu0 }
0x1fc2   :  { %v6825_v4 = vpop.f32.mrb[35].mxu0  ;;  %v3330_v32 = vadd.f32 %v6213_v30, %v3320_v3 }
0x2020   :  { %v3417_v6 = vpop.xlane.xlu0 %3416 }
0x2021   :  { %7557 = vrcp.f32 %v3417_v6 }
0x2024   :  { %v3572_v10 = vpop.permute.xlu0 %3571 }
0x202b   :  { %v7558_v7 = vpop.eup %7557 }
0x202c   :  { %v3419_v8 = vmul.f32 %v7558_v7, %v7556_v63 }
0x202e   :  { %6834 = vmatmul.mubr.msk.f32.vlgmr.msra.gmra.mrb[36].mxu0 %vm579_vm5, %v3419_v8 }
0x202f   :  { %6844 = vmatpush3.xpose.msk.msra.mxu0 %vm504_vm4, %v3572_v10  ;;  %6845 = vmatprep.mubr.msk.f32.mxu0 %vm7826_vm3, %v7825_v18 }
0x2030   :  { %7187 = vmatprep.subr.bf16.mxu0 %v7832_v38 }
0x2032   :  { %6846 = vmatmul.mubr.msk.f32.vlgmr.msra.gmra.mrb[38].mxu0 %vm504_vm4, %v8469_v29 }
0x2033   :  { %7189 = vmatpush3.bf16.msra.mxu0 %v7182_v46  ;;  %6857 = vmatprep.mubr.msk.f32.mxu0 %vm7826_vm3, %v7825_v18 }
0x2034   :  { %6865 = vmatprep.subr.mxu0 %v7825_v18 }
0x2101   :  { %v3492_v33 = vpop.f32.mrb[36].mxu0 }
0x2102   :  { %v6835_v11 = vpop.f32.mrb[37].mxu0  ;;  %6841 = vmatmul.mubr.msk.f32.vlgmr.msra.gmra.mrb[36].mxu1 %vm504_vm4, %v3492_v33 }
0x2103   :  { %6850 = vmatprep.mubr.msk.f32.mxu1 %vm7826_vm3, %v7825_v18 }
0x2105   :  { %v3643_v12 = vpop.f32.mrb[38].mxu0 }
0x2106   :  { %v3644_v13 = vadd.f32 %v8480_v35, %v3643_v12  ;;  %v6847_v14 = vpop.f32.mrb[39].mxu0 }
0x2108   :  { %v3647_v15 = vsel %vm579_vm5, %v3644_v13, -inf }
0x2109   :  { %3648 = vmax.xlane.f32.xlu1 %v3647_v15  ;;  %v6226_v15 = vld [vmem:[%s8935_s16] ss:$0 sm:$0xff] }
0x211a   :  { %3658 = vrot.lane.b32.xlu1 %v8469_v29, %s7827_s13  ;;  %s8936_s13 = sld [smem:[#allocation43_spill]] }
0x211e   :  { %3808 = vrot.lane.b32.xlu1 %v8469_v29, %s7831_s8 }
0x2196   :  { %v3649_v19 = vpop.xlane.xlu1 %3648 }
0x2197   :  { %v3650_v20 = vsub.f32 %v3644_v13, %v3649_v19 }
0x2199   :  { %v3651_v22 = vmul.f32 1.442695, %v3650_v20  ;;  %v6227_v20 = vld [vmem:[%s8936_s13] ss:$0 sm:$0xff] }
0x219a   :  { %v3659_v24 = vpop.permute.xlu1 %3658 }
0x219b   :  { %7559 = vpow2.f32 %v3651_v22  ;;  %6849 = vmatpush3.msra.mxu1 %v3659_v24 }
0x219c   :  { %6860 = vmatprep.subr.mxu1 %v7825_v18 }
0x219e   :  { %v3809_v43 = vpop.permute.xlu1 %3808 }
0x21a5   :  { %v7560_v27 = vpop.eup %7559 }
0x21a6   :  { %v3653_v28 = vsel %vm579_vm5, %v7560_v27, 0.0 }
0x21a7   :  { %3654 = vadd.xlane.f32.xlu0 %v3653_v28 }
0x21bd   :  { %3810 = vrot.lane.b32.xlu0 %v8469_v29, %s7829_s29 }
0x21d5   :  { %v3565_v34 = vpop.f32.mrb[36].mxu1 }
0x21d6   :  { %v3569_v5 = vadd.f32 %v3565_v34, %v3330_v32  ;;  %v6842_v36 = vpop.f32.mrb[37].mxu1 }
0x21d7   :  { %v4185_v36 = vld [vmem:[%s8938_s14] sm:$0xff] }
0x21d8   :  { %v4047_v49 = vadd.f32 %v3569_v5, %v8458_v23 }
0x21da   :  { %v4051_v50 = vsel %vm414_vm2, %v4047_v49, 0.0 }
0x2234   :  { %v3655_v37 = vpop.xlane.xlu0 %3654 }
0x2235   :  { %7561 = vrcp.f32 %v3655_v37  ;;  %v4186_v37 = vld [vmem:[%s8938_s14 + $0x8] sm:$0xff] }
0x2238   :  { %v3811_v31 = vpop.permute.xlu0 %3810 }
0x223f   :  { %v7562_v39 = vpop.eup %7561 }
0x2240   :  { %v3657_v41 = vmul.f32 %v7562_v39, %v7560_v27  ;;  %v7201_v39 = vpack.c.bf16 %v4186_v37, %v4185_v36 }
0x2242   :  { %6851 = vmatmul.mubr.msk.f32.vlgmr.msra.gmra.mrb[38].mxu1 %vm579_vm5, %v3657_v41 }
0x2243   :  { %6861 = vmatpush3.xpose.msk.msra.mxu1 %vm504_vm4, %v3811_v31  ;;  %6862 = vmatprep.mubr.msk.f32.mxu1 %vm7826_vm3, %v7825_v18 }
0x2244   :  { %7190 = vmatprep.subr.bf16.mxu1 %v7832_v38 }
0x2246   :  { %6863 = vmatmul.mubr.msk.f32.vlgmr.msra.gmra.mrb[40].mxu1 %vm504_vm4, %v3809_v43 }
0x2247   :  { %7192 = vmatpush3.bf16.msra.mxu1 %v7185_v2  ;;  %6874 = vmatprep.mubr.msk.f32.mxu1 %vm7826_vm3, %v7825_v18 }
0x2248   :  { %7213 = vmatprep.subr.bf16.mxu1 %v7832_v38 }
0x2315   :  { %v3730_v9 = vpop.f32.mrb[38].mxu1 }
0x2316   :  { %v6852_v26 = vpop.f32.mrb[39].mxu1  ;;  %6858 = vmatmul.mubr.msk.f32.vlgmr.msra.gmra.mrb[40].mxu0 %vm504_vm4, %v3730_v9 }
0x2317   :  { %6867 = vmatprep.mubr.msk.f32.mxu0 %vm7826_vm3, %v7825_v18 }
0x2319   :  { %v3882_v45 = vpop.f32.mrb[40].mxu1 }
0x231a   :  { %v3883_v44 = vadd.f32 %v8480_v35, %v3882_v45  ;;  %v6864_v46 = vpop.f32.mrb[41].mxu1  ;;  %v4187_v45 = vld [vmem:[%s8938_s14 + $0x10] sm:$0xff] }
0x231c   :  { %v3886_v47 = vsel %vm579_vm5, %v3883_v44, -inf }
0x231d   :  { %3887 = vmax.xlane.f32.xlu1 %v3886_v47 }
0x2321   :  { %4052 = vadd.xlane.f32.xlu1 %v4051_v50  ;;  %v7596_v50 = vld [vmem:[%s8914_s6] sm:$0xff] }
0x23aa   :  { %v3888_v52 = vpop.xlane.xlu1 %3887 }
0x23ab   :  { %v3889_v53 = vsub.f32 %v3883_v44, %v3888_v52  ;;  %v4188_v44 = vld [vmem:[%s8938_s14 + $0x18] sm:$0xff]  ;;  %v7597_v52 = vld [vmem:[%s8914_s6 + $0x8] sm:$0xff] }
0x23ad   :  { %v3890_v42 = vmul.f32 1.442695, %v3889_v53  ;;  %v7598_v53 = vld [vmem:[%s8914_s6 + $0x10] sm:$0xff] }
0x23ae   :  { %v4053_v59 = vpop.xlane.xlu1 %4052 }
0x23af   :  { %7563 = vpow2.f32 %v3890_v42  ;;  %v4057_v62 = vmul.f32 0.03125, %v4053_v59  ;;  %v7599_v42 = vld [vmem:[%s8914_s6 + $0x18] sm:$0xff]  ;;  %s8941_s6 = sld [smem:[#allocation48_spill]] }
0x23b1   :  { %v4059_v0 = vsub.f32 %v4047_v49, %v4057_v62  ;;  %v7205_v49 = vpack.c.bf16 %v4188_v44, %v4187_v45 }
0x23b3   :  { %v4061_v4 = vmul.f32 %v4059_v0, %v4059_v0 }
0x23b5   :  { %v4063_v6 = vsel %vm414_vm2, %v4061_v4, 0.0 }
0x23b9   :  { %v7564_v54 = vpop.eup %7563 }
0x23ba   :  { %v3892_v55 = vsel %vm579_vm5, %v7564_v54, 0.0 }
0x23bb   :  { %3893 = vadd.xlane.f32.xlu0 %v3892_v55 }
0x23d1   :  { %3897 = vrot.lane.b32.xlu0 %v8469_v29, %s7830_s3  ;;  %s8937_s3 = sld [smem:[#allocation44_spill]] }
0x23d7   :  { %v4093_v27 = vld [vmem:[%s8937_s3] sm:$0xff]  ;;  %v4094_v28 = vld [vmem:[%s8937_s3 + $0x8] sm:$0xff]  ;;  %v4095_v32 = vld [vmem:[%s8937_s3 + $0x10] sm:$0xff] }
0x23d8   :  { %v4096_v34 = vld [vmem:[%s8937_s3 + $0x18] sm:$0xff] }
0x23d9   :  { %v7197_v5 = vpack.c.bf16 %v4096_v34, %v4095_v32 }
0x23e9   :  { %v3803_v35 = vpop.f32.mrb[40].mxu0 }
0x23ea   :  { %v6859_v56 = vpop.f32.mrb[41].mxu0  ;;  %v3807_v29 = vadd.f32 %v6213_v30, %v3803_v35  ;;  %v7193_v30 = vpack.c.bf16 %v4094_v28, %v4093_v27 }
0x2448   :  { %v3894_v51 = vpop.xlane.xlu0 %3893 }
0x2449   :  { %7565 = vrcp.f32 %v3894_v51  ;;  %v6231_v51 = vld [vmem:[%s8940_s24] ss:$0 sm:$0xff] }
0x244c   :  { %v3898_v23 = vpop.permute.xlu0 %3897 }
0x244d   :  { %6866 = vmatpush3.msra.mxu0 %v3898_v23 }
0x244e   :  { %7194 = vmatprep.subr.bf16.mxu0 %v7193_v30 }
0x2453   :  { %v7566_v57 = vpop.eup %7565 }
0x2454   :  { %v3896_v58 = vmul.f32 %v7566_v57, %v7564_v54  ;;  %v6228_v54 = vld [vmem:[%s8939_s19] ss:$0 sm:$0xff] }
0x2456   :  { %6868 = vmatmul.mubr.msk.f32.vlgmr.msra.gmra.mrb[42].mxu0 %vm579_vm5, %v3896_v58 }
0x2457   :  { %7196 = vmatpush3.bf16.msra.mxu0 %v7193_v30 }
0x2458   :  { %7198 = vmatprep.subr.bf16.mxu0 %v7197_v5 }
0x245b   :  { %7200 = vmatpush3.bf16.msra.mxu0 %v7197_v5 }
0x245c   :  { %7202 = vmatprep.subr.bf16.mxu0 %v7201_v39 }
0x2529   :  { %v3969_v60 = vpop.f32.mrb[42].mxu0 }
0x252a   :  { %v6869_v61 = vpop.f32.mrb[43].mxu0  ;;  %6875 = vmatmul.mubr.msk.f32.vlgmr.msra.gmra.mrb[42].mxu1 %vm504_vm4, %v3969_v60 }
0x252b   :  { %6913 = vmatprep.mubr.msk.f32.mxu1 %vm7826_vm3, %v7825_v18 }
0x25fd   :  { %v4042_v63 = vpop.f32.mrb[42].mxu1 }
0x25fe   :  { %v4046_v1 = vadd.f32 %v4042_v63, %v3807_v29  ;;  %v6876_v17 = vpop.f32.mrb[43].mxu1 }
0x2600   :  { %v4048_v2 = vadd.f32 %v4046_v1, %v8462_v25 }
0x2602   :  { %v4054_v3 = vsel %vm414_vm2, %v4048_v2, 0.0 }
0x2603   :  { %4055 = vadd.xlane.f32.xlu1 %v4054_v3 }
0x2607   :  { %4064 = vadd.xlane.f32.xlu1 %v4063_v6 }
0x2690   :  { %v4056_v7 = vpop.xlane.xlu1 %4055 }
0x2691   :  { %v4058_v8 = vmul.f32 0.03125, %v4056_v7 }
0x2693   :  { %v4060_v10 = vsub.f32 %v4048_v2, %v4058_v8 }
0x2694   :  { %v4065_v33 = vpop.xlane.xlu1 %4064 }
0x2695   :  { %v4069_v11 = vmul.f32 0.03125, %v4065_v33  ;;  %v4062_v12 = vmul.f32 %v4060_v10, %v4060_v10 }
0x2697   :  { %v4071_v13 = vadd.f32 1e-05, %v4069_v11  ;;  %v4066_v25 = vsel %vm414_vm2, %v4062_v12, 0.0 }
0x2698   :  { %4067 = vadd.xlane.f32.xlu1 %v4066_v25 }
0x2699   :  { %7567 = vrsqrt.f32 %v4071_v13 }
0x26a3   :  { %v7568_v14 = vpop.eup %7567 }
0x26a4   :  { %v4075_v19 = vmul.f32 %v7568_v14, %v4059_v0  ;;  %v4281_v14 = vld [vmem:[%s8941_s6] sm:$0xff] }
0x26a6   :  { %v4083_v22 = vmul.f32 %v6226_v15, %v4075_v19 }
0x26a8   :  { %v8564_v24 = vadd.f32 %v6227_v20, %v4083_v22 }
0x26aa   :  { %6885 = vmatprep.mubr.msk.f32.mxu0 %vm414_vm2, %v8564_v24 }
0x2725   :  { %v4068_v41 = vpop.xlane.xlu1 %4067 }
0x2726   :  { %v4070_v31 = vmul.f32 0.03125, %v4068_v41 }
0x2728   :  { %v4072_v43 = vadd.f32 1e-05, %v4070_v31 }
0x272a   :  { %7569 = vrsqrt.f32 %v4072_v43 }
0x2734   :  { %v7570_v9 = vpop.eup %7569 }
0x2735   :  { %v4076_v26 = vmul.f32 %v7570_v9, %v4060_v10 }
0x2737   :  { %v4084_v46 = vmul.f32 %v6226_v15, %v4076_v26  ;;  %v4282_v15 = vld [vmem:[%s8941_s6 + $0x8] sm:$0xff] }
0x2738   :  { %v8618_v19 = vpack.c.bf16 %v4282_v15, %v4281_v14 }
0x2739   :  { %v8576_v47 = vadd.f32 %v6227_v20, %v4084_v46 }
0x273b   :  { %6886 = vmatmul.mubr.msk.f32.vlgmr.msra.gmra.mrb[44].mxu0 %vm414_vm2, %v8576_v47 }
0x273c   :  { %7204 = vmatpush3.bf16.msra.mxu0 %v7201_v39  ;;  %6896 = vmatprep.mubr.msk.f32.mxu0 %vm414_vm2, %v7596_v50 }
0x273d   :  { %7206 = vmatprep.subr.bf16.mxu0 %v7205_v49 }
0x2740   :  { %7208 = vmatpush3.bf16.msra.mxu0 %v7205_v49 }
0x2741   :  { %7209 = vmatprep.subr.bf16.mxu0 %v7832_v38 }
0x2743   :  { %6897 = vmatmul.mubr.msk.f32.vlgmr.msra.gmra.mrb[46].mxu0 %vm414_vm2, %v7597_v52 }
0x2744   :  { %6899 = vmatprep.mubr.msk.f32.mxu0 %vm414_vm2, %v7598_v53 }
0x2747   :  { %6900 = vmatmul.mubr.msk.f32.gmra.mrb[48].mxu0 %vm414_vm2, %v7599_v42 }
0x2748   :  { %6906 = vmatprep.mubr.msk.f32.mxu0 %vm7826_vm3, %v7825_v18 }
0x280e   :  { %v6887_v55 = vpop.f32.mrb[44].mxu0 }
0x280f   :  { %v8592_v35 = vadd.f32 %v6887_v55, %v6228_v54  ;;  %v4176_v56 = vpop.f32.mrb[45].mxu0 }
0x2810   :  { %v4177_v1 = vadd.f32 %v6228_v54, %v4176_v56 }
0x2816   :  { %v6898_v23 = vpop.f32.mrb[46].mxu0 }
0x2817   :  { %v4268_v57 = vadd.f32 %v6898_v23, %v6231_v51  ;;  %v4262_v58 = vpop.f32.mrb[47].mxu0 }
0x2818   :  { %v4263_v60 = vadd.f32 %v6231_v51, %v4262_v58 }
0x281a   :  { %v7210_v61 = vpack.c.bf16 %v4268_v57, %v4263_v60  ;;  %v8595_v59 = vpack.i.bf16 %v4268_v57, %v4263_v60  ;;  %v6901_v62 = vpop.f32.mrb[48].mxu0 }
0x281b   :  { %v8597_v29 = vadd.f32 %v6901_v62, %v6231_v51  ;;  %v4272_v63 = vpop.f32.mrb[49].mxu0 }
0x281c   :  { %7477 = vrot.lane.b32.xlu0 %v8595_v59, %s7828_s25  ;;  %7212 = vmatpush3.bf16.xpose.msk.msra.mxu0 %vm8292_vm6, %v7210_v61  ;;  %v8603_v0 = vadd.f32 %v6231_v51, %v4272_v63 }
0x281d   :  { %7216 = vmatprep.subr.bf16.mxu0 %v7832_v38 }
0x281e   :  { %v7230_v36 = vpack.c.bf16 %v8597_v29, %v8603_v0 }
0x2820   :  { %4535 = vrot.lane.b32.xlu0 %v4177_v1, %s7831_s8 }
0x2823   :  { %6907 = vmatmul.mubr.msk.f32.vlgmr.msra.gmra.mrb[50].mxu0 %vm504_vm4, %v4177_v1 }
0x2824   :  { %6920 = vmatprep.mubr.msk.f32.mxu0 %vm7826_vm3, %v7825_v18  ;;  %7218 = vmatpush3.bf16.msra.mxu0 %v8618_v19 }
0x2825   :  { %7223 = vmatprep.subr.bf16.mxu0 %v7832_v38 }
0x288e   :  { %v7478_v17 = vpop.permute.xlu0 %7477 }
0x288f   :  { %v7480_v2 = vunpack.i.h.bf16 %v7478_v17  ;;  %v7479_v3 = vunpack.i.l.bf16 %v7478_v17 }
0x2891   :  { %v7214_v4 = vpack.c.bf16 %v7480_v2, %v7479_v3  ;;  %v4283_v2 = vld [vmem:[%s8941_s6 + $0x10] sm:$0xff]  ;;  %v4284_v3 = vld [vmem:[%s8941_s6 + $0x18] sm:$0xff] }
0x2892   :  { %v4536_v5 = vpop.permute.xlu0 %4535 }
0x2893   :  { %7215 = vmatpush3.bf16.msra.mxu1 %v7214_v4 }
0x2894   :  { %7219 = vmatprep.subr.bf16.mxu1 %v7832_v38 }
0x28f6   :  { %v4361_v6 = vpop.f32.mrb[50].mxu0 }
0x28f7   :  { %v4362_v7 = vadd.f32 %v4361_v6, %v8322_v16  ;;  %v6908_v8 = vpop.f32.mrb[51].mxu0  ;;  %v7227_v6 = vpack.c.bf16 %v4284_v3, %v4283_v2 }
0x28f9   :  { %v4365_v10 = vsel %vm504_vm4, %v4362_v7, -inf }
0x28fa   :  { %4366 = vmax.xlane.f32.xlu1 %v4365_v10 }
0x2987   :  { %v4367_v33 = vpop.xlane.xlu1 %4366 }
0x2988   :  { %v4368_v11 = vsub.f32 %v4362_v7, %v4367_v33 }
0x298a   :  { %v4369_v12 = vmul.f32 1.442695, %v4368_v11 }
0x298c   :  { %7571 = vpow2.f32 %v4369_v12 }
0x2996   :  { %v7572_v13 = vpop.eup %7571 }
0x2997   :  { %v4371_v25 = vsel %vm504_vm4, %v7572_v13, 0.0 }
0x2998   :  { %4372 = vadd.xlane.f32.xlu1 %v4371_v25 }
0x29a9   :  { %7482 = vrot.lane.b32.xlu1 %v8595_v59, %s7831_s8 }
0x2a25   :  { %v4373_v20 = vpop.xlane.xlu1 %4372 }
0x2a26   :  { %7573 = vrcp.f32 %v4373_v20 }
0x2a29   :  { %v7483_v22 = vpop.permute.xlu1 %7482 }
0x2a2a   :  { %v7485_v27 = vunpack.i.h.bf16 %v7483_v22  ;;  %v7484_v28 = vunpack.i.l.bf16 %v7483_v22 }
0x2a2c   :  { %v7220_v34 = vpack.c.bf16 %v7485_v27, %v7484_v28 }
0x2a30   :  { %v7574_v30 = vpop.eup %7573 }
0x2a31   :  { %v4375_v32 = vmul.f32 %v7574_v30, %v7572_v13 }
0x2a33   :  { %6914 = vmatmul.mubr.msk.f32.vlgmr.msra.gmra.mrb[44].mxu1 %vm504_vm4, %v4375_v32 }
0x2a34   :  { %7222 = vmatpush3.bf16.xpose.msk.msra.mxu1 %vm8292_vm6, %v7220_v34  ;;  %6927 = vmatprep.mubr.msk.f32.mxu1 %vm7826_vm3, %v7825_v18 }
0x2a35   :  { %7229 = vmatprep.subr.bf16.mxu1 %v7832_v38 }
0x2a3b   :  { %6928 = vmatmul.mubr.msk.f32.vlgmr.msra.gmra.mrb[46].mxu1 %vm504_vm4, %v4536_v5 }
0x2a3c   :  { %7232 = vmatpush3.bf16.xpose.msk.msra.mxu1 %vm8292_vm6, %v7230_v36  ;;  %6948 = vmatprep.mubr.msk.f32.mxu1 %vm7826_vm3, %v7825_v18 }
0x2a3d   :  { %7239 = vmatprep.subr.bf16.mxu1 %v7832_v38 }
0x2a43   :  { %6949 = vmatmul.mubr.msk.f32.vlgmr.msra.gmra.mrb[48].mxu1 %vm504_vm4, %v8592_v35 }
0x2a44   :  { %6969 = vmatprep.mubr.msk.f32.mxu1 %vm7826_vm3, %v7825_v18 }
0x2b06   :  { %v4451_v37 = vpop.f32.mrb[44].mxu1 }
0x2b07   :  { %v6915_v39 = vpop.f32.mrb[45].mxu1  ;;  %6921 = vmatmul.mubr.msk.f32.vlgmr.msra.gmra.mrb[52].mxu0 %vm504_vm4, %v4451_v37 }
0x2b08   :  { %6934 = vmatprep.mubr.msk.f32.mxu0 %vm7826_vm3, %v7825_v18 }
0x2b0e   :  { %v4613_v41 = vpop.f32.mrb[46].mxu1 }
0x2b0f   :  { %v4614_v31 = vadd.f32 %v4613_v41, %v8322_v16  ;;  %v6929_v43 = vpop.f32.mrb[47].mxu1  ;;  %v8653_v16 = vpack.i.bf16 %v8597_v29, %v8603_v0 }
0x2b11   :  { %v4617_v9 = vsel %vm504_vm4, %v4614_v31, -inf }
0x2b12   :  { %4618 = vmax.xlane.f32.xlu0 %v4617_v9 }
0x2b16   :  { %v4856_v26 = vpop.f32.mrb[48].mxu1 }
0x2b17   :  { %v6950_v45 = vpop.f32.mrb[49].mxu1  ;;  %v4857_v44 = vadd.f32 %v4856_v26, %v8376_v48 }
0x2b19   :  { %v4860_v46 = vsel %vm504_vm4, %v4857_v44, -inf }
0x2b28   :  { %7487 = vrot.lane.b32.xlu0 %v8595_v59, %s7829_s29 }
0x2b2c   :  { %5024 = vrot.lane.b32.xlu0 %v8592_v35, %s7831_s8 }
0x2b4b   :  { %4861 = vmax.xlane.f32.xlu0 %v4860_v46 }
0x2b61   :  { %7497 = vrot.lane.b32.xlu0 %v8653_v16, %s7828_s25  ;;  %s8942_s25 = sld [smem:[#allocation49_spill]] }
0x2b67   :  { %v6241_v5 = vld [vmem:[%s8942_s25] ss:$0 sm:$0xff] }
0x2b9f   :  { %v4619_v49 = vpop.xlane.xlu0 %4618 }
0x2ba0   :  { %v4620_v50 = vsub.f32 %v4614_v31, %v4619_v49 }
0x2ba2   :  { %v4621_v52 = vmul.f32 1.442695, %v4620_v50 }
0x2ba3   :  { %v7488_v53 = vpop.permute.xlu0 %7487 }
0x2ba4   :  { %7575 = vpow2.f32 %v4621_v52  ;;  %v7490_v42 = vunpack.i.h.bf16 %v7488_v53  ;;  %v7489_v54 = vunpack.i.l.bf16 %v7488_v53 }
0x2ba6   :  { %v7224_v55 = vpack.c.bf16 %v7490_v42, %v7489_v54 }
0x2ba7   :  { %v5025_v51 = vpop.permute.xlu0 %5024 }
0x2ba8   :  { %7225 = vmatpush3.bf16.msra.mxu0 %v7224_v55 }
0x2ba9   :  { %7226 = vmatprep.subr.bf16.mxu0 %v7832_v38 }
0x2bae   :  { %v7576_v35 = vpop.eup %7575 }
0x2baf   :  { %v4623_v56 = vsel %vm504_vm4, %v7576_v35, 0.0 }
0x2bb0   :  { %4624 = vadd.xlane.f32.xlu1 %v4623_v56 }
0x2bc1   :  { %7492 = vrot.lane.b32.xlu1 %v8653_v16, %s7831_s8  ;;  %s8944_s8 = sld [smem:[#allocation51_spill]] }
0x2bd8   :  { %v4862_v23 = vpop.xlane.xlu0 %4861 }
0x2bd9   :  { %v4863_v57 = vsub.f32 %v4857_v44, %v4862_v23 }
0x2bda   :  { %v4524_v58 = vpop.f32.mrb[52].mxu0 }
0x2bdb   :  { %v4864_v60 = vmul.f32 1.442695, %v4863_v57  ;;  %v6922_v61 = vpop.f32.mrb[53].mxu0  ;;  %v4534_v36 = vadd.f32 %v6241_v5, %v4524_v58 }
0x2bdc   :  { %v7498_v10 = vpop.permute.xlu0 %7497  ;;  %v6258_v61 = vld [vmem:[%s8944_s8] ss:$0 sm:$0xff] }
0x2bdd   :  { %7577 = vpow2.f32 %v4864_v60  ;;  %v7500_v33 = vunpack.i.h.bf16 %v7498_v10  ;;  %v7499_v11 = vunpack.i.l.bf16 %v7498_v10 }
0x2bdf   :  { %v7234_v12 = vpack.c.bf16 %v7500_v33, %v7499_v11  ;;  %v5316_v11 = vld [vmem:[%s8945_s27] sm:$0xff] }
0x2be7   :  { %v7578_v59 = vpop.eup %7577 }
0x2be8   :  { %v4866_v62 = vsel %vm504_vm4, %v7578_v59, 0.0 }
0x2be9   :  { %4867 = vadd.xlane.f32.xlu1 %v4866_v62 }
0x2c3d   :  { %v4625_v29 = vpop.xlane.xlu1 %4624 }
0x2c3e   :  { %7579 = vrcp.f32 %v4625_v29 }
0x2c41   :  { %v7493_v63 = vpop.permute.xlu1 %7492 }
0x2c42   :  { %v7495_v0 = vunpack.i.h.bf16 %v7493_v63  ;;  %v7494_v1 = vunpack.i.l.bf16 %v7493_v63 }
0x2c44   :  { %v7240_v17 = vpack.c.bf16 %v7495_v0, %v7494_v1 }
0x2c46   :  { %7242 = vmatpush3.bf16.xpose.msk.msra.mxu1 %vm8292_vm6, %v7240_v17 }
0x2c48   :  { %v7580_v4 = vpop.eup %7579 }
0x2c49   :  { %v4627_v7 = vmul.f32 %v7580_v4, %v7576_v35 }
0x2c4b   :  { %6935 = vmatmul.mubr.msk.f32.vlgmr.msra.gmra.mrb[54].mxu0 %vm504_vm4, %v4627_v7 }
0x2c4c   :  { %7228 = vmatpush3.bf16.msra.mxu0 %v7227_v6  ;;  %6941 = vmatprep.mubr.msk.f32.mxu0 %vm7826_vm3, %v7825_v18 }
0x2c4d   :  { %6970 = vmatmul.mubr.msk.f32.vlgmr.msra.gmra.mrb[50].mxu1 %vm504_vm4, %v5025_v51  ;;  %7233 = vmatprep.subr.bf16.mxu0 %v7832_v38 }
0x2c76   :  { %v4868_v8 = vpop.xlane.xlu1 %4867 }
0x2c77   :  { %7581 = vrcp.f32 %v4868_v8 }
0x2c81   :  { %v7582_v40 = vpop.eup %7581 }
0x2c82   :  { %v4870_v15 = vmul.f32 %v7582_v40, %v7578_v59  ;;  %v5317_v40 = vld [vmem:[%s8945_s27 + $0x8] sm:$0xff] }
0x2d1e   :  { %v4703_v13 = vpop.f32.mrb[54].mxu0 }
0x2d1f   :  { %v6936_v25 = vpop.f32.mrb[55].mxu0  ;;  %6942 = vmatmul.mubr.msk.f32.vlgmr.msra.gmra.mrb[56].mxu0 %vm504_vm4, %v4703_v13  ;;  %v5319_v13 = vld [vmem:[%s8945_s27 + $0x18] sm:$0xff] }
0x2d20   :  { %7235 = vmatpush3.bf16.msra.mxu0 %v7234_v12  ;;  %v5102_v14 = vpop.f32.mrb[50].mxu1  ;;  %6955 = vmatprep.mubr.msk.f32.mxu0 %vm7826_vm3, %v7825_v18  ;;  %v7249_v12 = vpack.c.bf16 %v5317_v40, %v5316_v11  ;;  %v5698_v11 = vld [vmem:[%s8948_s23 + $0x188] sm:$0xff] }
0x2d21   :  { %v5103_v20 = vadd.f32 %v5102_v14, %v8376_v48  ;;  %v6971_v22 = vpop.f32.mrb[51].mxu1  ;;  %7236 = vmatprep.subr.bf16.mxu0 %v7832_v38  ;;  %v5410_v14 = vld [vmem:[%s8946_s18] sm:$0xff] }
0x2d22   :  { %7250 = vmatprep.subr.bf16.mxu1 %v7249_v12 }
0x2d23   :  { %6956 = vmatmul.mubr.msk.f32.vlgmr.msra.gmra.mrb[58].mxu0 %vm504_vm4, %v4870_v15  ;;  %v5106_v27 = vsel %vm504_vm4, %v5103_v20, -inf  ;;  %7252 = vmatpush3.bf16.msra.mxu1 %v7249_v12  ;;  %v5411_v15 = vld [vmem:[%s8946_s18 + $0x8] sm:$0xff]  ;;  %v5681_v12 = vld [vmem:[%s8948_s23 + $0x100] sm:$0xff] }
0x2d24   :  { %5107 = vmax.xlane.f32.xlu1 %v5106_v27  ;;  %7238 = vmatpush3.bf16.msra.mxu0 %v8618_v19  ;;  %v7257_v22 = vpack.c.bf16 %v5411_v15, %v5410_v14  ;;  %v5413_v27 = vld [vmem:[%s8946_s18 + $0x18] sm:$0xff] }
0x2d25   :  { %6962 = vmatprep.mubr.msk.f32.mxu0 %vm7826_vm3, %v7825_v18  ;;  %7243 = vmatprep.subr.bf16.mxu0 %v7832_v38  ;;  %v5700_v14 = vld [vmem:[%s8948_s23 + $0x198] sm:$0xff] }
0x2db1   :  { %v5108_v28 = vpop.xlane.xlu1 %5107 }
0x2db2   :  { %v5109_v30 = vsub.f32 %v5103_v20, %v5108_v28  ;;  %v5412_v20 = vld [vmem:[%s8946_s18 + $0x10] sm:$0xff] }
0x2db3   :  { %v7261_v28 = vpack.c.bf16 %v5413_v27, %v5412_v20  ;;  %v5683_v20 = vld [vmem:[%s8948_s23 + $0x110] sm:$0xff] }
0x2db4   :  { %v5110_v32 = vmul.f32 1.442695, %v5109_v30  ;;  %v5414_v30 = vld [vmem:[%s8946_s18 + $0x20] sm:$0xff] }
0x2db6   :  { %7583 = vpow2.f32 %v5110_v32  ;;  %v5415_v32 = vld [vmem:[%s8946_s18 + $0x28] sm:$0xff] }
0x2dc0   :  { %v7584_v48 = vpop.eup %7583 }
0x2dc1   :  { %v5112_v34 = vsel %vm504_vm4, %v7584_v48, 0.0 }
0x2dc2   :  { %5113 = vadd.xlane.f32.xlu1 %v5112_v34 }
0x2dd3   :  { %7502 = vrot.lane.b32.xlu1 %v8653_v16, %s7829_s29  ;;  %s8943_s29 = sld [smem:[#allocation50_spill]] }
0x2dd9   :  { %v6257_v58 = vld [vmem:[%s8943_s29] ss:$0 sm:$0xff] }
0x2df2   :  { %v4776_v37 = vpop.f32.mrb[56].mxu0 }
0x2df3   :  { %v4780_v19 = vadd.f32 %v4776_v37, %v4534_v36  ;;  %v6943_v39 = vpop.f32.mrb[57].mxu0 }
0x2df5   :  { %v5270_v41 = vadd.f32 %v4780_v19, %v8564_v24 }
0x2df6   :  { %v4946_v31 = vpop.f32.mrb[58].mxu0 }
0x2df7   :  { %v6957_v43 = vpop.f32.mrb[59].mxu0  ;;  %6963 = vmatmul.mubr.msk.f32.vlgmr.msra.gmra.mrb[60].mxu0 %vm504_vm4, %v4946_v31  ;;  %v5274_v9 = vsel %vm414_vm2, %v5270_v41, 0.0  ;;  %v5416_v31 = vld [vmem:[%s8946_s18 + $0x30] sm:$0xff] }
0x2df8   :  { %5275 = vadd.xlane.f32.xlu0 %v5274_v9  ;;  %6976 = vmatprep.mubr.msk.f32.mxu0 %vm7826_vm3, %v7825_v18  ;;  %v5417_v43 = vld [vmem:[%s8946_s18 + $0x38] sm:$0xff] }
0x2df9   :  { %v7269_v9 = vpack.c.bf16 %v5417_v43, %v5416_v31  ;;  %v5705_v43 = vld [vmem:[%s8948_s23 + $0x1c0] sm:$0xff] }
0x2e4f   :  { %v5114_v26 = vpop.xlane.xlu1 %5113 }
0x2e50   :  { %7585 = vrcp.f32 %v5114_v26  ;;  %v6259_v26 = vld [vmem:[%s8947_s22] ss:$0 sm:$0xff] }
0x2e53   :  { %v7503_v45 = vpop.permute.xlu1 %7502 }
0x2e54   :  { %v7505_v44 = vunpack.i.h.bf16 %v7503_v45  ;;  %v7504_v46 = vunpack.i.l.bf16 %v7503_v45 }
0x2e56   :  { %v7244_v16 = vpack.c.bf16 %v7505_v44, %v7504_v46 }
0x2e58   :  { %7245 = vmatpush3.bf16.msra.mxu0 %v7244_v16 }
0x2e59   :  { %7246 = vmatprep.subr.bf16.mxu0 %v7832_v38 }
0x2e5a   :  { %v7586_v24 = vpop.eup %7585 }
0x2e5b   :  { %v5116_v49 = vmul.f32 %v7586_v24, %v7584_v48  ;;  %v7265_v48 = vpack.c.bf16 %v5415_v32, %v5414_v30  ;;  %v5702_v30 = vld [vmem:[%s8948_s23 + $0x1a8] sm:$0xff] }
0x2e5d   :  { %6977 = vmatmul.mubr.msk.f32.vlgmr.msra.gmra.mrb[62].mxu0 %vm504_vm4, %v5116_v49 }
0x2e5e   :  { %7248 = vmatpush3.bf16.msra.mxu0 %v7227_v6  ;;  %6983 = vmatprep.mubr.msk.f32.mxu0 %vm7826_vm3, %v7825_v18 }
0x2e5f   :  { %7258 = vmatprep.subr.bf16.mxu0 %v7257_v22 }
0x2e85   :  { %v5276_v50 = vpop.xlane.xlu0 %5275 }
0x2e86   :  { %v5280_v52 = vmul.f32 0.03125, %v5276_v50  ;;  %v6262_v50 = vld [vmem:[#allocation2] ss:$0 sm:$0xff] }
0x2e88   :  { %v5282_v53 = vsub.f32 %v5270_v41, %v5280_v52 }
0x2e8a   :  { %v5284_v42 = vmul.f32 %v5282_v53, %v5282_v53 }
0x2e8c   :  { %v5286_v54 = vsel %vm414_vm2, %v5284_v42, 0.0 }
0x2e8d   :  { %5287 = vadd.xlane.f32.xlu0 %v5286_v54 }
0x2eca   :  { %v5019_v55 = vpop.f32.mrb[60].mxu0 }
0x2ecb   :  { %v6964_v35 = vpop.f32.mrb[61].mxu0  ;;  %v5023_v0 = vadd.f32 %v6241_v5, %v5019_v55 }
0x2f1a   :  { %v5288_v56 = vpop.xlane.xlu0 %5287 }
0x2f1b   :  { %v5292_v51 = vmul.f32 0.03125, %v5288_v56 }
0x2f1d   :  { %v5294_v23 = vadd.f32 1e-05, %v5292_v51 }
0x2f1f   :  { %7587 = vrsqrt.f32 %v5294_v23 }
0x2f29   :  { %v7588_v57 = vpop.eup %7587 }
0x2f2a   :  { %v5298_v60 = vmul.f32 %v7588_v57, %v5282_v53 }
0x2f2c   :  { %v5306_v59 = vmul.f32 %v6257_v58, %v5298_v60 }
0x2f2e   :  { %v8698_v62 = vadd.f32 %v6258_v61, %v5306_v59 }
0x2f30   :  { %v5192_v29 = vpop.f32.mrb[62].mxu0  ;;  %6994 = vmatprep.mubr.msk.f32.mxu1 %vm414_vm2, %v8698_v62 }
0x2f31   :  { %v6978_v63 = vpop.f32.mrb[63].mxu0  ;;  %6984 = vmatmul.mubr.msk.f32.vlgmr.msra.gmra.mrb[64].mxu0 %vm504_vm4, %v5192_v29 }
0x2f32   :  { %7260 = vmatpush3.bf16.msra.mxu0 %v7257_v22  ;;  %v5684_v22 = vld [vmem:[%s8948_s23 + $0x118] sm:$0xff] }
0x2f33   :  { %7262 = vmatprep.subr.bf16.mxu0 %v7261_v28  ;;  %v7319_v27 = vpack.c.bf16 %v5684_v22, %v5683_v20 }
0x2f36   :  { %7264 = vmatpush3.bf16.msra.mxu0 %v7261_v28  ;;  %v5701_v28 = vld [vmem:[%s8948_s23 + $0x1a0] sm:$0xff] }
0x2f37   :  { %7266 = vmatprep.subr.bf16.mxu0 %v7265_v48  ;;  %v7321_v32 = vpack.c.bf16 %v5702_v30, %v5701_v28  ;;  %v5650_v28 = vld [vmem:[%s8948_s23 + $0x8] sm:$0xff]  ;;  %v5667_v30 = vld [vmem:[%s8948_s23 + $0x90] sm:$0xff] }
0x2f3a   :  { %7268 = vmatpush3.bf16.msra.mxu0 %v7265_v48  ;;  %v5685_v48 = vld [vmem:[%s8948_s23 + $0x120] sm:$0xff] }
0x2f3b   :  { %7270 = vmatprep.subr.bf16.mxu0 %v7269_v9 }
0x2f3e   :  { %7272 = vmatpush3.bf16.msra.mxu0 %v7269_v9  ;;  %v5706_v9 = vld [vmem:[%s8948_s23 + $0x1c8] sm:$0xff] }
0x3004   :  { %v5265_v1 = vpop.f32.mrb[64].mxu0 }
0x3005   :  { %v5269_v17 = vadd.f32 %v5265_v1, %v5023_v0  ;;  %v6985_v2 = vpop.f32.mrb[65].mxu0  ;;  %v5552_v1 = vld [vmem:[%s8103_s20] sm:$0xff] }
0x3007   :  { %v5271_v3 = vadd.f32 %v5269_v17, %v8576_v47  ;;  %v5318_v47 = vld [vmem:[%s8945_s27 + $0x10] sm:$0xff]  ;;  %v5553_v17 = vld [vmem:[%s8103_s20 + $0x8] sm:$0xff] }
0x3008   :  { %v7253_v25 = vpack.c.bf16 %v5319_v13, %v5318_v47  ;;  %v7273_v2 = vpack.c.bf16 %v5553_v17, %v5552_v1  ;;  %v5682_v47 = vld [vmem:[%s8948_s23 + $0x108] sm:$0xff] }
0x3009   :  { %v5277_v4 = vsel %vm414_vm2, %v5271_v3, 0.0  ;;  %v7315_v13 = vpack.c.bf16 %v5682_v47, %v5681_v12  ;;  %v6265_v47 = vld [vmem:[#allocation5] ss:$0 sm:$0xff] }
0x300a   :  { %5278 = vadd.xlane.f32.xlu1 %v5277_v4  ;;  %7254 = vmatprep.subr.bf16.mxu1 %v7253_v25  ;;  %v5555_v4 = vld [vmem:[%s8103_s20 + $0x18] sm:$0xff] }
0x300b   :  { %7256 = vmatpush3.bf16.msra.mxu1 %v7253_v25  ;;  %v5699_v25 = vld [vmem:[%s8948_s23 + $0x190] sm:$0xff] }
0x300c   :  { %7274 = vmatprep.subr.bf16.mxu1 %v7273_v2  ;;  %v7317_v15 = vpack.c.bf16 %v5700_v14, %v5699_v25  ;;  %v6266_v25 = vld [vmem:[#allocation7] ss:$0 sm:$0xff] }
0x3097   :  { %v5279_v6 = vpop.xlane.xlu1 %5278 }
0x3098   :  { %v5281_v7 = vmul.f32 0.03125, %v5279_v6 }
0x309a   :  { %v5283_v8 = vsub.f32 %v5271_v3, %v5281_v7  ;;  %v5554_v3 = vld [vmem:[%s8103_s20 + $0x10] sm:$0xff]  ;;  %v5665_v7 = vld [vmem:[%s8948_s23 + $0x80] sm:$0xff]  ;;  %s8949_s20 = sld [smem:[#allocation20_spill]] }
0x309b   :  { %v7277_v6 = vpack.c.bf16 %v5555_v4, %v5554_v3  ;;  %v5696_v3 = vld [vmem:[%s8948_s23 + $0x178] sm:$0xff] }
0x309c   :  { %v5285_v10 = vmul.f32 %v5283_v8, %v5283_v8 }
0x309e   :  { %v5289_v33 = vsel %vm414_vm2, %v5285_v10, 0.0 }
0x309f   :  { %5290 = vadd.xlane.f32.xlu0 %v5289_v33  ;;  %v5697_v33 = vld [vmem:[%s8948_s23 + $0x180] sm:$0xff] }
0x30a0   :  { %v7313_v40 = vpack.c.bf16 %v5698_v11, %v5697_v33 }
0x30a2   :  { %7314 = vmatprep.subr.bf16.mxu0 %v7313_v40 }
0x312c   :  { %v5291_v34 = vpop.xlane.xlu0 %5290 }
0x312d   :  { %v5293_v5 = vmul.f32 0.03125, %v5291_v34  ;;  %v5686_v34 = vld [vmem:[%s8948_s23 + $0x128] sm:$0xff] }
0x312f   :  { %v5295_v36 = vadd.f32 1e-05, %v5293_v5  ;;  %v7323_v5 = vpack.c.bf16 %v5686_v34, %v5685_v48 }
0x3131   :  { %7589 = vrsqrt.f32 %v5295_v36  ;;  %v5703_v36 = vld [vmem:[%s8948_s23 + $0x1b0] sm:$0xff] }
0x313b   :  { %v7590_v37 = vpop.eup %7589 }
0x313c   :  { %v5299_v19 = vmul.f32 %v7590_v37, %v5283_v8  ;;  %v5666_v8 = vld [vmem:[%s8948_s23 + $0x88] sm:$0xff]  ;;  %v5704_v37 = vld [vmem:[%s8948_s23 + $0x1b8] sm:$0xff] }
0x313d   :  { %v7281_v10 = vpack.c.bf16 %v5666_v8, %v5665_v7 }
0x313e   :  { %v5307_v39 = vmul.f32 %v6257_v58, %v5299_v19  ;;  %v7325_v19 = vpack.c.bf16 %v5704_v37, %v5703_v36  ;;  %v5651_v37 = vld [vmem:[%s8948_s23 + $0x10] sm:$0xff] }
0x3140   :  { %v5315_v41 = vadd.f32 %v6258_v61, %v5307_v39  ;;  %v5687_v39 = vld [vmem:[%s8948_s23 + $0x130] sm:$0xff] }
0x3142   :  { %6995 = vmatmul.mubr.msk.f32.vlgmr.msra.gmra.mrb[52].mxu1 %vm414_vm2, %v5315_v41 }
0x3143   :  { %7276 = vmatpush3.bf16.msra.mxu1 %v7273_v2  ;;  %v5695_v2 = vld [vmem:[%s8948_s23 + $0x170] sm:$0xff] }
0x3144   :  { %7278 = vmatprep.subr.bf16.mxu1 %v7277_v6  ;;  %v7343_v4 = vpack.c.bf16 %v5696_v3, %v5695_v2  ;;  %v5680_v2 = vld [vmem:[%s8948_s23 + $0xf8] sm:$0xff] }
0x3147   :  { %7280 = vmatpush3.bf16.msra.mxu1 %v7277_v6 }
0x3148   :  { %7282 = vmatprep.subr.bf16.mxu1 %v7281_v10 }
0x3215   :  { %v6996_v45 = vpop.f32.mrb[52].mxu1 }
0x3216   :  { %v5405_v44 = vadd.f32 %v6996_v45, %v6259_v26  ;;  %v5399_v46 = vpop.f32.mrb[53].mxu1  ;;  %v5689_v45 = vld [vmem:[%s8948_s23 + $0x140] sm:$0xff] }
0x3217   :  { %v5400_v16 = vadd.f32 %v6259_v26, %v5399_v46  ;;  %v7329_v26 = vpack.c.bf16 %v5706_v9, %v5705_v43  ;;  %v5653_v43 = vld [vmem:[%s8948_s23 + $0x20] sm:$0xff]  ;;  %v5654_v9 = vld [vmem:[%s8948_s23 + $0x28] sm:$0xff] }
0x3218   :  { %v5409_v49 = vmax.f32 %v5405_v44, 0.0  ;;  %v5690_v44 = vld [vmem:[%s8948_s23 + $0x148] sm:$0xff] }
0x3219   :  { %v5408_v24 = vmax.f32 %v5400_v16, 0.0  ;;  %v7331_v46 = vpack.c.bf16 %v5690_v44, %v5689_v45  ;;  %v5707_v16 = vld [vmem:[%s8948_s23 + $0x1d0] sm:$0xff]  ;;  %v5672_v45 = vld [vmem:[%s8948_s23 + $0xb8] sm:$0xff]  ;;  %v7291_v44 = vpack.c.bf16 %v5654_v9, %v5653_v43 }
0x321a   :  { %v5980_v9 = vld [vmem:[%s8950_s26 + $0x10] sm:$0xff] }
0x321b   :  { %7013 = vmatprep.mubr.msk.f32.mxu0 %vm2862_vm7, %v5408_v24  ;;  %v5708_v24 = vld [vmem:[%s8948_s23 + $0x1d8] sm:$0xff] }
0x321c   :  { %7014 = vmatmul.mubr.msk.f32.vlgmr.msra.gmra.mrb[66].mxu0 %vm2862_vm7, %v5409_v49  ;;  %v7333_v49 = vpack.c.bf16 %v5708_v24, %v5707_v16  ;;  %v5655_v16 = vld [vmem:[%s8948_s23 + $0x30] sm:$0xff]  ;;  %v5656_v24 = vld [vmem:[%s8948_s23 + $0x38] sm:$0xff] }
0x321d   :  { %7316 = vmatpush3.bf16.msra.mxu0 %v7315_v13 }
0x321e   :  { %7318 = vmatprep.subr.bf16.mxu0 %v7317_v15 }
0x3221   :  { %7320 = vmatpush3.bf16.msra.mxu0 %v7319_v27  ;;  %v5649_v27 = vld [vmem:[%s8948_s23] sm:$0xff] }
0x3222   :  { %7322 = vmatprep.subr.bf16.mxu0 %v7321_v32  ;;  %v5668_v32 = vld [vmem:[%s8948_s23 + $0x98] sm:$0xff] }
0x3223   :  { %v7285_v36 = vpack.c.bf16 %v5668_v32, %v5667_v30  ;;  %v5725_v32 = vld [vmem:[%s8948_s23 + $0x260] sm:$0xff] }
0x3225   :  { %7324 = vmatpush3.bf16.msra.mxu0 %v7323_v5 }
0x3226   :  { %7326 = vmatprep.subr.bf16.mxu0 %v7325_v19  ;;  %v5669_v19 = vld [vmem:[%s8948_s23 + $0xa0] sm:$0xff] }
0x32ef   :  { %v7015_v52 = vpop.f32.mrb[66].mxu0 }
0x32f0   :  { %v5497_v53 = vpop.f32.mrb[67].mxu0  ;;  %v5503_v42 = vadd.f32 %v7015_v52, %v6262_v50  ;;  %v5692_v52 = vld [vmem:[%s8948_s23 + $0x158] sm:$0xff] }
0x32f1   :  { %v5498_v54 = vadd.f32 %v6262_v50, %v5497_v53  ;;  %v5691_v50 = vld [vmem:[%s8948_s23 + $0x150] sm:$0xff] }
0x32f2   :  { %v5507_v56 = vadd.f32 %v5503_v42, %v5315_v41  ;;  %v5688_v41 = vld [vmem:[%s8948_s23 + $0x138] sm:$0xff]  ;;  %v7335_v53 = vpack.c.bf16 %v5692_v52, %v5691_v50  ;;  %v7833_v42 = vmov 1983009808   ;;  %v5674_v50 = vld [vmem:[%s8948_s23 + $0xc8] sm:$0xff]  ;;  %v7295_v52 = vpack.c.bf16 %v5656_v24, %v5655_v16 }
0x32f3   :  { %v5506_v55 = vadd.f32 %v5498_v54, %v8698_v62  ;;  %v7327_v31 = vpack.c.bf16 %v5688_v41, %v5687_v39  ;;  %v5740_v54 = vunpack.c.l.s4 %v7833_v42  ;;  %v5670_v39 = vld [vmem:[%s8948_s23 + $0xa8] sm:$0xff]  ;;  %v5657_v42 = vld [vmem:[%s8948_s23 + $0x40] sm:$0xff] }
0x32f4   :  { %v5513_v51 = vsel %vm414_vm2, %v5507_v56, 0.0 }
0x32f5   :  { %v5510_v35 = vsel %vm414_vm2, %v5506_v55, 0.0  ;;  %7328 = vmatpush3.bf16.msra.mxu0 %v7327_v31  ;;  %v7289_v31 = vpack.c.bf16 %v5670_v39, %v5669_v19 }
0x32f6   :  { %5511 = vadd.xlane.f32.xlu0 %v5510_v35  ;;  %7330 = vmatprep.subr.bf16.mxu0 %v7329_v26  ;;  %v5710_v35 = vld [vmem:[%s8948_s23 + $0x1e8] sm:$0xff]  ;;  %v5671_v26 = vld [vmem:[%s8948_s23 + $0xb0] sm:$0xff] }
0x32f9   :  { %7332 = vmatpush3.bf16.msra.mxu0 %v7331_v46  ;;  %v7293_v46 = vpack.c.bf16 %v5672_v45, %v5671_v26  ;;  %v5981_v26 = vld [vmem:[%s8950_s26 + $0x18] sm:$0xff] }
0x32fa   :  { %5514 = vadd.xlane.f32.xlu0 %v5513_v51  ;;  %7334 = vmatprep.subr.bf16.mxu0 %v7333_v49  ;;  %v5673_v49 = vld [vmem:[%s8948_s23 + $0xc0] sm:$0xff]  ;;  %v7373_v45 = vpack.c.bf16 %v5981_v26, %v5980_v9 }
0x32fd   :  { %7336 = vmatpush3.bf16.msra.mxu0 %v7335_v53  ;;  %v7297_v53 = vpack.c.bf16 %v5674_v50, %v5673_v49 }
0x3383   :  { %v5512_v23 = vpop.xlane.xlu0 %5511 }
0x3384   :  { %v5516_v57 = vmul.f32 0.03125, %v5512_v23  ;;  %v5693_v23 = vld [vmem:[%s8948_s23 + $0x160] sm:$0xff] }
0x3386   :  { %v8725_v58 = vsub.f32 %v5506_v55, %v5516_v57  ;;  %v5709_v55 = vld [vmem:[%s8948_s23 + $0x1e0] sm:$0xff]  ;;  %v5694_v57 = vld [vmem:[%s8948_s23 + $0x168] sm:$0xff] }
0x3387   :  { %v5515_v60 = vpop.xlane.xlu0 %5514  ;;  %v7337_v51 = vpack.c.bf16 %v5710_v35, %v5709_v55  ;;  %v5675_v55 = vld [vmem:[%s8948_s23 + $0xd0] sm:$0xff]  ;;  %v5676_v35 = vld [vmem:[%s8948_s23 + $0xd8] sm:$0xff] }
0x3388   :  { %v5517_v61 = vmul.f32 0.03125, %v5515_v60  ;;  %v5520_v59 = vmul.f32 %v8725_v58, %v8725_v58  ;;  %v7339_v60 = vpack.c.bf16 %v5694_v57, %v5693_v23  ;;  %v5659_v23 = vld [vmem:[%s8948_s23 + $0x50] sm:$0xff]  ;;  %v5660_v57 = vld [vmem:[%s8948_s23 + $0x58] sm:$0xff] }
0x3389   :  { %7338 = vmatprep.subr.bf16.mxu0 %v7337_v51  ;;  %v7301_v51 = vpack.c.bf16 %v5676_v35, %v5675_v55 }
0x338a   :  { %v8729_v62 = vsub.f32 %v5507_v56, %v5517_v61  ;;  %v5522_v29 = vsel %vm414_vm2, %v5520_v59, 0.0  ;;  %v5741_v56 = vunpack.c.0.s8 %v5740_v54  ;;  %v5647_v59 = vld [vmem:[%s8949_s20] sm:$0xff]  ;;  %7340 = vmatpush3.bf16.msra.mxu0 %v7339_v60  ;;  %v5658_v54 = vld [vmem:[%s8948_s23 + $0x48] sm:$0xff] }
0x338b   :  { %5523 = vadd.xlane.f32.xlu0 %v5522_v29  ;;  %v5711_v29 = vld [vmem:[%s8948_s23 + $0x1f0] sm:$0xff]  ;;  %v5738_v1 = vcombine.high %v5647_v59, %v5647_v59  ;;  %v5677_v60 = vld [vmem:[%s8948_s23 + $0xe0] sm:$0xff] }
0x338c   :  { %v5521_v63 = vmul.f32 %v8729_v62, %v8729_v62  ;;  %v5744_v61 = vsub.s32 %v5741_v56, %v8315_v21  ;;  %v7299_v56 = vpack.c.bf16 %v5658_v54, %v5657_v42 }
0x338e   :  { %v5525_v0 = vsel %vm414_vm2, %v5521_v63, 0.0  ;;  %v5712_v63 = vld [vmem:[%s8948_s23 + $0x1f8] sm:$0xff]  ;;  %v5752_v6 = vrot.slane %v5738_v1, %v5744_v61  ;;  %v5662_v1 = vld [vmem:[%s8948_s23 + $0x68] sm:$0xff] }
0x338f   :  { %5526 = vadd.xlane.f32.xlu0 %v5525_v0  ;;  %v8773_v0 = vrot.slane %v5647_v59, %v5744_v61  ;;  %v7341_v17 = vpack.c.bf16 %v5712_v63, %v5711_v29  ;;  %v5678_v61 = vld [vmem:[%s8948_s23 + $0xe8] sm:$0xff]  ;;  %v7303_v59 = vpack.c.bf16 %v5660_v57, %v5659_v23  ;;  %v5661_v63 = vld [vmem:[%s8948_s23 + $0x60] sm:$0xff] }
0x3390   :  { %v5754_v7 = vcombine.high %v5752_v6, %v5752_v6  ;;  %v7305_v29 = vpack.c.bf16 %v5678_v61, %v5677_v60  ;;  %v7307_v3 = vpack.c.bf16 %v5662_v1, %v5661_v63  ;;  %v6272_v23 = vld [vmem:[#allocation10] ss:$0 sm:$0xff] }
0x3391   :  { %7342 = vmatprep.subr.bf16.mxu0 %v7341_v17  ;;  %v5753_v34 = vcombine.high %v8773_v0, %v8773_v0  ;;  %v5679_v17 = vld [vmem:[%s8948_s23 + $0xf0] sm:$0xff] }
0x3392   :  { %7344 = vmatpush3.bf16.msra.mxu0 %v7343_v4  ;;  %5901 = vmatprep.mubr.f32.mxu0 %v5754_v7  ;;  %v7309_v4 = vpack.c.bf16 %v5680_v2, %v5679_v17  ;;  %v5664_v7 = vld [vmem:[%s8948_s23 + $0x78] sm:$0xff] }
0x3393   :  { %7369 = vmatprep.subr.bf16.mxu0 %v7832_v38 }
0x3395   :  { %5902 = vmatmul.mubr.f32.vlgmr.msra.gmra.mrb[68].mxu0 %v5752_v6  ;;  %v5663_v6 = vld [vmem:[%s8948_s23 + $0x70] sm:$0xff] }
0x3396   :  { %7070 = vmatprep.mubr.msk.f32.mxu0 %vm7826_vm3, %v7825_v18 }
0x3418   :  { %v5524_v21 = vpop.xlane.xlu0 %5523 }
0x3419   :  { %v5528_v8 = vmul.f32 0.03125, %v5524_v21  ;;  %v7311_v21 = vpack.c.bf16 %v5664_v7, %v5663_v6 }
0x341b   :  { %v5530_v10 = vadd.f32 1e-05, %v5528_v8  ;;  %v5713_v8 = vld [vmem:[%s8948_s23 + $0x200] sm:$0xff] }
0x341c   :  { %v5527_v33 = vpop.xlane.xlu0 %5526 }
0x341d   :  { %7591 = vrsqrt.f32 %v5530_v10  ;;  %v5529_v11 = vmul.f32 0.03125, %v5527_v33  ;;  %v5714_v10 = vld [vmem:[%s8948_s23 + $0x208] sm:$0xff] }
0x341e   :  { %v7346_v33 = vpack.c.bf16 %v5714_v10, %v5713_v8 }
0x341f   :  { %v5531_v40 = vadd.f32 1e-05, %v5529_v11  ;;  %v5715_v11 = vld [vmem:[%s8948_s23 + $0x210] sm:$0xff] }
0x3421   :  { %7593 = vrsqrt.f32 %v5531_v40  ;;  %v5716_v40 = vld [vmem:[%s8948_s23 + $0x218] sm:$0xff] }
0x3427   :  { %v7592_v12 = vpop.eup %7591 }
0x3428   :  { %v5534_v13 = vmul.f32 %v7592_v12, %v8725_v58  ;;  %v7283_v58 = vpack.c.bf16 %v5650_v28, %v5649_v27  ;;  %v7349_v12 = vpack.c.bf16 %v5716_v40, %v5715_v11  ;;  %v5723_v27 = vld [vmem:[%s8948_s23 + $0x250] sm:$0xff]  ;;  %v5724_v28 = vld [vmem:[%s8948_s23 + $0x258] sm:$0xff] }
0x3429   :  { %v7361_v30 = vpack.c.bf16 %v5724_v28, %v5723_v27 }
0x342a   :  { %v5542_v14 = vmul.f32 %v6265_v47, %v5534_v13  ;;  %v5718_v13 = vld [vmem:[%s8948_s23 + $0x228] sm:$0xff] }
0x342b   :  { %v7594_v15 = vpop.eup %7593 }
0x342c   :  { %v5535_v20 = vmul.f32 %v7594_v15, %v8729_v62  ;;  %v5550_v22 = vadd.f32 %v6266_v25, %v5542_v14  ;;  %v5652_v62 = vld [vmem:[%s8948_s23 + $0x18] sm:$0xff]  ;;  %v5719_v14 = vld [vmem:[%s8948_s23 + $0x230] sm:$0xff] }
0x342d   :  { %v7287_v41 = vpack.c.bf16 %v5652_v62, %v5651_v37  ;;  %v6271_v37 = vld.sshfl [vmem:[%s8949_s20 + $0x8] sm:$0x3 pattern:$0x76325410] }
0x342e   :  { %v5543_v48 = vmul.f32 %v6265_v47, %v5535_v20  ;;  %7024 = vmatprep.mubr.msk.f32.mxu1 %vm414_vm2, %v5550_v22  ;;  %v5717_v47 = vld [vmem:[%s8948_s23 + $0x220] sm:$0xff]  ;;  %v5722_v20 = vld [vmem:[%s8948_s23 + $0x248] sm:$0xff] }
0x3430   :  { %v5551_v5 = vadd.f32 %v6266_v25, %v5543_v48  ;;  %v7352_v25 = vpack.c.bf16 %v5718_v13, %v5717_v47  ;;  %v5726_v48 = vld [vmem:[%s8948_s23 + $0x268] sm:$0xff] }
0x3432   :  { %7025 = vmatmul.mubr.msk.f32.vlgmr.msra.gmra.mrb[54].mxu1 %vm414_vm2, %v5551_v5  ;;  %v5728_v5 = vld [vmem:[%s8948_s23 + $0x278] sm:$0xff] }
0x3433   :  { %7284 = vmatpush3.bf16.msra.mxu1 %v7283_v58  ;;  %5831 = vmatprep.mubr.f32.mxu1 %v5753_v34  ;;  %v7364_v58 = vpack.c.bf16 %v5726_v48, %v5725_v32  ;;  %v5727_v34 = vld [vmem:[%s8948_s23 + $0x270] sm:$0xff] }
0x3434   :  { %7286 = vmatprep.subr.bf16.mxu1 %v7285_v36  ;;  %v7367_v36 = vpack.c.bf16 %v5728_v5, %v5727_v34 }
0x3437   :  { %7288 = vmatpush3.bf16.msra.mxu1 %v7287_v41  ;;  %v5978_v41 = vld [vmem:[%s8950_s26] sm:$0xff] }
0x3438   :  { %7290 = vmatprep.subr.bf16.mxu1 %v7289_v31  ;;  %v5979_v31 = vld [vmem:[%s8950_s26 + $0x8] sm:$0xff] }
0x3439   :  { %v7370_v43 = vpack.c.bf16 %v5979_v31, %v5978_v41 }
0x343b   :  { %7292 = vmatpush3.bf16.msra.mxu1 %v7291_v44  ;;  %7371 = vmatpush3.bf16.msra.mxu0 %v7370_v43  ;;  %v6267_v44 = vld [vmem:[#allocation11] ss:$0 sm:$0xff] }
0x343c   :  { %7294 = vmatprep.subr.bf16.mxu1 %v7293_v46  ;;  %7372 = vmatprep.subr.bf16.mxu0 %v7832_v38 }
0x343f   :  { %7296 = vmatpush3.bf16.msra.mxu1 %v7295_v52  ;;  %7374 = vmatpush3.bf16.msra.mxu0 %v7373_v45  ;;  %v6270_v52 = vld [vmem:[#allocation8] ss:$0 sm:$0xff] }
0x3440   :  { %7298 = vmatprep.subr.bf16.mxu1 %v7297_v53 }
0x3443   :  { %7300 = vmatpush3.bf16.msra.mxu1 %v7299_v56 }
0x3444   :  { %7302 = vmatprep.subr.bf16.mxu1 %v7301_v51 }
0x3447   :  { %7304 = vmatpush3.bf16.msra.mxu1 %v7303_v59 }
0x3448   :  { %7306 = vmatprep.subr.bf16.mxu1 %v7305_v29 }
0x344b   :  { %7308 = vmatpush3.bf16.msra.mxu1 %v7307_v3 }
0x344c   :  { %7310 = vmatprep.subr.bf16.mxu1 %v7309_v4 }
0x344f   :  { %7312 = vmatpush3.bf16.msra.mxu1 %v7311_v21 }
0x3450   :  { %7345 = vmatprep.subr.bf16.mxu1 %v7832_v38 }
0x3452   :  { %5832 = vmatmul.mubr.f32.vlgmr.msra.gmra.mrb[56].mxu1 %v8773_v0  ;;  %v5720_v0 = vld [vmem:[%s8948_s23 + $0x238] sm:$0xff] }
0x3453   :  { %7347 = vmatpush3.bf16.msra.mxu1 %v7346_v33  ;;  %7059 = vmatprep.mubr.msk.f32.mxu1 %vm7826_vm3, %v7825_v18  ;;  %v7355_v15 = vpack.c.bf16 %v5720_v0, %v5719_v14  ;;  %v5721_v18 = vld [vmem:[%s8948_s23 + $0x240] sm:$0xff] }
0x3454   :  { %7348 = vmatprep.subr.bf16.mxu1 %v7832_v38  ;;  %v7358_v22 = vpack.c.bf16 %v5722_v20, %v5721_v18 }
0x3457   :  { %7350 = vmatpush3.bf16.msra.mxu1 %v7349_v12 }
0x3458   :  { %7351 = vmatprep.subr.bf16.mxu1 %v7832_v38 }
0x345b   :  { %7353 = vmatpush3.bf16.msra.mxu1 %v7352_v25 }
0x345c   :  { %7354 = vmatprep.subr.bf16.mxu1 %v7832_v38 }
0x345f   :  { %7356 = vmatpush3.bf16.msra.mxu1 %v7355_v15 }
0x3460   :  { %7357 = vmatprep.subr.bf16.mxu1 %v7832_v38 }
0x3463   :  { %7359 = vmatpush3.bf16.msra.mxu1 %v7358_v22 }
0x3464   :  { %7360 = vmatprep.subr.bf16.mxu1 %v7832_v38 }
0x3467   :  { %7362 = vmatpush3.bf16.msra.mxu1 %v7361_v30 }
0x3468   :  { %7363 = vmatprep.subr.bf16.mxu1 %v7832_v38  ;;  %v6550_v62 = vpop.f32.mrb[68].mxu0 }
0x3469   :  { %v6551_v19 = vpop.f32.mrb[69].mxu0 }
0x346a   :  { %v6552_v39 = vadd.f32 %v6551_v19, %v6550_v62 }
0x346b   :  { %7365 = vmatpush3.bf16.msra.mxu1 %v7364_v58 }
0x346c   :  { %7366 = vmatprep.subr.bf16.mxu1 %v7832_v38 }
0x346f   :  { %7368 = vmatpush3.bf16.msra.mxu1 %v7367_v36 }
0x3472   :  { %7060 = vmatmul.mubr.f32.vlgmr.msra.gmra.mrb[58].mxu1 %v6271_v37 }
0x3505   :  { %v7026_v46 = vpop.f32.mrb[54].mxu1 }
0x3506   :  { %v5641_v16 = vadd.f32 %v7026_v46, %v6267_v44  ;;  %v5635_v24 = vpop.f32.mrb[55].mxu1 }
0x3507   :  { %v5636_v49 = vadd.f32 %v6267_v44, %v5635_v24 }
0x3508   :  { %5646 = vst.msk [vmem:[%s8118_s30 + $0x8] sm:$0xff] %vm5644_vm8, %v5641_v16 }
0x3509   :  { %5645 = vst.msk [vmem:[%s8118_s30] sm:$0xff] %vm5644_vm8, %v5636_v49  ;;  %s7732_s30 = scalar_lea.vmem %s6071_s28, 32 }
0x350a   :  { %p7733_p6 = scmp.ne.s32.totalorder %s6071_s28, %s7732_s30  ;;  %p7738_p8 = scmp.lt.s32.totalorder %s7732_s30, %s7732_s30 }
0x350c   :  { %p7739_p9 = por %p7738_p8, %p7737_p7 }
0x350e   :  { %p7740_p10 = pnand %p7739_p9, %p7733_p6 }
0x3525   :  { %v6515_v50 = vpop.f32.mrb[56].mxu1 }
0x3526   :  { %v6516_v53 = vpop.f32.mrb[57].mxu1 }
0x3527   :  { %v6517_v42 = vadd.f32 %v6516_v53, %v6515_v50 }
0x3529   :  { %v5834_v54 = vadd.f32 %v6517_v42, %v6270_v52 }
0x352b   :  { %v5904_v55 = vadd.f32 %v6552_v39, %v5834_v54 }
0x3545   :  { %v5973_v35 = vpop.f32.mrb[58].mxu1 }
0x3546   :  { %v5974_v38 = vadd.f32 %v5973_v35, %v5904_v55  ;;  %v7061_v56 = vpop.f32.mrb[59].mxu1 }
0x3548   :  { %v5977_v51 = vmax.f32 %v5974_v38, 0.0 }
0x354a   :  { %7071 = vmatmul.mubr.msk.f32.vlgmr.msra.gmra.mrb[70].mxu0 %vm414_vm2, %v5977_v51 }
0x361d   :  { %v6058_v57 = vpop.f32.mrb[70].mxu0 }
0x361e   :  { %v6059_v60 = vadd.f32 %v6272_v23, %v6058_v57  ;;  %v7072_v61 = vpop.f32.mrb[71].mxu0 }
0x3620   :  { %6063 = vst.msk [vmem:[#allocation13] sm:$0x3] %vm6062_vm9, %v6059_v60 }
0x3621   :  { %7743 = shalt.err (!%p7740_p10)
}
0x3622   :  { %s7744_s1 = scalar_lea.hbm %s8113_s5, 32 }
0x3623   :  { %p7745_p11 = scmp.ne.s32.totalorder %s8113_s5, %s7744_s1  ;;  %p7748_p12 = scmp.lt.u32.totalorder %s7744_s1, %s8113_s5 }
0x3625   :  { %p7750_p13 = pnand %p7748_p12, %p7745_p11 }
0x3627   :  { %7753 = shalt.err (!%p7750_p13)
}
0x3628   :  { %6073 = dma.vmem_to_hbm [thread:$0]  %s6071_s28, 32, %s8113_s5, [#allocation4]  }
0x3629   :  { %7762 = dma.done.wait [#allocation4], 32  }
0x362a   :  { %7763 = vsyncadd [#allocation4], 4294967264 }
0x362b   :  { %6081 = vsyncpa [#allocation3], 1 }
0x362c   :  { %6082 = vsyncpa [#allocation6], 1 }
0x362d   :  { %6083 = vsyncpa [#allocation9], 1 }
0x362e   :  { %6084 = vsyncpa [#allocation12], 1 }
0x362f   :  { %6085 = vsyncpa [#allocation4], 1 }

</bundles_post_ra>
